<compile_context>
chip_gen: v5e
topology: v5e:2x2
jax: 0.10.0
libtpu: 0.0.40
codegen_flags: <defaults>
</compile_context>

<pallas_src>
import functools

import jax
import jax.numpy as jnp
from jax.experimental import pallas as pl
from jax.experimental.pallas import tpu as pltpu


# ----------------------------------------------------------------------------
# Pallas kernels
# ----------------------------------------------------------------------------
def _flow_head_kernel(img_ref, w1_ref, b1_ref, w2_ref, b2_ref, o_ref, *, frame_w):
    """Fused im2col(3x3) + two-layer flow head on lane-dense [2, H, F*T*W] planes.

    Rows shift on sublanes, columns shift on lanes with a frame-boundary mask; the
    tiny contractions (18 -> hid -> 2) run on the VPU with SMEM scalar weights, so
    the [18, n_pix] patch matrix never round-trips through HBM.
    """
    ch, h, nl = img_ref.shape
    hid = b1_ref.shape[0]
    out_c = o_ref.shape[0]
    w = frame_w

    row = jax.lax.broadcasted_iota(jnp.int32, (h, nl), 0)
    lane = jax.lax.broadcasted_iota(jnp.int32, (h, nl), 1) % w

    def shifted(x, dy, dx):
        # tap[i, j] = x[i - dy, j - dx] with zero padding (per-frame along lanes)
        if dy != 0:
            x = jnp.roll(x, dy, axis=0)
            x = (jnp.where(row >= dy, x, 0.0) if dy > 0
                 else jnp.where(row <= h - 1 + dy, x, 0.0))
        if dx != 0:
            x = jnp.roll(x, dx, axis=1)
            x = (jnp.where(lane >= dx, x, 0.0) if dx > 0
                 else jnp.where(lane <= w - 1 + dx, x, 0.0))
        return x

    hidden = [jnp.full((h, nl), b1_ref[k], dtype=jnp.float32) for k in range(hid)]
    for ci in range(ch):
        xc = img_ref[ci]
        for di in range(3):
            for dj in range(3):
                tap = shifted(xc, 1 - di, 1 - dj)
                tidx = ci * 9 + di * 3 + dj
                for k in range(hid):
                    hidden[k] = hidden[k] + w1_ref[tidx, k] * tap
    hidden = [jnp.maximum(hk, 0.0) for hk in hidden]
    for oc in range(out_c):
        acc = jnp.full((h, nl), b2_ref[oc], dtype=jnp.float32)
        for k in range(hid):
            acc = acc + w2_ref[oc, k] * hidden[k]
        o_ref[oc] = acc


def _normal_sense_kernel(xr_ref, xi_ref, sr_ref, si_ref, m_ref,
                         f2c_ref, a2c_ref, dr_ref, di_ref,
                         oxr_ref, oxi_ref, st_ref):
    """Fused multicoil SENSE normal operator on one frame-aligned lane chunk:

        out = sum_c conj(s_c) * icFFT2( mask^2 * cFFT2( s_c * x ) )

    All coils are stacked into the M dimension ([pr_0; pi_0; pr_1; pi_1; ...]), so every
    DFT stage is a single MXU call with M = 2*H*C and a shared bf16 RHS.  The adjoint
    column-DFT reuses (dr, -di) via centered-DFT symmetry.
    """
    h, nl = xr_ref.shape
    c, _, w = sr_ref.shape
    reps = nl // w
    h2 = 2 * h

    xr = xr_ref[...]
    xi = xi_ref[...]

    # lane-broadcast the (untiled) coil maps once; reused in build & combine
    srt = [jnp.tile(sr_ref[ci], (1, reps)) for ci in range(c)]
    sit = [jnp.tile(si_ref[ci], (1, reps)) for ci in range(c)]

    # stacked [pr_c; pi_c] for all coils, written straight into bf16 VMEM scratch
    for ci in range(c):
        o = ci * h2
        st_ref[o:o + h, :] = (srt[ci] * xr - sit[ci] * xi).astype(st_ref.dtype)
        st_ref[o + h:o + h2, :] = (srt[ci] * xi + sit[ci] * xr).astype(st_ref.dtype)

    # forward row-DFT (all coils at once), then column-DFT with a shared RHS
    t = jnp.dot(f2c_ref[...], st_ref[...], preferred_element_type=jnp.float32)
    t16 = t.astype(dr_ref.dtype)
    ta = jnp.dot(t16, dr_ref[...], preferred_element_type=jnp.float32)
    tb = jnp.dot(t16, di_ref[...], preferred_element_type=jnp.float32)

    # A applies the mask once, AH applies it once -> mask^2, reuse scratch for [yr; yi]
    mm = m_ref[...] * m_ref[...]
    for ci in range(c):
        o = ci * h2
        st_ref[o:o + h, :] = ((ta[o:o + h] - tb[o + h:o + h2]) * mm).astype(st_ref.dtype)
        st_ref[o + h:o + h2, :] = ((tb[o:o + h] + ta[o + h:o + h2]) * mm).astype(st_ref.dtype)

    # adjoint row-DFT, then adjoint column-DFT: E = conj(D) -> reuse dr / di
    u = jnp.dot(a2c_ref[...], st_ref[...], preferred_element_type=jnp.float32)
    u16 = u.astype(dr_ref.dtype)
    ua = jnp.dot(u16, dr_ref[...], preferred_element_type=jnp.float32)
    ub = jnp.dot(u16, di_ref[...], preferred_element_type=jnp.float32)

    accr = jnp.zeros((h, nl), jnp.float32)
    acci = jnp.zeros((h, nl), jnp.float32)
    for ci in range(c):
        o = ci * h2
        zr = ua[o:o + h] + ub[o + h:o + h2]
        zi = ua[o + h:o + h2] - ub[o:o + h]
        accr = accr + srt[ci] * zr + sit[ci] * zi
        acci = acci + srt[ci] * zi - sit[ci] * zr
    oxr_ref[...] = accr
    oxi_ref[...] = acci


def _adj_sense_kernel(yr_ref, yi_ref, m_ref, sr_ref, si_ref,
                      a2c_ref, dr_ref, di_ref, oxr_ref, oxi_ref, st_ref):
    """Adjoint operator x = sum_c conj(s_c) * icFFT2( mask * y_c ), coil-stacked."""
    h, nl = m_ref.shape
    c, _, w = sr_ref.shape
    reps = nl // w
    h2 = 2 * h

    m = m_ref[...]
    for ci in range(c):
        o = ci * h2
        st_ref[o:o + h, :] = (m * yr_ref[ci]).astype(st_ref.dtype)
        st_ref[o + h:o + h2, :] = (m * yi_ref[ci]).astype(st_ref.dtype)

    u = jnp.dot(a2c_ref[...], st_ref[...], preferred_element_type=jnp.float32)
    u16 = u.astype(dr_ref.dtype)
    ua = jnp.dot(u16, dr_ref[...], preferred_element_type=jnp.float32)
    ub = jnp.dot(u16, di_ref[...], preferred_element_type=jnp.float32)

    accr = jnp.zeros((h, nl), jnp.float32)
    acci = jnp.zeros((h, nl), jnp.float32)
    for ci in range(c):
        o = ci * h2
        zr = ua[o:o + h] + ub[o + h:o + h2]
        zi = ua[o + h:o + h2] - ub[o:o + h]
        sr = jnp.tile(sr_ref[ci], (1, reps))
        si = jnp.tile(si_ref[ci], (1, reps))
        accr = accr + sr * zr + si * zi
        acci = acci + sr * zi - si * zr
    oxr_ref[...] = accr
    oxi_ref[...] = acci


# ----------------------------------------------------------------------------
# Pallas wrappers
# ----------------------------------------------------------------------------
def _chunk_lanes(n, w):
    """Largest lane chunk that is frame aligned and 128-lane aligned (megacore-friendly)."""
    if n > 128 and n % 128 == 0 and 128 % w == 0:
        return 128
    return n


def flow_head_pallas(planes, w1, b1, w2, b2, frame_w):
    ch, h, nl = planes.shape
    out_c = w2.shape[0]
    kern = functools.partial(_flow_head_kernel, frame_w=frame_w)
    smem = pl.BlockSpec(memory_space=pltpu.MemorySpace.SMEM)
    return pl.pallas_call(
        kern,
        out_shape=jax.ShapeDtypeStruct((out_c, h, nl), jnp.float32),
        grid_spec=pltpu.PrefetchScalarGridSpec(
            num_scalar_prefetch=0,
            grid=(1,),
            in_specs=[pl.BlockSpec((ch, h, nl), lambda i: (0, 0, 0)),
                      smem, smem, smem, smem],
            out_specs=pl.BlockSpec((out_c, h, nl), lambda i: (0, 0, 0))),
        compiler_params=pltpu.CompilerParams(dimension_semantics=("arbitrary",)),
    )(planes, w1, b1, w2, b2)


def normal_sense_pallas(xr, xi, sr, si, m, f2c, a2c, dr, di):
    h, n = xr.shape
    c, _, w = sr.shape
    cn = dr.shape[0]
    assert n % cn == 0
    nchunks = n // cn
    h2c = f2c.shape[0]

    plane = lambda: pl.BlockSpec((h, cn), lambda i: (0, i))
    const2 = lambda shp: pl.BlockSpec(shp, lambda i: (0, 0))
    const3 = lambda shp: pl.BlockSpec(shp, lambda i: (0, 0, 0))

    flops = nchunks * (4 * h2c * h2c * cn + 8 * h2c * cn * cn)
    bytes_accessed = ((5 * h * n + 2 * c * h * w) * 4
                      + (2 * h2c * h2c + 2 * cn * cn) * 2)
    return pl.pallas_call(
        _normal_sense_kernel,
        out_shape=(jax.ShapeDtypeStruct((h, n), jnp.float32),
                   jax.ShapeDtypeStruct((h, n), jnp.float32)),
        grid_spec=pltpu.PrefetchScalarGridSpec(
            num_scalar_prefetch=0,
            grid=(nchunks,),
            in_specs=[plane(), plane(),
                      const3((c, h, w)), const3((c, h, w)),
                      plane(),
                      const2((h2c, h2c)), const2((h2c, h2c)),
                      const2((cn, cn)), const2((cn, cn))],
            out_specs=[plane(), plane()],
            scratch_shapes=[pltpu.VMEM((h2c, cn), jnp.bfloat16)]),
        compiler_params=pltpu.CompilerParams(dimension_semantics=("parallel",)),
        cost_estimate=pl.CostEstimate(flops=flops, transcendentals=0,
                                      bytes_accessed=bytes_accessed),
    )(xr, xi, sr, si, m, f2c, a2c, dr, di)


def adj_sense_pallas(yr, yi, m, sr, si, a2c, dr, di):
    c, h, n = yr.shape
    _, _, w = sr.shape
    cn = dr.shape[0]
    assert n % cn == 0
    nchunks = n // cn
    h2c = a2c.shape[0]

    plane = lambda: pl.BlockSpec((h, cn), lambda i: (0, i))
    coil_plane = lambda: pl.BlockSpec((c, h, cn), lambda i: (0, 0, i))
    const2 = lambda shp: pl.BlockSpec(shp, lambda i: (0, 0))
    const3 = lambda shp: pl.BlockSpec(shp, lambda i: (0, 0, 0))

    return pl.pallas_call(
        _adj_sense_kernel,
        out_shape=(jax.ShapeDtypeStruct((h, n), jnp.float32),
                   jax.ShapeDtypeStruct((h, n), jnp.float32)),
        grid_spec=pltpu.PrefetchScalarGridSpec(
            num_scalar_prefetch=0,
            grid=(nchunks,),
            in_specs=[coil_plane(), coil_plane(),
                      plane(),
                      const3((c, h, w)), const3((c, h, w)),
                      const2((h2c, h2c)),
                      const2((cn, cn)), const2((cn, cn))],
            out_specs=[plane(), plane()],
            scratch_shapes=[pltpu.VMEM((h2c, cn), jnp.bfloat16)]),
        compiler_params=pltpu.CompilerParams(dimension_semantics=("parallel",)),
    )(yr, yi, m, sr, si, a2c, dr, di)


# ----------------------------------------------------------------------------
# JAX glue: warping (gather/scatter), centered-DFT matrices, CG
# ----------------------------------------------------------------------------
def centered_dft_matrix(n):
    """Matrix of fftshift(fft(ifftshift(.), norm='ortho')) along one axis."""
    eye = jnp.eye(n, dtype=jnp.complex64)
    fc = jnp.fft.fftshift(
        jnp.fft.fft(jnp.fft.ifftshift(eye, axes=0), axis=0, norm="ortho"), axes=0)
    return fc.astype(jnp.complex64)


def _stacked_complex(mat):
    """[[Re, -Im], [Im, Re]] real block form of a complex matrix."""
    mr, mi = jnp.real(mat), jnp.imag(mat)
    return jnp.block([[mr, -mi], [mi, mr]]).astype(jnp.float32)


def _warp_weights(flow, h, w):
    ii = jnp.arange(h, dtype=jnp.float32)[:, None]
    jj = jnp.arange(w, dtype=jnp.float32)[None, :]
    yy = ii + flow[..., 0]
    xx = jj + flow[..., 1]
    y0 = jnp.floor(yy)
    x0 = jnp.floor(xx)
    wy1 = yy - y0
    wx1 = xx - x0
    wy0 = 1.0 - wy1
    wx0 = 1.0 - wx1
    y0 = y0.astype(jnp.int32)
    x0 = x0.astype(jnp.int32)
    y0c = jnp.clip(y0, 0, h - 1)
    y1c = jnp.clip(y0 + 1, 0, h - 1)
    x0c = jnp.clip(x0, 0, w - 1)
    x1c = jnp.clip(x0 + 1, 0, w - 1)
    return (y0c, y1c, x0c, x1c, wy0, wy1, wx0, wx1)


def _warp_single(img, flow):
    h, w = img.shape
    y0c, y1c, x0c, x1c, wy0, wy1, wx0, wx1 = _warp_weights(flow, h, w)
    return ((wy0 * wx0) * img[y0c, x0c] + (wy0 * wx1) * img[y0c, x1c]
            + (wy1 * wx0) * img[y1c, x0c] + (wy1 * wx1) * img[y1c, x1c])


def _warp_adjoint_single(g, flow):
    h, w = g.shape
    y0c, y1c, x0c, x1c, wy0, wy1, wx0, wx1 = _warp_weights(flow, h, w)
    z = jnp.zeros((h, w), dtype=g.dtype)
    z = z.at[y0c, x0c].add((wy0 * wx0) * g)
    z = z.at[y0c, x1c].add((wy0 * wx1) * g)
    z = z.at[y1c, x0c].add((wy1 * wx0) * g)
    z = z.at[y1c, x1c].add((wy1 * wx1) * g)
    return z


# TODO(synk): the bilinear warp gather and its exact adjoint scatter stay in XLA (no clean
#             Pallas gather/scatter equivalent at this granularity); they dominate glue time.
_warp_all = jax.vmap(jax.vmap(_warp_single, in_axes=(None, 0)), in_axes=(0, 0))
_warp_adj_all = jax.vmap(jax.vmap(_warp_adjoint_single, in_axes=(0, 0)), in_axes=(0, 0))


def dcpm_motion(x0, y, mask, smaps, flow, lam=1e-12, max_iter=6):
    """DCPM: CG on (A^H A + lam I) x = A^H y + lam x0, with the multicoil motion op.

    A^H A (including warp / warp-adjoint) uses one fused coil-stacked Pallas normal-operator
    kernel per CG application; A^H y uses the adjoint-only kernel once.
    """
    f, h, w = x0.shape
    c = smaps.shape[0]
    t = flow.shape[1]
    b = f * t
    n = b * w
    assert h % 2 == 0 and w % 2 == 0  # centered-DFT symmetry (adjoint col-DFT = conj)

    # --- centered-DFT operator matrices (bf16, coil-stacked / chunk-sized) ----
    dft_h = centered_dft_matrix(h)
    dft_w = centered_dft_matrix(w)
    f2 = _stacked_complex(dft_h)                       # [2H, 2H] forward row-DFT
    a2 = _stacked_complex(jnp.conj(dft_h).T)           # [2H, 2H] adjoint row-DFT
    eye_c = jnp.eye(c, dtype=jnp.float32)
    f2c = jnp.kron(eye_c, f2).astype(jnp.bfloat16)     # [2HC, 2HC]
    a2c = jnp.kron(eye_c, a2).astype(jnp.bfloat16)

    cn = _chunk_lanes(n, w)                            # frame-aligned lane chunk
    eye_bc = jnp.eye(cn // w, dtype=jnp.complex64)
    d_blk = jnp.kron(eye_bc, dft_w.T)                  # [cn, cn] forward col-DFT (block diag)
    dr = jnp.real(d_blk).astype(jnp.bfloat16)
    di = jnp.imag(d_blk).astype(jnp.bfloat16)
    # adjoint col-DFT matrix is conj(d_blk) == (dr, -di): er/ei never materialized.

    # --- lane-dense planes: [.., H, B*W] --------------------------------------
    m_plane = jnp.transpose(mask, (1, 0, 2)).reshape(h, n).astype(jnp.float32)
    sr_s = jnp.real(smaps).astype(jnp.float32)         # [C, H, W] (lane-broadcast in-kernel)
    si_s = jnp.imag(smaps).astype(jnp.float32)

    def to_plane(img_b):                               # [B,H,W] -> [H, B*W]
        return jnp.transpose(img_b, (1, 0, 2)).reshape(h, n)

    def from_plane(pr, pi):                            # [H,B*W] re/im -> [B,H,W] complex
        z = (pr + 1j * pi).reshape(h, b, w)
        return jnp.transpose(z, (1, 0, 2))

    def normal_op(x):                                  # A^H A x  (with motion warping)
        xw = _warp_all(x, flow).reshape(b, h, w)
        xp = to_plane(xw)
        oxr, oxi = normal_sense_pallas(
            jnp.real(xp).astype(jnp.float32), jnp.imag(xp).astype(jnp.float32),
            sr_s, si_s, m_plane, f2c, a2c, dr, di)
        z = from_plane(oxr, oxi).reshape(f, t, h, w)
        return _warp_adj_all(z, flow).sum(axis=1)

    def AH(k):                                         # [C,F*T,H,W] complex -> [F,H,W]
        yr = jnp.transpose(jnp.real(k), (0, 2, 1, 3)).reshape(c, h, n).astype(jnp.float32)
        yi = jnp.transpose(jnp.imag(k), (0, 2, 1, 3)).reshape(c, h, n).astype(jnp.float32)
        oxr, oxi = adj_sense_pallas(yr, yi, m_plane, sr_s, si_s, a2c, dr, di)
        z = from_plane(oxr, oxi).reshape(f, t, h, w)
        return _warp_adj_all(z, flow).sum(axis=1)

    def M(p):
        return normal_op(p) + lam * p

    def cdot(a, bb):
        return jnp.real(jnp.sum(jnp.conj(a) * bb))

    rhs = AH(y) + lam * x0
    x = x0
    r = rhs - M(x)
    p = r
    rsold = cdot(r, r)
    for _ in range(max_iter):
        mp = M(p)
        alpha = rsold / (cdot(p, mp) + 1e-30)
        x = x + alpha * p
        r = r - alpha * mp
        rsnew = cdot(r, r)
        p = r + (rsnew / (rsold + 1e-30)) * p
        rsold = rsnew
    return x


# ----------------------------------------------------------------------------
# MocoRecon forward (JAX orchestration around the Pallas kernels)
# ----------------------------------------------------------------------------
def init_flow_params(key, hidden=8):
    k1, k2 = jax.random.split(key)
    return {
        "w1": 0.05 * jax.random.normal(k1, (2 * 9, hidden), dtype=jnp.float32),
        "b1": jnp.full((hidden,), 0.1, dtype=jnp.float32),
        "w2": 0.05 * jax.random.normal(k2, (hidden, 2), dtype=jnp.float32),
        "b2": jnp.zeros((2,), dtype=jnp.float32),
    }


@functools.partial(jax.jit, static_argnames=("recon_frames", "recon_neighbor_frames",
                                              "max_iter"))
def moco_recon_forward(params, init, volume, kspace, masks, smaps,
                       recon_frames, recon_neighbor_frames="all", max_iter=6):
    assert recon_neighbor_frames == "all"
    b0, t, h, w = volume.shape
    assert b0 == 1
    c = kspace.shape[1]
    f = len(recon_frames)
    frame_idx = jnp.array(recon_frames)

    init_sel = init[:, frame_idx]                       # [1, F, H, W] complex

    # ---- motion estimation (simplified GRAFT substitute) ----
    vol = jnp.abs(volume[0])                            # [T, H, W]
    im1 = jnp.broadcast_to(vol[frame_idx][:, None], (f, t, h, w))   # reference frame
    im2 = jnp.broadcast_to(vol[None], (f, t, h, w))                 # neighbor frames
    pairs = jnp.stack([im1, im2], axis=0)               # [2, F, T, H, W]
    planes = jnp.transpose(pairs, (0, 3, 1, 2, 4)).reshape(2, h, f * t * w)
    flow_planes = flow_head_pallas(planes, params["w1"], params["b1"],
                                   params["w2"].T, params["b2"], frame_w=w)
    flow_recon = jnp.transpose(flow_planes.reshape(2, h, f, t, w),
                               (2, 3, 1, 4, 0))          # [F, T, H, W, 2] channel-last
    flow_n2m_list = [jnp.transpose(flow_recon[i], (0, 3, 1, 2)) for i in range(f)]

    # recon_motion_detach (default True): stop gradients through the flow
    flow_recon = jax.lax.stop_gradient(flow_recon)
    center = t // 2
    flow_recon = flow_recon.at[:, center].set(0.0)
    # torch flow is (dx, dy); flip(-1) -> (dy, dx) = (row, col) offsets used by the warp
    flow_for_recon = jnp.flip(flow_recon, axis=-1)       # [F, T, H, W, 2]

    # ---- ReconDCPMMotion input expansion (recon_neighbor_frames == 'all') ----
    ksp6 = jnp.broadcast_to(kspace[:, :, None], (1, c, f, t, h, w))
    msk6 = jnp.broadcast_to(masks[:, :, None], (1, 1, f, t, h, w))
    smaps6 = smaps[:, :, None]

    y = ksp6[0].reshape(c, f * t, h, w)                  # [C, F*T, H, W] complex
    m = msk6[0, 0].reshape(f * t, h, w).astype(jnp.float32)
    s = smaps6[0, :, 0, 0]                               # [C, H, W] complex
    x0 = init_sel[0]                                     # [F, H, W] complex

    recon = dcpm_motion(x0, y, m, s, flow_for_recon, lam=1e-12, max_iter=max_iter)
    recon_im = recon[None]                               # [1, F, H, W] complex
    return recon_im, flow_n2m_list, flow_recon


# ----------------------------------------------------------------------------
# main
# ----------------------------------------------------------------------------
if __name__ == "__main__":
    key = jax.random.PRNGKey(0)
    keys = jax.random.split(key, 10)

    B0, C, T, H, W = 1, 4, 8, 16, 16
    recon_frames = (3, 4)

    volume = jnp.abs(jax.random.normal(keys[0], (B0, T, H, W), dtype=jnp.float32))
    init = (jax.random.normal(keys[1], (B0, T, H, W))
            + 1j * jax.random.normal(keys[2], (B0, T, H, W))).astype(jnp.complex64) * 0.1
    kspace = (jax.random.normal(keys[3], (B0, C, T, H, W))
              + 1j * jax.random.normal(keys[4], (B0, C, T, H, W))).astype(jnp.complex64)
    # phase-encode-line undersampling mask, broadcast across readout rows
    masks = (jax.random.uniform(keys[5], (B0, 1, T, 1, W)) > 0.4).astype(jnp.float32)
    masks = jnp.broadcast_to(masks, (B0, 1, T, H, W))
    smaps = (jax.random.normal(keys[6], (B0, C, 1, H, W))
             + 1j * jax.random.normal(keys[7], (B0, C, 1, H, W))).astype(jnp.complex64)
    smaps = smaps / jnp.sqrt(jnp.sum(jnp.abs(smaps) ** 2, axis=1, keepdims=True) + 1e-6)

    params = init_flow_params(keys[8])

    recon_im, flow_list, flow_recon = moco_recon_forward(
        params, init, volume, kspace, masks, smaps, recon_frames,
        recon_neighbor_frames="all", max_iter=6)
    (recon_im, flow_recon) = jax.block_until_ready((recon_im, flow_recon))

    assert recon_im.shape == (1, len(recon_frames), H, W)
    assert flow_recon.shape == (len(recon_frames), T, H, W, 2)
    assert bool(jnp.all(jnp.isfinite(jnp.real(recon_im))))
    assert bool(jnp.all(jnp.isfinite(jnp.imag(recon_im))))
    print("KERNEL_OK")
</pallas_src>

<mosaic_0001>
module attributes {stable_mosaic.version = 11 : i64} {
  func.func @_flow_head_kernel(%arg0: i32, %arg1: memref<2x16x256xf32, #tpu.memory_space<vmem>>, %arg2: memref<18x8xf32, #tpu.memory_space<smem>>, %arg3: memref<8xf32, #tpu.memory_space<smem>>, %arg4: memref<2x8xf32, #tpu.memory_space<smem>>, %arg5: memref<2xf32, #tpu.memory_space<smem>>, %arg6: memref<2x16x256xf32, #tpu.memory_space<vmem>>) attributes {dimension_semantics = [#tpu.dimension_semantics<arbitrary>], iteration_bounds = array<i64: 1>, scalar_prefetch = 0 : i64, scratch_operands = 0 : i64, tpu.core_type = #tpu.core_type<tc>, window_params = [{pipeline_mode = #tpu.pipeline_mode<synchronous>, transform_indices = @transform_0, window_bounds = array<i64: 2, 16, 256>}, {transform_indices = @transform_1, window_bounds = array<i64: 18, 8>}, {transform_indices = @transform_2, window_bounds = array<i64: 8>}, {transform_indices = @transform_3, window_bounds = array<i64: 2, 8>}, {transform_indices = @transform_4, window_bounds = array<i64: 2>}, {pipeline_mode = #tpu.pipeline_mode<synchronous>, transform_indices = @transform_5, window_bounds = array<i64: 2, 16, 256>}]} {
    %0 = tpu.iota {dimensions = array<i32: 0>} : vector<16x256xi32>
    %1 = tpu.iota {dimensions = array<i32: 1>} : vector<16x256xi32>
    %c16_i32 = arith.constant 16 : i32
    %c0_i32 = arith.constant 0 : i32
    %2 = arith.cmpi eq, %c16_i32, %c0_i32 : i32
    %c1_i32 = arith.constant 1 : i32
    %3 = arith.select %2, %c1_i32, %c16_i32 : i32
    %4 = vector.broadcast %3 : i32 to vector<16x256xi32>
    %5 = arith.remsi %1, %4 : vector<16x256xi32>
    %c0_i32_0 = arith.constant 0 : i32
    %6 = vector.broadcast %c0_i32_0 : i32 to vector<16x256xi32>
    %7 = arith.cmpi ne, %5, %6 : vector<16x256xi32>
    %c0_i32_1 = arith.constant 0 : i32
    %8 = vector.broadcast %c0_i32_1 : i32 to vector<16x256xi32>
    %9 = arith.cmpi slt, %5, %8 : vector<16x256xi32>
    %c0_i32_2 = arith.constant 0 : i32
    %10 = arith.cmpi slt, %3, %c0_i32_2 : i32
    %11 = vector.broadcast %10 : i1 to vector<16x256xi1>
    %12 = vector.broadcast %11 : vector<16x256xi1> to vector<16x256xi1>
    %13 = arith.xori %9, %12 : vector<16x256xi1>
    %14 = arith.andi %13, %7 : vector<16x256xi1>
    %15 = vector.broadcast %3 : i32 to vector<16x256xi32>
    %16 = arith.addi %5, %15 : vector<16x256xi32>
    %17 = arith.select %14, %16, %5 : vector<16x256xi1>, vector<16x256xi32>
    %c0 = arith.constant 0 : index
    %18 = memref.load %arg3[%c0] : memref<8xf32, #tpu.memory_space<smem>>
    %19 = vector.broadcast %18 : f32 to vector<16x256xf32>
    %c1 = arith.constant 1 : index
    %20 = memref.load %arg3[%c1] : memref<8xf32, #tpu.memory_space<smem>>
    %21 = vector.broadcast %20 : f32 to vector<16x256xf32>
    %c2 = arith.constant 2 : index
    %22 = memref.load %arg3[%c2] : memref<8xf32, #tpu.memory_space<smem>>
    %23 = vector.broadcast %22 : f32 to vector<16x256xf32>
    %c3 = arith.constant 3 : index
    %24 = memref.load %arg3[%c3] : memref<8xf32, #tpu.memory_space<smem>>
    %25 = vector.broadcast %24 : f32 to vector<16x256xf32>
    %c4 = arith.constant 4 : index
    %26 = memref.load %arg3[%c4] : memref<8xf32, #tpu.memory_space<smem>>
    %27 = vector.broadcast %26 : f32 to vector<16x256xf32>
    %c5 = arith.constant 5 : index
    %28 = memref.load %arg3[%c5] : memref<8xf32, #tpu.memory_space<smem>>
    %29 = vector.broadcast %28 : f32 to vector<16x256xf32>
    %c6 = arith.constant 6 : index
    %30 = memref.load %arg3[%c6] : memref<8xf32, #tpu.memory_space<smem>>
    %31 = vector.broadcast %30 : f32 to vector<16x256xf32>
    %c7 = arith.constant 7 : index
    %32 = memref.load %arg3[%c7] : memref<8xf32, #tpu.memory_space<smem>>
    %33 = vector.broadcast %32 : f32 to vector<16x256xf32>
    %c0_3 = arith.constant 0 : index
    %c0_4 = arith.constant 0 : index
    %c0_5 = arith.constant 0 : index
    %34 = vector.load %arg1[%c0_3, %c0_4, %c0_5] : memref<2x16x256xf32, #tpu.memory_space<vmem>>, vector<1x16x256xf32>
    %35 = vector.shape_cast %34 : vector<1x16x256xf32> to vector<16x256xf32>
    %36 = vector.extract_strided_slice %35 {offsets = [15, 0], sizes = [1, 256], strides = [1, 1]} : vector<16x256xf32> to vector<1x256xf32>
    %37 = vector.extract_strided_slice %35 {offsets = [0, 0], sizes = [15, 256], strides = [1, 1]} : vector<16x256xf32> to vector<15x256xf32>
    %38 = tpu.concatenate %36, %37 in 0 : vector<1x256xf32>, vector<15x256xf32> -> vector<16x256xf32>
    %c1_i32_6 = arith.constant 1 : i32
    %39 = vector.broadcast %c1_i32_6 : i32 to vector<16x256xi32>
    %40 = arith.cmpi sge, %0, %39 : vector<16x256xi32>
    %cst = arith.constant 0.000000e+00 : f32
    %41 = vector.broadcast %cst : f32 to vector<16x256xf32>
    %42 = arith.select %40, %38, %41 : vector<16x256xi1>, vector<16x256xf32>
    %43 = vector.extract_strided_slice %42 {offsets = [0, 255], sizes = [16, 1], strides = [1, 1]} : vector<16x256xf32> to vector<16x1xf32>
    %44 = vector.extract_strided_slice %42 {offsets = [0, 0], sizes = [16, 255], strides = [1, 1]} : vector<16x256xf32> to vector<16x255xf32>
    %45 = tpu.concatenate %43, %44 in 1 : vector<16x1xf32>, vector<16x255xf32> -> vector<16x256xf32>
    %c1_i32_7 = arith.constant 1 : i32
    %46 = vector.broadcast %c1_i32_7 : i32 to vector<16x256xi32>
    %47 = arith.cmpi sge, %17, %46 : vector<16x256xi32>
    %cst_8 = arith.constant 0.000000e+00 : f32
    %48 = vector.broadcast %cst_8 : f32 to vector<16x256xf32>
    %49 = arith.select %47, %45, %48 : vector<16x256xi1>, vector<16x256xf32>
    %c0_9 = arith.constant 0 : index
    %c0_10 = arith.constant 0 : index
    %50 = memref.load %arg2[%c0_9, %c0_10] : memref<18x8xf32, #tpu.memory_space<smem>>
    %51 = vector.broadcast %50 : f32 to vector<16x256xf32>
    %52 = arith.mulf %51, %49 : vector<16x256xf32>
    %53 = arith.addf %19, %52 : vector<16x256xf32>
    %c0_11 = arith.constant 0 : index
    %c1_12 = arith.constant 1 : index
    %54 = memref.load %arg2[%c0_11, %c1_12] : memref<18x8xf32, #tpu.memory_space<smem>>
    %55 = vector.broadcast %54 : f32 to vector<16x256xf32>
    %56 = arith.mulf %55, %49 : vector<16x256xf32>
    %57 = arith.addf %21, %56 : vector<16x256xf32>
    %c0_13 = arith.constant 0 : index
    %c2_14 = arith.constant 2 : index
    %58 = memref.load %arg2[%c0_13, %c2_14] : memref<18x8xf32, #tpu.memory_space<smem>>
    %59 = vector.broadcast %58 : f32 to vector<16x256xf32>
    %60 = arith.mulf %59, %49 : vector<16x256xf32>
    %61 = arith.addf %23, %60 : vector<16x256xf32>
    %c0_15 = arith.constant 0 : index
    %c3_16 = arith.constant 3 : index
    %62 = memref.load %arg2[%c0_15, %c3_16] : memref<18x8xf32, #tpu.memory_space<smem>>
    %63 = vector.broadcast %62 : f32 to vector<16x256xf32>
    %64 = arith.mulf %63, %49 : vector<16x256xf32>
    %65 = arith.addf %25, %64 : vector<16x256xf32>
    %c0_17 = arith.constant 0 : index
    %c4_18 = arith.constant 4 : index
    %66 = memref.load %arg2[%c0_17, %c4_18] : memref<18x8xf32, #tpu.memory_space<smem>>
    %67 = vector.broadcast %66 : f32 to vector<16x256xf32>
    %68 = arith.mulf %67, %49 : vector<16x256xf32>
    %69 = arith.addf %27, %68 : vector<16x256xf32>
    %c0_19 = arith.constant 0 : index
    %c5_20 = arith.constant 5 : index
    %70 = memref.load %arg2[%c0_19, %c5_20] : memref<18x8xf32, #tpu.memory_space<smem>>
    %71 = vector.broadcast %70 : f32 to vector<16x256xf32>
    %72 = arith.mulf %71, %49 : vector<16x256xf32>
    %73 = arith.addf %29, %72 : vector<16x256xf32>
    %c0_21 = arith.constant 0 : index
    %c6_22 = arith.constant 6 : index
    %74 = memref.load %arg2[%c0_21, %c6_22] : memref<18x8xf32, #tpu.memory_space<smem>>
    %75 = vector.broadcast %74 : f32 to vector<16x256xf32>
    %76 = arith.mulf %75, %49 : vector<16x256xf32>
    %77 = arith.addf %31, %76 : vector<16x256xf32>
    %c0_23 = arith.constant 0 : index
    %c7_24 = arith.constant 7 : index
    %78 = memref.load %arg2[%c0_23, %c7_24] : memref<18x8xf32, #tpu.memory_space<smem>>
    %79 = vector.broadcast %78 : f32 to vector<16x256xf32>
    %80 = arith.mulf %79, %49 : vector<16x256xf32>
    %81 = arith.addf %33, %80 : vector<16x256xf32>
    %82 = vector.extract_strided_slice %35 {offsets = [15, 0], sizes = [1, 256], strides = [1, 1]} : vector<16x256xf32> to vector<1x256xf32>
    %83 = vector.extract_strided_slice %35 {offsets = [0, 0], sizes = [15, 256], strides = [1, 1]} : vector<16x256xf32> to vector<15x256xf32>
    %84 = tpu.concatenate %82, %83 in 0 : vector<1x256xf32>, vector<15x256xf32> -> vector<16x256xf32>
    %c1_i32_25 = arith.constant 1 : i32
    %85 = vector.broadcast %c1_i32_25 : i32 to vector<16x256xi32>
    %86 = arith.cmpi sge, %0, %85 : vector<16x256xi32>
    %cst_26 = arith.constant 0.000000e+00 : f32
    %87 = vector.broadcast %cst_26 : f32 to vector<16x256xf32>
    %88 = arith.select %86, %84, %87 : vector<16x256xi1>, vector<16x256xf32>
    %c1_27 = arith.constant 1 : index
    %c0_28 = arith.constant 0 : index
    %89 = memref.load %arg2[%c1_27, %c0_28] : memref<18x8xf32, #tpu.memory_space<smem>>
    %90 = vector.broadcast %89 : f32 to vector<16x256xf32>
    %91 = arith.mulf %90, %88 : vector<16x256xf32>
    %92 = arith.addf %53, %91 : vector<16x256xf32>
    %c1_29 = arith.constant 1 : index
    %c1_30 = arith.constant 1 : index
    %93 = memref.load %arg2[%c1_29, %c1_30] : memref<18x8xf32, #tpu.memory_space<smem>>
    %94 = vector.broadcast %93 : f32 to vector<16x256xf32>
    %95 = arith.mulf %94, %88 : vector<16x256xf32>
    %96 = arith.addf %57, %95 : vector<16x256xf32>
    %c1_31 = arith.constant 1 : index
    %c2_32 = arith.constant 2 : index
    %97 = memref.load %arg2[%c1_31, %c2_32] : memref<18x8xf32, #tpu.memory_space<smem>>
    %98 = vector.broadcast %97 : f32 to vector<16x256xf32>
    %99 = arith.mulf %98, %88 : vector<16x256xf32>
    %100 = arith.addf %61, %99 : vector<16x256xf32>
    %c1_33 = arith.constant 1 : index
    %c3_34 = arith.constant 3 : index
    %101 = memref.load %arg2[%c1_33, %c3_34] : memref<18x8xf32, #tpu.memory_space<smem>>
    %102 = vector.broadcast %101 : f32 to vector<16x256xf32>
    %103 = arith.mulf %102, %88 : vector<16x256xf32>
    %104 = arith.addf %65, %103 : vector<16x256xf32>
    %c1_35 = arith.constant 1 : index
    %c4_36 = arith.constant 4 : index
    %105 = memref.load %arg2[%c1_35, %c4_36] : memref<18x8xf32, #tpu.memory_space<smem>>
    %106 = vector.broadcast %105 : f32 to vector<16x256xf32>
    %107 = arith.mulf %106, %88 : vector<16x256xf32>
    %108 = arith.addf %69, %107 : vector<16x256xf32>
    %c1_37 = arith.constant 1 : index
    %c5_38 = arith.constant 5 : index
    %109 = memref.load %arg2[%c1_37, %c5_38] : memref<18x8xf32, #tpu.memory_space<smem>>
    %110 = vector.broadcast %109 : f32 to vector<16x256xf32>
    %111 = arith.mulf %110, %88 : vector<16x256xf32>
    %112 = arith.addf %73, %111 : vector<16x256xf32>
    %c1_39 = arith.constant 1 : index
    %c6_40 = arith.constant 6 : index
    %113 = memref.load %arg2[%c1_39, %c6_40] : memref<18x8xf32, #tpu.memory_space<smem>>
    %114 = vector.broadcast %113 : f32 to vector<16x256xf32>
    %115 = arith.mulf %114, %88 : vector<16x256xf32>
    %116 = arith.addf %77, %115 : vector<16x256xf32>
    %c1_41 = arith.constant 1 : index
    %c7_42 = arith.constant 7 : index
    %117 = memref.load %arg2[%c1_41, %c7_42] : memref<18x8xf32, #tpu.memory_space<smem>>
    %118 = vector.broadcast %117 : f32 to vector<16x256xf32>
    %119 = arith.mulf %118, %88 : vector<16x256xf32>
    %120 = arith.addf %81, %119 : vector<16x256xf32>
    %121 = vector.extract_strided_slice %35 {offsets = [15, 0], sizes = [1, 256], strides = [1, 1]} : vector<16x256xf32> to vector<1x256xf32>
    %122 = vector.extract_strided_slice %35 {offsets = [0, 0], sizes = [15, 256], strides = [1, 1]} : vector<16x256xf32> to vector<15x256xf32>
    %123 = tpu.concatenate %121, %122 in 0 : vector<1x256xf32>, vector<15x256xf32> -> vector<16x256xf32>
    %c1_i32_43 = arith.constant 1 : i32
    %124 = vector.broadcast %c1_i32_43 : i32 to vector<16x256xi32>
    %125 = arith.cmpi sge, %0, %124 : vector<16x256xi32>
    %cst_44 = arith.constant 0.000000e+00 : f32
    %126 = vector.broadcast %cst_44 : f32 to vector<16x256xf32>
    %127 = arith.select %125, %123, %126 : vector<16x256xi1>, vector<16x256xf32>
    %128 = vector.extract_strided_slice %127 {offsets = [0, 1], sizes = [16, 255], strides = [1, 1]} : vector<16x256xf32> to vector<16x255xf32>
    %129 = vector.extract_strided_slice %127 {offsets = [0, 0], sizes = [16, 1], strides = [1, 1]} : vector<16x256xf32> to vector<16x1xf32>
    %130 = tpu.concatenate %128, %129 in 1 : vector<16x255xf32>, vector<16x1xf32> -> vector<16x256xf32>
    %c14_i32 = arith.constant 14 : i32
    %131 = vector.broadcast %c14_i32 : i32 to vector<16x256xi32>
    %132 = arith.cmpi sle, %17, %131 : vector<16x256xi32>
    %cst_45 = arith.constant 0.000000e+00 : f32
    %133 = vector.broadcast %cst_45 : f32 to vector<16x256xf32>
    %134 = arith.select %132, %130, %133 : vector<16x256xi1>, vector<16x256xf32>
    %c2_46 = arith.constant 2 : index
    %c0_47 = arith.constant 0 : index
    %135 = memref.load %arg2[%c2_46, %c0_47] : memref<18x8xf32, #tpu.memory_space<smem>>
    %136 = vector.broadcast %135 : f32 to vector<16x256xf32>
    %137 = arith.mulf %136, %134 : vector<16x256xf32>
    %138 = arith.addf %92, %137 : vector<16x256xf32>
    %c2_48 = arith.constant 2 : index
    %c1_49 = arith.constant 1 : index
    %139 = memref.load %arg2[%c2_48, %c1_49] : memref<18x8xf32, #tpu.memory_space<smem>>
    %140 = vector.broadcast %139 : f32 to vector<16x256xf32>
    %141 = arith.mulf %140, %134 : vector<16x256xf32>
    %142 = arith.addf %96, %141 : vector<16x256xf32>
    %c2_50 = arith.constant 2 : index
    %c2_51 = arith.constant 2 : index
    %143 = memref.load %arg2[%c2_50, %c2_51] : memref<18x8xf32, #tpu.memory_space<smem>>
    %144 = vector.broadcast %143 : f32 to vector<16x256xf32>
    %145 = arith.mulf %144, %134 : vector<16x256xf32>
    %146 = arith.addf %100, %145 : vector<16x256xf32>
    %c2_52 = arith.constant 2 : index
    %c3_53 = arith.constant 3 : index
    %147 = memref.load %arg2[%c2_52, %c3_53] : memref<18x8xf32, #tpu.memory_space<smem>>
    %148 = vector.broadcast %147 : f32 to vector<16x256xf32>
    %149 = arith.mulf %148, %134 : vector<16x256xf32>
    %150 = arith.addf %104, %149 : vector<16x256xf32>
    %c2_54 = arith.constant 2 : index
    %c4_55 = arith.constant 4 : index
    %151 = memref.load %arg2[%c2_54, %c4_55] : memref<18x8xf32, #tpu.memory_space<smem>>
    %152 = vector.broadcast %151 : f32 to vector<16x256xf32>
    %153 = arith.mulf %152, %134 : vector<16x256xf32>
    %154 = arith.addf %108, %153 : vector<16x256xf32>
    %c2_56 = arith.constant 2 : index
    %c5_57 = arith.constant 5 : index
    %155 = memref.load %arg2[%c2_56, %c5_57] : memref<18x8xf32, #tpu.memory_space<smem>>
    %156 = vector.broadcast %155 : f32 to vector<16x256xf32>
    %157 = arith.mulf %156, %134 : vector<16x256xf32>
    %158 = arith.addf %112, %157 : vector<16x256xf32>
    %c2_58 = arith.constant 2 : index
    %c6_59 = arith.constant 6 : index
    %159 = memref.load %arg2[%c2_58, %c6_59] : memref<18x8xf32, #tpu.memory_space<smem>>
    %160 = vector.broadcast %159 : f32 to vector<16x256xf32>
    %161 = arith.mulf %160, %134 : vector<16x256xf32>
    %162 = arith.addf %116, %161 : vector<16x256xf32>
    %c2_60 = arith.constant 2 : index
    %c7_61 = arith.constant 7 : index
    %163 = memref.load %arg2[%c2_60, %c7_61] : memref<18x8xf32, #tpu.memory_space<smem>>
    %164 = vector.broadcast %163 : f32 to vector<16x256xf32>
    %165 = arith.mulf %164, %134 : vector<16x256xf32>
    %166 = arith.addf %120, %165 : vector<16x256xf32>
    %167 = vector.extract_strided_slice %35 {offsets = [0, 255], sizes = [16, 1], strides = [1, 1]} : vector<16x256xf32> to vector<16x1xf32>
    %168 = vector.extract_strided_slice %35 {offsets = [0, 0], sizes = [16, 255], strides = [1, 1]} : vector<16x256xf32> to vector<16x255xf32>
    %169 = tpu.concatenate %167, %168 in 1 : vector<16x1xf32>, vector<16x255xf32> -> vector<16x256xf32>
    %c1_i32_62 = arith.constant 1 : i32
    %170 = vector.broadcast %c1_i32_62 : i32 to vector<16x256xi32>
    %171 = arith.cmpi sge, %17, %170 : vector<16x256xi32>
    %cst_63 = arith.constant 0.000000e+00 : f32
    %172 = vector.broadcast %cst_63 : f32 to vector<16x256xf32>
    %173 = arith.select %171, %169, %172 : vector<16x256xi1>, vector<16x256xf32>
    %c3_64 = arith.constant 3 : index
    %c0_65 = arith.constant 0 : index
    %174 = memref.load %arg2[%c3_64, %c0_65] : memref<18x8xf32, #tpu.memory_space<smem>>
    %175 = vector.broadcast %174 : f32 to vector<16x256xf32>
    %176 = arith.mulf %175, %173 : vector<16x256xf32>
    %177 = arith.addf %138, %176 : vector<16x256xf32>
    %c3_66 = arith.constant 3 : index
    %c1_67 = arith.constant 1 : index
    %178 = memref.load %arg2[%c3_66, %c1_67] : memref<18x8xf32, #tpu.memory_space<smem>>
    %179 = vector.broadcast %178 : f32 to vector<16x256xf32>
    %180 = arith.mulf %179, %173 : vector<16x256xf32>
    %181 = arith.addf %142, %180 : vector<16x256xf32>
    %c3_68 = arith.constant 3 : index
    %c2_69 = arith.constant 2 : index
    %182 = memref.load %arg2[%c3_68, %c2_69] : memref<18x8xf32, #tpu.memory_space<smem>>
    %183 = vector.broadcast %182 : f32 to vector<16x256xf32>
    %184 = arith.mulf %183, %173 : vector<16x256xf32>
    %185 = arith.addf %146, %184 : vector<16x256xf32>
    %c3_70 = arith.constant 3 : index
    %c3_71 = arith.constant 3 : index
    %186 = memref.load %arg2[%c3_70, %c3_71] : memref<18x8xf32, #tpu.memory_space<smem>>
    %187 = vector.broadcast %186 : f32 to vector<16x256xf32>
    %188 = arith.mulf %187, %173 : vector<16x256xf32>
    %189 = arith.addf %150, %188 : vector<16x256xf32>
    %c3_72 = arith.constant 3 : index
    %c4_73 = arith.constant 4 : index
    %190 = memref.load %arg2[%c3_72, %c4_73] : memref<18x8xf32, #tpu.memory_space<smem>>
    %191 = vector.broadcast %190 : f32 to vector<16x256xf32>
    %192 = arith.mulf %191, %173 : vector<16x256xf32>
    %193 = arith.addf %154, %192 : vector<16x256xf32>
    %c3_74 = arith.constant 3 : index
    %c5_75 = arith.constant 5 : index
    %194 = memref.load %arg2[%c3_74, %c5_75] : memref<18x8xf32, #tpu.memory_space<smem>>
    %195 = vector.broadcast %194 : f32 to vector<16x256xf32>
    %196 = arith.mulf %195, %173 : vector<16x256xf32>
    %197 = arith.addf %158, %196 : vector<16x256xf32>
    %c3_76 = arith.constant 3 : index
    %c6_77 = arith.constant 6 : index
    %198 = memref.load %arg2[%c3_76, %c6_77] : memref<18x8xf32, #tpu.memory_space<smem>>
    %199 = vector.broadcast %198 : f32 to vector<16x256xf32>
    %200 = arith.mulf %199, %173 : vector<16x256xf32>
    %201 = arith.addf %162, %200 : vector<16x256xf32>
    %c3_78 = arith.constant 3 : index
    %c7_79 = arith.constant 7 : index
    %202 = memref.load %arg2[%c3_78, %c7_79] : memref<18x8xf32, #tpu.memory_space<smem>>
    %203 = vector.broadcast %202 : f32 to vector<16x256xf32>
    %204 = arith.mulf %203, %173 : vector<16x256xf32>
    %205 = arith.addf %166, %204 : vector<16x256xf32>
    %c4_80 = arith.constant 4 : index
    %c0_81 = arith.constant 0 : index
    %206 = memref.load %arg2[%c4_80, %c0_81] : memref<18x8xf32, #tpu.memory_space<smem>>
    %207 = vector.broadcast %206 : f32 to vector<16x256xf32>
    %208 = arith.mulf %207, %35 : vector<16x256xf32>
    %209 = arith.addf %177, %208 : vector<16x256xf32>
    %c4_82 = arith.constant 4 : index
    %c1_83 = arith.constant 1 : index
    %210 = memref.load %arg2[%c4_82, %c1_83] : memref<18x8xf32, #tpu.memory_space<smem>>
    %211 = vector.broadcast %210 : f32 to vector<16x256xf32>
    %212 = arith.mulf %211, %35 : vector<16x256xf32>
    %213 = arith.addf %181, %212 : vector<16x256xf32>
    %c4_84 = arith.constant 4 : index
    %c2_85 = arith.constant 2 : index
    %214 = memref.load %arg2[%c4_84, %c2_85] : memref<18x8xf32, #tpu.memory_space<smem>>
    %215 = vector.broadcast %214 : f32 to vector<16x256xf32>
    %216 = arith.mulf %215, %35 : vector<16x256xf32>
    %217 = arith.addf %185, %216 : vector<16x256xf32>
    %c4_86 = arith.constant 4 : index
    %c3_87 = arith.constant 3 : index
    %218 = memref.load %arg2[%c4_86, %c3_87] : memref<18x8xf32, #tpu.memory_space<smem>>
    %219 = vector.broadcast %218 : f32 to vector<16x256xf32>
    %220 = arith.mulf %219, %35 : vector<16x256xf32>
    %221 = arith.addf %189, %220 : vector<16x256xf32>
    %c4_88 = arith.constant 4 : index
    %c4_89 = arith.constant 4 : index
    %222 = memref.load %arg2[%c4_88, %c4_89] : memref<18x8xf32, #tpu.memory_space<smem>>
    %223 = vector.broadcast %222 : f32 to vector<16x256xf32>
    %224 = arith.mulf %223, %35 : vector<16x256xf32>
    %225 = arith.addf %193, %224 : vector<16x256xf32>
    %c4_90 = arith.constant 4 : index
    %c5_91 = arith.constant 5 : index
    %226 = memref.load %arg2[%c4_90, %c5_91] : memref<18x8xf32, #tpu.memory_space<smem>>
    %227 = vector.broadcast %226 : f32 to vector<16x256xf32>
    %228 = arith.mulf %227, %35 : vector<16x256xf32>
    %229 = arith.addf %197, %228 : vector<16x256xf32>
    %c4_92 = arith.constant 4 : index
    %c6_93 = arith.constant 6 : index
    %230 = memref.load %arg2[%c4_92, %c6_93] : memref<18x8xf32, #tpu.memory_space<smem>>
    %231 = vector.broadcast %230 : f32 to vector<16x256xf32>
    %232 = arith.mulf %231, %35 : vector<16x256xf32>
    %233 = arith.addf %201, %232 : vector<16x256xf32>
    %c4_94 = arith.constant 4 : index
    %c7_95 = arith.constant 7 : index
    %234 = memref.load %arg2[%c4_94, %c7_95] : memref<18x8xf32, #tpu.memory_space<smem>>
    %235 = vector.broadcast %234 : f32 to vector<16x256xf32>
    %236 = arith.mulf %235, %35 : vector<16x256xf32>
    %237 = arith.addf %205, %236 : vector<16x256xf32>
    %238 = vector.extract_strided_slice %35 {offsets = [0, 1], sizes = [16, 255], strides = [1, 1]} : vector<16x256xf32> to vector<16x255xf32>
    %239 = vector.extract_strided_slice %35 {offsets = [0, 0], sizes = [16, 1], strides = [1, 1]} : vector<16x256xf32> to vector<16x1xf32>
    %240 = tpu.concatenate %238, %239 in 1 : vector<16x255xf32>, vector<16x1xf32> -> vector<16x256xf32>
    %c14_i32_96 = arith.constant 14 : i32
    %241 = vector.broadcast %c14_i32_96 : i32 to vector<16x256xi32>
    %242 = arith.cmpi sle, %17, %241 : vector<16x256xi32>
    %cst_97 = arith.constant 0.000000e+00 : f32
    %243 = vector.broadcast %cst_97 : f32 to vector<16x256xf32>
    %244 = arith.select %242, %240, %243 : vector<16x256xi1>, vector<16x256xf32>
    %c5_98 = arith.constant 5 : index
    %c0_99 = arith.constant 0 : index
    %245 = memref.load %arg2[%c5_98, %c0_99] : memref<18x8xf32, #tpu.memory_space<smem>>
    %246 = vector.broadcast %245 : f32 to vector<16x256xf32>
    %247 = arith.mulf %246, %244 : vector<16x256xf32>
    %248 = arith.addf %209, %247 : vector<16x256xf32>
    %c5_100 = arith.constant 5 : index
    %c1_101 = arith.constant 1 : index
    %249 = memref.load %arg2[%c5_100, %c1_101] : memref<18x8xf32, #tpu.memory_space<smem>>
    %250 = vector.broadcast %249 : f32 to vector<16x256xf32>
    %251 = arith.mulf %250, %244 : vector<16x256xf32>
    %252 = arith.addf %213, %251 : vector<16x256xf32>
    %c5_102 = arith.constant 5 : index
    %c2_103 = arith.constant 2 : index
    %253 = memref.load %arg2[%c5_102, %c2_103] : memref<18x8xf32, #tpu.memory_space<smem>>
    %254 = vector.broadcast %253 : f32 to vector<16x256xf32>
    %255 = arith.mulf %254, %244 : vector<16x256xf32>
    %256 = arith.addf %217, %255 : vector<16x256xf32>
    %c5_104 = arith.constant 5 : index
    %c3_105 = arith.constant 3 : index
    %257 = memref.load %arg2[%c5_104, %c3_105] : memref<18x8xf32, #tpu.memory_space<smem>>
    %258 = vector.broadcast %257 : f32 to vector<16x256xf32>
    %259 = arith.mulf %258, %244 : vector<16x256xf32>
    %260 = arith.addf %221, %259 : vector<16x256xf32>
    %c5_106 = arith.constant 5 : index
    %c4_107 = arith.constant 4 : index
    %261 = memref.load %arg2[%c5_106, %c4_107] : memref<18x8xf32, #tpu.memory_space<smem>>
    %262 = vector.broadcast %261 : f32 to vector<16x256xf32>
    %263 = arith.mulf %262, %244 : vector<16x256xf32>
    %264 = arith.addf %225, %263 : vector<16x256xf32>
    %c5_108 = arith.constant 5 : index
    %c5_109 = arith.constant 5 : index
    %265 = memref.load %arg2[%c5_108, %c5_109] : memref<18x8xf32, #tpu.memory_space<smem>>
    %266 = vector.broadcast %265 : f32 to vector<16x256xf32>
    %267 = arith.mulf %266, %244 : vector<16x256xf32>
    %268 = arith.addf %229, %267 : vector<16x256xf32>
    %c5_110 = arith.constant 5 : index
    %c6_111 = arith.constant 6 : index
    %269 = memref.load %arg2[%c5_110, %c6_111] : memref<18x8xf32, #tpu.memory_space<smem>>
    %270 = vector.broadcast %269 : f32 to vector<16x256xf32>
    %271 = arith.mulf %270, %244 : vector<16x256xf32>
    %272 = arith.addf %233, %271 : vector<16x256xf32>
    %c5_112 = arith.constant 5 : index
    %c7_113 = arith.constant 7 : index
    %273 = memref.load %arg2[%c5_112, %c7_113] : memref<18x8xf32, #tpu.memory_space<smem>>
    %274 = vector.broadcast %273 : f32 to vector<16x256xf32>
    %275 = arith.mulf %274, %244 : vector<16x256xf32>
    %276 = arith.addf %237, %275 : vector<16x256xf32>
    %277 = vector.extract_strided_slice %35 {offsets = [1, 0], sizes = [15, 256], strides = [1, 1]} : vector<16x256xf32> to vector<15x256xf32>
    %278 = vector.extract_strided_slice %35 {offsets = [0, 0], sizes = [1, 256], strides = [1, 1]} : vector<16x256xf32> to vector<1x256xf32>
    %279 = tpu.concatenate %277, %278 in 0 : vector<15x256xf32>, vector<1x256xf32> -> vector<16x256xf32>
    %c14_i32_114 = arith.constant 14 : i32
    %280 = vector.broadcast %c14_i32_114 : i32 to vector<16x256xi32>
    %281 = arith.cmpi sle, %0, %280 : vector<16x256xi32>
    %cst_115 = arith.constant 0.000000e+00 : f32
    %282 = vector.broadcast %cst_115 : f32 to vector<16x256xf32>
    %283 = arith.select %281, %279, %282 : vector<16x256xi1>, vector<16x256xf32>
    %284 = vector.extract_strided_slice %283 {offsets = [0, 255], sizes = [16, 1], strides = [1, 1]} : vector<16x256xf32> to vector<16x1xf32>
    %285 = vector.extract_strided_slice %283 {offsets = [0, 0], sizes = [16, 255], strides = [1, 1]} : vector<16x256xf32> to vector<16x255xf32>
    %286 = tpu.concatenate %284, %285 in 1 : vector<16x1xf32>, vector<16x255xf32> -> vector<16x256xf32>
    %c1_i32_116 = arith.constant 1 : i32
    %287 = vector.broadcast %c1_i32_116 : i32 to vector<16x256xi32>
    %288 = arith.cmpi sge, %17, %287 : vector<16x256xi32>
    %cst_117 = arith.constant 0.000000e+00 : f32
    %289 = vector.broadcast %cst_117 : f32 to vector<16x256xf32>
    %290 = arith.select %288, %286, %289 : vector<16x256xi1>, vector<16x256xf32>
    %c6_118 = arith.constant 6 : index
    %c0_119 = arith.constant 0 : index
    %291 = memref.load %arg2[%c6_118, %c0_119] : memref<18x8xf32, #tpu.memory_space<smem>>
    %292 = vector.broadcast %291 : f32 to vector<16x256xf32>
    %293 = arith.mulf %292, %290 : vector<16x256xf32>
    %294 = arith.addf %248, %293 : vector<16x256xf32>
    %c6_120 = arith.constant 6 : index
    %c1_121 = arith.constant 1 : index
    %295 = memref.load %arg2[%c6_120, %c1_121] : memref<18x8xf32, #tpu.memory_space<smem>>
    %296 = vector.broadcast %295 : f32 to vector<16x256xf32>
    %297 = arith.mulf %296, %290 : vector<16x256xf32>
    %298 = arith.addf %252, %297 : vector<16x256xf32>
    %c6_122 = arith.constant 6 : index
    %c2_123 = arith.constant 2 : index
    %299 = memref.load %arg2[%c6_122, %c2_123] : memref<18x8xf32, #tpu.memory_space<smem>>
    %300 = vector.broadcast %299 : f32 to vector<16x256xf32>
    %301 = arith.mulf %300, %290 : vector<16x256xf32>
    %302 = arith.addf %256, %301 : vector<16x256xf32>
    %c6_124 = arith.constant 6 : index
    %c3_125 = arith.constant 3 : index
    %303 = memref.load %arg2[%c6_124, %c3_125] : memref<18x8xf32, #tpu.memory_space<smem>>
    %304 = vector.broadcast %303 : f32 to vector<16x256xf32>
    %305 = arith.mulf %304, %290 : vector<16x256xf32>
    %306 = arith.addf %260, %305 : vector<16x256xf32>
    %c6_126 = arith.constant 6 : index
    %c4_127 = arith.constant 4 : index
    %307 = memref.load %arg2[%c6_126, %c4_127] : memref<18x8xf32, #tpu.memory_space<smem>>
    %308 = vector.broadcast %307 : f32 to vector<16x256xf32>
    %309 = arith.mulf %308, %290 : vector<16x256xf32>
    %310 = arith.addf %264, %309 : vector<16x256xf32>
    %c6_128 = arith.constant 6 : index
    %c5_129 = arith.constant 5 : index
    %311 = memref.load %arg2[%c6_128, %c5_129] : memref<18x8xf32, #tpu.memory_space<smem>>
    %312 = vector.broadcast %311 : f32 to vector<16x256xf32>
    %313 = arith.mulf %312, %290 : vector<16x256xf32>
    %314 = arith.addf %268, %313 : vector<16x256xf32>
    %c6_130 = arith.constant 6 : index
    %c6_131 = arith.constant 6 : index
    %315 = memref.load %arg2[%c6_130, %c6_131] : memref<18x8xf32, #tpu.memory_space<smem>>
    %316 = vector.broadcast %315 : f32 to vector<16x256xf32>
    %317 = arith.mulf %316, %290 : vector<16x256xf32>
    %318 = arith.addf %272, %317 : vector<16x256xf32>
    %c6_132 = arith.constant 6 : index
    %c7_133 = arith.constant 7 : index
    %319 = memref.load %arg2[%c6_132, %c7_133] : memref<18x8xf32, #tpu.memory_space<smem>>
    %320 = vector.broadcast %319 : f32 to vector<16x256xf32>
    %321 = arith.mulf %320, %290 : vector<16x256xf32>
    %322 = arith.addf %276, %321 : vector<16x256xf32>
    %323 = vector.extract_strided_slice %35 {offsets = [1, 0], sizes = [15, 256], strides = [1, 1]} : vector<16x256xf32> to vector<15x256xf32>
    %324 = vector.extract_strided_slice %35 {offsets = [0, 0], sizes = [1, 256], strides = [1, 1]} : vector<16x256xf32> to vector<1x256xf32>
    %325 = tpu.concatenate %323, %324 in 0 : vector<15x256xf32>, vector<1x256xf32> -> vector<16x256xf32>
    %c14_i32_134 = arith.constant 14 : i32
    %326 = vector.broadcast %c14_i32_134 : i32 to vector<16x256xi32>
    %327 = arith.cmpi sle, %0, %326 : vector<16x256xi32>
    %cst_135 = arith.constant 0.000000e+00 : f32
    %328 = vector.broadcast %cst_135 : f32 to vector<16x256xf32>
    %329 = arith.select %327, %325, %328 : vector<16x256xi1>, vector<16x256xf32>
    %c7_136 = arith.constant 7 : index
    %c0_137 = arith.constant 0 : index
    %330 = memref.load %arg2[%c7_136, %c0_137] : memref<18x8xf32, #tpu.memory_space<smem>>
    %331 = vector.broadcast %330 : f32 to vector<16x256xf32>
    %332 = arith.mulf %331, %329 : vector<16x256xf32>
    %333 = arith.addf %294, %332 : vector<16x256xf32>
    %c7_138 = arith.constant 7 : index
    %c1_139 = arith.constant 1 : index
    %334 = memref.load %arg2[%c7_138, %c1_139] : memref<18x8xf32, #tpu.memory_space<smem>>
    %335 = vector.broadcast %334 : f32 to vector<16x256xf32>
    %336 = arith.mulf %335, %329 : vector<16x256xf32>
    %337 = arith.addf %298, %336 : vector<16x256xf32>
    %c7_140 = arith.constant 7 : index
    %c2_141 = arith.constant 2 : index
    %338 = memref.load %arg2[%c7_140, %c2_141] : memref<18x8xf32, #tpu.memory_space<smem>>
    %339 = vector.broadcast %338 : f32 to vector<16x256xf32>
    %340 = arith.mulf %339, %329 : vector<16x256xf32>
    %341 = arith.addf %302, %340 : vector<16x256xf32>
    %c7_142 = arith.constant 7 : index
    %c3_143 = arith.constant 3 : index
    %342 = memref.load %arg2[%c7_142, %c3_143] : memref<18x8xf32, #tpu.memory_space<smem>>
    %343 = vector.broadcast %342 : f32 to vector<16x256xf32>
    %344 = arith.mulf %343, %329 : vector<16x256xf32>
    %345 = arith.addf %306, %344 : vector<16x256xf32>
    %c7_144 = arith.constant 7 : index
    %c4_145 = arith.constant 4 : index
    %346 = memref.load %arg2[%c7_144, %c4_145] : memref<18x8xf32, #tpu.memory_space<smem>>
    %347 = vector.broadcast %346 : f32 to vector<16x256xf32>
    %348 = arith.mulf %347, %329 : vector<16x256xf32>
    %349 = arith.addf %310, %348 : vector<16x256xf32>
    %c7_146 = arith.constant 7 : index
    %c5_147 = arith.constant 5 : index
    %350 = memref.load %arg2[%c7_146, %c5_147] : memref<18x8xf32, #tpu.memory_space<smem>>
    %351 = vector.broadcast %350 : f32 to vector<16x256xf32>
    %352 = arith.mulf %351, %329 : vector<16x256xf32>
    %353 = arith.addf %314, %352 : vector<16x256xf32>
    %c7_148 = arith.constant 7 : index
    %c6_149 = arith.constant 6 : index
    %354 = memref.load %arg2[%c7_148, %c6_149] : memref<18x8xf32, #tpu.memory_space<smem>>
    %355 = vector.broadcast %354 : f32 to vector<16x256xf32>
    %356 = arith.mulf %355, %329 : vector<16x256xf32>
    %357 = arith.addf %318, %356 : vector<16x256xf32>
    %c7_150 = arith.constant 7 : index
    %c7_151 = arith.constant 7 : index
    %358 = memref.load %arg2[%c7_150, %c7_151] : memref<18x8xf32, #tpu.memory_space<smem>>
    %359 = vector.broadcast %358 : f32 to vector<16x256xf32>
    %360 = arith.mulf %359, %329 : vector<16x256xf32>
    %361 = arith.addf %322, %360 : vector<16x256xf32>
    %362 = vector.extract_strided_slice %35 {offsets = [1, 0], sizes = [15, 256], strides = [1, 1]} : vector<16x256xf32> to vector<15x256xf32>
    %363 = vector.extract_strided_slice %35 {offsets = [0, 0], sizes = [1, 256], strides = [1, 1]} : vector<16x256xf32> to vector<1x256xf32>
    %364 = tpu.concatenate %362, %363 in 0 : vector<15x256xf32>, vector<1x256xf32> -> vector<16x256xf32>
    %c14_i32_152 = arith.constant 14 : i32
    %365 = vector.broadcast %c14_i32_152 : i32 to vector<16x256xi32>
    %366 = arith.cmpi sle, %0, %365 : vector<16x256xi32>
    %cst_153 = arith.constant 0.000000e+00 : f32
    %367 = vector.broadcast %cst_153 : f32 to vector<16x256xf32>
    %368 = arith.select %366, %364, %367 : vector<16x256xi1>, vector<16x256xf32>
    %369 = vector.extract_strided_slice %368 {offsets = [0, 1], sizes = [16, 255], strides = [1, 1]} : vector<16x256xf32> to vector<16x255xf32>
    %370 = vector.extract_strided_slice %368 {offsets = [0, 0], sizes = [16, 1], strides = [1, 1]} : vector<16x256xf32> to vector<16x1xf32>
    %371 = tpu.concatenate %369, %370 in 1 : vector<16x255xf32>, vector<16x1xf32> -> vector<16x256xf32>
    %c14_i32_154 = arith.constant 14 : i32
    %372 = vector.broadcast %c14_i32_154 : i32 to vector<16x256xi32>
    %373 = arith.cmpi sle, %17, %372 : vector<16x256xi32>
    %cst_155 = arith.constant 0.000000e+00 : f32
    %374 = vector.broadcast %cst_155 : f32 to vector<16x256xf32>
    %375 = arith.select %373, %371, %374 : vector<16x256xi1>, vector<16x256xf32>
    %c8 = arith.constant 8 : index
    %c0_156 = arith.constant 0 : index
    %376 = memref.load %arg2[%c8, %c0_156] : memref<18x8xf32, #tpu.memory_space<smem>>
    %377 = vector.broadcast %376 : f32 to vector<16x256xf32>
    %378 = arith.mulf %377, %375 : vector<16x256xf32>
    %379 = arith.addf %333, %378 : vector<16x256xf32>
    %c8_157 = arith.constant 8 : index
    %c1_158 = arith.constant 1 : index
    %380 = memref.load %arg2[%c8_157, %c1_158] : memref<18x8xf32, #tpu.memory_space<smem>>
    %381 = vector.broadcast %380 : f32 to vector<16x256xf32>
    %382 = arith.mulf %381, %375 : vector<16x256xf32>
    %383 = arith.addf %337, %382 : vector<16x256xf32>
    %c8_159 = arith.constant 8 : index
    %c2_160 = arith.constant 2 : index
    %384 = memref.load %arg2[%c8_159, %c2_160] : memref<18x8xf32, #tpu.memory_space<smem>>
    %385 = vector.broadcast %384 : f32 to vector<16x256xf32>
    %386 = arith.mulf %385, %375 : vector<16x256xf32>
    %387 = arith.addf %341, %386 : vector<16x256xf32>
    %c8_161 = arith.constant 8 : index
    %c3_162 = arith.constant 3 : index
    %388 = memref.load %arg2[%c8_161, %c3_162] : memref<18x8xf32, #tpu.memory_space<smem>>
    %389 = vector.broadcast %388 : f32 to vector<16x256xf32>
    %390 = arith.mulf %389, %375 : vector<16x256xf32>
    %391 = arith.addf %345, %390 : vector<16x256xf32>
    %c8_163 = arith.constant 8 : index
    %c4_164 = arith.constant 4 : index
    %392 = memref.load %arg2[%c8_163, %c4_164] : memref<18x8xf32, #tpu.memory_space<smem>>
    %393 = vector.broadcast %392 : f32 to vector<16x256xf32>
    %394 = arith.mulf %393, %375 : vector<16x256xf32>
    %395 = arith.addf %349, %394 : vector<16x256xf32>
    %c8_165 = arith.constant 8 : index
    %c5_166 = arith.constant 5 : index
    %396 = memref.load %arg2[%c8_165, %c5_166] : memref<18x8xf32, #tpu.memory_space<smem>>
    %397 = vector.broadcast %396 : f32 to vector<16x256xf32>
    %398 = arith.mulf %397, %375 : vector<16x256xf32>
    %399 = arith.addf %353, %398 : vector<16x256xf32>
    %c8_167 = arith.constant 8 : index
    %c6_168 = arith.constant 6 : index
    %400 = memref.load %arg2[%c8_167, %c6_168] : memref<18x8xf32, #tpu.memory_space<smem>>
    %401 = vector.broadcast %400 : f32 to vector<16x256xf32>
    %402 = arith.mulf %401, %375 : vector<16x256xf32>
    %403 = arith.addf %357, %402 : vector<16x256xf32>
    %c8_169 = arith.constant 8 : index
    %c7_170 = arith.constant 7 : index
    %404 = memref.load %arg2[%c8_169, %c7_170] : memref<18x8xf32, #tpu.memory_space<smem>>
    %405 = vector.broadcast %404 : f32 to vector<16x256xf32>
    %406 = arith.mulf %405, %375 : vector<16x256xf32>
    %407 = arith.addf %361, %406 : vector<16x256xf32>
    %c1_171 = arith.constant 1 : index
    %c0_172 = arith.constant 0 : index
    %c0_173 = arith.constant 0 : index
    %408 = vector.load %arg1[%c1_171, %c0_172, %c0_173] : memref<2x16x256xf32, #tpu.memory_space<vmem>>, vector<1x16x256xf32>
    %409 = vector.shape_cast %408 : vector<1x16x256xf32> to vector<16x256xf32>
    %410 = vector.extract_strided_slice %409 {offsets = [15, 0], sizes = [1, 256], strides = [1, 1]} : vector<16x256xf32> to vector<1x256xf32>
    %411 = vector.extract_strided_slice %409 {offsets = [0, 0], sizes = [15, 256], strides = [1, 1]} : vector<16x256xf32> to vector<15x256xf32>
    %412 = tpu.concatenate %410, %411 in 0 : vector<1x256xf32>, vector<15x256xf32> -> vector<16x256xf32>
    %c1_i32_174 = arith.constant 1 : i32
    %413 = vector.broadcast %c1_i32_174 : i32 to vector<16x256xi32>
    %414 = arith.cmpi sge, %0, %413 : vector<16x256xi32>
    %cst_175 = arith.constant 0.000000e+00 : f32
    %415 = vector.broadcast %cst_175 : f32 to vector<16x256xf32>
    %416 = arith.select %414, %412, %415 : vector<16x256xi1>, vector<16x256xf32>
    %417 = vector.extract_strided_slice %416 {offsets = [0, 255], sizes = [16, 1], strides = [1, 1]} : vector<16x256xf32> to vector<16x1xf32>
    %418 = vector.extract_strided_slice %416 {offsets = [0, 0], sizes = [16, 255], strides = [1, 1]} : vector<16x256xf32> to vector<16x255xf32>
    %419 = tpu.concatenate %417, %418 in 1 : vector<16x1xf32>, vector<16x255xf32> -> vector<16x256xf32>
    %c1_i32_176 = arith.constant 1 : i32
    %420 = vector.broadcast %c1_i32_176 : i32 to vector<16x256xi32>
    %421 = arith.cmpi sge, %17, %420 : vector<16x256xi32>
    %cst_177 = arith.constant 0.000000e+00 : f32
    %422 = vector.broadcast %cst_177 : f32 to vector<16x256xf32>
    %423 = arith.select %421, %419, %422 : vector<16x256xi1>, vector<16x256xf32>
    %c9 = arith.constant 9 : index
    %c0_178 = arith.constant 0 : index
    %424 = memref.load %arg2[%c9, %c0_178] : memref<18x8xf32, #tpu.memory_space<smem>>
    %425 = vector.broadcast %424 : f32 to vector<16x256xf32>
    %426 = arith.mulf %425, %423 : vector<16x256xf32>
    %427 = arith.addf %379, %426 : vector<16x256xf32>
    %c9_179 = arith.constant 9 : index
    %c1_180 = arith.constant 1 : index
    %428 = memref.load %arg2[%c9_179, %c1_180] : memref<18x8xf32, #tpu.memory_space<smem>>
    %429 = vector.broadcast %428 : f32 to vector<16x256xf32>
    %430 = arith.mulf %429, %423 : vector<16x256xf32>
    %431 = arith.addf %383, %430 : vector<16x256xf32>
    %c9_181 = arith.constant 9 : index
    %c2_182 = arith.constant 2 : index
    %432 = memref.load %arg2[%c9_181, %c2_182] : memref<18x8xf32, #tpu.memory_space<smem>>
    %433 = vector.broadcast %432 : f32 to vector<16x256xf32>
    %434 = arith.mulf %433, %423 : vector<16x256xf32>
    %435 = arith.addf %387, %434 : vector<16x256xf32>
    %c9_183 = arith.constant 9 : index
    %c3_184 = arith.constant 3 : index
    %436 = memref.load %arg2[%c9_183, %c3_184] : memref<18x8xf32, #tpu.memory_space<smem>>
    %437 = vector.broadcast %436 : f32 to vector<16x256xf32>
    %438 = arith.mulf %437, %423 : vector<16x256xf32>
    %439 = arith.addf %391, %438 : vector<16x256xf32>
    %c9_185 = arith.constant 9 : index
    %c4_186 = arith.constant 4 : index
    %440 = memref.load %arg2[%c9_185, %c4_186] : memref<18x8xf32, #tpu.memory_space<smem>>
    %441 = vector.broadcast %440 : f32 to vector<16x256xf32>
    %442 = arith.mulf %441, %423 : vector<16x256xf32>
    %443 = arith.addf %395, %442 : vector<16x256xf32>
    %c9_187 = arith.constant 9 : index
    %c5_188 = arith.constant 5 : index
    %444 = memref.load %arg2[%c9_187, %c5_188] : memref<18x8xf32, #tpu.memory_space<smem>>
    %445 = vector.broadcast %444 : f32 to vector<16x256xf32>
    %446 = arith.mulf %445, %423 : vector<16x256xf32>
    %447 = arith.addf %399, %446 : vector<16x256xf32>
    %c9_189 = arith.constant 9 : index
    %c6_190 = arith.constant 6 : index
    %448 = memref.load %arg2[%c9_189, %c6_190] : memref<18x8xf32, #tpu.memory_space<smem>>
    %449 = vector.broadcast %448 : f32 to vector<16x256xf32>
    %450 = arith.mulf %449, %423 : vector<16x256xf32>
    %451 = arith.addf %403, %450 : vector<16x256xf32>
    %c9_191 = arith.constant 9 : index
    %c7_192 = arith.constant 7 : index
    %452 = memref.load %arg2[%c9_191, %c7_192] : memref<18x8xf32, #tpu.memory_space<smem>>
    %453 = vector.broadcast %452 : f32 to vector<16x256xf32>
    %454 = arith.mulf %453, %423 : vector<16x256xf32>
    %455 = arith.addf %407, %454 : vector<16x256xf32>
    %456 = vector.extract_strided_slice %409 {offsets = [15, 0], sizes = [1, 256], strides = [1, 1]} : vector<16x256xf32> to vector<1x256xf32>
    %457 = vector.extract_strided_slice %409 {offsets = [0, 0], sizes = [15, 256], strides = [1, 1]} : vector<16x256xf32> to vector<15x256xf32>
    %458 = tpu.concatenate %456, %457 in 0 : vector<1x256xf32>, vector<15x256xf32> -> vector<16x256xf32>
    %c1_i32_193 = arith.constant 1 : i32
    %459 = vector.broadcast %c1_i32_193 : i32 to vector<16x256xi32>
    %460 = arith.cmpi sge, %0, %459 : vector<16x256xi32>
    %cst_194 = arith.constant 0.000000e+00 : f32
    %461 = vector.broadcast %cst_194 : f32 to vector<16x256xf32>
    %462 = arith.select %460, %458, %461 : vector<16x256xi1>, vector<16x256xf32>
    %c10 = arith.constant 10 : index
    %c0_195 = arith.constant 0 : index
    %463 = memref.load %arg2[%c10, %c0_195] : memref<18x8xf32, #tpu.memory_space<smem>>
    %464 = vector.broadcast %463 : f32 to vector<16x256xf32>
    %465 = arith.mulf %464, %462 : vector<16x256xf32>
    %466 = arith.addf %427, %465 : vector<16x256xf32>
    %c10_196 = arith.constant 10 : index
    %c1_197 = arith.constant 1 : index
    %467 = memref.load %arg2[%c10_196, %c1_197] : memref<18x8xf32, #tpu.memory_space<smem>>
    %468 = vector.broadcast %467 : f32 to vector<16x256xf32>
    %469 = arith.mulf %468, %462 : vector<16x256xf32>
    %470 = arith.addf %431, %469 : vector<16x256xf32>
    %c10_198 = arith.constant 10 : index
    %c2_199 = arith.constant 2 : index
    %471 = memref.load %arg2[%c10_198, %c2_199] : memref<18x8xf32, #tpu.memory_space<smem>>
    %472 = vector.broadcast %471 : f32 to vector<16x256xf32>
    %473 = arith.mulf %472, %462 : vector<16x256xf32>
    %474 = arith.addf %435, %473 : vector<16x256xf32>
    %c10_200 = arith.constant 10 : index
    %c3_201 = arith.constant 3 : index
    %475 = memref.load %arg2[%c10_200, %c3_201] : memref<18x8xf32, #tpu.memory_space<smem>>
    %476 = vector.broadcast %475 : f32 to vector<16x256xf32>
    %477 = arith.mulf %476, %462 : vector<16x256xf32>
    %478 = arith.addf %439, %477 : vector<16x256xf32>
    %c10_202 = arith.constant 10 : index
    %c4_203 = arith.constant 4 : index
    %479 = memref.load %arg2[%c10_202, %c4_203] : memref<18x8xf32, #tpu.memory_space<smem>>
    %480 = vector.broadcast %479 : f32 to vector<16x256xf32>
    %481 = arith.mulf %480, %462 : vector<16x256xf32>
    %482 = arith.addf %443, %481 : vector<16x256xf32>
    %c10_204 = arith.constant 10 : index
    %c5_205 = arith.constant 5 : index
    %483 = memref.load %arg2[%c10_204, %c5_205] : memref<18x8xf32, #tpu.memory_space<smem>>
    %484 = vector.broadcast %483 : f32 to vector<16x256xf32>
    %485 = arith.mulf %484, %462 : vector<16x256xf32>
    %486 = arith.addf %447, %485 : vector<16x256xf32>
    %c10_206 = arith.constant 10 : index
    %c6_207 = arith.constant 6 : index
    %487 = memref.load %arg2[%c10_206, %c6_207] : memref<18x8xf32, #tpu.memory_space<smem>>
    %488 = vector.broadcast %487 : f32 to vector<16x256xf32>
    %489 = arith.mulf %488, %462 : vector<16x256xf32>
    %490 = arith.addf %451, %489 : vector<16x256xf32>
    %c10_208 = arith.constant 10 : index
    %c7_209 = arith.constant 7 : index
    %491 = memref.load %arg2[%c10_208, %c7_209] : memref<18x8xf32, #tpu.memory_space<smem>>
    %492 = vector.broadcast %491 : f32 to vector<16x256xf32>
    %493 = arith.mulf %492, %462 : vector<16x256xf32>
    %494 = arith.addf %455, %493 : vector<16x256xf32>
    %495 = vector.extract_strided_slice %409 {offsets = [15, 0], sizes = [1, 256], strides = [1, 1]} : vector<16x256xf32> to vector<1x256xf32>
    %496 = vector.extract_strided_slice %409 {offsets = [0, 0], sizes = [15, 256], strides = [1, 1]} : vector<16x256xf32> to vector<15x256xf32>
    %497 = tpu.concatenate %495, %496 in 0 : vector<1x256xf32>, vector<15x256xf32> -> vector<16x256xf32>
    %c1_i32_210 = arith.constant 1 : i32
    %498 = vector.broadcast %c1_i32_210 : i32 to vector<16x256xi32>
    %499 = arith.cmpi sge, %0, %498 : vector<16x256xi32>
    %cst_211 = arith.constant 0.000000e+00 : f32
    %500 = vector.broadcast %cst_211 : f32 to vector<16x256xf32>
    %501 = arith.select %499, %497, %500 : vector<16x256xi1>, vector<16x256xf32>
    %502 = vector.extract_strided_slice %501 {offsets = [0, 1], sizes = [16, 255], strides = [1, 1]} : vector<16x256xf32> to vector<16x255xf32>
    %503 = vector.extract_strided_slice %501 {offsets = [0, 0], sizes = [16, 1], strides = [1, 1]} : vector<16x256xf32> to vector<16x1xf32>
    %504 = tpu.concatenate %502, %503 in 1 : vector<16x255xf32>, vector<16x1xf32> -> vector<16x256xf32>
    %c14_i32_212 = arith.constant 14 : i32
    %505 = vector.broadcast %c14_i32_212 : i32 to vector<16x256xi32>
    %506 = arith.cmpi sle, %17, %505 : vector<16x256xi32>
    %cst_213 = arith.constant 0.000000e+00 : f32
    %507 = vector.broadcast %cst_213 : f32 to vector<16x256xf32>
    %508 = arith.select %506, %504, %507 : vector<16x256xi1>, vector<16x256xf32>
    %c11 = arith.constant 11 : index
    %c0_214 = arith.constant 0 : index
    %509 = memref.load %arg2[%c11, %c0_214] : memref<18x8xf32, #tpu.memory_space<smem>>
    %510 = vector.broadcast %509 : f32 to vector<16x256xf32>
    %511 = arith.mulf %510, %508 : vector<16x256xf32>
    %512 = arith.addf %466, %511 : vector<16x256xf32>
    %c11_215 = arith.constant 11 : index
    %c1_216 = arith.constant 1 : index
    %513 = memref.load %arg2[%c11_215, %c1_216] : memref<18x8xf32, #tpu.memory_space<smem>>
    %514 = vector.broadcast %513 : f32 to vector<16x256xf32>
    %515 = arith.mulf %514, %508 : vector<16x256xf32>
    %516 = arith.addf %470, %515 : vector<16x256xf32>
    %c11_217 = arith.constant 11 : index
    %c2_218 = arith.constant 2 : index
    %517 = memref.load %arg2[%c11_217, %c2_218] : memref<18x8xf32, #tpu.memory_space<smem>>
    %518 = vector.broadcast %517 : f32 to vector<16x256xf32>
    %519 = arith.mulf %518, %508 : vector<16x256xf32>
    %520 = arith.addf %474, %519 : vector<16x256xf32>
    %c11_219 = arith.constant 11 : index
    %c3_220 = arith.constant 3 : index
    %521 = memref.load %arg2[%c11_219, %c3_220] : memref<18x8xf32, #tpu.memory_space<smem>>
    %522 = vector.broadcast %521 : f32 to vector<16x256xf32>
    %523 = arith.mulf %522, %508 : vector<16x256xf32>
    %524 = arith.addf %478, %523 : vector<16x256xf32>
    %c11_221 = arith.constant 11 : index
    %c4_222 = arith.constant 4 : index
    %525 = memref.load %arg2[%c11_221, %c4_222] : memref<18x8xf32, #tpu.memory_space<smem>>
    %526 = vector.broadcast %525 : f32 to vector<16x256xf32>
    %527 = arith.mulf %526, %508 : vector<16x256xf32>
    %528 = arith.addf %482, %527 : vector<16x256xf32>
    %c11_223 = arith.constant 11 : index
    %c5_224 = arith.constant 5 : index
    %529 = memref.load %arg2[%c11_223, %c5_224] : memref<18x8xf32, #tpu.memory_space<smem>>
    %530 = vector.broadcast %529 : f32 to vector<16x256xf32>
    %531 = arith.mulf %530, %508 : vector<16x256xf32>
    %532 = arith.addf %486, %531 : vector<16x256xf32>
    %c11_225 = arith.constant 11 : index
    %c6_226 = arith.constant 6 : index
    %533 = memref.load %arg2[%c11_225, %c6_226] : memref<18x8xf32, #tpu.memory_space<smem>>
    %534 = vector.broadcast %533 : f32 to vector<16x256xf32>
    %535 = arith.mulf %534, %508 : vector<16x256xf32>
    %536 = arith.addf %490, %535 : vector<16x256xf32>
    %c11_227 = arith.constant 11 : index
    %c7_228 = arith.constant 7 : index
    %537 = memref.load %arg2[%c11_227, %c7_228] : memref<18x8xf32, #tpu.memory_space<smem>>
    %538 = vector.broadcast %537 : f32 to vector<16x256xf32>
    %539 = arith.mulf %538, %508 : vector<16x256xf32>
    %540 = arith.addf %494, %539 : vector<16x256xf32>
    %541 = vector.extract_strided_slice %409 {offsets = [0, 255], sizes = [16, 1], strides = [1, 1]} : vector<16x256xf32> to vector<16x1xf32>
    %542 = vector.extract_strided_slice %409 {offsets = [0, 0], sizes = [16, 255], strides = [1, 1]} : vector<16x256xf32> to vector<16x255xf32>
    %543 = tpu.concatenate %541, %542 in 1 : vector<16x1xf32>, vector<16x255xf32> -> vector<16x256xf32>
    %c1_i32_229 = arith.constant 1 : i32
    %544 = vector.broadcast %c1_i32_229 : i32 to vector<16x256xi32>
    %545 = arith.cmpi sge, %17, %544 : vector<16x256xi32>
    %cst_230 = arith.constant 0.000000e+00 : f32
    %546 = vector.broadcast %cst_230 : f32 to vector<16x256xf32>
    %547 = arith.select %545, %543, %546 : vector<16x256xi1>, vector<16x256xf32>
    %c12 = arith.constant 12 : index
    %c0_231 = arith.constant 0 : index
    %548 = memref.load %arg2[%c12, %c0_231] : memref<18x8xf32, #tpu.memory_space<smem>>
    %549 = vector.broadcast %548 : f32 to vector<16x256xf32>
    %550 = arith.mulf %549, %547 : vector<16x256xf32>
    %551 = arith.addf %512, %550 : vector<16x256xf32>
    %c12_232 = arith.constant 12 : index
    %c1_233 = arith.constant 1 : index
    %552 = memref.load %arg2[%c12_232, %c1_233] : memref<18x8xf32, #tpu.memory_space<smem>>
    %553 = vector.broadcast %552 : f32 to vector<16x256xf32>
    %554 = arith.mulf %553, %547 : vector<16x256xf32>
    %555 = arith.addf %516, %554 : vector<16x256xf32>
    %c12_234 = arith.constant 12 : index
    %c2_235 = arith.constant 2 : index
    %556 = memref.load %arg2[%c12_234, %c2_235] : memref<18x8xf32, #tpu.memory_space<smem>>
    %557 = vector.broadcast %556 : f32 to vector<16x256xf32>
    %558 = arith.mulf %557, %547 : vector<16x256xf32>
    %559 = arith.addf %520, %558 : vector<16x256xf32>
    %c12_236 = arith.constant 12 : index
    %c3_237 = arith.constant 3 : index
    %560 = memref.load %arg2[%c12_236, %c3_237] : memref<18x8xf32, #tpu.memory_space<smem>>
    %561 = vector.broadcast %560 : f32 to vector<16x256xf32>
    %562 = arith.mulf %561, %547 : vector<16x256xf32>
    %563 = arith.addf %524, %562 : vector<16x256xf32>
    %c12_238 = arith.constant 12 : index
    %c4_239 = arith.constant 4 : index
    %564 = memref.load %arg2[%c12_238, %c4_239] : memref<18x8xf32, #tpu.memory_space<smem>>
    %565 = vector.broadcast %564 : f32 to vector<16x256xf32>
    %566 = arith.mulf %565, %547 : vector<16x256xf32>
    %567 = arith.addf %528, %566 : vector<16x256xf32>
    %c12_240 = arith.constant 12 : index
    %c5_241 = arith.constant 5 : index
    %568 = memref.load %arg2[%c12_240, %c5_241] : memref<18x8xf32, #tpu.memory_space<smem>>
    %569 = vector.broadcast %568 : f32 to vector<16x256xf32>
    %570 = arith.mulf %569, %547 : vector<16x256xf32>
    %571 = arith.addf %532, %570 : vector<16x256xf32>
    %c12_242 = arith.constant 12 : index
    %c6_243 = arith.constant 6 : index
    %572 = memref.load %arg2[%c12_242, %c6_243] : memref<18x8xf32, #tpu.memory_space<smem>>
    %573 = vector.broadcast %572 : f32 to vector<16x256xf32>
    %574 = arith.mulf %573, %547 : vector<16x256xf32>
    %575 = arith.addf %536, %574 : vector<16x256xf32>
    %c12_244 = arith.constant 12 : index
    %c7_245 = arith.constant 7 : index
    %576 = memref.load %arg2[%c12_244, %c7_245] : memref<18x8xf32, #tpu.memory_space<smem>>
    %577 = vector.broadcast %576 : f32 to vector<16x256xf32>
    %578 = arith.mulf %577, %547 : vector<16x256xf32>
    %579 = arith.addf %540, %578 : vector<16x256xf32>
    %c13 = arith.constant 13 : index
    %c0_246 = arith.constant 0 : index
    %580 = memref.load %arg2[%c13, %c0_246] : memref<18x8xf32, #tpu.memory_space<smem>>
    %581 = vector.broadcast %580 : f32 to vector<16x256xf32>
    %582 = arith.mulf %581, %409 : vector<16x256xf32>
    %583 = arith.addf %551, %582 : vector<16x256xf32>
    %c13_247 = arith.constant 13 : index
    %c1_248 = arith.constant 1 : index
    %584 = memref.load %arg2[%c13_247, %c1_248] : memref<18x8xf32, #tpu.memory_space<smem>>
    %585 = vector.broadcast %584 : f32 to vector<16x256xf32>
    %586 = arith.mulf %585, %409 : vector<16x256xf32>
    %587 = arith.addf %555, %586 : vector<16x256xf32>
    %c13_249 = arith.constant 13 : index
    %c2_250 = arith.constant 2 : index
    %588 = memref.load %arg2[%c13_249, %c2_250] : memref<18x8xf32, #tpu.memory_space<smem>>
    %589 = vector.broadcast %588 : f32 to vector<16x256xf32>
    %590 = arith.mulf %589, %409 : vector<16x256xf32>
    %591 = arith.addf %559, %590 : vector<16x256xf32>
    %c13_251 = arith.constant 13 : index
    %c3_252 = arith.constant 3 : index
    %592 = memref.load %arg2[%c13_251, %c3_252] : memref<18x8xf32, #tpu.memory_space<smem>>
    %593 = vector.broadcast %592 : f32 to vector<16x256xf32>
    %594 = arith.mulf %593, %409 : vector<16x256xf32>
    %595 = arith.addf %563, %594 : vector<16x256xf32>
    %c13_253 = arith.constant 13 : index
    %c4_254 = arith.constant 4 : index
    %596 = memref.load %arg2[%c13_253, %c4_254] : memref<18x8xf32, #tpu.memory_space<smem>>
    %597 = vector.broadcast %596 : f32 to vector<16x256xf32>
    %598 = arith.mulf %597, %409 : vector<16x256xf32>
    %599 = arith.addf %567, %598 : vector<16x256xf32>
    %c13_255 = arith.constant 13 : index
    %c5_256 = arith.constant 5 : index
    %600 = memref.load %arg2[%c13_255, %c5_256] : memref<18x8xf32, #tpu.memory_space<smem>>
    %601 = vector.broadcast %600 : f32 to vector<16x256xf32>
    %602 = arith.mulf %601, %409 : vector<16x256xf32>
    %603 = arith.addf %571, %602 : vector<16x256xf32>
    %c13_257 = arith.constant 13 : index
    %c6_258 = arith.constant 6 : index
    %604 = memref.load %arg2[%c13_257, %c6_258] : memref<18x8xf32, #tpu.memory_space<smem>>
    %605 = vector.broadcast %604 : f32 to vector<16x256xf32>
    %606 = arith.mulf %605, %409 : vector<16x256xf32>
    %607 = arith.addf %575, %606 : vector<16x256xf32>
    %c13_259 = arith.constant 13 : index
    %c7_260 = arith.constant 7 : index
    %608 = memref.load %arg2[%c13_259, %c7_260] : memref<18x8xf32, #tpu.memory_space<smem>>
    %609 = vector.broadcast %608 : f32 to vector<16x256xf32>
    %610 = arith.mulf %609, %409 : vector<16x256xf32>
    %611 = arith.addf %579, %610 : vector<16x256xf32>
    %612 = vector.extract_strided_slice %409 {offsets = [0, 1], sizes = [16, 255], strides = [1, 1]} : vector<16x256xf32> to vector<16x255xf32>
    %613 = vector.extract_strided_slice %409 {offsets = [0, 0], sizes = [16, 1], strides = [1, 1]} : vector<16x256xf32> to vector<16x1xf32>
    %614 = tpu.concatenate %612, %613 in 1 : vector<16x255xf32>, vector<16x1xf32> -> vector<16x256xf32>
    %c14_i32_261 = arith.constant 14 : i32
    %615 = vector.broadcast %c14_i32_261 : i32 to vector<16x256xi32>
    %616 = arith.cmpi sle, %17, %615 : vector<16x256xi32>
    %cst_262 = arith.constant 0.000000e+00 : f32
    %617 = vector.broadcast %cst_262 : f32 to vector<16x256xf32>
    %618 = arith.select %616, %614, %617 : vector<16x256xi1>, vector<16x256xf32>
    %c14 = arith.constant 14 : index
    %c0_263 = arith.constant 0 : index
    %619 = memref.load %arg2[%c14, %c0_263] : memref<18x8xf32, #tpu.memory_space<smem>>
    %620 = vector.broadcast %619 : f32 to vector<16x256xf32>
    %621 = arith.mulf %620, %618 : vector<16x256xf32>
    %622 = arith.addf %583, %621 : vector<16x256xf32>
    %c14_264 = arith.constant 14 : index
    %c1_265 = arith.constant 1 : index
    %623 = memref.load %arg2[%c14_264, %c1_265] : memref<18x8xf32, #tpu.memory_space<smem>>
    %624 = vector.broadcast %623 : f32 to vector<16x256xf32>
    %625 = arith.mulf %624, %618 : vector<16x256xf32>
    %626 = arith.addf %587, %625 : vector<16x256xf32>
    %c14_266 = arith.constant 14 : index
    %c2_267 = arith.constant 2 : index
    %627 = memref.load %arg2[%c14_266, %c2_267] : memref<18x8xf32, #tpu.memory_space<smem>>
    %628 = vector.broadcast %627 : f32 to vector<16x256xf32>
    %629 = arith.mulf %628, %618 : vector<16x256xf32>
    %630 = arith.addf %591, %629 : vector<16x256xf32>
    %c14_268 = arith.constant 14 : index
    %c3_269 = arith.constant 3 : index
    %631 = memref.load %arg2[%c14_268, %c3_269] : memref<18x8xf32, #tpu.memory_space<smem>>
    %632 = vector.broadcast %631 : f32 to vector<16x256xf32>
    %633 = arith.mulf %632, %618 : vector<16x256xf32>
    %634 = arith.addf %595, %633 : vector<16x256xf32>
    %c14_270 = arith.constant 14 : index
    %c4_271 = arith.constant 4 : index
    %635 = memref.load %arg2[%c14_270, %c4_271] : memref<18x8xf32, #tpu.memory_space<smem>>
    %636 = vector.broadcast %635 : f32 to vector<16x256xf32>
    %637 = arith.mulf %636, %618 : vector<16x256xf32>
    %638 = arith.addf %599, %637 : vector<16x256xf32>
    %c14_272 = arith.constant 14 : index
    %c5_273 = arith.constant 5 : index
    %639 = memref.load %arg2[%c14_272, %c5_273] : memref<18x8xf32, #tpu.memory_space<smem>>
    %640 = vector.broadcast %639 : f32 to vector<16x256xf32>
    %641 = arith.mulf %640, %618 : vector<16x256xf32>
    %642 = arith.addf %603, %641 : vector<16x256xf32>
    %c14_274 = arith.constant 14 : index
    %c6_275 = arith.constant 6 : index
    %643 = memref.load %arg2[%c14_274, %c6_275] : memref<18x8xf32, #tpu.memory_space<smem>>
    %644 = vector.broadcast %643 : f32 to vector<16x256xf32>
    %645 = arith.mulf %644, %618 : vector<16x256xf32>
    %646 = arith.addf %607, %645 : vector<16x256xf32>
    %c14_276 = arith.constant 14 : index
    %c7_277 = arith.constant 7 : index
    %647 = memref.load %arg2[%c14_276, %c7_277] : memref<18x8xf32, #tpu.memory_space<smem>>
    %648 = vector.broadcast %647 : f32 to vector<16x256xf32>
    %649 = arith.mulf %648, %618 : vector<16x256xf32>
    %650 = arith.addf %611, %649 : vector<16x256xf32>
    %651 = vector.extract_strided_slice %409 {offsets = [1, 0], sizes = [15, 256], strides = [1, 1]} : vector<16x256xf32> to vector<15x256xf32>
    %652 = vector.extract_strided_slice %409 {offsets = [0, 0], sizes = [1, 256], strides = [1, 1]} : vector<16x256xf32> to vector<1x256xf32>
    %653 = tpu.concatenate %651, %652 in 0 : vector<15x256xf32>, vector<1x256xf32> -> vector<16x256xf32>
    %c14_i32_278 = arith.constant 14 : i32
    %654 = vector.broadcast %c14_i32_278 : i32 to vector<16x256xi32>
    %655 = arith.cmpi sle, %0, %654 : vector<16x256xi32>
    %cst_279 = arith.constant 0.000000e+00 : f32
    %656 = vector.broadcast %cst_279 : f32 to vector<16x256xf32>
    %657 = arith.select %655, %653, %656 : vector<16x256xi1>, vector<16x256xf32>
    %658 = vector.extract_strided_slice %657 {offsets = [0, 255], sizes = [16, 1], strides = [1, 1]} : vector<16x256xf32> to vector<16x1xf32>
    %659 = vector.extract_strided_slice %657 {offsets = [0, 0], sizes = [16, 255], strides = [1, 1]} : vector<16x256xf32> to vector<16x255xf32>
    %660 = tpu.concatenate %658, %659 in 1 : vector<16x1xf32>, vector<16x255xf32> -> vector<16x256xf32>
    %c1_i32_280 = arith.constant 1 : i32
    %661 = vector.broadcast %c1_i32_280 : i32 to vector<16x256xi32>
    %662 = arith.cmpi sge, %17, %661 : vector<16x256xi32>
    %cst_281 = arith.constant 0.000000e+00 : f32
    %663 = vector.broadcast %cst_281 : f32 to vector<16x256xf32>
    %664 = arith.select %662, %660, %663 : vector<16x256xi1>, vector<16x256xf32>
    %c15 = arith.constant 15 : index
    %c0_282 = arith.constant 0 : index
    %665 = memref.load %arg2[%c15, %c0_282] : memref<18x8xf32, #tpu.memory_space<smem>>
    %666 = vector.broadcast %665 : f32 to vector<16x256xf32>
    %667 = arith.mulf %666, %664 : vector<16x256xf32>
    %668 = arith.addf %622, %667 : vector<16x256xf32>
    %c15_283 = arith.constant 15 : index
    %c1_284 = arith.constant 1 : index
    %669 = memref.load %arg2[%c15_283, %c1_284] : memref<18x8xf32, #tpu.memory_space<smem>>
    %670 = vector.broadcast %669 : f32 to vector<16x256xf32>
    %671 = arith.mulf %670, %664 : vector<16x256xf32>
    %672 = arith.addf %626, %671 : vector<16x256xf32>
    %c15_285 = arith.constant 15 : index
    %c2_286 = arith.constant 2 : index
    %673 = memref.load %arg2[%c15_285, %c2_286] : memref<18x8xf32, #tpu.memory_space<smem>>
    %674 = vector.broadcast %673 : f32 to vector<16x256xf32>
    %675 = arith.mulf %674, %664 : vector<16x256xf32>
    %676 = arith.addf %630, %675 : vector<16x256xf32>
    %c15_287 = arith.constant 15 : index
    %c3_288 = arith.constant 3 : index
    %677 = memref.load %arg2[%c15_287, %c3_288] : memref<18x8xf32, #tpu.memory_space<smem>>
    %678 = vector.broadcast %677 : f32 to vector<16x256xf32>
    %679 = arith.mulf %678, %664 : vector<16x256xf32>
    %680 = arith.addf %634, %679 : vector<16x256xf32>
    %c15_289 = arith.constant 15 : index
    %c4_290 = arith.constant 4 : index
    %681 = memref.load %arg2[%c15_289, %c4_290] : memref<18x8xf32, #tpu.memory_space<smem>>
    %682 = vector.broadcast %681 : f32 to vector<16x256xf32>
    %683 = arith.mulf %682, %664 : vector<16x256xf32>
    %684 = arith.addf %638, %683 : vector<16x256xf32>
    %c15_291 = arith.constant 15 : index
    %c5_292 = arith.constant 5 : index
    %685 = memref.load %arg2[%c15_291, %c5_292] : memref<18x8xf32, #tpu.memory_space<smem>>
    %686 = vector.broadcast %685 : f32 to vector<16x256xf32>
    %687 = arith.mulf %686, %664 : vector<16x256xf32>
    %688 = arith.addf %642, %687 : vector<16x256xf32>
    %c15_293 = arith.constant 15 : index
    %c6_294 = arith.constant 6 : index
    %689 = memref.load %arg2[%c15_293, %c6_294] : memref<18x8xf32, #tpu.memory_space<smem>>
    %690 = vector.broadcast %689 : f32 to vector<16x256xf32>
    %691 = arith.mulf %690, %664 : vector<16x256xf32>
    %692 = arith.addf %646, %691 : vector<16x256xf32>
    %c15_295 = arith.constant 15 : index
    %c7_296 = arith.constant 7 : index
    %693 = memref.load %arg2[%c15_295, %c7_296] : memref<18x8xf32, #tpu.memory_space<smem>>
    %694 = vector.broadcast %693 : f32 to vector<16x256xf32>
    %695 = arith.mulf %694, %664 : vector<16x256xf32>
    %696 = arith.addf %650, %695 : vector<16x256xf32>
    %697 = vector.extract_strided_slice %409 {offsets = [1, 0], sizes = [15, 256], strides = [1, 1]} : vector<16x256xf32> to vector<15x256xf32>
    %698 = vector.extract_strided_slice %409 {offsets = [0, 0], sizes = [1, 256], strides = [1, 1]} : vector<16x256xf32> to vector<1x256xf32>
    %699 = tpu.concatenate %697, %698 in 0 : vector<15x256xf32>, vector<1x256xf32> -> vector<16x256xf32>
    %c14_i32_297 = arith.constant 14 : i32
    %700 = vector.broadcast %c14_i32_297 : i32 to vector<16x256xi32>
    %701 = arith.cmpi sle, %0, %700 : vector<16x256xi32>
    %cst_298 = arith.constant 0.000000e+00 : f32
    %702 = vector.broadcast %cst_298 : f32 to vector<16x256xf32>
    %703 = arith.select %701, %699, %702 : vector<16x256xi1>, vector<16x256xf32>
    %c16 = arith.constant 16 : index
    %c0_299 = arith.constant 0 : index
    %704 = memref.load %arg2[%c16, %c0_299] : memref<18x8xf32, #tpu.memory_space<smem>>
    %705 = vector.broadcast %704 : f32 to vector<16x256xf32>
    %706 = arith.mulf %705, %703 : vector<16x256xf32>
    %707 = arith.addf %668, %706 : vector<16x256xf32>
    %c16_300 = arith.constant 16 : index
    %c1_301 = arith.constant 1 : index
    %708 = memref.load %arg2[%c16_300, %c1_301] : memref<18x8xf32, #tpu.memory_space<smem>>
    %709 = vector.broadcast %708 : f32 to vector<16x256xf32>
    %710 = arith.mulf %709, %703 : vector<16x256xf32>
    %711 = arith.addf %672, %710 : vector<16x256xf32>
    %c16_302 = arith.constant 16 : index
    %c2_303 = arith.constant 2 : index
    %712 = memref.load %arg2[%c16_302, %c2_303] : memref<18x8xf32, #tpu.memory_space<smem>>
    %713 = vector.broadcast %712 : f32 to vector<16x256xf32>
    %714 = arith.mulf %713, %703 : vector<16x256xf32>
    %715 = arith.addf %676, %714 : vector<16x256xf32>
    %c16_304 = arith.constant 16 : index
    %c3_305 = arith.constant 3 : index
    %716 = memref.load %arg2[%c16_304, %c3_305] : memref<18x8xf32, #tpu.memory_space<smem>>
    %717 = vector.broadcast %716 : f32 to vector<16x256xf32>
    %718 = arith.mulf %717, %703 : vector<16x256xf32>
    %719 = arith.addf %680, %718 : vector<16x256xf32>
    %c16_306 = arith.constant 16 : index
    %c4_307 = arith.constant 4 : index
    %720 = memref.load %arg2[%c16_306, %c4_307] : memref<18x8xf32, #tpu.memory_space<smem>>
    %721 = vector.broadcast %720 : f32 to vector<16x256xf32>
    %722 = arith.mulf %721, %703 : vector<16x256xf32>
    %723 = arith.addf %684, %722 : vector<16x256xf32>
    %c16_308 = arith.constant 16 : index
    %c5_309 = arith.constant 5 : index
    %724 = memref.load %arg2[%c16_308, %c5_309] : memref<18x8xf32, #tpu.memory_space<smem>>
    %725 = vector.broadcast %724 : f32 to vector<16x256xf32>
    %726 = arith.mulf %725, %703 : vector<16x256xf32>
    %727 = arith.addf %688, %726 : vector<16x256xf32>
    %c16_310 = arith.constant 16 : index
    %c6_311 = arith.constant 6 : index
    %728 = memref.load %arg2[%c16_310, %c6_311] : memref<18x8xf32, #tpu.memory_space<smem>>
    %729 = vector.broadcast %728 : f32 to vector<16x256xf32>
    %730 = arith.mulf %729, %703 : vector<16x256xf32>
    %731 = arith.addf %692, %730 : vector<16x256xf32>
    %c16_312 = arith.constant 16 : index
    %c7_313 = arith.constant 7 : index
    %732 = memref.load %arg2[%c16_312, %c7_313] : memref<18x8xf32, #tpu.memory_space<smem>>
    %733 = vector.broadcast %732 : f32 to vector<16x256xf32>
    %734 = arith.mulf %733, %703 : vector<16x256xf32>
    %735 = arith.addf %696, %734 : vector<16x256xf32>
    %736 = vector.extract_strided_slice %409 {offsets = [1, 0], sizes = [15, 256], strides = [1, 1]} : vector<16x256xf32> to vector<15x256xf32>
    %737 = vector.extract_strided_slice %409 {offsets = [0, 0], sizes = [1, 256], strides = [1, 1]} : vector<16x256xf32> to vector<1x256xf32>
    %738 = tpu.concatenate %736, %737 in 0 : vector<15x256xf32>, vector<1x256xf32> -> vector<16x256xf32>
    %c14_i32_314 = arith.constant 14 : i32
    %739 = vector.broadcast %c14_i32_314 : i32 to vector<16x256xi32>
    %740 = arith.cmpi sle, %0, %739 : vector<16x256xi32>
    %cst_315 = arith.constant 0.000000e+00 : f32
    %741 = vector.broadcast %cst_315 : f32 to vector<16x256xf32>
    %742 = arith.select %740, %738, %741 : vector<16x256xi1>, vector<16x256xf32>
    %743 = vector.extract_strided_slice %742 {offsets = [0, 1], sizes = [16, 255], strides = [1, 1]} : vector<16x256xf32> to vector<16x255xf32>
    %744 = vector.extract_strided_slice %742 {offsets = [0, 0], sizes = [16, 1], strides = [1, 1]} : vector<16x256xf32> to vector<16x1xf32>
    %745 = tpu.concatenate %743, %744 in 1 : vector<16x255xf32>, vector<16x1xf32> -> vector<16x256xf32>
    %c14_i32_316 = arith.constant 14 : i32
    %746 = vector.broadcast %c14_i32_316 : i32 to vector<16x256xi32>
    %747 = arith.cmpi sle, %17, %746 : vector<16x256xi32>
    %cst_317 = arith.constant 0.000000e+00 : f32
    %748 = vector.broadcast %cst_317 : f32 to vector<16x256xf32>
    %749 = arith.select %747, %745, %748 : vector<16x256xi1>, vector<16x256xf32>
    %c17 = arith.constant 17 : index
    %c0_318 = arith.constant 0 : index
    %750 = memref.load %arg2[%c17, %c0_318] : memref<18x8xf32, #tpu.memory_space<smem>>
    %751 = vector.broadcast %750 : f32 to vector<16x256xf32>
    %752 = arith.mulf %751, %749 : vector<16x256xf32>
    %753 = arith.addf %707, %752 : vector<16x256xf32>
    %c17_319 = arith.constant 17 : index
    %c1_320 = arith.constant 1 : index
    %754 = memref.load %arg2[%c17_319, %c1_320] : memref<18x8xf32, #tpu.memory_space<smem>>
    %755 = vector.broadcast %754 : f32 to vector<16x256xf32>
    %756 = arith.mulf %755, %749 : vector<16x256xf32>
    %757 = arith.addf %711, %756 : vector<16x256xf32>
    %c17_321 = arith.constant 17 : index
    %c2_322 = arith.constant 2 : index
    %758 = memref.load %arg2[%c17_321, %c2_322] : memref<18x8xf32, #tpu.memory_space<smem>>
    %759 = vector.broadcast %758 : f32 to vector<16x256xf32>
    %760 = arith.mulf %759, %749 : vector<16x256xf32>
    %761 = arith.addf %715, %760 : vector<16x256xf32>
    %c17_323 = arith.constant 17 : index
    %c3_324 = arith.constant 3 : index
    %762 = memref.load %arg2[%c17_323, %c3_324] : memref<18x8xf32, #tpu.memory_space<smem>>
    %763 = vector.broadcast %762 : f32 to vector<16x256xf32>
    %764 = arith.mulf %763, %749 : vector<16x256xf32>
    %765 = arith.addf %719, %764 : vector<16x256xf32>
    %c17_325 = arith.constant 17 : index
    %c4_326 = arith.constant 4 : index
    %766 = memref.load %arg2[%c17_325, %c4_326] : memref<18x8xf32, #tpu.memory_space<smem>>
    %767 = vector.broadcast %766 : f32 to vector<16x256xf32>
    %768 = arith.mulf %767, %749 : vector<16x256xf32>
    %769 = arith.addf %723, %768 : vector<16x256xf32>
    %c17_327 = arith.constant 17 : index
    %c5_328 = arith.constant 5 : index
    %770 = memref.load %arg2[%c17_327, %c5_328] : memref<18x8xf32, #tpu.memory_space<smem>>
    %771 = vector.broadcast %770 : f32 to vector<16x256xf32>
    %772 = arith.mulf %771, %749 : vector<16x256xf32>
    %773 = arith.addf %727, %772 : vector<16x256xf32>
    %c17_329 = arith.constant 17 : index
    %c6_330 = arith.constant 6 : index
    %774 = memref.load %arg2[%c17_329, %c6_330] : memref<18x8xf32, #tpu.memory_space<smem>>
    %775 = vector.broadcast %774 : f32 to vector<16x256xf32>
    %776 = arith.mulf %775, %749 : vector<16x256xf32>
    %777 = arith.addf %731, %776 : vector<16x256xf32>
    %c17_331 = arith.constant 17 : index
    %c7_332 = arith.constant 7 : index
    %778 = memref.load %arg2[%c17_331, %c7_332] : memref<18x8xf32, #tpu.memory_space<smem>>
    %779 = vector.broadcast %778 : f32 to vector<16x256xf32>
    %780 = arith.mulf %779, %749 : vector<16x256xf32>
    %781 = arith.addf %735, %780 : vector<16x256xf32>
    %cst_333 = arith.constant 0.000000e+00 : f32
    %782 = vector.broadcast %cst_333 : f32 to vector<16x256xf32>
    %783 = arith.maximumf %753, %782 : vector<16x256xf32>
    %cst_334 = arith.constant 0.000000e+00 : f32
    %784 = vector.broadcast %cst_334 : f32 to vector<16x256xf32>
    %785 = arith.maximumf %757, %784 : vector<16x256xf32>
    %cst_335 = arith.constant 0.000000e+00 : f32
    %786 = vector.broadcast %cst_335 : f32 to vector<16x256xf32>
    %787 = arith.maximumf %761, %786 : vector<16x256xf32>
    %cst_336 = arith.constant 0.000000e+00 : f32
    %788 = vector.broadcast %cst_336 : f32 to vector<16x256xf32>
    %789 = arith.maximumf %765, %788 : vector<16x256xf32>
    %cst_337 = arith.constant 0.000000e+00 : f32
    %790 = vector.broadcast %cst_337 : f32 to vector<16x256xf32>
    %791 = arith.maximumf %769, %790 : vector<16x256xf32>
    %cst_338 = arith.constant 0.000000e+00 : f32
    %792 = vector.broadcast %cst_338 : f32 to vector<16x256xf32>
    %793 = arith.maximumf %773, %792 : vector<16x256xf32>
    %cst_339 = arith.constant 0.000000e+00 : f32
    %794 = vector.broadcast %cst_339 : f32 to vector<16x256xf32>
    %795 = arith.maximumf %777, %794 : vector<16x256xf32>
    %cst_340 = arith.constant 0.000000e+00 : f32
    %796 = vector.broadcast %cst_340 : f32 to vector<16x256xf32>
    %797 = arith.maximumf %781, %796 : vector<16x256xf32>
    %c0_341 = arith.constant 0 : index
    %798 = memref.load %arg5[%c0_341] : memref<2xf32, #tpu.memory_space<smem>>
    %799 = vector.broadcast %798 : f32 to vector<16x256xf32>
    %c0_342 = arith.constant 0 : index
    %c0_343 = arith.constant 0 : index
    %800 = memref.load %arg4[%c0_342, %c0_343] : memref<2x8xf32, #tpu.memory_space<smem>>
    %801 = vector.broadcast %800 : f32 to vector<16x256xf32>
    %802 = arith.mulf %801, %783 : vector<16x256xf32>
    %803 = arith.addf %799, %802 : vector<16x256xf32>
    %c0_344 = arith.constant 0 : index
    %c1_345 = arith.constant 1 : index
    %804 = memref.load %arg4[%c0_344, %c1_345] : memref<2x8xf32, #tpu.memory_space<smem>>
    %805 = vector.broadcast %804 : f32 to vector<16x256xf32>
    %806 = arith.mulf %805, %785 : vector<16x256xf32>
    %807 = arith.addf %803, %806 : vector<16x256xf32>
    %c0_346 = arith.constant 0 : index
    %c2_347 = arith.constant 2 : index
    %808 = memref.load %arg4[%c0_346, %c2_347] : memref<2x8xf32, #tpu.memory_space<smem>>
    %809 = vector.broadcast %808 : f32 to vector<16x256xf32>
    %810 = arith.mulf %809, %787 : vector<16x256xf32>
    %811 = arith.addf %807, %810 : vector<16x256xf32>
    %c0_348 = arith.constant 0 : index
    %c3_349 = arith.constant 3 : index
    %812 = memref.load %arg4[%c0_348, %c3_349] : memref<2x8xf32, #tpu.memory_space<smem>>
    %813 = vector.broadcast %812 : f32 to vector<16x256xf32>
    %814 = arith.mulf %813, %789 : vector<16x256xf32>
    %815 = arith.addf %811, %814 : vector<16x256xf32>
    %c0_350 = arith.constant 0 : index
    %c4_351 = arith.constant 4 : index
    %816 = memref.load %arg4[%c0_350, %c4_351] : memref<2x8xf32, #tpu.memory_space<smem>>
    %817 = vector.broadcast %816 : f32 to vector<16x256xf32>
    %818 = arith.mulf %817, %791 : vector<16x256xf32>
    %819 = arith.addf %815, %818 : vector<16x256xf32>
    %c0_352 = arith.constant 0 : index
    %c5_353 = arith.constant 5 : index
    %820 = memref.load %arg4[%c0_352, %c5_353] : memref<2x8xf32, #tpu.memory_space<smem>>
    %821 = vector.broadcast %820 : f32 to vector<16x256xf32>
    %822 = arith.mulf %821, %793 : vector<16x256xf32>
    %823 = arith.addf %819, %822 : vector<16x256xf32>
    %c0_354 = arith.constant 0 : index
    %c6_355 = arith.constant 6 : index
    %824 = memref.load %arg4[%c0_354, %c6_355] : memref<2x8xf32, #tpu.memory_space<smem>>
    %825 = vector.broadcast %824 : f32 to vector<16x256xf32>
    %826 = arith.mulf %825, %795 : vector<16x256xf32>
    %827 = arith.addf %823, %826 : vector<16x256xf32>
    %c0_356 = arith.constant 0 : index
    %c7_357 = arith.constant 7 : index
    %828 = memref.load %arg4[%c0_356, %c7_357] : memref<2x8xf32, #tpu.memory_space<smem>>
    %829 = vector.broadcast %828 : f32 to vector<16x256xf32>
    %830 = arith.mulf %829, %797 : vector<16x256xf32>
    %831 = arith.addf %827, %830 : vector<16x256xf32>
    %c0_358 = arith.constant 0 : index
    %c0_359 = arith.constant 0 : index
    %c0_360 = arith.constant 0 : index
    %832 = vector.load %arg6[%c0_358, %c0_359, %c0_360] : memref<2x16x256xf32, #tpu.memory_space<vmem>>, vector<1x16x256xf32>
    %833 = vector.shape_cast %832 : vector<1x16x256xf32> to vector<16x256xf32>
    %834 = vector.shape_cast %831 : vector<16x256xf32> to vector<1x16x256xf32>
    tpu.vector_store %arg6[%c0_358, %c0_359, %c0_360], %834 {strides = array<i32>} : memref<2x16x256xf32, #tpu.memory_space<vmem>>, vector<1x16x256xf32>,
    %c1_361 = arith.constant 1 : index
    %835 = memref.load %arg5[%c1_361] : memref<2xf32, #tpu.memory_space<smem>>
    %836 = vector.broadcast %835 : f32 to vector<16x256xf32>
    %c1_362 = arith.constant 1 : index
    %c0_363 = arith.constant 0 : index
    %837 = memref.load %arg4[%c1_362, %c0_363] : memref<2x8xf32, #tpu.memory_space<smem>>
    %838 = vector.broadcast %837 : f32 to vector<16x256xf32>
    %839 = arith.mulf %838, %783 : vector<16x256xf32>
    %840 = arith.addf %836, %839 : vector<16x256xf32>
    %c1_364 = arith.constant 1 : index
    %c1_365 = arith.constant 1 : index
    %841 = memref.load %arg4[%c1_364, %c1_365] : memref<2x8xf32, #tpu.memory_space<smem>>
    %842 = vector.broadcast %841 : f32 to vector<16x256xf32>
    %843 = arith.mulf %842, %785 : vector<16x256xf32>
    %844 = arith.addf %840, %843 : vector<16x256xf32>
    %c1_366 = arith.constant 1 : index
    %c2_367 = arith.constant 2 : index
    %845 = memref.load %arg4[%c1_366, %c2_367] : memref<2x8xf32, #tpu.memory_space<smem>>
    %846 = vector.broadcast %845 : f32 to vector<16x256xf32>
    %847 = arith.mulf %846, %787 : vector<16x256xf32>
    %848 = arith.addf %844, %847 : vector<16x256xf32>
    %c1_368 = arith.constant 1 : index
    %c3_369 = arith.constant 3 : index
    %849 = memref.load %arg4[%c1_368, %c3_369] : memref<2x8xf32, #tpu.memory_space<smem>>
    %850 = vector.broadcast %849 : f32 to vector<16x256xf32>
    %851 = arith.mulf %850, %789 : vector<16x256xf32>
    %852 = arith.addf %848, %851 : vector<16x256xf32>
    %c1_370 = arith.constant 1 : index
    %c4_371 = arith.constant 4 : index
    %853 = memref.load %arg4[%c1_370, %c4_371] : memref<2x8xf32, #tpu.memory_space<smem>>
    %854 = vector.broadcast %853 : f32 to vector<16x256xf32>
    %855 = arith.mulf %854, %791 : vector<16x256xf32>
    %856 = arith.addf %852, %855 : vector<16x256xf32>
    %c1_372 = arith.constant 1 : index
    %c5_373 = arith.constant 5 : index
    %857 = memref.load %arg4[%c1_372, %c5_373] : memref<2x8xf32, #tpu.memory_space<smem>>
    %858 = vector.broadcast %857 : f32 to vector<16x256xf32>
    %859 = arith.mulf %858, %793 : vector<16x256xf32>
    %860 = arith.addf %856, %859 : vector<16x256xf32>
    %c1_374 = arith.constant 1 : index
    %c6_375 = arith.constant 6 : index
    %861 = memref.load %arg4[%c1_374, %c6_375] : memref<2x8xf32, #tpu.memory_space<smem>>
    %862 = vector.broadcast %861 : f32 to vector<16x256xf32>
    %863 = arith.mulf %862, %795 : vector<16x256xf32>
    %864 = arith.addf %860, %863 : vector<16x256xf32>
    %c1_376 = arith.constant 1 : index
    %c7_377 = arith.constant 7 : index
    %865 = memref.load %arg4[%c1_376, %c7_377] : memref<2x8xf32, #tpu.memory_space<smem>>
    %866 = vector.broadcast %865 : f32 to vector<16x256xf32>
    %867 = arith.mulf %866, %797 : vector<16x256xf32>
    %868 = arith.addf %864, %867 : vector<16x256xf32>
    %c1_378 = arith.constant 1 : index
    %c0_379 = arith.constant 0 : index
    %c0_380 = arith.constant 0 : index
    %869 = vector.load %arg6[%c1_378, %c0_379, %c0_380] : memref<2x16x256xf32, #tpu.memory_space<vmem>>, vector<1x16x256xf32>
    %870 = vector.shape_cast %869 : vector<1x16x256xf32> to vector<16x256xf32>
    %871 = vector.shape_cast %868 : vector<16x256xf32> to vector<1x16x256xf32>
    tpu.vector_store %arg6[%c1_378, %c0_379, %c0_380], %871 {strides = array<i32>} : memref<2x16x256xf32, #tpu.memory_space<vmem>>, vector<1x16x256xf32>,
    return
  }
  func.func @transform_0(%arg0: i32) -> (i32, i32, i32) {
    %c0_i32 = arith.constant 0 : i32
    %c0_i32_0 = arith.constant 0 : i32
    %c0_i32_1 = arith.constant 0 : i32
    %c0_i32_2 = arith.constant 0 : i32
    return %c0_i32, %c0_i32_0, %c0_i32_1 : i32, i32, i32
  }
  func.func @transform_1(%arg0: i32) -> (i32, i32) {
    %c0_i32 = arith.constant 0 : i32
    %c0_i32_0 = arith.constant 0 : i32
    %c0_i32_1 = arith.constant 0 : i32
    return %c0_i32, %c0_i32_0 : i32, i32
  }
  func.func @transform_2(%arg0: i32) -> i32 {
    %c0_i32 = arith.constant 0 : i32
    %c0_i32_0 = arith.constant 0 : i32
    return %c0_i32 : i32
  }
  func.func @transform_3(%arg0: i32) -> (i32, i32) {
    %c0_i32 = arith.constant 0 : i32
    %c0_i32_0 = arith.constant 0 : i32
    %c0_i32_1 = arith.constant 0 : i32
    return %c0_i32, %c0_i32_0 : i32, i32
  }
  func.func @transform_4(%arg0: i32) -> i32 {
    %c0_i32 = arith.constant 0 : i32
    %c0_i32_0 = arith.constant 0 : i32
    return %c0_i32 : i32
  }
  func.func @transform_5(%arg0: i32) -> (i32, i32, i32) {
    %c0_i32 = arith.constant 0 : i32
    %c0_i32_0 = arith.constant 0 : i32
    %c0_i32_1 = arith.constant 0 : i32
    %c0_i32_2 = arith.constant 0 : i32
    return %c0_i32, %c0_i32_0, %c0_i32_1 : i32, i32, i32
  }
}

module attributes {stable_mosaic.version = 11 : i64} {
  func.func @_adj_sense_kernel(%arg0: i32, %arg1: memref<4x16x128xf32, #tpu.memory_space<vmem>>, %arg2: memref<4x16x128xf32, #tpu.memory_space<vmem>>, %arg3: memref<16x128xf32, #tpu.memory_space<vmem>>, %arg4: memref<4x16x16xf32, #tpu.memory_space<vmem>>, %arg5: memref<4x16x16xf32, #tpu.memory_space<vmem>>, %arg6: memref<128x128xbf16, #tpu.memory_space<vmem>>, %arg7: memref<128x128xbf16, #tpu.memory_space<vmem>>, %arg8: memref<128x128xbf16, #tpu.memory_space<vmem>>, %arg9: memref<16x128xf32, #tpu.memory_space<vmem>>, %arg10: memref<16x128xf32, #tpu.memory_space<vmem>>, %arg11: memref<128x128xbf16, #tpu.memory_space<vmem>>) attributes {dimension_semantics = [#tpu.dimension_semantics<parallel>], iteration_bounds = array<i64: 2>, scalar_prefetch = 0 : i64, scratch_operands = 1 : i64, tpu.core_type = #tpu.core_type<tc>, window_params = [{transform_indices = @transform_0, window_bounds = array<i64: 4, 16, 128>}, {transform_indices = @transform_1, window_bounds = array<i64: 4, 16, 128>}, {transform_indices = @transform_2, window_bounds = array<i64: 16, 128>}, {pipeline_mode = #tpu.pipeline_mode<synchronous>, transform_indices = @transform_3, window_bounds = array<i64: 4, 16, 16>}, {pipeline_mode = #tpu.pipeline_mode<synchronous>, transform_indices = @transform_4, window_bounds = array<i64: 4, 16, 16>}, {pipeline_mode = #tpu.pipeline_mode<synchronous>, transform_indices = @transform_5, window_bounds = array<i64: 128, 128>}, {pipeline_mode = #tpu.pipeline_mode<synchronous>, transform_indices = @transform_6, window_bounds = array<i64: 128, 128>}, {pipeline_mode = #tpu.pipeline_mode<synchronous>, transform_indices = @transform_7, window_bounds = array<i64: 128, 128>}, {transform_indices = @transform_8, window_bounds = array<i64: 16, 128>}, {transform_indices = @transform_9, window_bounds = array<i64: 16, 128>}]} {
    %c0 = arith.constant 0 : index
    %c0_0 = arith.constant 0 : index
    %0 = vector.load %arg3[%c0, %c0_0] : memref<16x128xf32, #tpu.memory_space<vmem>>, vector<16x128xf32>
    %c0_1 = arith.constant 0 : index
    %c0_2 = arith.constant 0 : index
    %c0_3 = arith.constant 0 : index
    %1 = vector.load %arg1[%c0_1, %c0_2, %c0_3] : memref<4x16x128xf32, #tpu.memory_space<vmem>>, vector<1x16x128xf32>
    %2 = vector.shape_cast %1 : vector<1x16x128xf32> to vector<16x128xf32>
    %3 = arith.mulf %0, %2 : vector<16x128xf32>
    %4 = arith.truncf %3 : vector<16x128xf32> to vector<16x128xbf16>
    %c0_4 = arith.constant 0 : index
    %c0_5 = arith.constant 0 : index
    %5 = vector.load %arg11[%c0_4, %c0_5] : memref<128x128xbf16, #tpu.memory_space<vmem>>, vector<16x128xbf16>
    tpu.vector_store %arg11[%c0_4, %c0_5], %4 {strides = array<i32>} : memref<128x128xbf16, #tpu.memory_space<vmem>>, vector<16x128xbf16>,
    %c0_6 = arith.constant 0 : index
    %c0_7 = arith.constant 0 : index
    %c0_8 = arith.constant 0 : index
    %6 = vector.load %arg2[%c0_6, %c0_7, %c0_8] : memref<4x16x128xf32, #tpu.memory_space<vmem>>, vector<1x16x128xf32>
    %7 = vector.shape_cast %6 : vector<1x16x128xf32> to vector<16x128xf32>
    %8 = arith.mulf %0, %7 : vector<16x128xf32>
    %9 = arith.truncf %8 : vector<16x128xf32> to vector<16x128xbf16>
    %c16 = arith.constant 16 : index
    %c0_9 = arith.constant 0 : index
    %10 = vector.load %arg11[%c16, %c0_9] : memref<128x128xbf16, #tpu.memory_space<vmem>>, vector<16x128xbf16>
    tpu.vector_store %arg11[%c16, %c0_9], %9 {strides = array<i32>} : memref<128x128xbf16, #tpu.memory_space<vmem>>, vector<16x128xbf16>,
    %c1 = arith.constant 1 : index
    %c0_10 = arith.constant 0 : index
    %c0_11 = arith.constant 0 : index
    %11 = vector.load %arg1[%c1, %c0_10, %c0_11] : memref<4x16x128xf32, #tpu.memory_space<vmem>>, vector<1x16x128xf32>
    %12 = vector.shape_cast %11 : vector<1x16x128xf32> to vector<16x128xf32>
    %13 = arith.mulf %0, %12 : vector<16x128xf32>
    %14 = arith.truncf %13 : vector<16x128xf32> to vector<16x128xbf16>
    %c32 = arith.constant 32 : index
    %c0_12 = arith.constant 0 : index
    %15 = vector.load %arg11[%c32, %c0_12] : memref<128x128xbf16, #tpu.memory_space<vmem>>, vector<16x128xbf16>
    tpu.vector_store %arg11[%c32, %c0_12], %14 {strides = array<i32>} : memref<128x128xbf16, #tpu.memory_space<vmem>>, vector<16x128xbf16>,
    %c1_13 = arith.constant 1 : index
    %c0_14 = arith.constant 0 : index
    %c0_15 = arith.constant 0 : index
    %16 = vector.load %arg2[%c1_13, %c0_14, %c0_15] : memref<4x16x128xf32, #tpu.memory_space<vmem>>, vector<1x16x128xf32>
    %17 = vector.shape_cast %16 : vector<1x16x128xf32> to vector<16x128xf32>
    %18 = arith.mulf %0, %17 : vector<16x128xf32>
    %19 = arith.truncf %18 : vector<16x128xf32> to vector<16x128xbf16>
    %c48 = arith.constant 48 : index
    %c0_16 = arith.constant 0 : index
    %20 = vector.load %arg11[%c48, %c0_16] : memref<128x128xbf16, #tpu.memory_space<vmem>>, vector<16x128xbf16>
    tpu.vector_store %arg11[%c48, %c0_16], %19 {strides = array<i32>} : memref<128x128xbf16, #tpu.memory_space<vmem>>, vector<16x128xbf16>,
    %c2 = arith.constant 2 : index
    %c0_17 = arith.constant 0 : index
    %c0_18 = arith.constant 0 : index
    %21 = vector.load %arg1[%c2, %c0_17, %c0_18] : memref<4x16x128xf32, #tpu.memory_space<vmem>>, vector<1x16x128xf32>
    %22 = vector.shape_cast %21 : vector<1x16x128xf32> to vector<16x128xf32>
    %23 = arith.mulf %0, %22 : vector<16x128xf32>
    %24 = arith.truncf %23 : vector<16x128xf32> to vector<16x128xbf16>
    %c64 = arith.constant 64 : index
    %c0_19 = arith.constant 0 : index
    %25 = vector.load %arg11[%c64, %c0_19] : memref<128x128xbf16, #tpu.memory_space<vmem>>, vector<16x128xbf16>
    tpu.vector_store %arg11[%c64, %c0_19], %24 {strides = array<i32>} : memref<128x128xbf16, #tpu.memory_space<vmem>>, vector<16x128xbf16>,
    %c2_20 = arith.constant 2 : index
    %c0_21 = arith.constant 0 : index
    %c0_22 = arith.constant 0 : index
    %26 = vector.load %arg2[%c2_20, %c0_21, %c0_22] : memref<4x16x128xf32, #tpu.memory_space<vmem>>, vector<1x16x128xf32>
    %27 = vector.shape_cast %26 : vector<1x16x128xf32> to vector<16x128xf32>
    %28 = arith.mulf %0, %27 : vector<16x128xf32>
    %29 = arith.truncf %28 : vector<16x128xf32> to vector<16x128xbf16>
    %c80 = arith.constant 80 : index
    %c0_23 = arith.constant 0 : index
    %30 = vector.load %arg11[%c80, %c0_23] : memref<128x128xbf16, #tpu.memory_space<vmem>>, vector<16x128xbf16>
    tpu.vector_store %arg11[%c80, %c0_23], %29 {strides = array<i32>} : memref<128x128xbf16, #tpu.memory_space<vmem>>, vector<16x128xbf16>,
    %c3 = arith.constant 3 : index
    %c0_24 = arith.constant 0 : index
    %c0_25 = arith.constant 0 : index
    %31 = vector.load %arg1[%c3, %c0_24, %c0_25] : memref<4x16x128xf32, #tpu.memory_space<vmem>>, vector<1x16x128xf32>
    %32 = vector.shape_cast %31 : vector<1x16x128xf32> to vector<16x128xf32>
    %33 = arith.mulf %0, %32 : vector<16x128xf32>
    %34 = arith.truncf %33 : vector<16x128xf32> to vector<16x128xbf16>
    %c96 = arith.constant 96 : index
    %c0_26 = arith.constant 0 : index
    %35 = vector.load %arg11[%c96, %c0_26] : memref<128x128xbf16, #tpu.memory_space<vmem>>, vector<16x128xbf16>
    tpu.vector_store %arg11[%c96, %c0_26], %34 {strides = array<i32>} : memref<128x128xbf16, #tpu.memory_space<vmem>>, vector<16x128xbf16>,
    %c3_27 = arith.constant 3 : index
    %c0_28 = arith.constant 0 : index
    %c0_29 = arith.constant 0 : index
    %36 = vector.load %arg2[%c3_27, %c0_28, %c0_29] : memref<4x16x128xf32, #tpu.memory_space<vmem>>, vector<1x16x128xf32>
    %37 = vector.shape_cast %36 : vector<1x16x128xf32> to vector<16x128xf32>
    %38 = arith.mulf %0, %37 : vector<16x128xf32>
    %39 = arith.truncf %38 : vector<16x128xf32> to vector<16x128xbf16>
    %c112 = arith.constant 112 : index
    %c0_30 = arith.constant 0 : index
    %40 = vector.load %arg11[%c112, %c0_30] : memref<128x128xbf16, #tpu.memory_space<vmem>>, vector<16x128xbf16>
    tpu.vector_store %arg11[%c112, %c0_30], %39 {strides = array<i32>} : memref<128x128xbf16, #tpu.memory_space<vmem>>, vector<16x128xbf16>,
    %c0_31 = arith.constant 0 : index
    %c0_32 = arith.constant 0 : index
    %41 = vector.load %arg6[%c0_31, %c0_32] : memref<128x128xbf16, #tpu.memory_space<vmem>>, vector<128x128xbf16>
    %c0_33 = arith.constant 0 : index
    %c0_34 = arith.constant 0 : index
    %42 = vector.load %arg11[%c0_33, %c0_34] : memref<128x128xbf16, #tpu.memory_space<vmem>>, vector<128x128xbf16>
    %cst = arith.constant dense<0.000000e+00> : vector<128x128xf32>
    %43 = tpu.matmul %41, %42, %cst {dimension_numbers = #tpu.dot_dimension_numbers<[1], [0], [0], [1], [0, 0, 1, 1], [], []>} : vector<128x128xbf16>, vector<128x128xbf16>, vector<128x128xf32> -> vector<128x128xf32>
    %44 = arith.truncf %43 : vector<128x128xf32> to vector<128x128xbf16>
    %c0_35 = arith.constant 0 : index
    %c0_36 = arith.constant 0 : index
    %45 = vector.load %arg7[%c0_35, %c0_36] : memref<128x128xbf16, #tpu.memory_space<vmem>>, vector<128x128xbf16>
    %cst_37 = arith.constant dense<0.000000e+00> : vector<128x128xf32>
    %46 = tpu.matmul %44, %45, %cst_37 {dimension_numbers = #tpu.dot_dimension_numbers<[1], [0], [0], [1], [0, 0, 1, 1], [], []>} : vector<128x128xbf16>, vector<128x128xbf16>, vector<128x128xf32> -> vector<128x128xf32>
    %c0_38 = arith.constant 0 : index
    %c0_39 = arith.constant 0 : index
    %47 = vector.load %arg8[%c0_38, %c0_39] : memref<128x128xbf16, #tpu.memory_space<vmem>>, vector<128x128xbf16>
    %cst_40 = arith.constant dense<0.000000e+00> : vector<128x128xf32>
    %48 = tpu.matmul %44, %47, %cst_40 {dimension_numbers = #tpu.dot_dimension_numbers<[1], [0], [0], [1], [0, 0, 1, 1], [], []>} : vector<128x128xbf16>, vector<128x128xbf16>, vector<128x128xf32> -> vector<128x128xf32>
    %cst_41 = arith.constant 0.000000e+00 : f32
    %49 = vector.broadcast %cst_41 : f32 to vector<16x128xf32>
    %cst_42 = arith.constant 0.000000e+00 : f32
    %50 = vector.broadcast %cst_42 : f32 to vector<16x128xf32>
    %51 = vector.extract_strided_slice %46 {offsets = [0, 0], sizes = [16, 128], strides = [1, 1]} : vector<128x128xf32> to vector<16x128xf32>
    %52 = vector.extract_strided_slice %48 {offsets = [16, 0], sizes = [16, 128], strides = [1, 1]} : vector<128x128xf32> to vector<16x128xf32>
    %53 = arith.addf %51, %52 : vector<16x128xf32>
    %54 = vector.extract_strided_slice %46 {offsets = [16, 0], sizes = [16, 128], strides = [1, 1]} : vector<128x128xf32> to vector<16x128xf32>
    %55 = vector.extract_strided_slice %48 {offsets = [0, 0], sizes = [16, 128], strides = [1, 1]} : vector<128x128xf32> to vector<16x128xf32>
    %56 = arith.subf %54, %55 : vector<16x128xf32>
    %c0_43 = arith.constant 0 : index
    %c0_44 = arith.constant 0 : index
    %c0_45 = arith.constant 0 : index
    %57 = vector.load %arg4[%c0_43, %c0_44, %c0_45] : memref<4x16x16xf32, #tpu.memory_space<vmem>>, vector<1x16x16xf32>
    %58 = vector.shape_cast %57 : vector<1x16x16xf32> to vector<16x16xf32>
    %59 = tpu.concatenate %58, %58, %58, %58, %58, %58, %58, %58 in 1 : vector<16x16xf32>, vector<16x16xf32>, vector<16x16xf32>, vector<16x16xf32>, vector<16x16xf32>, vector<16x16xf32>, vector<16x16xf32>, vector<16x16xf32> -> vector<16x128xf32>
    %c0_46 = arith.constant 0 : index
    %c0_47 = arith.constant 0 : index
    %c0_48 = arith.constant 0 : index
    %60 = vector.load %arg5[%c0_46, %c0_47, %c0_48] : memref<4x16x16xf32, #tpu.memory_space<vmem>>, vector<1x16x16xf32>
    %61 = vector.shape_cast %60 : vector<1x16x16xf32> to vector<16x16xf32>
    %62 = tpu.concatenate %61, %61, %61, %61, %61, %61, %61, %61 in 1 : vector<16x16xf32>, vector<16x16xf32>, vector<16x16xf32>, vector<16x16xf32>, vector<16x16xf32>, vector<16x16xf32>, vector<16x16xf32>, vector<16x16xf32> -> vector<16x128xf32>
    %63 = arith.mulf %59, %53 : vector<16x128xf32>
    %64 = arith.addf %49, %63 : vector<16x128xf32>
    %65 = arith.mulf %62, %56 : vector<16x128xf32>
    %66 = arith.addf %64, %65 : vector<16x128xf32>
    %67 = arith.mulf %59, %56 : vector<16x128xf32>
    %68 = arith.addf %50, %67 : vector<16x128xf32>
    %69 = arith.mulf %62, %53 : vector<16x128xf32>
    %70 = arith.subf %68, %69 : vector<16x128xf32>
    %71 = vector.extract_strided_slice %46 {offsets = [32, 0], sizes = [16, 128], strides = [1, 1]} : vector<128x128xf32> to vector<16x128xf32>
    %72 = vector.extract_strided_slice %48 {offsets = [48, 0], sizes = [16, 128], strides = [1, 1]} : vector<128x128xf32> to vector<16x128xf32>
    %73 = arith.addf %71, %72 : vector<16x128xf32>
    %74 = vector.extract_strided_slice %46 {offsets = [48, 0], sizes = [16, 128], strides = [1, 1]} : vector<128x128xf32> to vector<16x128xf32>
    %75 = vector.extract_strided_slice %48 {offsets = [32, 0], sizes = [16, 128], strides = [1, 1]} : vector<128x128xf32> to vector<16x128xf32>
    %76 = arith.subf %74, %75 : vector<16x128xf32>
    %c1_49 = arith.constant 1 : index
    %c0_50 = arith.constant 0 : index
    %c0_51 = arith.constant 0 : index
    %77 = vector.load %arg4[%c1_49, %c0_50, %c0_51] : memref<4x16x16xf32, #tpu.memory_space<vmem>>, vector<1x16x16xf32>
    %78 = vector.shape_cast %77 : vector<1x16x16xf32> to vector<16x16xf32>
    %79 = tpu.concatenate %78, %78, %78, %78, %78, %78, %78, %78 in 1 : vector<16x16xf32>, vector<16x16xf32>, vector<16x16xf32>, vector<16x16xf32>, vector<16x16xf32>, vector<16x16xf32>, vector<16x16xf32>, vector<16x16xf32> -> vector<16x128xf32>
    %c1_52 = arith.constant 1 : index
    %c0_53 = arith.constant 0 : index
    %c0_54 = arith.constant 0 : index
    %80 = vector.load %arg5[%c1_52, %c0_53, %c0_54] : memref<4x16x16xf32, #tpu.memory_space<vmem>>, vector<1x16x16xf32>
    %81 = vector.shape_cast %80 : vector<1x16x16xf32> to vector<16x16xf32>
    %82 = tpu.concatenate %81, %81, %81, %81, %81, %81, %81, %81 in 1 : vector<16x16xf32>, vector<16x16xf32>, vector<16x16xf32>, vector<16x16xf32>, vector<16x16xf32>, vector<16x16xf32>, vector<16x16xf32>, vector<16x16xf32> -> vector<16x128xf32>
    %83 = arith.mulf %79, %73 : vector<16x128xf32>
    %84 = arith.addf %66, %83 : vector<16x128xf32>
    %85 = arith.mulf %82, %76 : vector<16x128xf32>
    %86 = arith.addf %84, %85 : vector<16x128xf32>
    %87 = arith.mulf %79, %76 : vector<16x128xf32>
    %88 = arith.addf %70, %87 : vector<16x128xf32>
    %89 = arith.mulf %82, %73 : vector<16x128xf32>
    %90 = arith.subf %88, %89 : vector<16x128xf32>
    %91 = vector.extract_strided_slice %46 {offsets = [64, 0], sizes = [16, 128], strides = [1, 1]} : vector<128x128xf32> to vector<16x128xf32>
    %92 = vector.extract_strided_slice %48 {offsets = [80, 0], sizes = [16, 128], strides = [1, 1]} : vector<128x128xf32> to vector<16x128xf32>
    %93 = arith.addf %91, %92 : vector<16x128xf32>
    %94 = vector.extract_strided_slice %46 {offsets = [80, 0], sizes = [16, 128], strides = [1, 1]} : vector<128x128xf32> to vector<16x128xf32>
    %95 = vector.extract_strided_slice %48 {offsets = [64, 0], sizes = [16, 128], strides = [1, 1]} : vector<128x128xf32> to vector<16x128xf32>
    %96 = arith.subf %94, %95 : vector<16x128xf32>
    %c2_55 = arith.constant 2 : index
    %c0_56 = arith.constant 0 : index
    %c0_57 = arith.constant 0 : index
    %97 = vector.load %arg4[%c2_55, %c0_56, %c0_57] : memref<4x16x16xf32, #tpu.memory_space<vmem>>, vector<1x16x16xf32>
    %98 = vector.shape_cast %97 : vector<1x16x16xf32> to vector<16x16xf32>
    %99 = tpu.concatenate %98, %98, %98, %98, %98, %98, %98, %98 in 1 : vector<16x16xf32>, vector<16x16xf32>, vector<16x16xf32>, vector<16x16xf32>, vector<16x16xf32>, vector<16x16xf32>, vector<16x16xf32>, vector<16x16xf32> -> vector<16x128xf32>
    %c2_58 = arith.constant 2 : index
    %c0_59 = arith.constant 0 : index
    %c0_60 = arith.constant 0 : index
    %100 = vector.load %arg5[%c2_58, %c0_59, %c0_60] : memref<4x16x16xf32, #tpu.memory_space<vmem>>, vector<1x16x16xf32>
    %101 = vector.shape_cast %100 : vector<1x16x16xf32> to vector<16x16xf32>
    %102 = tpu.concatenate %101, %101, %101, %101, %101, %101, %101, %101 in 1 : vector<16x16xf32>, vector<16x16xf32>, vector<16x16xf32>, vector<16x16xf32>, vector<16x16xf32>, vector<16x16xf32>, vector<16x16xf32>, vector<16x16xf32> -> vector<16x128xf32>
    %103 = arith.mulf %99, %93 : vector<16x128xf32>
    %104 = arith.addf %86, %103 : vector<16x128xf32>
    %105 = arith.mulf %102, %96 : vector<16x128xf32>
    %106 = arith.addf %104, %105 : vector<16x128xf32>
    %107 = arith.mulf %99, %96 : vector<16x128xf32>
    %108 = arith.addf %90, %107 : vector<16x128xf32>
    %109 = arith.mulf %102, %93 : vector<16x128xf32>
    %110 = arith.subf %108, %109 : vector<16x128xf32>
    %111 = vector.extract_strided_slice %46 {offsets = [96, 0], sizes = [16, 128], strides = [1, 1]} : vector<128x128xf32> to vector<16x128xf32>
    %112 = vector.extract_strided_slice %48 {offsets = [112, 0], sizes = [16, 128], strides = [1, 1]} : vector<128x128xf32> to vector<16x128xf32>
    %113 = arith.addf %111, %112 : vector<16x128xf32>
    %114 = vector.extract_strided_slice %46 {offsets = [112, 0], sizes = [16, 128], strides = [1, 1]} : vector<128x128xf32> to vector<16x128xf32>
    %115 = vector.extract_strided_slice %48 {offsets = [96, 0], sizes = [16, 128], strides = [1, 1]} : vector<128x128xf32> to vector<16x128xf32>
    %116 = arith.subf %114, %115 : vector<16x128xf32>
    %c3_61 = arith.constant 3 : index
    %c0_62 = arith.constant 0 : index
    %c0_63 = arith.constant 0 : index
    %117 = vector.load %arg4[%c3_61, %c0_62, %c0_63] : memref<4x16x16xf32, #tpu.memory_space<vmem>>, vector<1x16x16xf32>
    %118 = vector.shape_cast %117 : vector<1x16x16xf32> to vector<16x16xf32>
    %119 = tpu.concatenate %118, %118, %118, %118, %118, %118, %118, %118 in 1 : vector<16x16xf32>, vector<16x16xf32>, vector<16x16xf32>, vector<16x16xf32>, vector<16x16xf32>, vector<16x16xf32>, vector<16x16xf32>, vector<16x16xf32> -> vector<16x128xf32>
    %c3_64 = arith.constant 3 : index
    %c0_65 = arith.constant 0 : index
    %c0_66 = arith.constant 0 : index
    %120 = vector.load %arg5[%c3_64, %c0_65, %c0_66] : memref<4x16x16xf32, #tpu.memory_space<vmem>>, vector<1x16x16xf32>
    %121 = vector.shape_cast %120 : vector<1x16x16xf32> to vector<16x16xf32>
    %122 = tpu.concatenate %121, %121, %121, %121, %121, %121, %121, %121 in 1 : vector<16x16xf32>, vector<16x16xf32>, vector<16x16xf32>, vector<16x16xf32>, vector<16x16xf32>, vector<16x16xf32>, vector<16x16xf32>, vector<16x16xf32> -> vector<16x128xf32>
    %123 = arith.mulf %119, %113 : vector<16x128xf32>
    %124 = arith.addf %106, %123 : vector<16x128xf32>
    %125 = arith.mulf %122, %116 : vector<16x128xf32>
    %126 = arith.addf %124, %125 : vector<16x128xf32>
    %127 = arith.mulf %119, %116 : vector<16x128xf32>
    %128 = arith.addf %110, %127 : vector<16x128xf32>
    %129 = arith.mulf %122, %113 : vector<16x128xf32>
    %130 = arith.subf %128, %129 : vector<16x128xf32>
    %c0_67 = arith.constant 0 : index
    %c0_68 = arith.constant 0 : index
    %131 = vector.load %arg9[%c0_67, %c0_68] : memref<16x128xf32, #tpu.memory_space<vmem>>, vector<16x128xf32>
    tpu.vector_store %arg9[%c0_67, %c0_68], %126 {strides = array<i32>} : memref<16x128xf32, #tpu.memory_space<vmem>>, vector<16x128xf32>,
    %c0_69 = arith.constant 0 : index
    %c0_70 = arith.constant 0 : index
    %132 = vector.load %arg10[%c0_69, %c0_70] : memref<16x128xf32, #tpu.memory_space<vmem>>, vector<16x128xf32>
    tpu.vector_store %arg10[%c0_69, %c0_70], %130 {strides = array<i32>} : memref<16x128xf32, #tpu.memory_space<vmem>>, vector<16x128xf32>,
    return
  }
  func.func @transform_0(%arg0: i32) -> (i32, i32, i32) {
    %c0_i32 = arith.constant 0 : i32
    %c0_i32_0 = arith.constant 0 : i32
    %c0_i32_1 = arith.constant 0 : i32
    return %c0_i32, %c0_i32_0, %arg0 : i32, i32, i32
  }
  func.func @transform_1(%arg0: i32) -> (i32, i32, i32) {
    %c0_i32 = arith.constant 0 : i32
    %c0_i32_0 = arith.constant 0 : i32
    %c0_i32_1 = arith.constant 0 : i32
    return %c0_i32, %c0_i32_0, %arg0 : i32, i32, i32
  }
  func.func @transform_2(%arg0: i32) -> (i32, i32) {
    %c0_i32 = arith.constant 0 : i32
    %c0_i32_0 = arith.constant 0 : i32
    return %c0_i32, %arg0 : i32, i32
  }
  func.func @transform_3(%arg0: i32) -> (i32, i32, i32) {
    %c0_i32 = arith.constant 0 : i32
    %c0_i32_0 = arith.constant 0 : i32
    %c0_i32_1 = arith.constant 0 : i32
    %c0_i32_2 = arith.constant 0 : i32
    return %c0_i32, %c0_i32_0, %c0_i32_1 : i32, i32, i32
  }
  func.func @transform_4(%arg0: i32) -> (i32, i32, i32) {
    %c0_i32 = arith.constant 0 : i32
    %c0_i32_0 = arith.constant 0 : i32
    %c0_i32_1 = arith.constant 0 : i32
    %c0_i32_2 = arith.constant 0 : i32
    return %c0_i32, %c0_i32_0, %c0_i32_1 : i32, i32, i32
  }
  func.func @transform_5(%arg0: i32) -> (i32, i32) {
    %c0_i32 = arith.constant 0 : i32
    %c0_i32_0 = arith.constant 0 : i32
    %c0_i32_1 = arith.constant 0 : i32
    return %c0_i32, %c0_i32_0 : i32, i32
  }
  func.func @transform_6(%arg0: i32) -> (i32, i32) {
    %c0_i32 = arith.constant 0 : i32
    %c0_i32_0 = arith.constant 0 : i32
    %c0_i32_1 = arith.constant 0 : i32
    return %c0_i32, %c0_i32_0 : i32, i32
  }
  func.func @transform_7(%arg0: i32) -> (i32, i32) {
    %c0_i32 = arith.constant 0 : i32
    %c0_i32_0 = arith.constant 0 : i32
    %c0_i32_1 = arith.constant 0 : i32
    return %c0_i32, %c0_i32_0 : i32, i32
  }
  func.func @transform_8(%arg0: i32) -> (i32, i32) {
    %c0_i32 = arith.constant 0 : i32
    %c0_i32_0 = arith.constant 0 : i32
    return %c0_i32, %arg0 : i32, i32
  }
  func.func @transform_9(%arg0: i32) -> (i32, i32) {
    %c0_i32 = arith.constant 0 : i32
    %c0_i32_0 = arith.constant 0 : i32
    return %c0_i32, %arg0 : i32, i32
  }
}

module attributes {stable_mosaic.version = 11 : i64} {
  func.func @_normal_sense_kernel(%arg0: i32, %arg1: memref<16x128xf32, #tpu.memory_space<vmem>>, %arg2: memref<16x128xf32, #tpu.memory_space<vmem>>, %arg3: memref<4x16x16xf32, #tpu.memory_space<vmem>>, %arg4: memref<4x16x16xf32, #tpu.memory_space<vmem>>, %arg5: memref<16x128xf32, #tpu.memory_space<vmem>>, %arg6: memref<128x128xbf16, #tpu.memory_space<vmem>>, %arg7: memref<128x128xbf16, #tpu.memory_space<vmem>>, %arg8: memref<128x128xbf16, #tpu.memory_space<vmem>>, %arg9: memref<128x128xbf16, #tpu.memory_space<vmem>>, %arg10: memref<16x128xf32, #tpu.memory_space<vmem>>, %arg11: memref<16x128xf32, #tpu.memory_space<vmem>>, %arg12: memref<128x128xbf16, #tpu.memory_space<vmem>>) attributes {dimension_semantics = [#tpu.dimension_semantics<parallel>], iteration_bounds = array<i64: 2>, scalar_prefetch = 0 : i64, scratch_operands = 1 : i64, tpu.core_type = #tpu.core_type<tc>, window_params = [{transform_indices = @transform_0, window_bounds = array<i64: 16, 128>}, {transform_indices = @transform_1, window_bounds = array<i64: 16, 128>}, {pipeline_mode = #tpu.pipeline_mode<synchronous>, transform_indices = @transform_2, window_bounds = array<i64: 4, 16, 16>}, {pipeline_mode = #tpu.pipeline_mode<synchronous>, transform_indices = @transform_3, window_bounds = array<i64: 4, 16, 16>}, {transform_indices = @transform_4, window_bounds = array<i64: 16, 128>}, {pipeline_mode = #tpu.pipeline_mode<synchronous>, transform_indices = @transform_5, window_bounds = array<i64: 128, 128>}, {pipeline_mode = #tpu.pipeline_mode<synchronous>, transform_indices = @transform_6, window_bounds = array<i64: 128, 128>}, {pipeline_mode = #tpu.pipeline_mode<synchronous>, transform_indices = @transform_7, window_bounds = array<i64: 128, 128>}, {pipeline_mode = #tpu.pipeline_mode<synchronous>, transform_indices = @transform_8, window_bounds = array<i64: 128, 128>}, {transform_indices = @transform_9, window_bounds = array<i64: 16, 128>}, {transform_indices = @transform_10, window_bounds = array<i64: 16, 128>}]} {
    %c0 = arith.constant 0 : index
    %c0_0 = arith.constant 0 : index
    %0 = vector.load %arg1[%c0, %c0_0] : memref<16x128xf32, #tpu.memory_space<vmem>>, vector<16x128xf32>
    %c0_1 = arith.constant 0 : index
    %c0_2 = arith.constant 0 : index
    %1 = vector.load %arg2[%c0_1, %c0_2] : memref<16x128xf32, #tpu.memory_space<vmem>>, vector<16x128xf32>
    %c0_3 = arith.constant 0 : index
    %c0_4 = arith.constant 0 : index
    %c0_5 = arith.constant 0 : index
    %2 = vector.load %arg3[%c0_3, %c0_4, %c0_5] : memref<4x16x16xf32, #tpu.memory_space<vmem>>, vector<1x16x16xf32>
    %3 = vector.shape_cast %2 : vector<1x16x16xf32> to vector<16x16xf32>
    %4 = tpu.concatenate %3, %3, %3, %3, %3, %3, %3, %3 in 1 : vector<16x16xf32>, vector<16x16xf32>, vector<16x16xf32>, vector<16x16xf32>, vector<16x16xf32>, vector<16x16xf32>, vector<16x16xf32>, vector<16x16xf32> -> vector<16x128xf32>
    %c1 = arith.constant 1 : index
    %c0_6 = arith.constant 0 : index
    %c0_7 = arith.constant 0 : index
    %5 = vector.load %arg3[%c1, %c0_6, %c0_7] : memref<4x16x16xf32, #tpu.memory_space<vmem>>, vector<1x16x16xf32>
    %6 = vector.shape_cast %5 : vector<1x16x16xf32> to vector<16x16xf32>
    %7 = tpu.concatenate %6, %6, %6, %6, %6, %6, %6, %6 in 1 : vector<16x16xf32>, vector<16x16xf32>, vector<16x16xf32>, vector<16x16xf32>, vector<16x16xf32>, vector<16x16xf32>, vector<16x16xf32>, vector<16x16xf32> -> vector<16x128xf32>
    %c2 = arith.constant 2 : index
    %c0_8 = arith.constant 0 : index
    %c0_9 = arith.constant 0 : index
    %8 = vector.load %arg3[%c2, %c0_8, %c0_9] : memref<4x16x16xf32, #tpu.memory_space<vmem>>, vector<1x16x16xf32>
    %9 = vector.shape_cast %8 : vector<1x16x16xf32> to vector<16x16xf32>
    %10 = tpu.concatenate %9, %9, %9, %9, %9, %9, %9, %9 in 1 : vector<16x16xf32>, vector<16x16xf32>, vector<16x16xf32>, vector<16x16xf32>, vector<16x16xf32>, vector<16x16xf32>, vector<16x16xf32>, vector<16x16xf32> -> vector<16x128xf32>
    %c3 = arith.constant 3 : index
    %c0_10 = arith.constant 0 : index
    %c0_11 = arith.constant 0 : index
    %11 = vector.load %arg3[%c3, %c0_10, %c0_11] : memref<4x16x16xf32, #tpu.memory_space<vmem>>, vector<1x16x16xf32>
    %12 = vector.shape_cast %11 : vector<1x16x16xf32> to vector<16x16xf32>
    %13 = tpu.concatenate %12, %12, %12, %12, %12, %12, %12, %12 in 1 : vector<16x16xf32>, vector<16x16xf32>, vector<16x16xf32>, vector<16x16xf32>, vector<16x16xf32>, vector<16x16xf32>, vector<16x16xf32>, vector<16x16xf32> -> vector<16x128xf32>
    %c0_12 = arith.constant 0 : index
    %c0_13 = arith.constant 0 : index
    %c0_14 = arith.constant 0 : index
    %14 = vector.load %arg4[%c0_12, %c0_13, %c0_14] : memref<4x16x16xf32, #tpu.memory_space<vmem>>, vector<1x16x16xf32>
    %15 = vector.shape_cast %14 : vector<1x16x16xf32> to vector<16x16xf32>
    %16 = tpu.concatenate %15, %15, %15, %15, %15, %15, %15, %15 in 1 : vector<16x16xf32>, vector<16x16xf32>, vector<16x16xf32>, vector<16x16xf32>, vector<16x16xf32>, vector<16x16xf32>, vector<16x16xf32>, vector<16x16xf32> -> vector<16x128xf32>
    %c1_15 = arith.constant 1 : index
    %c0_16 = arith.constant 0 : index
    %c0_17 = arith.constant 0 : index
    %17 = vector.load %arg4[%c1_15, %c0_16, %c0_17] : memref<4x16x16xf32, #tpu.memory_space<vmem>>, vector<1x16x16xf32>
    %18 = vector.shape_cast %17 : vector<1x16x16xf32> to vector<16x16xf32>
    %19 = tpu.concatenate %18, %18, %18, %18, %18, %18, %18, %18 in 1 : vector<16x16xf32>, vector<16x16xf32>, vector<16x16xf32>, vector<16x16xf32>, vector<16x16xf32>, vector<16x16xf32>, vector<16x16xf32>, vector<16x16xf32> -> vector<16x128xf32>
    %c2_18 = arith.constant 2 : index
    %c0_19 = arith.constant 0 : index
    %c0_20 = arith.constant 0 : index
    %20 = vector.load %arg4[%c2_18, %c0_19, %c0_20] : memref<4x16x16xf32, #tpu.memory_space<vmem>>, vector<1x16x16xf32>
    %21 = vector.shape_cast %20 : vector<1x16x16xf32> to vector<16x16xf32>
    %22 = tpu.concatenate %21, %21, %21, %21, %21, %21, %21, %21 in 1 : vector<16x16xf32>, vector<16x16xf32>, vector<16x16xf32>, vector<16x16xf32>, vector<16x16xf32>, vector<16x16xf32>, vector<16x16xf32>, vector<16x16xf32> -> vector<16x128xf32>
    %c3_21 = arith.constant 3 : index
    %c0_22 = arith.constant 0 : index
    %c0_23 = arith.constant 0 : index
    %23 = vector.load %arg4[%c3_21, %c0_22, %c0_23] : memref<4x16x16xf32, #tpu.memory_space<vmem>>, vector<1x16x16xf32>
    %24 = vector.shape_cast %23 : vector<1x16x16xf32> to vector<16x16xf32>
    %25 = tpu.concatenate %24, %24, %24, %24, %24, %24, %24, %24 in 1 : vector<16x16xf32>, vector<16x16xf32>, vector<16x16xf32>, vector<16x16xf32>, vector<16x16xf32>, vector<16x16xf32>, vector<16x16xf32>, vector<16x16xf32> -> vector<16x128xf32>
    %26 = arith.mulf %4, %0 : vector<16x128xf32>
    %27 = arith.mulf %16, %1 : vector<16x128xf32>
    %28 = arith.subf %26, %27 : vector<16x128xf32>
    %29 = arith.truncf %28 : vector<16x128xf32> to vector<16x128xbf16>
    %c0_24 = arith.constant 0 : index
    %c0_25 = arith.constant 0 : index
    %30 = vector.load %arg12[%c0_24, %c0_25] : memref<128x128xbf16, #tpu.memory_space<vmem>>, vector<16x128xbf16>
    tpu.vector_store %arg12[%c0_24, %c0_25], %29 {strides = array<i32>} : memref<128x128xbf16, #tpu.memory_space<vmem>>, vector<16x128xbf16>,
    %31 = arith.mulf %4, %1 : vector<16x128xf32>
    %32 = arith.mulf %16, %0 : vector<16x128xf32>
    %33 = arith.addf %31, %32 : vector<16x128xf32>
    %34 = arith.truncf %33 : vector<16x128xf32> to vector<16x128xbf16>
    %c16 = arith.constant 16 : index
    %c0_26 = arith.constant 0 : index
    %35 = vector.load %arg12[%c16, %c0_26] : memref<128x128xbf16, #tpu.memory_space<vmem>>, vector<16x128xbf16>
    tpu.vector_store %arg12[%c16, %c0_26], %34 {strides = array<i32>} : memref<128x128xbf16, #tpu.memory_space<vmem>>, vector<16x128xbf16>,
    %36 = arith.mulf %7, %0 : vector<16x128xf32>
    %37 = arith.mulf %19, %1 : vector<16x128xf32>
    %38 = arith.subf %36, %37 : vector<16x128xf32>
    %39 = arith.truncf %38 : vector<16x128xf32> to vector<16x128xbf16>
    %c32 = arith.constant 32 : index
    %c0_27 = arith.constant 0 : index
    %40 = vector.load %arg12[%c32, %c0_27] : memref<128x128xbf16, #tpu.memory_space<vmem>>, vector<16x128xbf16>
    tpu.vector_store %arg12[%c32, %c0_27], %39 {strides = array<i32>} : memref<128x128xbf16, #tpu.memory_space<vmem>>, vector<16x128xbf16>,
    %41 = arith.mulf %7, %1 : vector<16x128xf32>
    %42 = arith.mulf %19, %0 : vector<16x128xf32>
    %43 = arith.addf %41, %42 : vector<16x128xf32>
    %44 = arith.truncf %43 : vector<16x128xf32> to vector<16x128xbf16>
    %c48 = arith.constant 48 : index
    %c0_28 = arith.constant 0 : index
    %45 = vector.load %arg12[%c48, %c0_28] : memref<128x128xbf16, #tpu.memory_space<vmem>>, vector<16x128xbf16>
    tpu.vector_store %arg12[%c48, %c0_28], %44 {strides = array<i32>} : memref<128x128xbf16, #tpu.memory_space<vmem>>, vector<16x128xbf16>,
    %46 = arith.mulf %10, %0 : vector<16x128xf32>
    %47 = arith.mulf %22, %1 : vector<16x128xf32>
    %48 = arith.subf %46, %47 : vector<16x128xf32>
    %49 = arith.truncf %48 : vector<16x128xf32> to vector<16x128xbf16>
    %c64 = arith.constant 64 : index
    %c0_29 = arith.constant 0 : index
    %50 = vector.load %arg12[%c64, %c0_29] : memref<128x128xbf16, #tpu.memory_space<vmem>>, vector<16x128xbf16>
    tpu.vector_store %arg12[%c64, %c0_29], %49 {strides = array<i32>} : memref<128x128xbf16, #tpu.memory_space<vmem>>, vector<16x128xbf16>,
    %51 = arith.mulf %10, %1 : vector<16x128xf32>
    %52 = arith.mulf %22, %0 : vector<16x128xf32>
    %53 = arith.addf %51, %52 : vector<16x128xf32>
    %54 = arith.truncf %53 : vector<16x128xf32> to vector<16x128xbf16>
    %c80 = arith.constant 80 : index
    %c0_30 = arith.constant 0 : index
    %55 = vector.load %arg12[%c80, %c0_30] : memref<128x128xbf16, #tpu.memory_space<vmem>>, vector<16x128xbf16>
    tpu.vector_store %arg12[%c80, %c0_30], %54 {strides = array<i32>} : memref<128x128xbf16, #tpu.memory_space<vmem>>, vector<16x128xbf16>,
    %56 = arith.mulf %13, %0 : vector<16x128xf32>
    %57 = arith.mulf %25, %1 : vector<16x128xf32>
    %58 = arith.subf %56, %57 : vector<16x128xf32>
    %59 = arith.truncf %58 : vector<16x128xf32> to vector<16x128xbf16>
    %c96 = arith.constant 96 : index
    %c0_31 = arith.constant 0 : index
    %60 = vector.load %arg12[%c96, %c0_31] : memref<128x128xbf16, #tpu.memory_space<vmem>>, vector<16x128xbf16>
    tpu.vector_store %arg12[%c96, %c0_31], %59 {strides = array<i32>} : memref<128x128xbf16, #tpu.memory_space<vmem>>, vector<16x128xbf16>,
    %61 = arith.mulf %13, %1 : vector<16x128xf32>
    %62 = arith.mulf %25, %0 : vector<16x128xf32>
    %63 = arith.addf %61, %62 : vector<16x128xf32>
    %64 = arith.truncf %63 : vector<16x128xf32> to vector<16x128xbf16>
    %c112 = arith.constant 112 : index
    %c0_32 = arith.constant 0 : index
    %65 = vector.load %arg12[%c112, %c0_32] : memref<128x128xbf16, #tpu.memory_space<vmem>>, vector<16x128xbf16>
    tpu.vector_store %arg12[%c112, %c0_32], %64 {strides = array<i32>} : memref<128x128xbf16, #tpu.memory_space<vmem>>, vector<16x128xbf16>,
    %c0_33 = arith.constant 0 : index
    %c0_34 = arith.constant 0 : index
    %66 = vector.load %arg6[%c0_33, %c0_34] : memref<128x128xbf16, #tpu.memory_space<vmem>>, vector<128x128xbf16>
    %c0_35 = arith.constant 0 : index
    %c0_36 = arith.constant 0 : index
    %67 = vector.load %arg12[%c0_35, %c0_36] : memref<128x128xbf16, #tpu.memory_space<vmem>>, vector<128x128xbf16>
    %cst = arith.constant dense<0.000000e+00> : vector<128x128xf32>
    %68 = tpu.matmul %66, %67, %cst {dimension_numbers = #tpu.dot_dimension_numbers<[1], [0], [0], [1], [0, 0, 1, 1], [], []>} : vector<128x128xbf16>, vector<128x128xbf16>, vector<128x128xf32> -> vector<128x128xf32>
    %69 = arith.truncf %68 : vector<128x128xf32> to vector<128x128xbf16>
    %c0_37 = arith.constant 0 : index
    %c0_38 = arith.constant 0 : index
    %70 = vector.load %arg8[%c0_37, %c0_38] : memref<128x128xbf16, #tpu.memory_space<vmem>>, vector<128x128xbf16>
    %cst_39 = arith.constant dense<0.000000e+00> : vector<128x128xf32>
    %71 = tpu.matmul %69, %70, %cst_39 {dimension_numbers = #tpu.dot_dimension_numbers<[1], [0], [0], [1], [0, 0, 1, 1], [], []>} : vector<128x128xbf16>, vector<128x128xbf16>, vector<128x128xf32> -> vector<128x128xf32>
    %c0_40 = arith.constant 0 : index
    %c0_41 = arith.constant 0 : index
    %72 = vector.load %arg9[%c0_40, %c0_41] : memref<128x128xbf16, #tpu.memory_space<vmem>>, vector<128x128xbf16>
    %cst_42 = arith.constant dense<0.000000e+00> : vector<128x128xf32>
    %73 = tpu.matmul %69, %72, %cst_42 {dimension_numbers = #tpu.dot_dimension_numbers<[1], [0], [0], [1], [0, 0, 1, 1], [], []>} : vector<128x128xbf16>, vector<128x128xbf16>, vector<128x128xf32> -> vector<128x128xf32>
    %c0_43 = arith.constant 0 : index
    %c0_44 = arith.constant 0 : index
    %74 = vector.load %arg5[%c0_43, %c0_44] : memref<16x128xf32, #tpu.memory_space<vmem>>, vector<16x128xf32>
    %c0_45 = arith.constant 0 : index
    %c0_46 = arith.constant 0 : index
    %75 = vector.load %arg5[%c0_45, %c0_46] : memref<16x128xf32, #tpu.memory_space<vmem>>, vector<16x128xf32>
    %76 = arith.mulf %74, %75 : vector<16x128xf32>
    %77 = vector.extract_strided_slice %71 {offsets = [0, 0], sizes = [16, 128], strides = [1, 1]} : vector<128x128xf32> to vector<16x128xf32>
    %78 = vector.extract_strided_slice %73 {offsets = [16, 0], sizes = [16, 128], strides = [1, 1]} : vector<128x128xf32> to vector<16x128xf32>
    %79 = arith.subf %77, %78 : vector<16x128xf32>
    %80 = arith.mulf %79, %76 : vector<16x128xf32>
    %81 = arith.truncf %80 : vector<16x128xf32> to vector<16x128xbf16>
    %c0_47 = arith.constant 0 : index
    %c0_48 = arith.constant 0 : index
    %82 = vector.load %arg12[%c0_47, %c0_48] : memref<128x128xbf16, #tpu.memory_space<vmem>>, vector<16x128xbf16>
    tpu.vector_store %arg12[%c0_47, %c0_48], %81 {strides = array<i32>} : memref<128x128xbf16, #tpu.memory_space<vmem>>, vector<16x128xbf16>,
    %83 = vector.extract_strided_slice %73 {offsets = [0, 0], sizes = [16, 128], strides = [1, 1]} : vector<128x128xf32> to vector<16x128xf32>
    %84 = vector.extract_strided_slice %71 {offsets = [16, 0], sizes = [16, 128], strides = [1, 1]} : vector<128x128xf32> to vector<16x128xf32>
    %85 = arith.addf %83, %84 : vector<16x128xf32>
    %86 = arith.mulf %85, %76 : vector<16x128xf32>
    %87 = arith.truncf %86 : vector<16x128xf32> to vector<16x128xbf16>
    %c16_49 = arith.constant 16 : index
    %c0_50 = arith.constant 0 : index
    %88 = vector.load %arg12[%c16_49, %c0_50] : memref<128x128xbf16, #tpu.memory_space<vmem>>, vector<16x128xbf16>
    tpu.vector_store %arg12[%c16_49, %c0_50], %87 {strides = array<i32>} : memref<128x128xbf16, #tpu.memory_space<vmem>>, vector<16x128xbf16>,
    %89 = vector.extract_strided_slice %71 {offsets = [32, 0], sizes = [16, 128], strides = [1, 1]} : vector<128x128xf32> to vector<16x128xf32>
    %90 = vector.extract_strided_slice %73 {offsets = [48, 0], sizes = [16, 128], strides = [1, 1]} : vector<128x128xf32> to vector<16x128xf32>
    %91 = arith.subf %89, %90 : vector<16x128xf32>
    %92 = arith.mulf %91, %76 : vector<16x128xf32>
    %93 = arith.truncf %92 : vector<16x128xf32> to vector<16x128xbf16>
    %c32_51 = arith.constant 32 : index
    %c0_52 = arith.constant 0 : index
    %94 = vector.load %arg12[%c32_51, %c0_52] : memref<128x128xbf16, #tpu.memory_space<vmem>>, vector<16x128xbf16>
    tpu.vector_store %arg12[%c32_51, %c0_52], %93 {strides = array<i32>} : memref<128x128xbf16, #tpu.memory_space<vmem>>, vector<16x128xbf16>,
    %95 = vector.extract_strided_slice %73 {offsets = [32, 0], sizes = [16, 128], strides = [1, 1]} : vector<128x128xf32> to vector<16x128xf32>
    %96 = vector.extract_strided_slice %71 {offsets = [48, 0], sizes = [16, 128], strides = [1, 1]} : vector<128x128xf32> to vector<16x128xf32>
    %97 = arith.addf %95, %96 : vector<16x128xf32>
    %98 = arith.mulf %97, %76 : vector<16x128xf32>
    %99 = arith.truncf %98 : vector<16x128xf32> to vector<16x128xbf16>
    %c48_53 = arith.constant 48 : index
    %c0_54 = arith.constant 0 : index
    %100 = vector.load %arg12[%c48_53, %c0_54] : memref<128x128xbf16, #tpu.memory_space<vmem>>, vector<16x128xbf16>
    tpu.vector_store %arg12[%c48_53, %c0_54], %99 {strides = array<i32>} : memref<128x128xbf16, #tpu.memory_space<vmem>>, vector<16x128xbf16>,
    %101 = vector.extract_strided_slice %71 {offsets = [64, 0], sizes = [16, 128], strides = [1, 1]} : vector<128x128xf32> to vector<16x128xf32>
    %102 = vector.extract_strided_slice %73 {offsets = [80, 0], sizes = [16, 128], strides = [1, 1]} : vector<128x128xf32> to vector<16x128xf32>
    %103 = arith.subf %101, %102 : vector<16x128xf32>
    %104 = arith.mulf %103, %76 : vector<16x128xf32>
    %105 = arith.truncf %104 : vector<16x128xf32> to vector<16x128xbf16>
    %c64_55 = arith.constant 64 : index
    %c0_56 = arith.constant 0 : index
    %106 = vector.load %arg12[%c64_55, %c0_56] : memref<128x128xbf16, #tpu.memory_space<vmem>>, vector<16x128xbf16>
    tpu.vector_store %arg12[%c64_55, %c0_56], %105 {strides = array<i32>} : memref<128x128xbf16, #tpu.memory_space<vmem>>, vector<16x128xbf16>,
    %107 = vector.extract_strided_slice %73 {offsets = [64, 0], sizes = [16, 128], strides = [1, 1]} : vector<128x128xf32> to vector<16x128xf32>
    %108 = vector.extract_strided_slice %71 {offsets = [80, 0], sizes = [16, 128], strides = [1, 1]} : vector<128x128xf32> to vector<16x128xf32>
    %109 = arith.addf %107, %108 : vector<16x128xf32>
    %110 = arith.mulf %109, %76 : vector<16x128xf32>
    %111 = arith.truncf %110 : vector<16x128xf32> to vector<16x128xbf16>
    %c80_57 = arith.constant 80 : index
    %c0_58 = arith.constant 0 : index
    %112 = vector.load %arg12[%c80_57, %c0_58] : memref<128x128xbf16, #tpu.memory_space<vmem>>, vector<16x128xbf16>
    tpu.vector_store %arg12[%c80_57, %c0_58], %111 {strides = array<i32>} : memref<128x128xbf16, #tpu.memory_space<vmem>>, vector<16x128xbf16>,
    %113 = vector.extract_strided_slice %71 {offsets = [96, 0], sizes = [16, 128], strides = [1, 1]} : vector<128x128xf32> to vector<16x128xf32>
    %114 = vector.extract_strided_slice %73 {offsets = [112, 0], sizes = [16, 128], strides = [1, 1]} : vector<128x128xf32> to vector<16x128xf32>
    %115 = arith.subf %113, %114 : vector<16x128xf32>
    %116 = arith.mulf %115, %76 : vector<16x128xf32>
    %117 = arith.truncf %116 : vector<16x128xf32> to vector<16x128xbf16>
    %c96_59 = arith.constant 96 : index
    %c0_60 = arith.constant 0 : index
    %118 = vector.load %arg12[%c96_59, %c0_60] : memref<128x128xbf16, #tpu.memory_space<vmem>>, vector<16x128xbf16>
    tpu.vector_store %arg12[%c96_59, %c0_60], %117 {strides = array<i32>} : memref<128x128xbf16, #tpu.memory_space<vmem>>, vector<16x128xbf16>,
    %119 = vector.extract_strided_slice %73 {offsets = [96, 0], sizes = [16, 128], strides = [1, 1]} : vector<128x128xf32> to vector<16x128xf32>
    %120 = vector.extract_strided_slice %71 {offsets = [112, 0], sizes = [16, 128], strides = [1, 1]} : vector<128x128xf32> to vector<16x128xf32>
    %121 = arith.addf %119, %120 : vector<16x128xf32>
    %122 = arith.mulf %121, %76 : vector<16x128xf32>
    %123 = arith.truncf %122 : vector<16x128xf32> to vector<16x128xbf16>
    %c112_61 = arith.constant 112 : index
    %c0_62 = arith.constant 0 : index
    %124 = vector.load %arg12[%c112_61, %c0_62] : memref<128x128xbf16, #tpu.memory_space<vmem>>, vector<16x128xbf16>
    tpu.vector_store %arg12[%c112_61, %c0_62], %123 {strides = array<i32>} : memref<128x128xbf16, #tpu.memory_space<vmem>>, vector<16x128xbf16>,
    %c0_63 = arith.constant 0 : index
    %c0_64 = arith.constant 0 : index
    %125 = vector.load %arg7[%c0_63, %c0_64] : memref<128x128xbf16, #tpu.memory_space<vmem>>, vector<128x128xbf16>
    %c0_65 = arith.constant 0 : index
    %c0_66 = arith.constant 0 : index
    %126 = vector.load %arg12[%c0_65, %c0_66] : memref<128x128xbf16, #tpu.memory_space<vmem>>, vector<128x128xbf16>
    %cst_67 = arith.constant dense<0.000000e+00> : vector<128x128xf32>
    %127 = tpu.matmul %125, %126, %cst_67 {dimension_numbers = #tpu.dot_dimension_numbers<[1], [0], [0], [1], [0, 0, 1, 1], [], []>} : vector<128x128xbf16>, vector<128x128xbf16>, vector<128x128xf32> -> vector<128x128xf32>
    %128 = arith.truncf %127 : vector<128x128xf32> to vector<128x128xbf16>
    %c0_68 = arith.constant 0 : index
    %c0_69 = arith.constant 0 : index
    %129 = vector.load %arg8[%c0_68, %c0_69] : memref<128x128xbf16, #tpu.memory_space<vmem>>, vector<128x128xbf16>
    %cst_70 = arith.constant dense<0.000000e+00> : vector<128x128xf32>
    %130 = tpu.matmul %128, %129, %cst_70 {dimension_numbers = #tpu.dot_dimension_numbers<[1], [0], [0], [1], [0, 0, 1, 1], [], []>} : vector<128x128xbf16>, vector<128x128xbf16>, vector<128x128xf32> -> vector<128x128xf32>
    %c0_71 = arith.constant 0 : index
    %c0_72 = arith.constant 0 : index
    %131 = vector.load %arg9[%c0_71, %c0_72] : memref<128x128xbf16, #tpu.memory_space<vmem>>, vector<128x128xbf16>
    %cst_73 = arith.constant dense<0.000000e+00> : vector<128x128xf32>
    %132 = tpu.matmul %128, %131, %cst_73 {dimension_numbers = #tpu.dot_dimension_numbers<[1], [0], [0], [1], [0, 0, 1, 1], [], []>} : vector<128x128xbf16>, vector<128x128xbf16>, vector<128x128xf32> -> vector<128x128xf32>
    %cst_74 = arith.constant 0.000000e+00 : f32
    %133 = vector.broadcast %cst_74 : f32 to vector<16x128xf32>
    %cst_75 = arith.constant 0.000000e+00 : f32
    %134 = vector.broadcast %cst_75 : f32 to vector<16x128xf32>
    %135 = vector.extract_strided_slice %130 {offsets = [0, 0], sizes = [16, 128], strides = [1, 1]} : vector<128x128xf32> to vector<16x128xf32>
    %136 = vector.extract_strided_slice %132 {offsets = [16, 0], sizes = [16, 128], strides = [1, 1]} : vector<128x128xf32> to vector<16x128xf32>
    %137 = arith.addf %135, %136 : vector<16x128xf32>
    %138 = vector.extract_strided_slice %130 {offsets = [16, 0], sizes = [16, 128], strides = [1, 1]} : vector<128x128xf32> to vector<16x128xf32>
    %139 = vector.extract_strided_slice %132 {offsets = [0, 0], sizes = [16, 128], strides = [1, 1]} : vector<128x128xf32> to vector<16x128xf32>
    %140 = arith.subf %138, %139 : vector<16x128xf32>
    %141 = arith.mulf %4, %137 : vector<16x128xf32>
    %142 = arith.addf %133, %141 : vector<16x128xf32>
    %143 = arith.mulf %16, %140 : vector<16x128xf32>
    %144 = arith.addf %142, %143 : vector<16x128xf32>
    %145 = arith.mulf %4, %140 : vector<16x128xf32>
    %146 = arith.addf %134, %145 : vector<16x128xf32>
    %147 = arith.mulf %16, %137 : vector<16x128xf32>
    %148 = arith.subf %146, %147 : vector<16x128xf32>
    %149 = vector.extract_strided_slice %130 {offsets = [32, 0], sizes = [16, 128], strides = [1, 1]} : vector<128x128xf32> to vector<16x128xf32>
    %150 = vector.extract_strided_slice %132 {offsets = [48, 0], sizes = [16, 128], strides = [1, 1]} : vector<128x128xf32> to vector<16x128xf32>
    %151 = arith.addf %149, %150 : vector<16x128xf32>
    %152 = vector.extract_strided_slice %130 {offsets = [48, 0], sizes = [16, 128], strides = [1, 1]} : vector<128x128xf32> to vector<16x128xf32>
    %153 = vector.extract_strided_slice %132 {offsets = [32, 0], sizes = [16, 128], strides = [1, 1]} : vector<128x128xf32> to vector<16x128xf32>
    %154 = arith.subf %152, %153 : vector<16x128xf32>
    %155 = arith.mulf %7, %151 : vector<16x128xf32>
    %156 = arith.addf %144, %155 : vector<16x128xf32>
    %157 = arith.mulf %19, %154 : vector<16x128xf32>
    %158 = arith.addf %156, %157 : vector<16x128xf32>
    %159 = arith.mulf %7, %154 : vector<16x128xf32>
    %160 = arith.addf %148, %159 : vector<16x128xf32>
    %161 = arith.mulf %19, %151 : vector<16x128xf32>
    %162 = arith.subf %160, %161 : vector<16x128xf32>
    %163 = vector.extract_strided_slice %130 {offsets = [64, 0], sizes = [16, 128], strides = [1, 1]} : vector<128x128xf32> to vector<16x128xf32>
    %164 = vector.extract_strided_slice %132 {offsets = [80, 0], sizes = [16, 128], strides = [1, 1]} : vector<128x128xf32> to vector<16x128xf32>
    %165 = arith.addf %163, %164 : vector<16x128xf32>
    %166 = vector.extract_strided_slice %130 {offsets = [80, 0], sizes = [16, 128], strides = [1, 1]} : vector<128x128xf32> to vector<16x128xf32>
    %167 = vector.extract_strided_slice %132 {offsets = [64, 0], sizes = [16, 128], strides = [1, 1]} : vector<128x128xf32> to vector<16x128xf32>
    %168 = arith.subf %166, %167 : vector<16x128xf32>
    %169 = arith.mulf %10, %165 : vector<16x128xf32>
    %170 = arith.addf %158, %169 : vector<16x128xf32>
    %171 = arith.mulf %22, %168 : vector<16x128xf32>
    %172 = arith.addf %170, %171 : vector<16x128xf32>
    %173 = arith.mulf %10, %168 : vector<16x128xf32>
    %174 = arith.addf %162, %173 : vector<16x128xf32>
    %175 = arith.mulf %22, %165 : vector<16x128xf32>
    %176 = arith.subf %174, %175 : vector<16x128xf32>
    %177 = vector.extract_strided_slice %130 {offsets = [96, 0], sizes = [16, 128], strides = [1, 1]} : vector<128x128xf32> to vector<16x128xf32>
    %178 = vector.extract_strided_slice %132 {offsets = [112, 0], sizes = [16, 128], strides = [1, 1]} : vector<128x128xf32> to vector<16x128xf32>
    %179 = arith.addf %177, %178 : vector<16x128xf32>
    %180 = vector.extract_strided_slice %130 {offsets = [112, 0], sizes = [16, 128], strides = [1, 1]} : vector<128x128xf32> to vector<16x128xf32>
    %181 = vector.extract_strided_slice %132 {offsets = [96, 0], sizes = [16, 128], strides = [1, 1]} : vector<128x128xf32> to vector<16x128xf32>
    %182 = arith.subf %180, %181 : vector<16x128xf32>
    %183 = arith.mulf %13, %179 : vector<16x128xf32>
    %184 = arith.addf %172, %183 : vector<16x128xf32>
    %185 = arith.mulf %25, %182 : vector<16x128xf32>
    %186 = arith.addf %184, %185 : vector<16x128xf32>
    %187 = arith.mulf %13, %182 : vector<16x128xf32>
    %188 = arith.addf %176, %187 : vector<16x128xf32>
    %189 = arith.mulf %25, %179 : vector<16x128xf32>
    %190 = arith.subf %188, %189 : vector<16x128xf32>
    %c0_76 = arith.constant 0 : index
    %c0_77 = arith.constant 0 : index
    %191 = vector.load %arg10[%c0_76, %c0_77] : memref<16x128xf32, #tpu.memory_space<vmem>>, vector<16x128xf32>
    tpu.vector_store %arg10[%c0_76, %c0_77], %186 {strides = array<i32>} : memref<16x128xf32, #tpu.memory_space<vmem>>, vector<16x128xf32>,
    %c0_78 = arith.constant 0 : index
    %c0_79 = arith.constant 0 : index
    %192 = vector.load %arg11[%c0_78, %c0_79] : memref<16x128xf32, #tpu.memory_space<vmem>>, vector<16x128xf32>
    tpu.vector_store %arg11[%c0_78, %c0_79], %190 {strides = array<i32>} : memref<16x128xf32, #tpu.memory_space<vmem>>, vector<16x128xf32>,
    return
  }
  func.func @transform_0(%arg0: i32) -> (i32, i32) {
    %c0_i32 = arith.constant 0 : i32
    %c0_i32_0 = arith.constant 0 : i32
    return %c0_i32, %arg0 : i32, i32
  }
  func.func @transform_1(%arg0: i32) -> (i32, i32) {
    %c0_i32 = arith.constant 0 : i32
    %c0_i32_0 = arith.constant 0 : i32
    return %c0_i32, %arg0 : i32, i32
  }
  func.func @transform_2(%arg0: i32) -> (i32, i32, i32) {
    %c0_i32 = arith.constant 0 : i32
    %c0_i32_0 = arith.constant 0 : i32
    %c0_i32_1 = arith.constant 0 : i32
    %c0_i32_2 = arith.constant 0 : i32
    return %c0_i32, %c0_i32_0, %c0_i32_1 : i32, i32, i32
  }
  func.func @transform_3(%arg0: i32) -> (i32, i32, i32) {
    %c0_i32 = arith.constant 0 : i32
    %c0_i32_0 = arith.constant 0 : i32
    %c0_i32_1 = arith.constant 0 : i32
    %c0_i32_2 = arith.constant 0 : i32
    return %c0_i32, %c0_i32_0, %c0_i32_1 : i32, i32, i32
  }
  func.func @transform_4(%arg0: i32) -> (i32, i32) {
    %c0_i32 = arith.constant 0 : i32
    %c0_i32_0 = arith.constant 0 : i32
    return %c0_i32, %arg0 : i32, i32
  }
  func.func @transform_5(%arg0: i32) -> (i32, i32) {
    %c0_i32 = arith.constant 0 : i32
    %c0_i32_0 = arith.constant 0 : i32
    %c0_i32_1 = arith.constant 0 : i32
    return %c0_i32, %c0_i32_0 : i32, i32
  }
  func.func @transform_6(%arg0: i32) -> (i32, i32) {
    %c0_i32 = arith.constant 0 : i32
    %c0_i32_0 = arith.constant 0 : i32
    %c0_i32_1 = arith.constant 0 : i32
    return %c0_i32, %c0_i32_0 : i32, i32
  }
  func.func @transform_7(%arg0: i32) -> (i32, i32) {
    %c0_i32 = arith.constant 0 : i32
    %c0_i32_0 = arith.constant 0 : i32
    %c0_i32_1 = arith.constant 0 : i32
    return %c0_i32, %c0_i32_0 : i32, i32
  }
  func.func @transform_8(%arg0: i32) -> (i32, i32) {
    %c0_i32 = arith.constant 0 : i32
    %c0_i32_0 = arith.constant 0 : i32
    %c0_i32_1 = arith.constant 0 : i32
    return %c0_i32, %c0_i32_0 : i32, i32
  }
  func.func @transform_9(%arg0: i32) -> (i32, i32) {
    %c0_i32 = arith.constant 0 : i32
    %c0_i32_0 = arith.constant 0 : i32
    return %c0_i32, %arg0 : i32, i32
  }
  func.func @transform_10(%arg0: i32) -> (i32, i32) {
    %c0_i32 = arith.constant 0 : i32
    %c0_i32_0 = arith.constant 0 : i32
    return %c0_i32, %arg0 : i32, i32
  }
}

</mosaic_0001>

<bundles_post_ra>
// kernel: custom-call.5
= control target key start
LH: loop header
LB: loop body
LE: loop exit
PB: predicated region body
PF: predicated region fallthrough
CT: control target
= control target key end

     0   :  { %s56_s0 = inlined_call_operand.hbm [shape: c64[1,4,1,16,16], index: 0, kind: input, shape index: {}]   ;;  %s57_s1 = inlined_call_operand.vmem [shape: f32[1,4,1,16,16], index: 1, kind: output, shape index: {}]  }
   0x1   :  { %s2_s8 = scalar_lea.hbm %s56_s0, 64 }
   0x2   :  { %3 = vsyncpa [#allocation0], 0  ;;  %s5_s9 = sshll.u32 %s2_s8, 4  ;;  %s7_s12 = sshll.u32 %s57_s1, 4  ;;  %s6_s9 = int_to_ptr.hbm [resolvable:$true] %s5_s9  ;;  %s8_s12 = int_to_ptr.vmem [resolvable:$true] %s7_s12 }
   0x3   :  { %10 = dma.hbm_to_vmem [thread:$0]  %s6_s9, 1024, %s8_s12, [#allocation0] }
   0x4   :  { %38 = dma.done.wait [#allocation0], 1024  }
   0x5   :  { %39 = vsyncadd [#allocation0], 4294966272 }
   0x6   :  { %13 = vsyncpa [#allocation0], 1 }

// kernel: custom-call.4
= control target key start
LH: loop header
LB: loop body
LE: loop exit
PB: predicated region body
PF: predicated region fallthrough
CT: control target
= control target key end

     0   :  { %2 = vsyncpa [#allocation0], 0  ;;  %s55_s0 = inlined_call_operand.hbm [shape: c64[1,4,1,16,16], index: 0, kind: input, shape index: {}]   ;;  %s56_s1 = inlined_call_operand.vmem [shape: f32[1,4,1,16,16], index: 1, kind: output, shape index: {}]  }
   0x1   :  { %s4_s8 = sshll.u32 %s55_s0, 4  ;;  %s6_s11 = sshll.u32 %s56_s1, 4  ;;  %s5_s8 = int_to_ptr.hbm [resolvable:$true] %s4_s8  ;;  %s7_s11 = int_to_ptr.vmem [resolvable:$true] %s6_s11 }
   0x2   :  { %9 = dma.hbm_to_vmem [thread:$0]  %s5_s8, 1024, %s7_s11, [#allocation0] }
   0x3   :  { %37 = dma.done.wait [#allocation0], 1024  }
   0x4   :  { %38 = vsyncadd [#allocation0], 4294966272 }
   0x5   :  { %12 = vsyncpa [#allocation0], 1 }

// kernel: custom-call.1
= control target key start
LH: loop header
LB: loop body
LE: loop exit
PB: predicated region body
PF: predicated region fallthrough
CT: control target
= control target key end

     0   :  { %s56_s0 = inlined_call_operand.hbm [shape: c64[1,8,16,16], index: 0, kind: input, shape index: {}]   ;;  %s57_s1 = inlined_call_operand.vmem [shape: f32[1,8,16,16], index: 1, kind: output, shape index: {}]  }
   0x1   :  { %s2_s8 = scalar_lea.hbm %s56_s0, 128 }
   0x2   :  { %3 = vsyncpa [#allocation0], 0  ;;  %s5_s9 = sshll.u32 %s2_s8, 4  ;;  %s7_s12 = sshll.u32 %s57_s1, 4  ;;  %s6_s9 = int_to_ptr.hbm [resolvable:$true] %s5_s9  ;;  %s8_s12 = int_to_ptr.vmem [resolvable:$true] %s7_s12 }
   0x3   :  { %10 = dma.hbm_to_vmem [thread:$0]  %s6_s9, 2048, %s8_s12, [#allocation0] }
   0x4   :  { %38 = dma.done.wait [#allocation0], 2048  }
   0x5   :  { %39 = vsyncadd [#allocation0], 4294965248 }
   0x6   :  { %13 = vsyncpa [#allocation0], 1 }

// kernel: custom-call
= control target key start
LH: loop header
LB: loop body
LE: loop exit
PB: predicated region body
PF: predicated region fallthrough
CT: control target
= control target key end

     0   :  { %2 = vsyncpa [#allocation0], 0  ;;  %s55_s0 = inlined_call_operand.hbm [shape: c64[1,8,16,16], index: 0, kind: input, shape index: {}]   ;;  %s56_s1 = inlined_call_operand.vmem [shape: f32[1,8,16,16], index: 1, kind: output, shape index: {}]  }
   0x1   :  { %s4_s8 = sshll.u32 %s55_s0, 4  ;;  %s6_s11 = sshll.u32 %s56_s1, 4  ;;  %s5_s8 = int_to_ptr.hbm [resolvable:$true] %s4_s8  ;;  %s7_s11 = int_to_ptr.vmem [resolvable:$true] %s6_s11 }
   0x2   :  { %9 = dma.hbm_to_vmem [thread:$0]  %s5_s8, 2048, %s7_s11, [#allocation0] }
   0x3   :  { %37 = dma.done.wait [#allocation0], 2048  }
   0x4   :  { %38 = vsyncadd [#allocation0], 4294965248 }
   0x5   :  { %12 = vsyncpa [#allocation0], 1 }

// kernel: custom-call.3
= control target key start
LH: loop header
LB: loop body
LE: loop exit
PB: predicated region body
PF: predicated region fallthrough
CT: control target
= control target key end

     0   :  { %s56_s0 = inlined_call_operand.hbm [shape: c64[1,4,8,16,16], index: 0, kind: input, shape index: {}]   ;;  %s57_s1 = inlined_call_operand.vmem [shape: f32[1,4,8,16,16], index: 1, kind: output, shape index: {}]  }
   0x1   :  { %s2_s8 = scalar_lea.hbm %s56_s0, 512 }
   0x2   :  { %3 = vsyncpa [#allocation0], 0  ;;  %s5_s9 = sshll.u32 %s2_s8, 4  ;;  %s7_s12 = sshll.u32 %s57_s1, 4  ;;  %s6_s9 = int_to_ptr.hbm [resolvable:$true] %s5_s9  ;;  %s8_s12 = int_to_ptr.vmem [resolvable:$true] %s7_s12 }
   0x3   :  { %10 = dma.hbm_to_vmem [thread:$0]  %s6_s9, 8192, %s8_s12, [#allocation0] }
   0x4   :  { %38 = dma.done.wait [#allocation0], 8192  }
   0x5   :  { %39 = vsyncadd [#allocation0], 4294959104 }
   0x6   :  { %13 = vsyncpa [#allocation0], 1 }

// kernel: custom-call.2
= control target key start
LH: loop header
LB: loop body
LE: loop exit
PB: predicated region body
PF: predicated region fallthrough
CT: control target
= control target key end

     0   :  { %2 = vsyncpa [#allocation0], 0  ;;  %s55_s0 = inlined_call_operand.hbm [shape: c64[1,4,8,16,16], index: 0, kind: input, shape index: {}]   ;;  %s56_s1 = inlined_call_operand.vmem [shape: f32[1,4,8,16,16], index: 1, kind: output, shape index: {}]  }
   0x1   :  { %s4_s8 = sshll.u32 %s55_s0, 4  ;;  %s6_s11 = sshll.u32 %s56_s1, 4  ;;  %s5_s8 = int_to_ptr.hbm [resolvable:$true] %s4_s8  ;;  %s7_s11 = int_to_ptr.vmem [resolvable:$true] %s6_s11 }
   0x2   :  { %9 = dma.hbm_to_vmem [thread:$0]  %s5_s8, 8192, %s7_s11, [#allocation0] }
   0x3   :  { %37 = dma.done.wait [#allocation0], 8192  }
   0x4   :  { %38 = vsyncadd [#allocation0], 4294959104 }
   0x5   :  { %12 = vsyncpa [#allocation0], 1 }

// kernel: moco_recon_forward.9
= control target key start
LH: loop header
LB: loop body
LE: loop exit
PB: predicated region body
PF: predicated region fallthrough
CT: control target
= control target key end

     0   :  { %s5488_s0 = inlined_call_operand.vmem [shape: f32[2,16,256], index: 0, kind: input, shape index: {}]   ;;  %s5489_s1 = inlined_call_operand.vmem [shape: f32[18,8], index: 1, kind: input, shape index: {}]   ;;  %s5490_s2 = inlined_call_operand.vmem [shape: f32[8], index: 2, kind: input, shape index: {}]   ;;  %s5491_s3 = inlined_call_operand.vmem [shape: f32[2,8], index: 3, kind: input, shape index: {}]   ;;  %s5492_s4 = inlined_call_operand.vmem [shape: f32[2], index: 4, kind: input, shape index: {}]   ;;  %s5493_s5 = inlined_call_operand.vmem [shape: f32[2,16,256], index: 5, kind: output, shape index: {}]  }
   0x1   :  { %5603 = sst [smem:[#allocation71_spill]] %s5488_s0 }
   0x2   :  { %5604 = sst [smem:[#allocation72_spill]] %s5493_s5 }
   0x3   :  { %10 = vsyncpa [#allocation3], 0 }
   0x4   :  { %11 = vsyncpa [#allocation5], 0  ;;  %s31_s20 = sshll.u32 %s5490_s2, 4  ;;  %s32_s20 = int_to_ptr.vmem [resolvable:$true] %s31_s20 }
   0x5   :  { %12 = vsyncpa [#allocation8], 0  ;;  %s19_s23 = sshll.u32 %s5489_s1, 4  ;;  %s2393_s24 = smov [#allocation4]   ;;  %s20_s23 = int_to_ptr.vmem [resolvable:$true] %s19_s23 }
   0x6   :  { %34 = dma.vmem_to_smem %s32_s20, 16, %s2393_s24, [#allocation5]  }
   0x7   :  { %s2394_s25 = smov [#allocation2]   ;;  %s2395_s26 = smov 128  }
   0x8   :  { %s2396_s27 = smov 8   ;;  %s40_s30 = sshll.u32 %s5491_s3, 4  ;;  %s41_s30 = int_to_ptr.vmem [resolvable:$true] %s40_s30 }
   0x9   :  { %25 = dma.vmem_to_smem %s20_s23, 384, %s2394_s25, [#allocation3], %s2395_s26, %s2395_s26, %s2396_s27  }
   0xa   :  { %s49_s7 = sshll.u32 %s5492_s4, 4  ;;  %s2397_s8 = smov [#allocation6]   ;;  %s50_s7 = int_to_ptr.vmem [resolvable:$true] %s49_s7 }
   0xb   :  { %43 = dma.vmem_to_smem %s41_s30, 32, %s2397_s8, [#allocation5]  }
   0xc   :  { %s2398_s1 = smov [#allocation7]  }
   0xd   :  { %52 = dma.vmem_to_smem %s50_s7, 16, %s2398_s1, [#allocation8]  }
   0xe   :  { %2387 = dma.done.wait [#allocation3], 384  }
   0xf   :  { %2388 = vsyncadd [#allocation3], 4294966912 }
  0x10   :  { %2389 = dma.done.wait [#allocation5], 48  }
  0x11   :  { %2390 = vsyncadd [#allocation5], 4294967248 }
  0x12   :  { %2391 = dma.done.wait [#allocation8], 16  }
  0x13   :  { %2392 = vsyncadd [#allocation8], 4294967280 }
  0x14   :  { %69 = sfence }
  0x15   :  { %v70_v0 = vlaneseq  ;;  %v2446_v1 = vld [vmem:[%s5488_s0 + $0x8] sm:$0xff]  ;;  %v119_v2 = vld [vmem:[%s5488_s0 + $0x18] sm:$0xff]  ;;  %vm128_vm0 = vcmask 1040384   ;;  %v2454_v3 = vld [vmem:[%s5488_s0] sm:$0xff]  ;;  %s5496_s15 = smov 1   ;;  %s5494_s16 = smov 127  }
  0x16   :  { %5605 = vst [vmem:[#allocation12_spill] sm:$0xff] %v2446_v1  ;;  %v123_v4 = vrot.slane %v119_v2, 7  ;;  %v130_v5 = vrot.slane %v2446_v1, 7  ;;  %v118_v6 = vld [vmem:[%s5488_s0 + $0x10] sm:$0xff]  ;;  %v129_v7 = vrot.slane %v2454_v3, 7  ;;  %v2500_v16 = vld [vmem:[%s5488_s0 + $0x28] sm:$0xff] }
  0x17   :  { %5606 = vst [vmem:[#allocation13_spill] sm:$0xff] %v2454_v3  ;;  %v71_v8 = vshrl.u32 %v70_v0, 7  ;;  %v122_v9 = vrot.slane %v118_v6, 7  ;;  %v2505_v17 = vld [vmem:[%s5488_s0 + $0x38] sm:$0xff]  ;;  %v1046_v19 = vrot.slane %v2500_v16, 7  ;;  %v2521_v22 = vld [vmem:[%s5488_s0 + $0x20] sm:$0xff] }
  0x18   :  { %v138_v10 = vsel %vm128_vm0, %v123_v4, %v130_v5  ;;  %v2477_v14 = vsel %vm128_vm0, %v130_v5, %v123_v4  ;;  %v1040_v18 = vrot.slane %v2505_v17, 7  ;;  %v2526_v23 = vld [vmem:[%s5488_s0 + $0x30] sm:$0xff]  ;;  %v727_v24 = vrot.slane %v2446_v1, 1  ;;  %s2580_s25 = sld [smem:[#allocation2 + $0x100]] }
  0x19   :  { %vm139_vm1 = vcmp.ge.s32.totalorder %v71_v8, 1  ;;  %v137_v11 = vsel %vm128_vm0, %v122_v9, %v129_v7  ;;  %v2480_v15 = vsel %vm128_vm0, %v129_v7, %v122_v9  ;;  %v728_v25 = vrot.slane %v119_v2, 1  ;;  %s2584_s26 = sld [smem:[#allocation2 + $0x101]] }
  0x1a   :  { %v2465_v12 = vsel %vm139_vm1, %v138_v10, 0.0  ;;  %v2468_v13 = vsel %vm139_vm1, %v137_v11, 0.0  ;;  %v1054_v20 = vsel %vm128_vm0, %v1040_v18, %v1046_v19  ;;  %v2529_v26 = vadd.s32 8, %v71_v8  ;;  %s2586_s27 = sld [smem:[#allocation2 + $0x102]] }
  0x1b   :  { %147 = vrot.lane.b32.xlu0 %v2465_v12, %s5496_s15  ;;  %155 = vrot.lane.b32.xlu1 %v2468_v13, %s5496_s15  ;;  %v2512_v21 = vsel %vm139_vm1, %v1054_v20, 0.0  ;;  %vm723_vm2 = vcmask 1046528   ;;  %v1039_v27 = vrot.slane %v2526_v23, 7  ;;  %v1045_v28 = vrot.slane %v2521_v22, 7  ;;  %s2588_s28 = sld [smem:[#allocation2 + $0x103]] }
  0x1c   :  { %334 = vrot.lane.b32.xlu2 %v2468_v13, %s5494_s16  ;;  %5607 = vst [vmem:[#allocation14_spill] sm:$0xff] %v2512_v21  ;;  %v737_v29 = vsel %vm723_vm2, %v728_v25, %v727_v24  ;;  %v2536_v30 = vsel %vm723_vm2, %v727_v24, %v728_v25  ;;  %vm739_vm3 = vcmp.le.s32.totalorder %v2529_v26, 14  ;;  %v724_v31 = vrot.slane %v2454_v3, 1  ;;  %s2590_s29 = sld [smem:[#allocation2 + $0x104]] }
  0x1d   :  { %5608 = vst [vmem:[#allocation15_spill] sm:$0xff] %v2536_v30  ;;  %v725_v32 = vrot.slane %v118_v6, 1  ;;  %v2542_v33 = vsel %vm739_vm3, %v737_v29, 0.0  ;;  %v1053_v34 = vsel %vm128_vm0, %v1039_v27, %v1045_v28  ;;  %v2574_v39 = vsel %vm128_vm0, %v1046_v19, %v1040_v18  ;;  %s2595_s30 = sld [smem:[#allocation2 + $0x105]] }
  0x1e   :  { %5609 = vst [vmem:[#allocation16_spill] sm:$0xff] %v2542_v33  ;;  %v2546_v35 = vsel %vm139_vm1, %v1053_v34, 0.0  ;;  %v2593_v40 = vsel %vm128_vm0, %v1045_v28, %v1039_v27  ;;  %s2597_s6 = sld [smem:[#allocation2 + $0x106]]  ;;  %v2640_v41 = vand.u32 127, %v70_v0  ;;  %v1631_v42 = vrot.slane %v2521_v22, 1 }
  0x1f   :  { %5610 = vst [vmem:[#allocation17_spill] sm:$0xff] %v2546_v35  ;;  %v736_v36 = vsel %vm723_vm2, %v725_v32, %v724_v31  ;;  %v2555_v37 = vsel %vm723_vm2, %v724_v31, %v725_v32  ;;  %s2599_s2 = sld [smem:[#allocation2 + $0x107]]  ;;  %v1632_v43 = vrot.slane %v2526_v23, 1  ;;  %v5502_v44 = vrot.slane %v2500_v16, 1 }
  0x20   :  { %5611 = vst [vmem:[#allocation18_spill] sm:$0xff] %v2555_v37  ;;  %v2559_v38 = vsel %vm739_vm3, %v736_v36, 0.0  ;;  %s2605_s7 = sld [smem:[#allocation4]]  ;;  %v5501_v45 = vrot.slane %v2505_v17, 1  ;;  %v2661_v46 = vadd.s32 128, %v2640_v41  ;;  %v80_v50 = vand.u32 15, %v2640_v41 }
  0x21   :  { %5612 = vst [vmem:[#allocation19_spill] sm:$0xff] %v2559_v38  ;;  %s2609_s8 = sld [smem:[#allocation4 + $0x1]]  ;;  %v1643_v47 = vsel %vm723_vm2, %v1632_v43, %v1631_v42  ;;  %v2681_v51 = vsel %vm723_vm2, %v1631_v42, %v1632_v43  ;;  %v2689_v54 = vstv %s2580_s25  ;;  %v2694_v55 = vstv %s2584_s26  ;;  %s5626_s25 = smov 127  }
  0x22   :  { %5613 = vst [vmem:[#allocation20_spill] sm:$0xff] %v2574_v39  ;;  %s2611_s1 = sld [smem:[#allocation4 + $0x2]]  ;;  %v2675_v49 = vsel %vm723_vm2, %v5502_v44, %v5501_v45  ;;  %v2685_v52 = vsel %vm739_vm3, %v1643_v47, 0.0  ;;  %v87_v53 = vand.u32 15, %v2661_v46  ;;  %v2697_v56 = vstv %s2586_s27 }
  0x23   :  { %149 = vrot.lane.b32.xlu0 %v2477_v14, %s5496_s15  ;;  %157 = vrot.lane.b32.xlu1 %v2480_v15, %s5496_s15  ;;  %5614 = vst [vmem:[#allocation21_spill] sm:$0xff] %v2593_v40  ;;  %s2613_s9 = sld [smem:[#allocation4 + $0x3]]  ;;  %v2700_v57 = vstv %s2588_s28  ;;  %v2703_v58 = vstv %s2590_s29  ;;  %vm342_vm4 = vcmask 1039360   ;;  %vm2723_vm5 = vcmp.le.s32.totalorder %v80_v50, 14 }
  0x24   :  { %336 = vrot.lane.b32.xlu2 %v2465_v12, %s5494_s16  ;;  %s2615_s3 = sld [smem:[#allocation4 + $0x4]]  ;;  %5615 = vst [vmem:[#allocation22_spill] sm:$0xff] %v2675_v49  ;;  %v2708_v59 = vstv %s2595_s30  ;;  %v2711_v60 = vstv %s2597_s6  ;;  %v5627_v63 = vmov 0  ;;  %vm2733_vm6 = vcmp.le.s32.totalorder %v87_v53, 14 }
  0x25   :  { %s2617_s10 = sld [smem:[#allocation4 + $0x5]]  ;;  %5616 = vst [vmem:[#allocation23_spill] sm:$0xff] %v2681_v51  ;;  %v2714_v61 = vstv %s2599_s2  ;;  %v5628_v63 = vsel %vm2723_vm5, 4294967295, %v5627_v63  ;;  %v5630_v4 = vmov 0  ;;  %vm159_vm7 = vcmask 7168  }
  0x26   :  { %s2619_s4 = sld [smem:[#allocation4 + $0x6]]  ;;  %5617 = vst [vmem:[#allocation24_spill] sm:$0xff] %v2685_v52  ;;  %v2717_v62 = vstv %s2605_s7  ;;  %v5631_v4 = vsel %vm2733_vm6, 4294967295, %v5630_v4  ;;  %vm2834_vm8 = vcmp.ge.s32.totalorder %v80_v50, 1  ;;  %vm2838_vm9 = vcmp.ge.s32.totalorder %v87_v53, 1 }
  0x27   :  { %s2621_s11 = sld [smem:[#allocation4 + $0x7]]  ;;  %5618 = vst [vmem:[#allocation25_spill] sm:$0xff] %v2689_v54  ;;  %v2728_v0 = vstv %s2609_s8 }
  0x28   :  { %s2627_s12 = sld [smem:[#allocation2]]  ;;  %5619 = vst [vmem:[#allocation26_spill] sm:$0xff] %v2694_v55 }
  0x29   :  { %s2631_s13 = sld [smem:[#allocation2 + $0x1]]  ;;  %5620 = vst [vmem:[#allocation27_spill] sm:$0xff] %v2697_v56  ;;  %v2738_v5 = vstv %s2613_s9 }
  0x2a   :  { %s2633_s14 = sld [smem:[#allocation2 + $0x2]]  ;;  %5621 = vst [vmem:[#allocation28_spill] sm:$0xff] %v2700_v57 }
  0x2b   :  { %338 = vrot.lane.b32.xlu0 %v2480_v15, %s5494_s16  ;;  %340 = vrot.lane.b32.xlu1 %v2477_v14, %s5494_s16  ;;  %s2635_s17 = sld [smem:[#allocation2 + $0x3]]  ;;  %5622 = vst [vmem:[#allocation29_spill] sm:$0xff] %v2703_v58  ;;  %v2744_v7 = vstv %s2617_s10 }
  0x2c   :  { %439 = vrot.lane.b32.xlu2 %v2446_v1, %s5496_s15  ;;  %s2637_s18 = sld [smem:[#allocation2 + $0x4]]  ;;  %5623 = vst [vmem:[#allocation30_spill] sm:$0xff] %v2708_v59  ;;  %v2749_v8 = vstv %s2619_s4 }
  0x2d   :  { %s2642_s19 = sld [smem:[#allocation2 + $0x5]]  ;;  %5624 = vst [vmem:[#allocation31_spill] sm:$0xff] %v2711_v60  ;;  %v2752_v9 = vstv %s2621_s11 }
  0x2e   :  { %s2646_s20 = sld [smem:[#allocation2 + $0x80]]  ;;  %5625 = vst [vmem:[#allocation32_spill] sm:$0xff] %v2714_v61  ;;  %v2755_v10 = vstv %s2627_s12 }
  0x2f   :  { %s2648_s21 = sld [smem:[#allocation2 + $0x81]]  ;;  %5629 = vst [vmem:[#allocation33_spill] sm:$0xff] %v5628_v63  ;;  %v2758_v11 = vstv %s2631_s13 }
  0x30   :  { %s2656_s22 = sld [smem:[#allocation2 + $0x82]]  ;;  %5632 = vst [vmem:[#allocation34_spill] sm:$0xff] %v5631_v4  ;;  %v2761_v19 = vstv %s2633_s14 }
  0x31   :  { %s2663_s23 = sld [smem:[#allocation2 + $0x83]]  ;;  %v2775_v29 = vstv %s2635_s17 }
  0x32   :  { %s2666_s24 = sld [smem:[#allocation2 + $0x84]]  ;;  %v2787_v36 = vstv %s2637_s18 }
  0x33   :  { %441 = vrot.lane.b32.xlu0 %v119_v2, %s5496_s15  ;;  %445 = vrot.lane.b32.xlu1 %v2454_v3, %s5496_s15  ;;  %s2691_s5 = sld [smem:[#allocation2 + $0x87]]  ;;  %v2790_v41 = vstv %s2642_s19 }
  0x34   :  { %447 = vrot.lane.b32.xlu2 %v118_v6, %s5496_s15  ;;  %s2705_s0 = sld [smem:[#allocation2 + $0x6]]  ;;  %v255_v20 = vstv %s2646_s20 }
  0x35   :  { %v2796_v43 = vmul.f32 %v255_v20, %v2465_v12  ;;  %s3031_s26 = sld [smem:[#allocation2 + $0x182]] }
  0x36   :  { %v2766_v24 = vstv %s2656_s22  ;;  %s3037_s27 = sld [smem:[#allocation2 + $0x183]] }
  0x37   :  { %v285_v27 = vstv %s2663_s23  ;;  %v2803_v47 = vmul.f32 %v2766_v24, %v2465_v12  ;;  %s3127_s28 = sld [smem:[#allocation2 + $0x184]] }
  0x38   :  { %v2772_v28 = vstv %s2666_s24  ;;  %s3133_s29 = sld [smem:[#allocation2 + $0x185]] }
  0x39   :  { %v2784_v34 = vstv %s2691_s5  ;;  %s2818_s5 = sld [smem:[#allocation2 + $0x7]]  ;;  %v2857_v50 = vmul.f32 %v2772_v28, %v2468_v13 }
  0x3a   :  { %v2793_v42 = vstv %s2705_s0  ;;  %s5633_s0 = smov 1   ;;  %v2877_v63 = vmul.f32 %v2784_v34, %v2468_v13  ;;  %s3139_s30 = sld [smem:[#allocation2 + $0x186]] }
  0x3b   :  { %621 = vrot.lane.b32.xlu0 %v2454_v3, %s5494_s16  ;;  %623 = vrot.lane.b32.xlu1 %v2446_v1, %s5494_s16  ;;  %s3145_s6 = sld [smem:[#allocation2 + $0x187]] }
  0x3c   :  { %625 = vrot.lane.b32.xlu2 %v118_v6, %s5494_s16  ;;  %v2741_v6 = vstv %s2615_s3  ;;  %s3253_s2 = sld [smem:[#allocation2 + $0x200]] }
  0x3d   :  { %s3259_s7 = sld [smem:[#allocation2 + $0x201]] }
  0x3e   :  { %s3297_s8 = sld [smem:[#allocation2 + $0x202]] }
  0x3f   :  { %s3316_s9 = sld [smem:[#allocation2 + $0x204]] }
  0x40   :  { %s3327_s3 = sld [smem:[#allocation2 + $0x205]] }
  0x41   :  { %s3333_s10 = sld [smem:[#allocation2 + $0x206]] }
  0x42   :  { %s3339_s4 = sld [smem:[#allocation2 + $0x207]] }
  0x43   :  { %627 = vrot.lane.b32.xlu0 %v119_v2, %s5494_s16  ;;  %746 = vrot.lane.b32.xlu1 %v2536_v30, %s5496_s15  ;;  %v2731_v2 = vstv %s2611_s1  ;;  %s3307_s1 = sld [smem:[#allocation2 + $0x203]] }
  0x44   :  { %748 = vrot.lane.b32.xlu2 %v2542_v33, %s5496_s15  ;;  %s3347_s11 = sld [smem:[#allocation2 + $0x280]] }
  0x45   :  { %s3355_s12 = sld [smem:[#allocation2 + $0x281]] }
  0x46   :  { %s3361_s13 = sld [smem:[#allocation2 + $0x282]] }
  0x47   :  { %s3367_s14 = sld [smem:[#allocation2 + $0x283]] }
  0x48   :  { %s3369_s17 = sld [smem:[#allocation2 + $0x284]] }
  0x49   :  { %s3371_s18 = sld [smem:[#allocation2 + $0x285]] }
  0x4a   :  { %s3378_s19 = sld [smem:[#allocation2 + $0x286]] }
  0x4b   :  { %754 = vrot.lane.b32.xlu0 %v2555_v37, %s5496_s15  ;;  %756 = vrot.lane.b32.xlu1 %v2559_v38, %s5496_s15  ;;  %s3388_s20 = sld [smem:[#allocation2 + $0x287]] }
  0x4c   :  { %930 = vrot.lane.b32.xlu2 %v2555_v37, %s5494_s16  ;;  %v5642_v37 = vrot.slane %v2505_v17, 1  ;;  %s5730_s23 = sld [smem:[#allocation71_spill]] }
  0x4d   :  { %s3749_s22 = sld [smem:[#allocation2 + $0x407]] }
  0x4e   :  { %s3966_s24 = sld [smem:[#allocation2 + $0x480]] }
  0x53   :  { %932 = vrot.lane.b32.xlu0 %v2536_v30, %s5494_s16  ;;  %934 = vrot.lane.b32.xlu1 %v2559_v38, %s5494_s16  ;;  %v2843_v38 = vmul.f32 %v255_v20, %v2468_v13  ;;  %v5641_v30 = vrot.slane %v2500_v16, 1 }
  0x54   :  { %936 = vrot.lane.b32.xlu2 %v2542_v33, %s5494_s16 }
  0x55   :  { %v1644_v3 = vsel %vm723_vm2, %v5642_v37, %v5641_v30 }
  0x5b   :  { %1061 = vrot.lane.b32.xlu0 %v2512_v21, %s5496_s15  ;;  %1063 = vrot.lane.b32.xlu1 %v2574_v39, %s5496_s15 }
  0x5c   :  { %1069 = vrot.lane.b32.xlu2 %v2546_v35, %s5496_s15 }
  0x63   :  { %1071 = vrot.lane.b32.xlu0 %v2593_v40, %s5496_s15  ;;  %1245 = vrot.lane.b32.xlu1 %v2546_v35, %s5494_s16  ;;  %v5638_v35 = vmov 0 }
  0x64   :  { %1247 = vrot.lane.b32.xlu2 %v2512_v21, %s5494_s16  ;;  %v5639_v35 = vsel %vm2838_vm9, 4294967295, %v5638_v35 }
  0x65   :  { %5640 = vst [vmem:[#allocation37_spill] sm:$0xff] %v5639_v35 }
  0x6b   :  { %1249 = vrot.lane.b32.xlu0 %v2593_v40, %s5494_s16  ;;  %1251 = vrot.lane.b32.xlu1 %v2574_v39, %s5494_s16  ;;  %s2668_s16 = sld [smem:[#allocation2 + $0x85]]  ;;  %v2830_v40 = vmul.f32 %v2784_v34, %v2465_v12 }
  0x6c   :  { %1347 = vrot.lane.b32.xlu2 %v2500_v16, %s5496_s15 }
  0x6d   :  { %5634 = vst [vmem:[#allocation35_spill] sm:$0xff] %v2830_v40  ;;  %v2881_v40 = vsel %vm739_vm3, %v1644_v3, 0.0 }
  0x6e   :  { %5644 = vst [vmem:[#allocation39_spill] sm:$0xff] %v2881_v40 }
  0x71   :  { %v2778_v31 = vstv %s2668_s16  ;;  %s3023_s16 = sld [smem:[#allocation2 + $0x181]] }
  0x72   :  { %v2822_v44 = vmul.f32 %v2778_v31, %v2465_v12  ;;  %v2861_v53 = vmul.f32 %v2778_v31, %v2468_v13 }
  0x73   :  { %1349 = vrot.lane.b32.xlu0 %v2505_v17, %s5496_s15  ;;  %1353 = vrot.lane.b32.xlu1 %v2521_v22, %s5496_s15 }
  0x74   :  { %1355 = vrot.lane.b32.xlu2 %v2526_v23, %s5496_s15  ;;  %s2678_s15 = sld [smem:[#allocation2 + $0x86]] }
  0x76   :  { %v335_v48 = vpop.permute.xlu2 %334 }
  0x7a   :  { %v2781_v32 = vstv %s2678_s15  ;;  %s3015_s15 = sld [smem:[#allocation2 + $0x180]] }
  0x7b   :  { %1529 = vrot.lane.b32.xlu0 %v2521_v22, %s5626_s25  ;;  %1531 = vrot.lane.b32.xlu1 %v2500_v16, %s5626_s25  ;;  %v265_v22 = vstv %s2648_s21  ;;  %v2826_v39 = vmul.f32 %v2781_v32, %v2465_v12  ;;  %v2873_v4 = vmul.f32 %v2781_v32, %v2468_v13  ;;  %s3741_s21 = sld [smem:[#allocation2 + $0x406]] }
  0x7c   :  { %1533 = vrot.lane.b32.xlu2 %v2526_v23, %s5626_s25  ;;  %v2799_v46 = vmul.f32 %v265_v22, %v2465_v12  ;;  %v2846_v33 = vmul.f32 %v265_v22, %v2468_v13 }
  0x7e   :  { %v337_v18 = vpop.permute.xlu2 %336 }
  0x7f   :  { %v343_v23 = vsel %vm342_vm4, %v335_v48, %v337_v18  ;;  %v351_v25 = vsel %vm342_vm4, %v337_v18, %v335_v48  ;;  %v2806_v48 = vmul.f32 %v285_v27, %v2465_v12  ;;  %v2810_v18 = vmul.f32 %v2772_v28, %v2465_v12 }
  0x80   :  { %v355_v45 = vsel %vm2723_vm5, %v343_v23, 0.0  ;;  %v356_v21 = vsel %vm2733_vm6, %v351_v25, 0.0  ;;  %v5635_v23 = vmov 0  ;;  %v2850_v12 = vmul.f32 %v2766_v24, %v2468_v13 }
  0x81   :  { %v5636_v23 = vsel %vm2834_vm8, 4294967295, %v5635_v23  ;;  %v2853_v25 = vmul.f32 %v285_v27, %v2468_v13  ;;  %v2869_v1 = vmul.f32 %v2689_v54, %v355_v45  ;;  %v2884_v16 = vmul.f32 %v2689_v54, %v356_v21 }
  0x82   :  { %5637 = vst [vmem:[#allocation36_spill] sm:$0xff] %v5636_v23  ;;  %v2890_v30 = vmul.f32 %v2694_v55, %v356_v21  ;;  %v2893_v37 = vmul.f32 %v2697_v56, %v355_v45  ;;  %v2898_v13 = vmul.f32 %v2697_v56, %v356_v21  ;;  %v2901_v3 = vmul.f32 %v2700_v57, %v355_v45 }
  0x83   :  { %1535 = vrot.lane.b32.xlu0 %v2505_v17, %s5626_s25  ;;  %1651 = vrot.lane.b32.xlu1 %v2675_v49, %s5633_s0  ;;  %5643 = vst [vmem:[#allocation38_spill] sm:$0xff] %v2869_v1  ;;  %v2887_v17 = vmul.f32 %v2694_v55, %v355_v45  ;;  %v2904_v26 = vmul.f32 %v2700_v57, %v356_v21  ;;  %v3437_v23 = vstv %s3371_s18  ;;  %s3718_s18 = sld [smem:[#allocation2 + $0x403]] }
  0x84   :  { %5645 = vst [vmem:[#allocation40_spill] sm:$0xff] %v2884_v16  ;;  %1653 = vrot.lane.b32.xlu2 %v2881_v40, %s5633_s0  ;;  %v2910_v1 = vmul.f32 %v2703_v58, %v356_v21 }
  0x85   :  { %5646 = vst [vmem:[#allocation41_spill] sm:$0xff] %v2887_v17  ;;  %v2907_v17 = vmul.f32 %v2703_v58, %v355_v45  ;;  %v2983_v58 = vmul.f32 %v2781_v32, %v2480_v15 }
  0x86   :  { %5647 = vst [vmem:[#allocation42_spill] sm:$0xff] %v2890_v30  ;;  %v2916_v30 = vmul.f32 %v2708_v59, %v356_v21 }
  0x87   :  { %5648 = vst [vmem:[#allocation43_spill] sm:$0xff] %v2893_v37  ;;  %v2913_v37 = vmul.f32 %v2708_v59, %v355_v45 }
  0x88   :  { %5649 = vst [vmem:[#allocation44_spill] sm:$0xff] %v2898_v13  ;;  %v2919_v13 = vmul.f32 %v2711_v60, %v355_v45 }
  0x89   :  { %5650 = vst [vmem:[#allocation45_spill] sm:$0xff] %v2901_v3  ;;  %v2922_v3 = vmul.f32 %v2711_v60, %v356_v21  ;;  %v2977_v60 = vmul.f32 %v2778_v31, %v2477_v14 }
  0x8a   :  { %5651 = vst [vmem:[#allocation46_spill] sm:$0xff] %v2904_v26  ;;  %v2925_v26 = vmul.f32 %v2714_v61, %v355_v45  ;;  %v2944_v45 = vmul.f32 %v265_v22, %v2480_v15 }
  0x8b   :  { %5652 = vst [vmem:[#allocation47_spill] sm:$0xff] %v2907_v17  ;;  %v2928_v17 = vmul.f32 %v2714_v61, %v356_v21  ;;  %1659 = vrot.lane.b32.xlu0 %v2681_v51, %s5633_s0  ;;  %1661 = vrot.lane.b32.xlu1 %v2685_v52, %s5633_s0  ;;  %v2947_v21 = vmul.f32 %v265_v22, %v2477_v14  ;;  %s3982_s0 = sld [smem:[#allocation2 + $0x482]] }
  0x8c   :  { %5653 = vst [vmem:[#allocation48_spill] sm:$0xff] %v2910_v1  ;;  %v2931_v1 = vmul.f32 %v255_v20, %v2480_v15  ;;  %v2965_v22 = vmul.f32 %v2772_v28, %v2480_v15  ;;  %v2969_v61 = vmul.f32 %v2772_v28, %v2477_v14  ;;  %v2987_v28 = vmul.f32 %v2781_v32, %v2477_v14 }
  0x8d   :  { %5654 = vst [vmem:[#allocation49_spill] sm:$0xff] %v2913_v37  ;;  %v2938_v37 = vstv %s2818_s5  ;;  %v156_v16 = vpop.permute.xlu1 %155  ;;  %1835 = vrot.lane.b32.xlu2 %v2681_v51, %s5626_s25  ;;  %s3992_s5 = sld [smem:[#allocation2 + $0x483]] }
  0x8e   :  { %5655 = vst [vmem:[#allocation50_spill] sm:$0xff] %v2916_v30  ;;  %v148_v30 = vpop.permute.xlu0 %147 }
  0x8f   :  { %5656 = vst [vmem:[#allocation51_spill] sm:$0xff] %v2919_v13  ;;  %v2941_v13 = vmul.f32 %v255_v20, %v2477_v14  ;;  %v2961_v20 = vmul.f32 %v285_v27, %v2477_v14  ;;  %v166_v59 = vsel %vm159_vm7, %v148_v30, %v156_v16 }
  0x90   :  { %5657 = vst [vmem:[#allocation52_spill] sm:$0xff] %v2922_v3  ;;  %v2958_v3 = vmul.f32 %v285_v27, %v2480_v15  ;;  %v160_v27 = vsel %vm159_vm7, %v156_v16, %v148_v30  ;;  %v170_v57 = vsel %vm2834_vm8, %v166_v59, 0.0  ;;  %v2999_v16 = vmul.f32 %v2784_v34, %v2477_v14 }
  0x91   :  { %5658 = vst [vmem:[#allocation53_spill] sm:$0xff] %v2925_v26  ;;  %v2951_v26 = vmul.f32 %v2766_v24, %v2480_v15  ;;  %v171_v56 = vsel %vm2838_vm9, %v160_v27, 0.0  ;;  %v176_v32 = vmul.f32 %v2755_v10, %v170_v57  ;;  %v186_v59 = vmul.f32 %v2758_v11, %v170_v57 }
  0x92   :  { %5659 = vst [vmem:[#allocation54_spill] sm:$0xff] %v2928_v17  ;;  %v2955_v17 = vmul.f32 %v2766_v24, %v2477_v14  ;;  %v2973_v24 = vmul.f32 %v2778_v31, %v2480_v15  ;;  %v2995_v31 = vmul.f32 %v2784_v34, %v2480_v15  ;;  %v177_v30 = vmul.f32 %v2755_v10, %v171_v56 }
  0x93   :  { %5661 = vst [vmem:[#allocation56_spill] sm:$0xff] %v2958_v3  ;;  %v187_v55 = vmul.f32 %v2758_v11, %v171_v56  ;;  %v196_v27 = vmul.f32 %v2761_v19, %v170_v57  ;;  %v197_v15 = vmul.f32 %v2761_v19, %v171_v56  ;;  %v206_v54 = vmul.f32 %v2775_v29, %v170_v57 }
  0x94   :  { %5660 = vst [vmem:[#allocation55_spill] sm:$0xff] %v2955_v17  ;;  %v207_v14 = vmul.f32 %v2775_v29, %v171_v56  ;;  %v180_v34 = vadd.f32 %v176_v32, %v2717_v62  ;;  %v181_v51 = vadd.f32 %v177_v30, %v2717_v62  ;;  %1837 = vrot.lane.b32.xlu0 %v2675_v49, %s5626_s25 }
  0x95   :  { %5662 = vst [vmem:[#allocation57_spill] sm:$0xff] %v2961_v20  ;;  %v216_v32 = vmul.f32 %v2787_v36, %v170_v57  ;;  %v217_v30 = vmul.f32 %v2787_v36, %v171_v56  ;;  %1839 = vrot.lane.b32.xlu1 %v2685_v52, %s5626_s25  ;;  %1841 = vrot.lane.b32.xlu2 %v2881_v40, %s5626_s25  ;;  %s3972_s25 = sld [smem:[#allocation2 + $0x481]] }
  0x96   :  { %5663 = vst [vmem:[#allocation58_spill] sm:$0xff] %v2965_v22 }
  0x97   :  { %5664 = vst [vmem:[#allocation59_spill] sm:$0xff] %v2969_v61  ;;  %v220_v49 = vadd.f32 %v216_v32, %v2741_v6  ;;  %v221_v61 = vadd.f32 %v217_v30, %v2741_v6  ;;  %v3053_v32 = vadd.f32 %v2796_v43, %v181_v51  ;;  %v150_v43 = vpop.permute.xlu0 %149 }
  0x98   :  { %5665 = vst [vmem:[#allocation60_spill] sm:$0xff] %v2973_v24  ;;  %v211_v24 = vadd.f32 %v207_v14, %v2738_v5  ;;  %v247_v14 = vmul.f32 %v2938_v37, %v171_v56 }
  0x99   :  { %5666 = vst [vmem:[#allocation61_spill] sm:$0xff] %v2977_v60  ;;  %v210_v60 = vadd.f32 %v206_v54, %v2738_v5  ;;  %v236_v54 = vmul.f32 %v2793_v42, %v170_v57 }
  0x9a   :  { %5667 = vst [vmem:[#allocation62_spill] sm:$0xff] %v2983_v58  ;;  %v201_v58 = vadd.f32 %v197_v15, %v2731_v2  ;;  %v246_v15 = vmul.f32 %v2938_v37, %v170_v57  ;;  %v3071_v51 = vadd.f32 %v2806_v48, %v211_v24 }
  0x9b   :  { %5668 = vst [vmem:[#allocation63_spill] sm:$0xff] %v2987_v28  ;;  %v200_v28 = vadd.f32 %v196_v27, %v2731_v2  ;;  %v237_v27 = vmul.f32 %v2793_v42, %v171_v56  ;;  %v240_v20 = vadd.f32 %v236_v54, %v2749_v8 }
  0x9c   :  { %5669 = vst [vmem:[#allocation64_spill] sm:$0xff] %v2995_v31  ;;  %v191_v31 = vadd.f32 %v187_v55, %v2728_v0  ;;  %v226_v55 = vmul.f32 %v2790_v41, %v170_v57  ;;  %v250_v17 = vadd.f32 %v246_v15, %v2752_v9  ;;  %v251_v57 = vadd.f32 %v247_v14, %v2752_v9 }
  0x9d   :  { %5670 = vst [vmem:[#allocation65_spill] sm:$0xff] %v2999_v16  ;;  %v190_v16 = vadd.f32 %v186_v59, %v2728_v0  ;;  %v227_v59 = vmul.f32 %v2790_v41, %v171_v56  ;;  %v241_v3 = vadd.f32 %v237_v27, %v2749_v8  ;;  %v3050_v56 = vadd.f32 %v2843_v38, %v180_v34 }
  0x9e   :  { %v230_v22 = vadd.f32 %v226_v55, %v2744_v7  ;;  %v3059_v55 = vadd.f32 %v2799_v46, %v191_v31  ;;  %v3065_v54 = vadd.f32 %v2803_v47, %v201_v58  ;;  %v3068_v38 = vadd.f32 %v2853_v25, %v210_v60 }
  0x9f   :  { %v231_v52 = vadd.f32 %v227_v59, %v2744_v7  ;;  %v3056_v30 = vadd.f32 %v2846_v33, %v190_v16  ;;  %v3062_v59 = vadd.f32 %v2850_v12, %v200_v28  ;;  %v158_v33 = vpop.permute.xlu1 %157  ;;  %v3074_v46 = vadd.f32 %v2857_v50, %v220_v49  ;;  %v5676_v49 = vld [vmem:[#allocation35_spill] sm:$0xff] }
  0xa0   :  { %5671 = vst [vmem:[#allocation66_spill] sm:$0xff] %v3068_v38  ;;  %v3077_v12 = vadd.f32 %v2810_v18, %v221_v61  ;;  %v3080_v58 = vadd.f32 %v2861_v53, %v230_v22  ;;  %v3086_v60 = vadd.f32 %v2873_v4, %v240_v20  ;;  %v3089_v48 = vadd.f32 %v2826_v39, %v241_v3 }
  0xa1   :  { %5672 = vst [vmem:[#allocation67_spill] sm:$0xff] %v3074_v46  ;;  %v3083_v47 = vadd.f32 %v2822_v44, %v231_v52  ;;  %v3092_v25 = vadd.f32 %v2877_v63, %v250_v17  ;;  %v3095_v50 = vadd.f32 %v5676_v49, %v251_v57  ;;  %v161_v61 = vsel %vm159_vm7, %v158_v33, %v150_v43  ;;  %v5697_v46 = vld [vmem:[#allocation31_spill] sm:$0xff] }
  0xa2   :  { %5673 = vst [vmem:[#allocation68_spill] sm:$0xff] %v3080_v58  ;;  %v167_v18 = vsel %vm159_vm7, %v150_v43, %v158_v33  ;;  %v3100_v53 = vstv %s3015_s15  ;;  %v3103_v44 = vstv %s3023_s16  ;;  %v173_v39 = vsel %vm2838_vm9, %v161_v61, 0.0  ;;  %s3998_s15 = sld [smem:[#allocation2 + $0x484]] }
  0xa3   :  { %5674 = vst [vmem:[#allocation69_spill] sm:$0xff] %v3086_v60  ;;  %v172_v52 = vsel %vm2834_vm8, %v167_v18, 0.0  ;;  %v3110_v4 = vstv %s3031_s26  ;;  %v3113_v63 = vstv %s3037_s27  ;;  %v179_v3 = vmul.f32 %v2755_v10, %v173_v39  ;;  %v5696_v60 = vld [vmem:[#allocation30_spill] sm:$0xff]  ;;  %s3547_s26 = sld [smem:[#allocation2 + $0x300]] }
  0xa4   :  { %5675 = vst [vmem:[#allocation70_spill] sm:$0xff] %v3092_v25  ;;  %v178_v17 = vmul.f32 %v2755_v10, %v172_v52  ;;  %v188_v20 = vmul.f32 %v2758_v11, %v172_v52  ;;  %v189_v22 = vmul.f32 %v2758_v11, %v173_v39  ;;  %v198_v24 = vmul.f32 %v2761_v19, %v172_v52  ;;  %s3553_s27 = sld [smem:[#allocation2 + $0x301]] }
  0xa5   :  { %v199_v28 = vmul.f32 %v2761_v19, %v173_v39  ;;  %v208_v31 = vmul.f32 %v2775_v29, %v172_v52  ;;  %v209_v16 = vmul.f32 %v2775_v29, %v173_v39  ;;  %v183_v27 = vadd.f32 %v179_v3, %v2717_v62  ;;  %s4004_s16 = sld [smem:[#allocation2 + $0x485]] }
  0xa6   :  { %v182_v34 = vadd.f32 %v178_v17, %v2717_v62  ;;  %v192_v15 = vadd.f32 %v188_v20, %v2728_v0  ;;  %v193_v10 = vadd.f32 %v189_v22, %v2728_v0  ;;  %v202_v11 = vadd.f32 %v198_v24, %v2731_v2  ;;  %v3155_v20 = vpop.permute.xlu2 %439  ;;  %v339_v24 = vpop.permute.xlu0 %338 }
  0xa7   :  { %v203_v14 = vadd.f32 %v199_v28, %v2731_v2  ;;  %v212_v19 = vadd.f32 %v208_v31, %v2738_v5  ;;  %v213_v57 = vadd.f32 %v209_v16, %v2738_v5  ;;  %v218_v29 = vmul.f32 %v2787_v36, %v172_v52  ;;  %5677 = vst [vmem:[#allocation35_spill] sm:$0xff] %v3155_v20  ;;  %v5678_v28 = vld [vmem:[#allocation55_spill] sm:$0xff]  ;;  %v5679_v31 = vld [vmem:[#allocation56_spill] sm:$0xff]  ;;  %v5695_v20 = vld [vmem:[#allocation29_spill] sm:$0xff] }
  0xa8   :  { %v219_v62 = vmul.f32 %v2787_v36, %v173_v39  ;;  %v228_v43 = vmul.f32 %v2790_v41, %v172_v52  ;;  %v229_v0 = vmul.f32 %v2790_v41, %v173_v39  ;;  %v238_v33 = vmul.f32 %v2793_v42, %v172_v52 }
  0xa9   :  { %v239_v2 = vmul.f32 %v2793_v42, %v173_v39  ;;  %v248_v49 = vmul.f32 %v2938_v37, %v172_v52  ;;  %v249_v5 = vmul.f32 %v2938_v37, %v173_v39  ;;  %v222_v61 = vadd.f32 %v218_v29, %v2741_v6 }
  0xaa   :  { %v223_v36 = vadd.f32 %v219_v62, %v2741_v6  ;;  %v232_v18 = vadd.f32 %v228_v43, %v2744_v7  ;;  %v233_v41 = vadd.f32 %v229_v0, %v2744_v7  ;;  %v242_v17 = vadd.f32 %v238_v33, %v2749_v8  ;;  %v341_v62 = vpop.permute.xlu1 %340  ;;  %v5685_v43 = vld [vmem:[#allocation62_spill] sm:$0xff] }
  0xab   :  { %v243_v3 = vadd.f32 %v239_v2, %v2749_v8  ;;  %v252_v42 = vadd.f32 %v248_v49, %v2752_v9  ;;  %v253_v52 = vadd.f32 %v249_v5, %v2752_v9  ;;  %v262_v37 = vadd.f32 %v2931_v1, %v182_v34  ;;  %v5680_v9 = vld [vmem:[#allocation57_spill] sm:$0xff]  ;;  %v5681_v1 = vld [vmem:[#allocation58_spill] sm:$0xff]  ;;  %v5682_v34 = vld [vmem:[#allocation59_spill] sm:$0xff] }
  0xac   :  { %v263_v39 = vadd.f32 %v2941_v13, %v183_v27  ;;  %v272_v6 = vadd.f32 %v2944_v45, %v192_v15  ;;  %v273_v22 = vadd.f32 %v2947_v21, %v193_v10  ;;  %v282_v7 = vadd.f32 %v2951_v26, %v202_v11  ;;  %v5683_v27 = vld [vmem:[#allocation60_spill] sm:$0xff]  ;;  %v5684_v15 = vld [vmem:[#allocation61_spill] sm:$0xff]  ;;  %v5686_v11 = vld [vmem:[#allocation63_spill] sm:$0xff] }
  0xad   :  { %v283_v8 = vadd.f32 %v5678_v28, %v203_v14  ;;  %v292_v16 = vadd.f32 %v5679_v31, %v212_v19  ;;  %v293_v29 = vadd.f32 %v5680_v9, %v213_v57  ;;  %v302_v13 = vadd.f32 %v5681_v1, %v222_v61  ;;  %v5687_v14 = vld [vmem:[#allocation64_spill] sm:$0xff]  ;;  %v5688_v19 = vld [vmem:[#allocation65_spill] sm:$0xff]  ;;  %v5692_v9 = vld [vmem:[#allocation26_spill] sm:$0xff] }
  0xae   :  { %v303_v45 = vadd.f32 %v5682_v34, %v223_v36  ;;  %v312_v21 = vadd.f32 %v5683_v27, %v232_v18  ;;  %v313_v10 = vadd.f32 %v5684_v15, %v233_v41  ;;  %v322_v26 = vadd.f32 %v5685_v43, %v242_v17  ;;  %v5693_v1 = vld [vmem:[#allocation27_spill] sm:$0xff]  ;;  %v5694_v15 = vld [vmem:[#allocation28_spill] sm:$0xff] }
  0xaf   :  { %v323_v0 = vadd.f32 %v5686_v11, %v243_v3  ;;  %v332_v33 = vadd.f32 %v5687_v14, %v252_v42  ;;  %v333_v2 = vadd.f32 %v5688_v19, %v253_v52  ;;  %v344_v57 = vsel %vm342_vm4, %v339_v24, %v341_v62  ;;  %v5691_v42 = vld [vmem:[#allocation25_spill] sm:$0xff] }
  0xb0   :  { %v352_v49 = vsel %vm342_vm4, %v341_v62, %v339_v24  ;;  %v3176_v5 = vstv %s3127_s28  ;;  %v3179_v61 = vstv %s3133_s29  ;;  %v357_v18 = vsel %vm2723_vm5, %v344_v57, 0.0  ;;  %s3559_s28 = sld [smem:[#allocation2 + $0x302]] }
  0xb1   :  { %v358_v17 = vsel %vm2733_vm6, %v352_v49, 0.0  ;;  %v3186_v28 = vstv %s3139_s30  ;;  %v3189_v3 = vstv %s3145_s6  ;;  %v363_v52 = vmul.f32 %v5691_v42, %v357_v18  ;;  %s3569_s29 = sld [smem:[#allocation2 + $0x303]] }
  0xb2   :  { %v364_v31 = vmul.f32 %v5691_v42, %v358_v17  ;;  %v373_v24 = vmul.f32 %v5692_v9, %v357_v18  ;;  %v374_v62 = vmul.f32 %v5692_v9, %v358_v17  ;;  %v383_v34 = vmul.f32 %v5693_v1, %v357_v18  ;;  %s3579_s30 = sld [smem:[#allocation2 + $0x304]] }
  0xb3   :  { %v384_v27 = vmul.f32 %v5693_v1, %v358_v17  ;;  %v393_v43 = vmul.f32 %v5694_v15, %v357_v18  ;;  %v394_v11 = vmul.f32 %v5694_v15, %v358_v17  ;;  %v367_v14 = vadd.f32 %v363_v52, %v262_v37  ;;  %v5698_v37 = vld [vmem:[#allocation32_spill] sm:$0xff]  ;;  %s3585_s6 = sld [smem:[#allocation2 + $0x305]] }
  0xb4   :  { %v368_v19 = vadd.f32 %v364_v31, %v263_v39  ;;  %v377_v57 = vadd.f32 %v373_v24, %v272_v6  ;;  %v378_v49 = vadd.f32 %v374_v62, %v273_v22  ;;  %v387_v40 = vadd.f32 %v383_v34, %v282_v7  ;;  %v442_v22 = vpop.permute.xlu0 %441  ;;  %v448_v7 = vpop.permute.xlu2 %447 }
  0xb5   :  { %v388_v41 = vadd.f32 %v384_v27, %v283_v8  ;;  %v397_v36 = vadd.f32 %v393_v43, %v292_v16  ;;  %v398_v42 = vadd.f32 %v394_v11, %v293_v29  ;;  %v403_v25 = vmul.f32 %v5695_v20, %v357_v18 }
  0xb6   :  { %v404_v9 = vmul.f32 %v5695_v20, %v358_v17  ;;  %v413_v58 = vmul.f32 %v5696_v60, %v357_v18  ;;  %v414_v1 = vmul.f32 %v5696_v60, %v358_v17  ;;  %v423_v38 = vmul.f32 %v5697_v46, %v357_v18 }
  0xb7   :  { %v424_v15 = vmul.f32 %v5697_v46, %v358_v17  ;;  %v433_v39 = vmul.f32 %v5698_v37, %v357_v18  ;;  %v434_v6 = vmul.f32 %v5698_v37, %v358_v17  ;;  %v407_v8 = vadd.f32 %v403_v25, %v302_v13  ;;  %v5699_v46 = vld [vmem:[#allocation40_spill] sm:$0xff]  ;;  %v5700_v18 = vld [vmem:[#allocation42_spill] sm:$0xff] }
  0xb8   :  { %v408_v16 = vadd.f32 %v404_v9, %v303_v45  ;;  %v417_v29 = vadd.f32 %v413_v58, %v312_v21  ;;  %v418_v52 = vadd.f32 %v414_v1, %v313_v10  ;;  %v427_v31 = vadd.f32 %v423_v38, %v322_v26  ;;  %v5701_v25 = vld [vmem:[#allocation44_spill] sm:$0xff]  ;;  %v5702_v45 = vld [vmem:[#allocation46_spill] sm:$0xff] }
  0xb9   :  { %v428_v20 = vadd.f32 %v424_v15, %v323_v0  ;;  %v437_v24 = vadd.f32 %v433_v39, %v332_v33  ;;  %v438_v62 = vadd.f32 %v434_v6, %v333_v2  ;;  %v450_v60 = vsel %vm159_vm7, %v448_v7, %v442_v22 }
  0xba   :  { %v456_v34 = vsel %vm159_vm7, %v442_v22, %v448_v7  ;;  %v3211_v27 = vadd.f32 %v5699_v46, %v3053_v32  ;;  %v3215_v17 = vadd.f32 %v5700_v18, %v3059_v55  ;;  %v460_v38 = vsel %vm2838_vm9, %v450_v60, 0.0 }
  0xbb   :  { %v459_v58 = vsel %vm2834_vm8, %v456_v34, 0.0  ;;  %v3223_v13 = vadd.f32 %v5701_v25, %v3065_v54  ;;  %v3227_v21 = vadd.f32 %v5702_v45, %v3071_v51  ;;  %v466_v10 = vmul.f32 %v3100_v53, %v460_v38 }
  0xbc   :  { %v465_v32 = vmul.f32 %v3100_v53, %v459_v58  ;;  %v475_v55 = vmul.f32 %v3103_v44, %v459_v58  ;;  %v476_v26 = vmul.f32 %v3103_v44, %v460_v38  ;;  %v485_v0 = vmul.f32 %v3110_v4, %v459_v58 }
  0xbd   :  { %v486_v33 = vmul.f32 %v3110_v4, %v460_v38  ;;  %v495_v2 = vmul.f32 %v3113_v63, %v459_v58  ;;  %v496_v54 = vmul.f32 %v3113_v63, %v460_v38  ;;  %v3239_v51 = vadd.f32 %v466_v10, %v368_v19 }
  0xbe   :  { %v3237_v43 = vadd.f32 %v465_v32, %v367_v14  ;;  %v3241_v11 = vadd.f32 %v475_v55, %v377_v57  ;;  %v3243_v9 = vadd.f32 %v476_v26, %v378_v49  ;;  %v3245_v1 = vadd.f32 %v485_v0, %v387_v40  ;;  %v446_v32 = vpop.permute.xlu1 %445  ;;  %v5716_v55 = vld [vmem:[#allocation43_spill] sm:$0xff]  ;;  %v5717_v26 = vld [vmem:[#allocation66_spill] sm:$0xff] }
  0xbf   :  { %v3247_v15 = vadd.f32 %v486_v33, %v388_v41  ;;  %v3249_v37 = vadd.f32 %v495_v2, %v397_v36  ;;  %v3251_v39 = vadd.f32 %v496_v54, %v398_v42  ;;  %v505_v6 = vmul.f32 %v3176_v5, %v459_v58  ;;  %v5720_v33 = vld [vmem:[#allocation47_spill] sm:$0xff]  ;;  %v5722_v54 = vld [vmem:[#allocation49_spill] sm:$0xff] }
  0xc0   :  { %v506_v14 = vmul.f32 %v3176_v5, %v460_v38  ;;  %v515_v19 = vmul.f32 %v3179_v61, %v459_v58  ;;  %v516_v57 = vmul.f32 %v3179_v61, %v460_v38  ;;  %v525_v40 = vmul.f32 %v3186_v28, %v459_v58 }
  0xc1   :  { %v526_v41 = vmul.f32 %v3186_v28, %v460_v38  ;;  %v535_v36 = vmul.f32 %v3189_v3, %v459_v58  ;;  %v536_v49 = vmul.f32 %v3189_v3, %v460_v38  ;;  %v3265_v42 = vadd.f32 %v505_v6, %v407_v8  ;;  %v5710_v58 = vld [vmem:[#allocation48_spill] sm:$0xff]  ;;  %v5711_v8 = vld [vmem:[#allocation50_spill] sm:$0xff] }
  0xc2   :  { %v3267_v22 = vadd.f32 %v506_v14, %v408_v16  ;;  %v3269_v7 = vadd.f32 %v515_v19, %v417_v29  ;;  %v3271_v60 = vadd.f32 %v516_v57, %v418_v52  ;;  %v3273_v34 = vadd.f32 %v525_v40, %v427_v31  ;;  %v5712_v16 = vld [vmem:[#allocation52_spill] sm:$0xff]  ;;  %v5713_v52 = vld [vmem:[#allocation54_spill] sm:$0xff]  ;;  %v5723_v14 = vld [vmem:[#allocation69_spill] sm:$0xff] }
  0xc3   :  { %v3275_v46 = vadd.f32 %v526_v41, %v428_v20  ;;  %v3277_v18 = vadd.f32 %v535_v36, %v437_v24  ;;  %v3279_v25 = vadd.f32 %v536_v49, %v438_v62  ;;  %v406_v45 = vadd.f32 %v5710_v58, %v3077_v12  ;;  %v5714_v20 = vld [vmem:[#allocation38_spill] sm:$0xff]  ;;  %v5715_v62 = vld [vmem:[#allocation41_spill] sm:$0xff] }
  0xc4   :  { %5703 = vst [vmem:[#allocation55_spill] sm:$0xff] %v3267_v22  ;;  %v416_v38 = vadd.f32 %v5711_v8, %v3083_v47  ;;  %v426_v29 = vadd.f32 %v5712_v16, %v3089_v48  ;;  %v436_v31 = vadd.f32 %v5713_v52, %v3095_v50  ;;  %v365_v24 = vadd.f32 %v5714_v20, %v3050_v56  ;;  %v5718_v47 = vld [vmem:[#allocation45_spill] sm:$0xff]  ;;  %v5719_v48 = vld [vmem:[#allocation67_spill] sm:$0xff]  ;;  %v5721_v50 = vld [vmem:[#allocation68_spill] sm:$0xff] }
  0xc5   :  { %5704 = vst [vmem:[#allocation56_spill] sm:$0xff] %v3269_v7  ;;  %v375_v10 = vadd.f32 %v5715_v62, %v3056_v30  ;;  %v385_v12 = vadd.f32 %v5716_v55, %v3062_v59  ;;  %v395_v0 = vadd.f32 %v5718_v47, %v5717_v26  ;;  %v405_v2 = vadd.f32 %v5720_v33, %v5719_v48  ;;  %v5724_v56 = vld [vmem:[#allocation51_spill] sm:$0xff]  ;;  %v5725_v57 = vld [vmem:[#allocation70_spill] sm:$0xff]  ;;  %v5726_v30 = vld [vmem:[#allocation53_spill] sm:$0xff] }
  0xc6   :  { %5705 = vst [vmem:[#allocation57_spill] sm:$0xff] %v3271_v60  ;;  %v415_v6 = vadd.f32 %v5722_v54, %v5721_v50  ;;  %v425_v19 = vadd.f32 %v5724_v56, %v5723_v14  ;;  %v435_v40 = vadd.f32 %v5726_v30, %v5725_v57  ;;  %v5727_v59 = vld [vmem:[#allocation35_spill] sm:$0xff]  ;;  %v3314_v49 = vstv %s3253_s2  ;;  %v5728_v16 = vld [vmem:[#allocation12_spill] sm:$0xff]  ;;  %s2209_s2 = sld [smem:[#allocation2 + $0x306]] }
  0xc7   :  { %5706 = vst [vmem:[#allocation58_spill] sm:$0xff] %v3273_v34  ;;  %v449_v41 = vsel %vm159_vm7, %v446_v32, %v5727_v59  ;;  %v455_v36 = vsel %vm159_vm7, %v5727_v59, %v446_v32  ;;  %v544_v52 = vmul.f32 %v3314_v49, %v5728_v16  ;;  %v3325_v20 = vstv %s3259_s7  ;;  %s2210_s7 = sld [smem:[#allocation2 + $0x307]] }
  0xc8   :  { %5707 = vst [vmem:[#allocation59_spill] sm:$0xff] %v3275_v46  ;;  %v457_v58 = vsel %vm2834_vm8, %v455_v36, 0.0  ;;  %v458_v8 = vsel %vm2838_vm9, %v449_v41, 0.0 }
  0xc9   :  { %5708 = vst [vmem:[#allocation60_spill] sm:$0xff] %v3277_v18  ;;  %v463_v62 = vmul.f32 %v3100_v53, %v457_v58  ;;  %v464_v32 = vmul.f32 %v3100_v53, %v458_v8  ;;  %v473_v55 = vmul.f32 %v3103_v44, %v457_v58  ;;  %v474_v26 = vmul.f32 %v3103_v44, %v458_v8 }
  0xca   :  { %5709 = vst [vmem:[#allocation61_spill] sm:$0xff] %v3279_v25  ;;  %v483_v47 = vmul.f32 %v3110_v4, %v457_v58  ;;  %v484_v48 = vmul.f32 %v3110_v4, %v458_v8  ;;  %v493_v33 = vmul.f32 %v3113_v63, %v457_v58  ;;  %v494_v50 = vmul.f32 %v3113_v63, %v458_v8 }
  0xcb   :  { %v3341_v54 = vadd.f32 %v463_v62, %v365_v24  ;;  %v468_v53 = vadd.f32 %v464_v32, %v3211_v27  ;;  %v3344_v14 = vadd.f32 %v473_v55, %v375_v10  ;;  %v478_v44 = vadd.f32 %v474_v26, %v3215_v17 }
  0xcc   :  { %v3349_v56 = vadd.f32 %v483_v47, %v385_v12  ;;  %v488_v4 = vadd.f32 %v484_v48, %v3223_v13  ;;  %v3352_v57 = vadd.f32 %v493_v33, %v395_v0  ;;  %v498_v63 = vadd.f32 %v494_v50, %v3227_v21  ;;  %v2332_v47 = vld [vmem:[%s5730_s23] sm:$0xff] }
  0xcd   :  { %v503_v24 = vmul.f32 %v3176_v5, %v457_v58  ;;  %v504_v27 = vmul.f32 %v3176_v5, %v458_v8  ;;  %v513_v10 = vmul.f32 %v3179_v61, %v457_v58  ;;  %v514_v17 = vmul.f32 %v3179_v61, %v458_v8 }
  0xce   :  { %v523_v12 = vmul.f32 %v3186_v28, %v457_v58  ;;  %v524_v13 = vmul.f32 %v3186_v28, %v458_v8  ;;  %v533_v0 = vmul.f32 %v3189_v3, %v457_v58  ;;  %v534_v21 = vmul.f32 %v3189_v3, %v458_v8 }
  0xcf   :  { %v507_v5 = vadd.f32 %v503_v24, %v405_v2  ;;  %v508_v30 = vadd.f32 %v504_v27, %v406_v45  ;;  %v517_v59 = vadd.f32 %v513_v10, %v415_v6  ;;  %v518_v41 = vadd.f32 %v514_v17, %v416_v38 }
  0xd0   :  { %v527_v61 = vadd.f32 %v523_v12, %v425_v19  ;;  %v528_v36 = vadd.f32 %v524_v13, %v426_v29  ;;  %v537_v62 = vadd.f32 %v533_v0, %v435_v40  ;;  %v538_v32 = vadd.f32 %v534_v21, %v436_v31  ;;  %v5729_v29 = vld [vmem:[#allocation13_spill] sm:$0xff] }
  0xd1   :  { %v554_v28 = vmul.f32 %v3325_v20, %v5728_v16  ;;  %v3376_v3 = vstv %s3297_s8  ;;  %v3383_v38 = vstv %s3307_s1  ;;  %v3386_v2 = vstv %s3316_s9  ;;  %v2331_v40 = vld [vmem:[%s5730_s23 + $0x8] sm:$0xff]  ;;  %s3632_s8 = sld [smem:[#allocation2 + $0x380]] }
  0xd2   :  { %v564_v45 = vmul.f32 %v3376_v3, %v5728_v16  ;;  %v543_v31 = vmul.f32 %v3314_v49, %v5729_v29  ;;  %v548_v6 = vadd.f32 %v544_v52, %v468_v53  ;;  %v553_v19 = vmul.f32 %v3325_v20, %v5729_v29  ;;  %s3641_s1 = sld [smem:[#allocation2 + $0x381]] }
  0xd3   :  { %v574_v58 = vmul.f32 %v2331_v40, %v3383_v38  ;;  %v563_v8 = vmul.f32 %v3376_v3, %v5729_v29  ;;  %v584_v16 = vmul.f32 %v2331_v40, %v3386_v2  ;;  %v3402_v55 = vstv %s3327_s3  ;;  %s3647_s9 = sld [smem:[#allocation2 + $0x382]] }
  0xd4   :  { %v3405_v26 = vstv %s3333_s10  ;;  %v558_v52 = vadd.f32 %v554_v28, %v478_v44  ;;  %v573_v48 = vmul.f32 %v2332_v47, %v3383_v38  ;;  %v583_v33 = vmul.f32 %v2332_v47, %v3386_v2  ;;  %v622_v28 = vpop.permute.xlu0 %621  ;;  %s3652_s3 = sld [smem:[#allocation2 + $0x383]] }
  0xd5   :  { %v594_v50 = vmul.f32 %v2331_v40, %v3402_v55  ;;  %v568_v53 = vadd.f32 %v564_v45, %v488_v4  ;;  %v578_v24 = vadd.f32 %v574_v58, %v498_v63  ;;  %v604_v27 = vmul.f32 %v2331_v40, %v3405_v26  ;;  %s3654_s10 = sld [smem:[#allocation2 + $0x384]] }
  0xd6   :  { %v3415_v10 = vstv %s3339_s4  ;;  %v588_v44 = vadd.f32 %v584_v16, %v508_v30  ;;  %v593_v17 = vmul.f32 %v2332_v47, %v3402_v55  ;;  %v603_v12 = vmul.f32 %v2332_v47, %v3405_v26  ;;  %v624_v16 = vpop.permute.xlu1 %623  ;;  %s3656_s4 = sld [smem:[#allocation2 + $0x385]] }
  0xd7   :  { %v614_v13 = vmul.f32 %v2331_v40, %v3415_v10  ;;  %v598_v0 = vadd.f32 %v594_v50, %v518_v41  ;;  %v613_v21 = vmul.f32 %v2332_v47, %v3415_v10  ;;  %v3422_v4 = vstv %s3347_s11  ;;  %s3670_s11 = sld [smem:[#allocation2 + $0x386]] }
  0xd8   :  { %v3425_v63 = vstv %s3355_s12  ;;  %v608_v45 = vadd.f32 %v604_v27, %v528_v36  ;;  %v3428_v29 = vstv %s3361_s13  ;;  %v3431_v30 = vstv %s3367_s14  ;;  %s3684_s12 = sld [smem:[#allocation2 + $0x387]] }
  0xd9   :  { %v3434_v58 = vstv %s3369_s17  ;;  %v618_v35 = vadd.f32 %v614_v13, %v538_v32  ;;  %v3440_v40 = vstv %s3378_s19  ;;  %v3443_v41 = vstv %s3388_s20  ;;  %s3686_s13 = sld [smem:[#allocation2 + $0x400]] }
  0xda   :  { %v547_v47 = vadd.f32 %v543_v31, %v3341_v54  ;;  %v557_v50 = vadd.f32 %v553_v19, %v3344_v14  ;;  %v567_v36 = vadd.f32 %v563_v8, %v3349_v56  ;;  %v577_v27 = vadd.f32 %v573_v48, %v3352_v57  ;;  %s3690_s14 = sld [smem:[#allocation2 + $0x401]] }
  0xdb   :  { %v587_v25 = vadd.f32 %v583_v33, %v507_v5  ;;  %v597_v18 = vadd.f32 %v593_v17, %v517_v59  ;;  %v629_v46 = vsel %vm342_vm4, %v622_v28, %v624_v16  ;;  %v637_v32 = vsel %vm342_vm4, %v624_v16, %v622_v28  ;;  %s3704_s17 = sld [smem:[#allocation2 + $0x402]] }
  0xdc   :  { %v607_v13 = vadd.f32 %v603_v12, %v527_v61  ;;  %v617_v34 = vadd.f32 %v613_v21, %v537_v62  ;;  %v639_v7 = vsel %vm2723_vm5, %v629_v46, 0.0  ;;  %v640_v54 = vsel %vm2733_vm6, %v637_v32, 0.0  ;;  %s3725_s19 = sld [smem:[#allocation2 + $0x404]] }
  0xdd   :  { %v645_v14 = vmul.f32 %v3422_v4, %v639_v7  ;;  %v646_v56 = vmul.f32 %v3422_v4, %v640_v54  ;;  %v655_v57 = vmul.f32 %v3425_v63, %v639_v7  ;;  %v656_v5 = vmul.f32 %v3425_v63, %v640_v54  ;;  %s3733_s20 = sld [smem:[#allocation2 + $0x405]] }
  0xde   :  { %v665_v59 = vmul.f32 %v3428_v29, %v639_v7  ;;  %v666_v31 = vmul.f32 %v3428_v29, %v640_v54  ;;  %v675_v61 = vmul.f32 %v3431_v30, %v639_v7  ;;  %v676_v62 = vmul.f32 %v3431_v30, %v640_v54 }
  0xdf   :  { %v3463_v46 = vadd.f32 %v645_v14, %v547_v47  ;;  %v3465_v19 = vadd.f32 %v646_v56, %v548_v6  ;;  %v3467_v8 = vadd.f32 %v655_v57, %v557_v50  ;;  %v3469_v48 = vadd.f32 %v656_v5, %v558_v52 }
  0xe0   :  { %v3471_v33 = vadd.f32 %v665_v59, %v567_v36  ;;  %v3473_v17 = vadd.f32 %v666_v31, %v568_v53  ;;  %v3475_v12 = vadd.f32 %v675_v61, %v577_v27  ;;  %v3477_v21 = vadd.f32 %v676_v62, %v578_v24 }
  0xe1   :  { %v685_v28 = vmul.f32 %v3434_v58, %v639_v7  ;;  %v686_v16 = vmul.f32 %v3434_v58, %v640_v54  ;;  %v695_v47 = vmul.f32 %v3437_v23, %v639_v7  ;;  %v696_v6 = vmul.f32 %v3437_v23, %v640_v54 }
  0xe2   :  { %v705_v50 = vmul.f32 %v3440_v40, %v639_v7  ;;  %v706_v52 = vmul.f32 %v3440_v40, %v640_v54  ;;  %v715_v36 = vmul.f32 %v3443_v41, %v639_v7  ;;  %v716_v53 = vmul.f32 %v3443_v41, %v640_v54  ;;  %v2333_v7 = vld [vmem:[%s5730_s23 + $0x10] sm:$0xff] }
  0xe3   :  { %v3487_v27 = vadd.f32 %v685_v28, %v587_v25  ;;  %v3489_v24 = vadd.f32 %v686_v16, %v588_v44  ;;  %v3491_v32 = vadd.f32 %v695_v47, %v597_v18  ;;  %v3493_v14 = vadd.f32 %v696_v6, %v598_v0  ;;  %v2334_v18 = vld [vmem:[%s5730_s23 + $0x18] sm:$0xff]  ;;  %v628_v47 = vpop.permute.xlu0 %627 }
  0xe4   :  { %v3495_v56 = vadd.f32 %v705_v50, %v607_v13  ;;  %v3497_v57 = vadd.f32 %v706_v52, %v608_v45  ;;  %v3499_v5 = vadd.f32 %v715_v36, %v617_v34  ;;  %v3501_v59 = vadd.f32 %v716_v53, %v618_v35  ;;  %v747_v53 = vpop.permute.xlu1 %746 }
  0xe5   :  { %v545_v25 = vmul.f32 %v2333_v7, %v3314_v49  ;;  %v546_v44 = vmul.f32 %v2334_v18, %v3314_v49  ;;  %v555_v0 = vmul.f32 %v2333_v7, %v3325_v20  ;;  %v556_v45 = vmul.f32 %v2334_v18, %v3325_v20 }
  0xe6   :  { %v565_v34 = vmul.f32 %v2333_v7, %v3376_v3  ;;  %v566_v35 = vmul.f32 %v2334_v18, %v3376_v3  ;;  %v575_v13 = vmul.f32 %v2333_v7, %v3383_v38  ;;  %v576_v54 = vmul.f32 %v2334_v18, %v3383_v38 }
  0xe7   :  { %v585_v31 = vmul.f32 %v2333_v7, %v3386_v2  ;;  %v586_v61 = vmul.f32 %v2334_v18, %v3386_v2  ;;  %v595_v62 = vmul.f32 %v2333_v7, %v3402_v55  ;;  %v596_v49 = vmul.f32 %v2334_v18, %v3402_v55 }
  0xe8   :  { %v605_v28 = vmul.f32 %v2333_v7, %v3405_v26  ;;  %v606_v20 = vmul.f32 %v2334_v18, %v3405_v26  ;;  %v615_v16 = vmul.f32 %v2333_v7, %v3415_v10  ;;  %v616_v3 = vmul.f32 %v2334_v18, %v3415_v10  ;;  %v626_v7 = vpop.permute.xlu2 %625  ;;  %v5733_v18 = vld [vmem:[#allocation55_spill] sm:$0xff] }
  0xe9   :  { %v549_v6 = vadd.f32 %v545_v25, %v3237_v43  ;;  %v550_v38 = vadd.f32 %v546_v44, %v3239_v51  ;;  %v559_v50 = vadd.f32 %v555_v0, %v3241_v11  ;;  %v560_v2 = vadd.f32 %v556_v45, %v3243_v9  ;;  %v5734_v25 = vld [vmem:[#allocation56_spill] sm:$0xff]  ;;  %v5735_v44 = vld [vmem:[#allocation57_spill] sm:$0xff]  ;;  %v5736_v0 = vld [vmem:[#allocation58_spill] sm:$0xff] }
  0xea   :  { %v569_v52 = vadd.f32 %v565_v34, %v3245_v1  ;;  %v570_v55 = vadd.f32 %v566_v35, %v3247_v15  ;;  %v579_v36 = vadd.f32 %v575_v13, %v3249_v37  ;;  %v580_v26 = vadd.f32 %v576_v54, %v3251_v39  ;;  %v5737_v45 = vld [vmem:[#allocation59_spill] sm:$0xff]  ;;  %v5738_v34 = vld [vmem:[#allocation60_spill] sm:$0xff]  ;;  %v5739_v35 = vld [vmem:[#allocation61_spill] sm:$0xff] }
  0xeb   :  { %v589_v10 = vadd.f32 %v585_v31, %v3265_v42  ;;  %v590_v43 = vadd.f32 %v586_v61, %v5733_v18  ;;  %v599_v51 = vadd.f32 %v595_v62, %v5734_v25  ;;  %v600_v11 = vadd.f32 %v596_v49, %v5735_v44 }
  0xec   :  { %v609_v9 = vadd.f32 %v605_v28, %v5736_v0  ;;  %v610_v1 = vadd.f32 %v606_v20, %v5737_v45  ;;  %v630_v15 = vsel %vm342_vm4, %v626_v7, %v628_v47  ;;  %v638_v37 = vsel %vm342_vm4, %v628_v47, %v626_v7  ;;  %v755_v45 = vpop.permute.xlu0 %754 }
  0xed   :  { %v619_v39 = vadd.f32 %v615_v16, %v5738_v34  ;;  %v620_v13 = vadd.f32 %v616_v3, %v5739_v35  ;;  %v641_v42 = vsel %vm2723_vm5, %v630_v15, 0.0  ;;  %v642_v54 = vsel %vm2733_vm6, %v638_v37, 0.0  ;;  %v757_v15 = vpop.permute.xlu1 %756 }
  0xee   :  { %v647_v31 = vmul.f32 %v3422_v4, %v641_v42  ;;  %v648_v61 = vmul.f32 %v3422_v4, %v642_v54  ;;  %v657_v62 = vmul.f32 %v3425_v63, %v641_v42  ;;  %v658_v49 = vmul.f32 %v3425_v63, %v642_v54 }
  0xef   :  { %v667_v28 = vmul.f32 %v3428_v29, %v641_v42  ;;  %v668_v20 = vmul.f32 %v3428_v29, %v642_v54  ;;  %v677_v16 = vmul.f32 %v3431_v30, %v641_v42  ;;  %v678_v3 = vmul.f32 %v3431_v30, %v642_v54 }
  0xf0   :  { %v3561_v47 = vadd.f32 %v647_v31, %v549_v6  ;;  %v3563_v7 = vadd.f32 %v648_v61, %v550_v38  ;;  %v3565_v4 = vadd.f32 %v657_v62, %v559_v50  ;;  %v3567_v18 = vadd.f32 %v658_v49, %v560_v2 }
  0xf1   :  { %v3571_v63 = vadd.f32 %v667_v28, %v569_v52  ;;  %v3573_v25 = vadd.f32 %v668_v20, %v570_v55  ;;  %v3575_v29 = vadd.f32 %v677_v16, %v579_v36  ;;  %v3577_v44 = vadd.f32 %v678_v3, %v580_v26 }
  0xf2   :  { %v687_v30 = vmul.f32 %v3434_v58, %v641_v42  ;;  %v688_v6 = vmul.f32 %v3434_v58, %v642_v54  ;;  %v697_v38 = vmul.f32 %v3437_v23, %v641_v42  ;;  %v698_v50 = vmul.f32 %v3437_v23, %v642_v54 }
  0xf3   :  { %v707_v2 = vmul.f32 %v3440_v40, %v641_v42  ;;  %v708_v52 = vmul.f32 %v3440_v40, %v642_v54  ;;  %v717_v55 = vmul.f32 %v3443_v41, %v641_v42  ;;  %v718_v36 = vmul.f32 %v3443_v41, %v642_v54 }
  0xf4   :  { %v3591_v26 = vadd.f32 %v687_v30, %v589_v10  ;;  %v3593_v0 = vadd.f32 %v688_v6, %v590_v43  ;;  %v3595_v58 = vadd.f32 %v697_v38, %v599_v51  ;;  %v3597_v23 = vadd.f32 %v698_v50, %v600_v11  ;;  %v749_v43 = vpop.permute.xlu2 %748 }
  0xf5   :  { %v3599_v40 = vadd.f32 %v707_v2, %v609_v9  ;;  %v3601_v37 = vadd.f32 %v708_v52, %v610_v1  ;;  %v3603_v41 = vadd.f32 %v717_v55, %v619_v39  ;;  %v3605_v10 = vadd.f32 %v718_v36, %v620_v13 }
  0xf6   :  { %v771_v51 = vstv %s3547_s26  ;;  %v758_v11 = vsel %vm159_vm7, %v755_v45, %v747_v53  ;;  %v764_v34 = vsel %vm159_vm7, %v747_v53, %v755_v45  ;;  %v759_v35 = vsel %vm159_vm7, %v757_v15, %v749_v43  ;;  %s4014_s26 = sld [smem:[#allocation2 + $0x486]] }
  0xf7   :  { %v765_v9 = vsel %vm159_vm7, %v749_v43, %v757_v15  ;;  %v781_v42 = vstv %s3553_s27  ;;  %v766_v1 = vsel %vm2834_vm8, %v764_v34, 0.0  ;;  %v3617_v39 = vsel %vm2838_vm9, %v758_v11, 0.0  ;;  %s4024_s27 = sld [smem:[#allocation2 + $0x487]] }
  0xf8   :  { %v791_v13 = vstv %s3559_s28  ;;  %v772_v61 = vmul.f32 %v771_v51, %v766_v1  ;;  %v773_v62 = vmul.f32 %v771_v51, %v3617_v39  ;;  %v801_v49 = vstv %s3569_s29  ;;  %s4114_s28 = sld [smem:[#allocation2 + $0x500]] }
  0xf9   :  { %v811_v28 = vstv %s3579_s30  ;;  %v782_v20 = vmul.f32 %v781_v42, %v766_v1  ;;  %v821_v53 = vstv %s3585_s6  ;;  %v831_v16 = vstv %s2209_s2  ;;  %s4116_s29 = sld [smem:[#allocation2 + $0x501]] }
  0xfa   :  { %v3624_v3 = vstv %s2210_s7  ;;  %v768_v30 = vsel %vm2834_vm8, %v765_v9, 0.0  ;;  %v783_v6 = vmul.f32 %v781_v42, %v3617_v39  ;;  %v792_v38 = vmul.f32 %v791_v13, %v766_v1  ;;  %s4118_s30 = sld [smem:[#allocation2 + $0x502]] }
  0xfb   :  { %v793_v50 = vmul.f32 %v791_v13, %v3617_v39  ;;  %v769_v2 = vsel %vm2838_vm9, %v759_v35, 0.0  ;;  %v3635_v52 = vadd.f32 %v772_v61, %v3463_v46  ;;  %v3638_v55 = vadd.f32 %v773_v62, %v3465_v19  ;;  %s4132_s6 = sld [smem:[#allocation2 + $0x503]] }
  0xfc   :  { %v802_v36 = vmul.f32 %v801_v49, %v766_v1  ;;  %v803_v45 = vmul.f32 %v801_v49, %v3617_v39  ;;  %v3644_v15 = vadd.f32 %v782_v20, %v3467_v8  ;;  %v812_v43 = vmul.f32 %v811_v28, %v766_v1  ;;  %s4146_s2 = sld [smem:[#allocation2 + $0x504]] }
  0xfd   :  { %5742 = vst [vmem:[#allocation62_spill] sm:$0xff] %v3638_v55  ;;  %v813_v11 = vmul.f32 %v811_v28, %v3617_v39  ;;  %v822_v34 = vmul.f32 %v821_v53, %v766_v1  ;;  %v823_v46 = vmul.f32 %v821_v53, %v3617_v39  ;;  %v832_v35 = vmul.f32 %v831_v16, %v766_v1  ;;  %s4150_s7 = sld [smem:[#allocation2 + $0x505]] }
  0xfe   :  { %5743 = vst [vmem:[#allocation63_spill] sm:$0xff] %v3644_v15  ;;  %v833_v19 = vmul.f32 %v831_v16, %v3617_v39  ;;  %v842_v9 = vmul.f32 %v3624_v3, %v766_v1  ;;  %v774_v61 = vmul.f32 %v771_v51, %v768_v30  ;;  %v775_v62 = vmul.f32 %v771_v51, %v769_v2 }
  0xff   :  { %v784_v31 = vmul.f32 %v781_v42, %v768_v30  ;;  %v785_v8 = vmul.f32 %v781_v42, %v769_v2  ;;  %v794_v20 = vmul.f32 %v791_v13, %v768_v30  ;;  %v795_v54 = vmul.f32 %v791_v13, %v769_v2 }
 0x100   :  { %v804_v22 = vmul.f32 %v801_v49, %v768_v30  ;;  %v805_v60 = vmul.f32 %v801_v49, %v769_v2  ;;  %v3659_v15 = vadd.f32 %v774_v61, %v3561_v47  ;;  %v3662_v55 = vadd.f32 %v775_v62, %v3563_v7 }
 0x101   :  { %v3665_v1 = vadd.f32 %v784_v31, %v3565_v4  ;;  %v3668_v51 = vadd.f32 %v785_v8, %v3567_v18  ;;  %v3673_v42 = vadd.f32 %v794_v20, %v3571_v63  ;;  %v3676_v13 = vadd.f32 %v795_v54, %v3573_v25 }
 0x102   :  { %5744 = vst [vmem:[#allocation64_spill] sm:$0xff] %v3659_v15  ;;  %v3679_v47 = vadd.f32 %v804_v22, %v3575_v29  ;;  %v3682_v7 = vadd.f32 %v805_v60, %v3577_v44  ;;  %v814_v4 = vmul.f32 %v811_v28, %v768_v30  ;;  %v815_v31 = vmul.f32 %v811_v28, %v769_v2 }
 0x103   :  { %5745 = vst [vmem:[#allocation65_spill] sm:$0xff] %v3665_v1  ;;  %v824_v18 = vmul.f32 %v821_v53, %v768_v30  ;;  %v825_v49 = vmul.f32 %v821_v53, %v769_v2  ;;  %v834_v61 = vmul.f32 %v831_v16, %v768_v30  ;;  %v835_v63 = vmul.f32 %v831_v16, %v769_v2 }
 0x104   :  { %5746 = vst [vmem:[#allocation25_spill] sm:$0xff] %v3673_v42  ;;  %v844_v62 = vmul.f32 %v3624_v3, %v768_v30  ;;  %v845_v25 = vmul.f32 %v3624_v3, %v769_v2  ;;  %v3693_v22 = vadd.f32 %v814_v4, %v3591_v26  ;;  %v3696_v60 = vadd.f32 %v815_v31, %v3593_v0 }
 0x105   :  { %5747 = vst [vmem:[#allocation26_spill] sm:$0xff] %v3679_v47  ;;  %v3699_v29 = vadd.f32 %v824_v18, %v3595_v58  ;;  %v3702_v44 = vadd.f32 %v825_v49, %v3597_v23  ;;  %v3707_v54 = vadd.f32 %v834_v61, %v3599_v40  ;;  %v3710_v28 = vadd.f32 %v835_v63, %v3601_v37  ;;  %v933_v49 = vpop.permute.xlu0 %932 }
 0x106   :  { %5748 = vst [vmem:[#allocation27_spill] sm:$0xff] %v3682_v7  ;;  %v3713_v26 = vadd.f32 %v844_v62, %v3603_v41  ;;  %v3716_v0 = vadd.f32 %v845_v25, %v3605_v10  ;;  %v787_v58 = vadd.f32 %v783_v6, %v3469_v48  ;;  %v796_v23 = vadd.f32 %v792_v38, %v3471_v33  ;;  %v5758_v38 = vld [vmem:[#allocation15_spill] sm:$0xff] }
 0x107   :  { %5749 = vst [vmem:[#allocation28_spill] sm:$0xff] %v3693_v22  ;;  %v797_v53 = vadd.f32 %v793_v50, %v3473_v17  ;;  %v843_v40 = vmul.f32 %v3624_v3, %v3617_v39  ;;  %v806_v37 = vadd.f32 %v802_v36, %v3475_v12  ;;  %v807_v41 = vadd.f32 %v803_v45, %v3477_v21  ;;  %v5761_v22 = vld [vmem:[#allocation63_spill] sm:$0xff] }
 0x108   :  { %5750 = vst [vmem:[#allocation29_spill] sm:$0xff] %v3696_v60  ;;  %v816_v10 = vadd.f32 %v812_v43, %v3487_v27  ;;  %v3731_v16 = vstv %s3632_s8  ;;  %v817_v48 = vadd.f32 %v813_v11, %v3489_v24  ;;  %v826_v33 = vadd.f32 %v822_v34, %v3491_v32  ;;  %v5757_v32 = vld [vmem:[#allocation18_spill] sm:$0xff]  ;;  %s4176_s8 = sld [smem:[#allocation2 + $0x506]] }
 0x109   :  { %5751 = vst [vmem:[#allocation30_spill] sm:$0xff] %v3699_v29  ;;  %v827_v17 = vadd.f32 %v823_v46, %v3493_v14  ;;  %v3739_v39 = vstv %s3641_s1  ;;  %v836_v12 = vadd.f32 %v832_v35, %v3495_v56  ;;  %v837_v21 = vadd.f32 %v833_v19, %v3497_v57  ;;  %s4184_s1 = sld [smem:[#allocation2 + $0x507]] }
 0x10a   :  { %5752 = vst [vmem:[#allocation31_spill] sm:$0xff] %v3702_v44  ;;  %v846_v27 = vadd.f32 %v842_v9, %v3499_v5  ;;  %v3747_v3 = vstv %s3647_s9  ;;  %v847_v24 = vadd.f32 %v843_v40, %v3501_v59  ;;  %v852_v14 = vmul.f32 %v3731_v16, %v5757_v32  ;;  %v931_v40 = vpop.permute.xlu2 %930  ;;  %s4207_s9 = sld [smem:[#allocation2 + $0x580]] }
 0x10b   :  { %5753 = vst [vmem:[#allocation32_spill] sm:$0xff] %v3707_v54  ;;  %v3755_v30 = vstv %s3652_s3  ;;  %v3758_v6 = vstv %s3654_s10  ;;  %v853_v56 = vmul.f32 %v3731_v16, %v5758_v38  ;;  %v862_v57 = vmul.f32 %v3739_v39, %v5757_v32  ;;  %v5760_v54 = vld [vmem:[#allocation62_spill] sm:$0xff]  ;;  %s4217_s3 = sld [smem:[#allocation2 + $0x581]] }
 0x10c   :  { %5754 = vst [vmem:[#allocation40_spill] sm:$0xff] %v3710_v28  ;;  %v3765_v5 = vstv %s3656_s4  ;;  %v3768_v50 = vstv %s3670_s11  ;;  %v863_v59 = vmul.f32 %v3739_v39, %v5758_v38  ;;  %v872_v2 = vmul.f32 %v3747_v3, %v5757_v32  ;;  %s4229_s10 = sld [smem:[#allocation2 + $0x582]] }
 0x10d   :  { %5755 = vst [vmem:[#allocation42_spill] sm:$0xff] %v3713_v26  ;;  %v873_v36 = vmul.f32 %v3747_v3, %v5758_v38  ;;  %v3777_v45 = vstv %s3684_s12  ;;  %v882_v43 = vmul.f32 %v3755_v30, %v5757_v32  ;;  %v883_v11 = vmul.f32 %v3755_v30, %v5758_v38  ;;  %s4236_s4 = sld [smem:[#allocation2 + $0x583]] }
 0x10e   :  { %5756 = vst [vmem:[#allocation44_spill] sm:$0xff] %v3716_v0  ;;  %v892_v34 = vmul.f32 %v3758_v6, %v5757_v32  ;;  %v893_v46 = vmul.f32 %v3758_v6, %v5758_v38  ;;  %v902_v35 = vmul.f32 %v3765_v5, %v5757_v32  ;;  %v903_v19 = vmul.f32 %v3765_v5, %v5758_v38  ;;  %s4246_s11 = sld [smem:[#allocation2 + $0x584]] }
 0x10f   :  { %v912_v9 = vmul.f32 %v3768_v50, %v5757_v32  ;;  %v913_v8 = vmul.f32 %v3768_v50, %v5758_v38  ;;  %v922_v20 = vmul.f32 %v3777_v45, %v5757_v32  ;;  %v923_v4 = vmul.f32 %v3777_v45, %v5758_v38  ;;  %s4255_s12 = sld [smem:[#allocation2 + $0x585]] }
 0x110   :  { %v3800_v31 = vstv %s3686_s13  ;;  %v3803_v18 = vstv %s3690_s14  ;;  %v3806_v61 = vstv %s3704_s17  ;;  %v3809_v63 = vstv %s3718_s18  ;;  %s4259_s13 = sld [smem:[#allocation2 + $0x586]] }
 0x111   :  { %v3812_v62 = vstv %s3725_s19  ;;  %v3815_v25 = vstv %s3733_s20  ;;  %v3818_v26 = vstv %s3741_s21  ;;  %v3821_v32 = vstv %s3749_s22  ;;  %s2254_s14 = sld [smem:[#allocation2 + $0x587]] }
 0x112   :  { %5759 = vst [vmem:[#allocation46_spill] sm:$0xff] %v3821_v32  ;;  %v856_v38 = vadd.f32 %v852_v14, %v3635_v52  ;;  %v857_v29 = vadd.f32 %v853_v56, %v5760_v54  ;;  %v866_v47 = vadd.f32 %v862_v57, %v5761_v22  ;;  %v867_v42 = vadd.f32 %v863_v59, %v787_v58  ;;  %s4428_s17 = sld [smem:[#allocation2 + $0x600]] }
 0x113   :  { %v938_v1 = vsel %vm342_vm4, %v931_v40, %v933_v49  ;;  %v946_v15 = vsel %vm342_vm4, %v933_v49, %v931_v40  ;;  %v876_v0 = vadd.f32 %v872_v2, %v796_v23  ;;  %v877_v28 = vadd.f32 %v873_v36, %v797_v53  ;;  %v5764_v2 = vld [vmem:[#allocation16_spill] sm:$0xff]  ;;  %s4434_s18 = sld [smem:[#allocation2 + $0x601]] }
 0x114   :  { %v3830_v60 = vsel %vm2723_vm5, %v938_v1, 0.0  ;;  %v3834_v32 = vsel %vm2733_vm6, %v946_v15, 0.0  ;;  %v886_v52 = vadd.f32 %v882_v43, %v806_v37  ;;  %v887_v14 = vadd.f32 %v883_v11, %v807_v41  ;;  %s4440_s19 = sld [smem:[#allocation2 + $0x602]] }
 0x115   :  { %v3836_v54 = vadd.f32 %v892_v34, %v816_v10  ;;  %v3838_v22 = vadd.f32 %v893_v46, %v817_v48  ;;  %v3840_v58 = vadd.f32 %v902_v35, %v826_v33  ;;  %v3842_v56 = vadd.f32 %v903_v19, %v827_v17  ;;  %s4450_s20 = sld [smem:[#allocation2 + $0x603]] }
 0x116   :  { %v954_v23 = vmul.f32 %v3800_v31, %v3830_v60  ;;  %v955_v1 = vmul.f32 %v3800_v31, %v3834_v32  ;;  %v964_v15 = vmul.f32 %v3803_v18, %v3830_v60  ;;  %v965_v53 = vmul.f32 %v3803_v18, %v3834_v32  ;;  %s4460_s21 = sld [smem:[#allocation2 + $0x604]] }
 0x117   :  { %v974_v37 = vmul.f32 %v3806_v61, %v3830_v60  ;;  %v975_v41 = vmul.f32 %v3806_v61, %v3834_v32  ;;  %v3856_v10 = vadd.f32 %v912_v9, %v836_v12  ;;  %v3858_v48 = vadd.f32 %v913_v8, %v837_v21  ;;  %s4466_s22 = sld [smem:[#allocation2 + $0x605]] }
 0x118   :  { %v984_v33 = vmul.f32 %v3809_v63, %v3830_v60  ;;  %v985_v17 = vmul.f32 %v3809_v63, %v3834_v32  ;;  %v3864_v57 = vadd.f32 %v922_v20, %v846_v27  ;;  %v3866_v59 = vadd.f32 %v923_v4, %v847_v24 }
 0x119   :  { %v855_v36 = vmul.f32 %v3731_v16, %v5764_v2  ;;  %v865_v43 = vmul.f32 %v3739_v39, %v5764_v2  ;;  %v3872_v12 = vadd.f32 %v954_v23, %v856_v38  ;;  %v3874_v21 = vadd.f32 %v955_v1, %v857_v29 }
 0x11a   :  { %v875_v11 = vmul.f32 %v3747_v3, %v5764_v2  ;;  %v885_v34 = vmul.f32 %v3755_v30, %v5764_v2  ;;  %v3880_v27 = vadd.f32 %v964_v15, %v866_v47  ;;  %v3882_v24 = vadd.f32 %v965_v53, %v867_v42  ;;  %v937_v15 = vpop.permute.xlu2 %936 }
 0x11b   :  { %v3884_v46 = vadd.f32 %v974_v37, %v876_v0  ;;  %v3886_v35 = vadd.f32 %v975_v41, %v877_v28  ;;  %v3888_v19 = vadd.f32 %v984_v33, %v886_v52  ;;  %v3890_v9 = vadd.f32 %v985_v17, %v887_v14  ;;  %v5771_v14 = vld [vmem:[#allocation19_spill] sm:$0xff]  ;;  %v935_v33 = vpop.permute.xlu1 %934 }
 0x11c   :  { %5765 = vst [vmem:[#allocation48_spill] sm:$0xff] %v3880_v27  ;;  %v3894_v29 = vmul.f32 %v3812_v62, %v3830_v60  ;;  %v3898_v8 = vmul.f32 %v3812_v62, %v3834_v32  ;;  %v3902_v42 = vmul.f32 %v3815_v25, %v3830_v60  ;;  %v3906_v47 = vmul.f32 %v3815_v25, %v3834_v32  ;;  %v5772_v37 = vld [vmem:[#allocation27_spill] sm:$0xff] }
 0x11d   :  { %5766 = vst [vmem:[#allocation50_spill] sm:$0xff] %v3882_v24  ;;  %v3910_v28 = vmul.f32 %v3818_v26, %v3830_v60  ;;  %v3914_v0 = vmul.f32 %v3818_v26, %v3834_v32  ;;  %v895_v20 = vmul.f32 %v3758_v6, %v5764_v2  ;;  %v905_v4 = vmul.f32 %v3765_v5, %v5764_v2  ;;  %v5783_v24 = vld [vmem:[#allocation32_spill] sm:$0xff] }
 0x11e   :  { %5767 = vst [vmem:[#allocation52_spill] sm:$0xff] %v3884_v46  ;;  %v915_v49 = vmul.f32 %v3768_v50, %v5764_v2  ;;  %v925_v40 = vmul.f32 %v3777_v45, %v5764_v2  ;;  %v859_v38 = vadd.f32 %v855_v36, %v3662_v55  ;;  %v869_v52 = vadd.f32 %v865_v43, %v3668_v51  ;;  %v5773_v2 = vld [vmem:[#allocation29_spill] sm:$0xff]  ;;  %v5774_v36 = vld [vmem:[#allocation31_spill] sm:$0xff]  ;;  %v5782_v46 = vld [vmem:[#allocation30_spill] sm:$0xff] }
 0x11f   :  { %5768 = vst [vmem:[#allocation54_spill] sm:$0xff] %v3886_v35  ;;  %v854_v23 = vmul.f32 %v3731_v16, %v5771_v14  ;;  %v864_v1 = vmul.f32 %v3739_v39, %v5771_v14  ;;  %v879_v53 = vadd.f32 %v875_v11, %v3676_v13  ;;  %v889_v41 = vadd.f32 %v885_v34, %v5772_v37  ;;  %v5775_v16 = vld [vmem:[#allocation40_spill] sm:$0xff]  ;;  %v1062_v34 = vpop.permute.xlu0 %1061 }
 0x120   :  { %5769 = vst [vmem:[#allocation38_spill] sm:$0xff] %v3888_v19  ;;  %v874_v17 = vmul.f32 %v3747_v3, %v5771_v14  ;;  %v884_v55 = vmul.f32 %v3755_v30, %v5771_v14  ;;  %v899_v51 = vadd.f32 %v895_v20, %v5773_v2  ;;  %v909_v43 = vadd.f32 %v905_v4, %v5774_v36  ;;  %v5776_v19 = vld [vmem:[#allocation44_spill] sm:$0xff]  ;;  %v5778_v4 = vld [vmem:[#allocation65_spill] sm:$0xff]  ;;  %v5780_v36 = vld [vmem:[#allocation26_spill] sm:$0xff] }
 0x121   :  { %5770 = vst [vmem:[#allocation41_spill] sm:$0xff] %v3890_v9  ;;  %v919_v9 = vadd.f32 %v915_v49, %v5775_v16  ;;  %v929_v39 = vadd.f32 %v925_v40, %v5776_v19  ;;  %v894_v13 = vmul.f32 %v3758_v6, %v5771_v14  ;;  %v904_v11 = vmul.f32 %v3765_v5, %v5771_v14  ;;  %v5777_v20 = vld [vmem:[#allocation64_spill] sm:$0xff]  ;;  %v5779_v40 = vld [vmem:[#allocation25_spill] sm:$0xff] }
 0x122   :  { %v914_v3 = vmul.f32 %v3768_v50, %v5771_v14  ;;  %v924_v30 = vmul.f32 %v3777_v45, %v5771_v14  ;;  %v858_v37 = vadd.f32 %v854_v23, %v5777_v20  ;;  %v868_v2 = vadd.f32 %v864_v1, %v5778_v4  ;;  %v5781_v5 = vld [vmem:[#allocation28_spill] sm:$0xff]  ;;  %v5784_v45 = vld [vmem:[#allocation42_spill] sm:$0xff] }
 0x123   :  { %v939_v49 = vsel %vm342_vm4, %v935_v33, %v937_v15  ;;  %v947_v19 = vsel %vm342_vm4, %v937_v15, %v935_v33  ;;  %v878_v6 = vadd.f32 %v874_v17, %v5779_v40  ;;  %v888_v16 = vadd.f32 %v884_v55, %v5780_v36 }
 0x124   :  { %v898_v35 = vadd.f32 %v894_v13, %v5781_v5  ;;  %v908_v50 = vadd.f32 %v904_v11, %v5782_v46  ;;  %v918_v27 = vadd.f32 %v914_v3, %v5783_v24  ;;  %v928_v14 = vadd.f32 %v924_v30, %v5784_v45 }
 0x125   :  { %v950_v23 = vsel %vm2723_vm5, %v939_v49, 0.0  ;;  %v951_v1 = vsel %vm2733_vm6, %v947_v19, 0.0  ;;  %v5785_v19 = vld [vmem:[#allocation46_spill] sm:$0xff] }
 0x126   :  { %v956_v15 = vmul.f32 %v3800_v31, %v950_v23  ;;  %v957_v33 = vmul.f32 %v3800_v31, %v951_v1  ;;  %v966_v17 = vmul.f32 %v3803_v18, %v950_v23  ;;  %v967_v55 = vmul.f32 %v3803_v18, %v951_v1 }
 0x127   :  { %v976_v24 = vmul.f32 %v3806_v61, %v950_v23  ;;  %v977_v46 = vmul.f32 %v3806_v61, %v951_v1  ;;  %v986_v13 = vmul.f32 %v3809_v63, %v950_v23  ;;  %v987_v11 = vmul.f32 %v3809_v63, %v951_v1 }
 0x128   :  { %v3974_v3 = vadd.f32 %v956_v15, %v858_v37  ;;  %v3976_v30 = vadd.f32 %v957_v33, %v859_v38  ;;  %v3978_v31 = vadd.f32 %v966_v17, %v868_v2  ;;  %v3980_v20 = vadd.f32 %v967_v55, %v869_v52 }
 0x129   :  { %v3984_v18 = vadd.f32 %v976_v24, %v878_v6  ;;  %v3986_v4 = vadd.f32 %v977_v46, %v879_v53  ;;  %v3988_v61 = vadd.f32 %v986_v13, %v888_v16  ;;  %v3990_v49 = vadd.f32 %v987_v11, %v889_v41  ;;  %v1070_v16 = vpop.permute.xlu2 %1069 }
 0x12a   :  { %v996_v63 = vmul.f32 %v3812_v62, %v950_v23  ;;  %v997_v38 = vmul.f32 %v3812_v62, %v951_v1  ;;  %v1006_v37 = vmul.f32 %v3815_v25, %v950_v23  ;;  %v1007_v52 = vmul.f32 %v3815_v25, %v951_v1 }
 0x12b   :  { %v1016_v2 = vmul.f32 %v3818_v26, %v950_v23  ;;  %v1017_v53 = vmul.f32 %v3818_v26, %v951_v1  ;;  %v1026_v40 = vmul.f32 %v5785_v19, %v950_v23  ;;  %v1027_v41 = vmul.f32 %v5785_v19, %v951_v1  ;;  %v1072_v26 = vpop.permute.xlu0 %1071  ;;  %v1064_v1 = vpop.permute.xlu1 %1063 }
 0x12c   :  { %v4006_v6 = vadd.f32 %v996_v63, %v898_v35  ;;  %v4008_v62 = vadd.f32 %v997_v38, %v899_v51  ;;  %v4010_v36 = vadd.f32 %v1006_v37, %v908_v50  ;;  %v4012_v25 = vadd.f32 %v1007_v52, %v909_v43 }
 0x12d   :  { %v4016_v5 = vadd.f32 %v1016_v2, %v918_v27  ;;  %v4018_v45 = vadd.f32 %v1017_v53, %v919_v9  ;;  %v4020_v23 = vadd.f32 %v1026_v40, %v928_v14  ;;  %v4022_v35 = vadd.f32 %v1027_v41, %v929_v39  ;;  %v5789_v41 = vld [vmem:[#allocation50_spill] sm:$0xff] }
 0x12e   :  { %v4028_v51 = vadd.f32 %v3894_v29, %v3836_v54  ;;  %v1024_v43 = vmul.f32 %v5785_v19, %v3830_v60  ;;  %v1025_v50 = vmul.f32 %v5785_v19, %v3834_v32  ;;  %v1086_v27 = vstv %s3966_s24  ;;  %v5788_v19 = vld [vmem:[#allocation48_spill] sm:$0xff]  ;;  %s4472_s24 = sld [smem:[#allocation2 + $0x606]] }
 0x12f   :  { %v1073_v9 = vsel %vm159_vm7, %v1070_v16, %v1062_v34  ;;  %v1079_v39 = vsel %vm159_vm7, %v1062_v34, %v1070_v16  ;;  %v1074_v14 = vsel %vm159_vm7, %v1072_v26, %v1064_v1  ;;  %v1080_v15 = vsel %vm159_vm7, %v1064_v1, %v1072_v26  ;;  %v5790_v26 = vld [vmem:[#allocation52_spill] sm:$0xff] }
 0x130   :  { %v1096_v33 = vstv %s3972_s25  ;;  %v1106_v54 = vstv %s3982_s0  ;;  %v4043_v60 = vsel %vm2834_vm8, %v1079_v39, 0.0  ;;  %v4047_v32 = vsel %vm2838_vm9, %v1073_v9, 0.0  ;;  %s4482_s25 = sld [smem:[#allocation2 + $0x607]] }
 0x131   :  { %v4051_v34 = vadd.f32 %v3898_v8, %v3838_v22  ;;  %v4055_v55 = vadd.f32 %v3902_v42, %v3840_v58  ;;  %v4059_v24 = vadd.f32 %v3906_v47, %v3842_v56  ;;  %v4063_v46 = vadd.f32 %v3910_v28, %v3856_v10  ;;  %s4560_s0 = sld [smem:[#allocation2 + $0x680]] }
 0x132   :  { %v4067_v13 = vadd.f32 %v3914_v0, %v3858_v48  ;;  %v4070_v22 = vadd.f32 %v1024_v43, %v3864_v57  ;;  %v1087_v8 = vmul.f32 %v1086_v27, %v4043_v60  ;;  %v1088_v58 = vmul.f32 %v1086_v27, %v4047_v32 }
 0x133   :  { %v1116_v42 = vstv %s3992_s5  ;;  %v1097_v11 = vmul.f32 %v1096_v33, %v4043_v60  ;;  %v1098_v56 = vmul.f32 %v1096_v33, %v4047_v32  ;;  %v1107_v47 = vmul.f32 %v1106_v54, %v4043_v60  ;;  %s4571_s5 = sld [smem:[#allocation2 + $0x681]] }
 0x134   :  { %v4079_v10 = vadd.f32 %v1025_v50, %v3866_v59  ;;  %v1126_v28 = vstv %s3998_s15  ;;  %v1136_v48 = vstv %s4004_s16  ;;  %v1146_v0 = vstv %s4014_s26  ;;  %s4582_s15 = sld [smem:[#allocation2 + $0x682]] }
 0x135   :  { %v4085_v63 = vstv %s4024_s27  ;;  %v1108_v57 = vmul.f32 %v1106_v54, %v4047_v32  ;;  %v1083_v38 = vsel %vm2834_vm8, %v1080_v15, 0.0  ;;  %v1084_v37 = vsel %vm2838_vm9, %v1074_v14, 0.0  ;;  %s4593_s16 = sld [smem:[#allocation2 + $0x683]] }
 0x136   :  { %v4093_v52 = vadd.f32 %v1087_v8, %v3872_v12  ;;  %v4096_v2 = vadd.f32 %v1088_v58, %v3874_v21  ;;  %v1117_v59 = vmul.f32 %v1116_v42, %v4043_v60  ;;  %v1118_v53 = vmul.f32 %v1116_v42, %v4047_v32  ;;  %s4604_s26 = sld [smem:[#allocation2 + $0x684]] }
 0x137   :  { %v4101_v40 = vadd.f32 %v1097_v11, %v5788_v19  ;;  %v4104_v16 = vadd.f32 %v1098_v56, %v5789_v41  ;;  %v4107_v43 = vadd.f32 %v1107_v47, %v5790_v26  ;;  %v1127_v50 = vmul.f32 %v1126_v28, %v4043_v60  ;;  %s4609_s27 = sld [smem:[#allocation2 + $0x685]] }
 0x138   :  { %v1128_v12 = vmul.f32 %v1126_v28, %v4047_v32  ;;  %v1137_v21 = vmul.f32 %v1136_v48, %v4043_v60  ;;  %v1138_v1 = vmul.f32 %v1136_v48, %v4047_v32  ;;  %v1147_v9 = vmul.f32 %v1146_v0, %v4043_v60 }
 0x139   :  { %v1089_v39 = vmul.f32 %v1086_v27, %v1083_v38  ;;  %v1090_v14 = vmul.f32 %v1086_v27, %v1084_v37  ;;  %v1099_v15 = vmul.f32 %v1096_v33, %v1083_v38  ;;  %v1100_v8 = vmul.f32 %v1096_v33, %v1084_v37 }
 0x13a   :  { %v1109_v58 = vmul.f32 %v1106_v54, %v1083_v38  ;;  %v1110_v11 = vmul.f32 %v1106_v54, %v1084_v37  ;;  %v1119_v56 = vmul.f32 %v1116_v42, %v1083_v38  ;;  %v1120_v47 = vmul.f32 %v1116_v42, %v1084_v37 }
 0x13b   :  { %v4121_v19 = vadd.f32 %v1089_v39, %v3974_v3  ;;  %v4124_v41 = vadd.f32 %v1090_v14, %v3976_v30  ;;  %v4127_v26 = vadd.f32 %v1099_v15, %v3978_v31  ;;  %v4130_v27 = vadd.f32 %v1100_v8, %v3980_v20 }
 0x13c   :  { %v4135_v33 = vadd.f32 %v1109_v58, %v3984_v18  ;;  %v4138_v54 = vadd.f32 %v1110_v11, %v3986_v4  ;;  %v4141_v3 = vadd.f32 %v1119_v56, %v3988_v61  ;;  %v4144_v30 = vadd.f32 %v1120_v47, %v3990_v49  ;;  %v5792_v58 = vld [vmem:[#allocation38_spill] sm:$0xff]  ;;  %v5793_v11 = vld [vmem:[#allocation41_spill] sm:$0xff] }
 0x13d   :  { %v1129_v42 = vmul.f32 %v1126_v28, %v1083_v38  ;;  %v1130_v31 = vmul.f32 %v1126_v28, %v1084_v37  ;;  %v1139_v39 = vmul.f32 %v1136_v48, %v1083_v38  ;;  %v1140_v14 = vmul.f32 %v1136_v48, %v1084_v37 }
 0x13e   :  { %v1149_v20 = vmul.f32 %v1146_v0, %v1083_v38  ;;  %v1150_v15 = vmul.f32 %v1146_v0, %v1084_v37  ;;  %v1159_v18 = vmul.f32 %v4085_v63, %v1083_v38  ;;  %v1160_v4 = vmul.f32 %v4085_v63, %v1084_v37 }
 0x13f   :  { %v4153_v61 = vadd.f32 %v1129_v42, %v4006_v6  ;;  %v4156_v49 = vadd.f32 %v1130_v31, %v4008_v62  ;;  %v4159_v28 = vadd.f32 %v1139_v39, %v4010_v36  ;;  %v4162_v48 = vadd.f32 %v1140_v14, %v4012_v25  ;;  %v5791_v36 = vld [vmem:[#allocation54_spill] sm:$0xff]  ;;  %v5794_v39 = vld [vmem:[#allocation17_spill] sm:$0xff] }
 0x140   :  { %v4165_v38 = vadd.f32 %v1149_v20, %v4016_v5  ;;  %v4168_v37 = vadd.f32 %v1150_v15, %v4018_v45  ;;  %v4171_v6 = vadd.f32 %v1159_v18, %v4020_v23  ;;  %v4174_v62 = vadd.f32 %v1160_v4, %v4022_v35 }
 0x141   :  { %v1112_v8 = vadd.f32 %v1108_v57, %v5791_v36  ;;  %v1121_v25 = vadd.f32 %v1117_v59, %v5792_v58  ;;  %v1122_v56 = vadd.f32 %v1118_v53, %v5793_v11  ;;  %v4182_v5 = vstv %s4114_s28  ;;  %s4612_s28 = sld [smem:[#allocation2 + $0x686]] }
 0x142   :  { %v1148_v45 = vmul.f32 %v1146_v0, %v4047_v32  ;;  %v1157_v23 = vmul.f32 %v4085_v63, %v4043_v60  ;;  %v4190_v47 = vstv %s4116_s29  ;;  %v4193_v35 = vstv %s4118_s30  ;;  %s4615_s29 = sld [smem:[#allocation2 + $0x687]] }
 0x143   :  { %v1131_v42 = vadd.f32 %v1127_v50, %v4028_v51  ;;  %v1132_v57 = vadd.f32 %v1128_v12, %v4051_v34  ;;  %v1158_v59 = vmul.f32 %v4085_v63, %v4047_v32  ;;  %v4200_v53 = vstv %s4132_s6  ;;  %v5795_v51 = vld [vmem:[#allocation14_spill] sm:$0xff]  ;;  %s4627_s30 = sld [smem:[#allocation2 + $0x700]] }
 0x144   :  { %v1141_v0 = vadd.f32 %v1137_v21, %v4055_v55  ;;  %v1142_v31 = vadd.f32 %v1138_v1, %v4059_v24  ;;  %v1151_v60 = vadd.f32 %v1147_v9, %v4063_v46  ;;  %v1167_v14 = vmul.f32 %v4182_v5, %v5794_v39  ;;  %s4635_s6 = sld [smem:[#allocation2 + $0x701]] }
 0x145   :  { %v1168_v34 = vmul.f32 %v4182_v5, %v5795_v51  ;;  %v1177_v50 = vmul.f32 %v4190_v47, %v5794_v39  ;;  %v1178_v32 = vmul.f32 %v4190_v47, %v5795_v51  ;;  %v1187_v55 = vmul.f32 %v4193_v35, %v5794_v39 }
 0x146   :  { %v1188_v24 = vmul.f32 %v4193_v35, %v5795_v51  ;;  %v1197_v46 = vmul.f32 %v4200_v53, %v5794_v39  ;;  %v4224_v63 = vstv %s4146_s2  ;;  %v4227_v12 = vstv %s4150_s7  ;;  %s4643_s2 = sld [smem:[#allocation2 + $0x702]] }
 0x147   :  { %v1152_v21 = vadd.f32 %v1148_v45, %v4067_v13  ;;  %v1161_v1 = vadd.f32 %v1157_v23, %v4070_v22  ;;  %v1162_v9 = vadd.f32 %v1158_v59, %v4079_v10  ;;  %v1198_v20 = vmul.f32 %v4200_v53, %v5795_v51  ;;  %s4913_s7 = sld [smem:[#allocation2 + $0x882]] }
 0x148   :  { %v1171_v15 = vadd.f32 %v1167_v14, %v4093_v52  ;;  %v1207_v18 = vmul.f32 %v4224_v63, %v5794_v39  ;;  %v1208_v4 = vmul.f32 %v4224_v63, %v5795_v51  ;;  %v4244_v36 = vstv %s4176_s8  ;;  %v1248_v52 = vpop.permute.xlu2 %1247  ;;  %s4921_s8 = sld [smem:[#allocation2 + $0x883]] }
 0x149   :  { %v1172_v13 = vadd.f32 %v1168_v34, %v4096_v2  ;;  %v1181_v22 = vadd.f32 %v1177_v50, %v4101_v40  ;;  %v1217_v10 = vmul.f32 %v4227_v12, %v5794_v39  ;;  %v4253_v58 = vstv %s4184_s1  ;;  %v1246_v2 = vpop.permute.xlu1 %1245  ;;  %s4927_s1 = sld [smem:[#allocation2 + $0x884]] }
 0x14a   :  { %v1182_v11 = vadd.f32 %v1178_v32, %v4104_v16  ;;  %v1191_v45 = vadd.f32 %v1187_v55, %v4107_v43  ;;  %v1192_v23 = vadd.f32 %v1188_v24, %v1112_v8  ;;  %v1201_v59 = vadd.f32 %v1197_v46, %v1121_v25 }
 0x14b   :  { %v4261_v40 = vadd.f32 %v1198_v20, %v1122_v56  ;;  %v1218_v14 = vmul.f32 %v4227_v12, %v5795_v51  ;;  %v1227_v34 = vmul.f32 %v4244_v36, %v5794_v39  ;;  %v1228_v16 = vmul.f32 %v4244_v36, %v5795_v51 }
 0x14c   :  { %v4269_v43 = vadd.f32 %v1207_v18, %v1131_v42  ;;  %v4271_v8 = vadd.f32 %v1208_v4, %v1132_v57  ;;  %v1237_v25 = vmul.f32 %v4253_v58, %v5794_v39  ;;  %v1238_v56 = vmul.f32 %v4253_v58, %v5795_v51 }
 0x14d   :  { %v4277_v50 = vadd.f32 %v1217_v10, %v1141_v0  ;;  %v4280_v32 = vstv %s4207_s9  ;;  %v1253_v55 = vsel %vm342_vm4, %v1246_v2, %v1248_v52  ;;  %v1261_v24 = vsel %vm342_vm4, %v1248_v52, %v1246_v2  ;;  %s4937_s9 = sld [smem:[#allocation2 + $0x885]] }
 0x14e   :  { %5796 = vst [vmem:[#allocation43_spill] sm:$0xff] %v4269_v43  ;;  %v4285_v46 = vstv %s4217_s3  ;;  %v4288_v42 = vstv %s4229_s10  ;;  %v1263_v57 = vsel %vm2723_vm5, %v1253_v55, 0.0  ;;  %v4294_v0 = vsel %vm2733_vm6, %v1261_v24, 0.0  ;;  %v5805_v24 = vld [vmem:[#allocation20_spill] sm:$0xff]  ;;  %s4657_s3 = sld [smem:[#allocation2 + $0x703]] }
 0x14f   :  { %5797 = vst [vmem:[#allocation66_spill] sm:$0xff] %v4271_v8  ;;  %v4296_v39 = vadd.f32 %v1218_v14, %v1142_v31  ;;  %v4298_v51 = vadd.f32 %v1227_v34, %v1151_v60  ;;  %v4300_v20 = vadd.f32 %v1228_v16, %v1152_v21  ;;  %v4303_v18 = vstv %s4236_s4  ;;  %s4667_s10 = sld [smem:[#allocation2 + $0x704]] }
 0x150   :  { %5798 = vst [vmem:[#allocation45_spill] sm:$0xff] %v4277_v50  ;;  %v4305_v4 = vadd.f32 %v1237_v25, %v1161_v1  ;;  %v4307_v10 = vadd.f32 %v1238_v56, %v1162_v9  ;;  %v1269_v52 = vmul.f32 %v4280_v32, %v1263_v57  ;;  %v1270_v2 = vmul.f32 %v4280_v32, %v4294_v0  ;;  %v5804_v25 = vld [vmem:[#allocation21_spill] sm:$0xff]  ;;  %s4677_s4 = sld [smem:[#allocation2 + $0x705]] }
 0x151   :  { %5799 = vst [vmem:[#allocation67_spill] sm:$0xff] %v4296_v39  ;;  %v1279_v55 = vmul.f32 %v4285_v46, %v1263_v57  ;;  %v1280_v31 = vmul.f32 %v4285_v46, %v4294_v0  ;;  %v1289_v60 = vmul.f32 %v4288_v42, %v1263_v57  ;;  %v1290_v21 = vmul.f32 %v4288_v42, %v4294_v0 }
 0x152   :  { %5800 = vst [vmem:[#allocation47_spill] sm:$0xff] %v4298_v51  ;;  %v4319_v14 = vstv %s4246_s11  ;;  %v4322_v1 = vstv %s4255_s12  ;;  %v4325_v9 = vstv %s4259_s13  ;;  %v1299_v34 = vmul.f32 %v4303_v18, %v1263_v57  ;;  %s4683_s11 = sld [smem:[#allocation2 + $0x706]] }
 0x153   :  { %5801 = vst [vmem:[#allocation68_spill] sm:$0xff] %v4300_v20  ;;  %v4328_v16 = vstv %s2254_s14  ;;  %v1169_v56 = vmul.f32 %v4182_v5, %v5804_v25  ;;  %v4336_v20 = vadd.f32 %v1269_v52, %v1171_v15  ;;  %v4338_v17 = vadd.f32 %v1270_v2, %v1172_v13  ;;  %s4687_s12 = sld [smem:[#allocation2 + $0x707]] }
 0x154   :  { %5802 = vst [vmem:[#allocation49_spill] sm:$0xff] %v4305_v4  ;;  %v1179_v4 = vmul.f32 %v4190_v47, %v5804_v25  ;;  %v4342_v29 = vmul.f32 %v4303_v18, %v4294_v0  ;;  %v1180_v51 = vmul.f32 %v4190_v47, %v5805_v24  ;;  %v4346_v39 = vadd.f32 %v1279_v55, %v1181_v22  ;;  %s4989_s13 = sld [smem:[#allocation6 + $0x2]] }
 0x155   :  { %5803 = vst [vmem:[#allocation69_spill] sm:$0xff] %v4307_v10  ;;  %v1170_v10 = vmul.f32 %v4182_v5, %v5805_v24  ;;  %v4348_v50 = vadd.f32 %v1280_v31, %v1182_v11  ;;  %v4350_v8 = vadd.f32 %v1289_v60, %v1191_v45  ;;  %v4352_v5 = vadd.f32 %v1290_v21, %v1192_v23  ;;  %s5001_s14 = sld [smem:[#allocation6 + $0x3]] }
 0x156   :  { %v4354_v43 = vadd.f32 %v1299_v34, %v1201_v59  ;;  %v4357_v15 = vmul.f32 %v4319_v14, %v1263_v57  ;;  %v4361_v13 = vmul.f32 %v4319_v14, %v4294_v0  ;;  %v4364_v52 = vmul.f32 %v4322_v1, %v1263_v57 }
 0x157   :  { %5806 = vst [vmem:[#allocation51_spill] sm:$0xff] %v4348_v50  ;;  %v4368_v47 = vmul.f32 %v4322_v1, %v4294_v0  ;;  %v4371_v22 = vmul.f32 %v4325_v9, %v1263_v57  ;;  %v4375_v11 = vmul.f32 %v4325_v9, %v4294_v0  ;;  %v1190_v45 = vmul.f32 %v4193_v35, %v5805_v24 }
 0x158   :  { %5807 = vst [vmem:[#allocation70_spill] sm:$0xff] %v4350_v8  ;;  %v4380_v23 = vmul.f32 %v4328_v16, %v1263_v57  ;;  %v1174_v59 = vadd.f32 %v1170_v10, %v4124_v41  ;;  %v1200_v2 = vmul.f32 %v4200_v53, %v5805_v24  ;;  %v1210_v55 = vmul.f32 %v4224_v63, %v5805_v24 }
 0x159   :  { %5808 = vst [vmem:[#allocation53_spill] sm:$0xff] %v4352_v5  ;;  %v1189_v31 = vmul.f32 %v4193_v35, %v5804_v25  ;;  %v1199_v60 = vmul.f32 %v4200_v53, %v5804_v25  ;;  %v1209_v21 = vmul.f32 %v4224_v63, %v5804_v25  ;;  %v1220_v57 = vmul.f32 %v4227_v12, %v5805_v24  ;;  %v1250_v35 = vpop.permute.xlu0 %1249 }
 0x15a   :  { %5809 = vst [vmem:[#allocation35_spill] sm:$0xff] %v4354_v43  ;;  %v1184_v41 = vadd.f32 %v1180_v51, %v4130_v27  ;;  %v1194_v10 = vadd.f32 %v1190_v45, %v4138_v54  ;;  %v1219_v34 = vmul.f32 %v4227_v12, %v5804_v25  ;;  %v1230_v43 = vmul.f32 %v4244_v36, %v5805_v24  ;;  %v1252_v51 = vpop.permute.xlu1 %1251  ;;  %v4408_v54 = vpop.permute.xlu2 %1347 }
 0x15b   :  { %v1204_v5 = vadd.f32 %v1200_v2, %v4144_v30  ;;  %v1229_v53 = vmul.f32 %v4244_v36, %v5804_v25  ;;  %v1239_v63 = vmul.f32 %v4253_v58, %v5804_v25  ;;  %v1240_v27 = vmul.f32 %v4253_v58, %v5805_v24 }
 0x15c   :  { %v1214_v12 = vadd.f32 %v1210_v55, %v4156_v49  ;;  %v1224_v45 = vadd.f32 %v1220_v57, %v4162_v48  ;;  %v1173_v8 = vadd.f32 %v1169_v56, %v4121_v19  ;;  %v1183_v30 = vadd.f32 %v1179_v4, %v4127_v26 }
 0x15d   :  { %v1234_v2 = vadd.f32 %v1230_v43, %v4168_v37  ;;  %v1193_v36 = vadd.f32 %v1189_v31, %v4135_v33  ;;  %v1203_v25 = vadd.f32 %v1199_v60, %v4141_v3  ;;  %v1213_v50 = vadd.f32 %v1209_v21, %v4153_v61 }
 0x15e   :  { %v1244_v58 = vadd.f32 %v1240_v27, %v4174_v62  ;;  %v1223_v24 = vadd.f32 %v1219_v34, %v4159_v28  ;;  %v1254_v49 = vsel %vm342_vm4, %v1250_v35, %v1252_v51  ;;  %v1262_v48 = vsel %vm342_vm4, %v1252_v51, %v1250_v35 }
 0x15f   :  { %v1233_v19 = vadd.f32 %v1229_v53, %v4165_v38  ;;  %v1243_v26 = vadd.f32 %v1239_v63, %v4171_v6  ;;  %v1265_v37 = vsel %vm2723_vm5, %v1254_v49, 0.0  ;;  %v1266_v33 = vsel %vm2733_vm6, %v1262_v48, 0.0 }
 0x160   :  { %v1271_v3 = vmul.f32 %v4280_v32, %v1265_v37  ;;  %v1272_v61 = vmul.f32 %v4280_v32, %v1266_v33  ;;  %v1281_v28 = vmul.f32 %v4285_v46, %v1265_v37  ;;  %v1282_v62 = vmul.f32 %v4285_v46, %v1266_v33 }
 0x161   :  { %v1291_v38 = vmul.f32 %v4288_v42, %v1265_v37  ;;  %v1292_v6 = vmul.f32 %v4288_v42, %v1266_v33  ;;  %v1301_v43 = vmul.f32 %v4303_v18, %v1265_v37  ;;  %v1302_v4 = vmul.f32 %v4303_v18, %v1266_v33  ;;  %v1350_v63 = vpop.permute.xlu0 %1349 }
 0x162   :  { %v4442_v56 = vadd.f32 %v1271_v3, %v1173_v8  ;;  %v4444_v55 = vadd.f32 %v1272_v61, %v1174_v59  ;;  %v4446_v32 = vadd.f32 %v1281_v28, %v1183_v30  ;;  %v4448_v31 = vadd.f32 %v1282_v62, %v1184_v41  ;;  %v1356_v27 = vpop.permute.xlu2 %1355  ;;  %v1354_v49 = vpop.permute.xlu1 %1353  ;;  %v5817_v3 = vld [vmem:[#allocation68_spill] sm:$0xff]  ;;  %v5818_v28 = vld [vmem:[#allocation49_spill] sm:$0xff] }
 0x163   :  { %v4452_v46 = vadd.f32 %v1291_v38, %v1193_v36  ;;  %v4454_v60 = vadd.f32 %v1292_v6, %v1194_v10  ;;  %v4456_v42 = vadd.f32 %v1301_v43, %v1203_v25  ;;  %v4458_v21 = vadd.f32 %v1302_v4, %v1204_v5  ;;  %v5811_v25 = vld [vmem:[#allocation66_spill] sm:$0xff]  ;;  %v5819_v38 = vld [vmem:[#allocation69_spill] sm:$0xff] }
 0x164   :  { %v1311_v8 = vmul.f32 %v4319_v14, %v1265_v37  ;;  %v1312_v18 = vmul.f32 %v4319_v14, %v1266_v33  ;;  %v1321_v59 = vmul.f32 %v4322_v1, %v1265_v37  ;;  %v1322_v57 = vmul.f32 %v4322_v1, %v1266_v33 }
 0x165   :  { %v1331_v41 = vmul.f32 %v4325_v9, %v1265_v37  ;;  %v1332_v10 = vmul.f32 %v4325_v9, %v1266_v33  ;;  %v1341_v34 = vmul.f32 %v4328_v16, %v1265_v37  ;;  %v1342_v5 = vmul.f32 %v4328_v16, %v1266_v33 }
 0x166   :  { %v4474_v35 = vadd.f32 %v1311_v8, %v1213_v50  ;;  %v4476_v53 = vadd.f32 %v1312_v18, %v1214_v12  ;;  %v4478_v14 = vadd.f32 %v1321_v59, %v1223_v24  ;;  %v4480_v1 = vadd.f32 %v1322_v57, %v1224_v45  ;;  %v5810_v12 = vld [vmem:[#allocation43_spill] sm:$0xff] }
 0x167   :  { %v4484_v9 = vadd.f32 %v1331_v41, %v1233_v19  ;;  %v4486_v51 = vadd.f32 %v1332_v10, %v1234_v2  ;;  %v4488_v30 = vadd.f32 %v1341_v34, %v1243_v26  ;;  %v4490_v36 = vadd.f32 %v1342_v5, %v1244_v58  ;;  %v5812_v58 = vld [vmem:[#allocation45_spill] sm:$0xff]  ;;  %v5813_v19 = vld [vmem:[#allocation67_spill] sm:$0xff] }
 0x168   :  { %v4494_v50 = vadd.f32 %v4342_v29, %v4261_v40  ;;  %v4498_v45 = vadd.f32 %v4357_v15, %v5810_v12  ;;  %v4502_v24 = vadd.f32 %v4361_v13, %v5811_v25  ;;  %v1340_v2 = vmul.f32 %v4328_v16, %v4294_v0  ;;  %v5814_v26 = vld [vmem:[#allocation47_spill] sm:$0xff] }
 0x169   :  { %v4508_v48 = vadd.f32 %v4364_v52, %v5812_v58  ;;  %v1370_v29 = vstv %s4428_s17  ;;  %v1358_v40 = vsel %vm159_vm7, %v1356_v27, %v1350_v63  ;;  %v1364_v15 = vsel %vm159_vm7, %v1350_v63, %v1356_v27  ;;  %s5011_s17 = sld [smem:[#allocation6 + $0x4]] }
 0x16a   :  { %v4515_v13 = vadd.f32 %v4368_v47, %v5813_v19  ;;  %v4519_v0 = vadd.f32 %v4371_v22, %v5814_v26  ;;  %v1367_v52 = vsel %vm2834_vm8, %v1364_v15, 0.0  ;;  %v1368_v33 = vsel %vm2838_vm9, %v1358_v40, 0.0  ;;  %v1532_v16 = vpop.permute.xlu1 %1531 }
 0x16b   :  { %v4527_v61 = vadd.f32 %v4375_v11, %v5817_v3  ;;  %v4531_v47 = vadd.f32 %v4380_v23, %v5818_v28  ;;  %v1380_v62 = vstv %s4434_s18  ;;  %v1363_v22 = vsel %vm159_vm7, %v4408_v54, %v1354_v49  ;;  %s5019_s18 = sld [smem:[#allocation6 + $0x5]] }
 0x16c   :  { %v4537_v6 = vadd.f32 %v1340_v2, %v5819_v38  ;;  %v1390_v43 = vstv %s4440_s19  ;;  %v1373_v4 = vmul.f32 %v1370_v29, %v1367_v52  ;;  %v1357_v8 = vsel %vm159_vm7, %v1354_v49, %v4408_v54  ;;  %s4785_s19 = sld [smem:[#allocation2 + $0x781]] }
 0x16d   :  { %v1400_v18 = vstv %s4450_s20  ;;  %v1410_v59 = vstv %s4460_s21  ;;  %v1420_v11 = vstv %s4466_s22  ;;  %v1374_v57 = vmul.f32 %v1370_v29, %v1368_v33  ;;  %s4791_s20 = sld [smem:[#allocation2 + $0x782]] }
 0x16e   :  { %v1430_v41 = vstv %s4472_s24  ;;  %v1440_v10 = vstv %s4482_s25  ;;  %v1383_v23 = vmul.f32 %v1380_v62, %v1367_v52  ;;  %v1365_v34 = vsel %vm2834_vm8, %v1363_v22, 0.0  ;;  %s4797_s21 = sld [smem:[#allocation2 + $0x783]] }
 0x16f   :  { %v1384_v5 = vmul.f32 %v1380_v62, %v1368_v33  ;;  %v1393_v63 = vmul.f32 %v1390_v43, %v1367_v52  ;;  %v1394_v27 = vmul.f32 %v1390_v43, %v1368_v33  ;;  %v1366_v12 = vsel %vm2838_vm9, %v1357_v8, 0.0  ;;  %s4803_s22 = sld [smem:[#allocation2 + $0x784]] }
 0x170   :  { %v4552_v25 = vadd.f32 %v1373_v4, %v4442_v56  ;;  %v1403_v54 = vmul.f32 %v1400_v18, %v1367_v52  ;;  %v1404_v2 = vmul.f32 %v1400_v18, %v1368_v33  ;;  %v1413_v49 = vmul.f32 %v1410_v59, %v1367_v52  ;;  %s4809_s24 = sld [smem:[#allocation2 + $0x785]] }
 0x171   :  { %v4555_v58 = vadd.f32 %v1374_v57, %v4444_v55  ;;  %v1414_v40 = vmul.f32 %v1410_v59, %v1368_v33  ;;  %v1423_v15 = vmul.f32 %v1420_v11, %v1367_v52  ;;  %v1424_v19 = vmul.f32 %v1420_v11, %v1368_v33  ;;  %s4817_s25 = sld [smem:[#allocation2 + $0x786]] }
 0x172   :  { %v4558_v26 = vadd.f32 %v1383_v23, %v4446_v32  ;;  %v1433_v3 = vmul.f32 %v1430_v41, %v1367_v52  ;;  %v1434_v28 = vmul.f32 %v1430_v41, %v1368_v33  ;;  %v1443_v22 = vmul.f32 %v1440_v10, %v1367_v52 }
 0x173   :  { %v4563_v56 = vadd.f32 %v1384_v5, %v4448_v31  ;;  %v4566_v38 = vadd.f32 %v1393_v63, %v4452_v46  ;;  %v4569_v55 = vadd.f32 %v1394_v27, %v4454_v60  ;;  %v1444_v4 = vmul.f32 %v1440_v10, %v1368_v33 }
 0x174   :  { %v4574_v32 = vadd.f32 %v1403_v54, %v4456_v42  ;;  %v4577_v8 = vadd.f32 %v1404_v2, %v4458_v21  ;;  %v4580_v52 = vadd.f32 %v1413_v49, %v4474_v35  ;;  %v1371_v31 = vmul.f32 %v1370_v29, %v1365_v34 }
 0x175   :  { %v4585_v46 = vadd.f32 %v1414_v40, %v4476_v53  ;;  %v4588_v60 = vadd.f32 %v1423_v15, %v4478_v14  ;;  %v4591_v33 = vadd.f32 %v1424_v19, %v4480_v1  ;;  %v1372_v42 = vmul.f32 %v1370_v29, %v1366_v12  ;;  %v5832_v19 = vld [vmem:[#allocation53_spill] sm:$0xff] }
 0x176   :  { %5820 = vst [vmem:[#allocation12_spill] sm:$0xff] %v4574_v32  ;;  %v4596_v21 = vadd.f32 %v1433_v3, %v4484_v9  ;;  %v4599_v35 = vadd.f32 %v1434_v28, %v4486_v51  ;;  %v4602_v57 = vadd.f32 %v1443_v22, %v4488_v30  ;;  %v1381_v53 = vmul.f32 %v1380_v62, %v1365_v34  ;;  %v5833_v28 = vld [vmem:[#allocation35_spill] sm:$0xff] }
 0x177   :  { %5821 = vst [vmem:[#allocation13_spill] sm:$0xff] %v4577_v8  ;;  %v4607_v14 = vadd.f32 %v1444_v4, %v4490_v36  ;;  %v1382_v1 = vmul.f32 %v1380_v62, %v1366_v12  ;;  %v1391_v23 = vmul.f32 %v1390_v43, %v1365_v34  ;;  %v1392_v29 = vmul.f32 %v1390_v43, %v1366_v12 }
 0x178   :  { %5822 = vst [vmem:[#allocation55_spill] sm:$0xff] %v4580_v52  ;;  %v1375_v9 = vadd.f32 %v1371_v31, %v4336_v20  ;;  %v1401_v5 = vmul.f32 %v1400_v18, %v1365_v34  ;;  %v1402_v63 = vmul.f32 %v1400_v18, %v1366_v12  ;;  %v1411_v51 = vmul.f32 %v1410_v59, %v1365_v34  ;;  %v5830_v20 = vld [vmem:[#allocation51_spill] sm:$0xff]  ;;  %v5831_v18 = vld [vmem:[#allocation70_spill] sm:$0xff] }
 0x179   :  { %5823 = vst [vmem:[#allocation56_spill] sm:$0xff] %v4585_v46  ;;  %v1376_v30 = vadd.f32 %v1372_v42, %v4338_v17  ;;  %v1412_v27 = vmul.f32 %v1410_v59, %v1366_v12  ;;  %v1421_v54 = vmul.f32 %v1420_v11, %v1365_v34  ;;  %v1422_v2 = vmul.f32 %v1420_v11, %v1366_v12 }
 0x17a   :  { %5824 = vst [vmem:[#allocation57_spill] sm:$0xff] %v4588_v60  ;;  %v1385_v36 = vadd.f32 %v1381_v53, %v4346_v39  ;;  %v1431_v62 = vmul.f32 %v1430_v41, %v1365_v34  ;;  %v1432_v43 = vmul.f32 %v1430_v41, %v1366_v12  ;;  %v1441_v49 = vmul.f32 %v1440_v10, %v1365_v34 }
 0x17b   :  { %5825 = vst [vmem:[#allocation58_spill] sm:$0xff] %v4591_v33  ;;  %v1386_v40 = vadd.f32 %v1382_v1, %v5830_v20  ;;  %v1395_v15 = vadd.f32 %v1391_v23, %v5831_v18  ;;  %v1396_v3 = vadd.f32 %v1392_v29, %v5832_v19  ;;  %v1442_v17 = vmul.f32 %v1440_v10, %v1366_v12  ;;  %v1530_v18 = vpop.permute.xlu0 %1529 }
 0x17c   :  { %5826 = vst [vmem:[#allocation59_spill] sm:$0xff] %v4596_v21  ;;  %v1405_v59 = vadd.f32 %v1401_v5, %v5833_v28  ;;  %v1406_v11 = vadd.f32 %v1402_v63, %v4494_v50  ;;  %v1415_v22 = vadd.f32 %v1411_v51, %v4498_v45  ;;  %v4625_v4 = vstv %s4560_s0  ;;  %s4823_s0 = sld [smem:[#allocation2 + $0x787]] }
 0x17d   :  { %5827 = vst [vmem:[#allocation60_spill] sm:$0xff] %v4599_v35  ;;  %v1416_v39 = vadd.f32 %v1412_v27, %v4502_v24  ;;  %v1425_v41 = vadd.f32 %v1421_v54, %v4508_v48  ;;  %v1426_v34 = vadd.f32 %v1422_v2, %v4515_v13  ;;  %v4633_v31 = vstv %s4571_s5  ;;  %v2335_v48 = vld [vmem:[%s5730_s23 + $0x20] sm:$0xff]  ;;  %s4829_s5 = sld [smem:[#allocation2 + $0x800]] }
 0x17e   :  { %5828 = vst [vmem:[#allocation61_spill] sm:$0xff] %v4602_v57  ;;  %v1435_v50 = vadd.f32 %v1431_v62, %v4519_v0  ;;  %v1436_v45 = vadd.f32 %v1432_v43, %v4527_v61  ;;  %v1445_v10 = vadd.f32 %v1441_v49, %v4531_v47  ;;  %v4641_v12 = vstv %s4582_s15  ;;  %v2336_v0 = vld [vmem:[%s5730_s23 + $0x28] sm:$0xff]  ;;  %s4835_s15 = sld [smem:[#allocation2 + $0x801]] }
 0x17f   :  { %5829 = vst [vmem:[#allocation18_spill] sm:$0xff] %v4607_v14  ;;  %v1446_v24 = vadd.f32 %v1442_v17, %v4537_v6  ;;  %v1451_v13 = vmul.f32 %v2335_v48, %v4625_v4  ;;  %v1452_v61 = vmul.f32 %v2336_v0, %v4625_v4  ;;  %v4655_v47 = vstv %s4593_s16  ;;  %s4845_s16 = sld [smem:[#allocation2 + $0x802]] }
 0x180   :  { %v1461_v42 = vmul.f32 %v2335_v48, %v4633_v31  ;;  %v1462_v6 = vmul.f32 %v2336_v0, %v4633_v31  ;;  %v4662_v53 = vstv %s4604_s26  ;;  %v4665_v1 = vstv %s4609_s27  ;;  %s4855_s26 = sld [smem:[#allocation2 + $0x803]] }
 0x181   :  { %v1471_v23 = vmul.f32 %v2335_v48, %v4641_v12  ;;  %v1472_v29 = vmul.f32 %v2336_v0, %v4641_v12  ;;  %v4672_v5 = vstv %s4612_s28  ;;  %v4675_v63 = vstv %s4615_s29  ;;  %s4863_s27 = sld [smem:[#allocation2 + $0x804]] }
 0x182   :  { %v1481_v51 = vmul.f32 %v2335_v48, %v4655_v47  ;;  %v1482_v27 = vmul.f32 %v2336_v0, %v4655_v47  ;;  %v1491_v54 = vmul.f32 %v2335_v48, %v4662_v53  ;;  %v1492_v2 = vmul.f32 %v2336_v0, %v4662_v53  ;;  %s4871_s28 = sld [smem:[#allocation2 + $0x805]] }
 0x183   :  { %v1455_v62 = vadd.f32 %v1451_v13, %v1375_v9  ;;  %v1456_v43 = vadd.f32 %v1452_v61, %v1376_v30  ;;  %v1501_v49 = vmul.f32 %v2335_v48, %v4665_v1  ;;  %v1502_v20 = vmul.f32 %v2336_v0, %v4665_v1  ;;  %s4877_s29 = sld [smem:[#allocation2 + $0x806]] }
 0x184   :  { %v1511_v19 = vmul.f32 %v2335_v48, %v4672_v5  ;;  %v1512_v17 = vmul.f32 %v2336_v0, %v4672_v5  ;;  %v1521_v28 = vmul.f32 %v2335_v48, %v4675_v63  ;;  %v1522_v37 = vmul.f32 %v2336_v0, %v4675_v63 }
 0x185   :  { %v1465_v14 = vadd.f32 %v1461_v42, %v1385_v36  ;;  %v1466_v9 = vadd.f32 %v1462_v6, %v1386_v40  ;;  %v1475_v30 = vadd.f32 %v1471_v23, %v1395_v15  ;;  %v1476_v13 = vadd.f32 %v1472_v29, %v1396_v3 }
 0x186   :  { %v1485_v61 = vadd.f32 %v1481_v51, %v1405_v59  ;;  %v1486_v57 = vadd.f32 %v1482_v27, %v1406_v11  ;;  %v1495_v35 = vadd.f32 %v1491_v54, %v1415_v22  ;;  %v1496_v21 = vadd.f32 %v1492_v2, %v1416_v39 }
 0x187   :  { %v1505_v33 = vadd.f32 %v1501_v49, %v1425_v41  ;;  %v1506_v48 = vadd.f32 %v1502_v20, %v1426_v34  ;;  %v1537_v0 = vsel %vm342_vm4, %v1530_v18, %v1532_v16  ;;  %v1545_v36 = vsel %vm342_vm4, %v1532_v16, %v1530_v18 }
 0x188   :  { %v1515_v40 = vadd.f32 %v1511_v19, %v1435_v50  ;;  %v1516_v42 = vadd.f32 %v1512_v17, %v1436_v45  ;;  %v1525_v15 = vadd.f32 %v1521_v28, %v1445_v10  ;;  %v1526_v3 = vadd.f32 %v1522_v37, %v1446_v24  ;;  %v2337_v45 = vld [vmem:[%s5730_s23 + $0x30] sm:$0xff]  ;;  %v2338_v24 = vld [vmem:[%s5730_s23 + $0x38] sm:$0xff]  ;;  %s4777_s23 = sld [smem:[#allocation2 + $0x780]] }
 0x189   :  { %v4696_v59 = vstv %s4627_s30  ;;  %v4699_v11 = vstv %s4635_s6  ;;  %v1547_v22 = vsel %vm2723_vm5, %v1537_v0, 0.0  ;;  %v1548_v39 = vsel %vm2733_vm6, %v1545_v36, 0.0  ;;  %s4885_s30 = sld [smem:[#allocation2 + $0x807]] }
 0x18a   :  { %5834 = vst [vmem:[#allocation15_spill] sm:$0xff] %v4696_v59  ;;  %v4706_v41 = vstv %s4643_s2  ;;  %v4709_v34 = vstv %s4657_s3  ;;  %v4712_v6 = vstv %s4667_s10  ;;  %v4715_v16 = vstv %s4677_s4  ;;  %s4893_s6 = sld [smem:[#allocation2 + $0x880]] }
 0x18b   :  { %5835 = vst [vmem:[#allocation62_spill] sm:$0xff] %v4699_v11  ;;  %v4718_v50 = vstv %s4683_s11  ;;  %v4721_v37 = vstv %s4687_s12  ;;  %v1453_v10 = vmul.f32 %v2337_v45, %v4625_v4  ;;  %v1454_v23 = vmul.f32 %v2338_v24, %v4625_v4  ;;  %s4903_s2 = sld [smem:[#allocation2 + $0x881]] }
 0x18c   :  { %5836 = vst [vmem:[#allocation63_spill] sm:$0xff] %v4706_v41  ;;  %v1553_v29 = vmul.f32 %v4696_v59, %v1547_v22  ;;  %v1554_v51 = vmul.f32 %v4696_v59, %v1548_v39  ;;  %v1463_v27 = vmul.f32 %v2337_v45, %v4633_v31  ;;  %v1464_v54 = vmul.f32 %v2338_v24, %v4633_v31  ;;  %s4944_s3 = sld [smem:[#allocation2 + $0x886]] }
 0x18d   :  { %5837 = vst [vmem:[#allocation33_spill] sm:$0xff] %v4709_v34  ;;  %v1563_v2 = vmul.f32 %v4699_v11, %v1547_v22  ;;  %v1564_v49 = vmul.f32 %v4699_v11, %v1548_v39  ;;  %v1573_v20 = vmul.f32 %v4706_v41, %v1547_v22  ;;  %v1574_v18 = vmul.f32 %v4706_v41, %v1548_v39  ;;  %s4952_s10 = sld [smem:[#allocation2 + $0x887]] }
 0x18e   :  { %5838 = vst [vmem:[#allocation34_spill] sm:$0xff] %v4712_v6  ;;  %v1583_v19 = vmul.f32 %v4709_v34, %v1547_v22  ;;  %v1584_v4 = vmul.f32 %v4709_v34, %v1548_v39  ;;  %v1593_v17 = vmul.f32 %v4712_v6, %v1547_v22  ;;  %v1594_v28 = vmul.f32 %v4712_v6, %v1548_v39  ;;  %s4957_s4 = sld [smem:[#allocation7]] }
 0x18f   :  { %5839 = vst [vmem:[#allocation16_spill] sm:$0xff] %v4715_v16  ;;  %v1603_v0 = vmul.f32 %v4715_v16, %v1547_v22  ;;  %v1604_v31 = vmul.f32 %v4715_v16, %v1548_v39  ;;  %v1613_v36 = vmul.f32 %v4718_v50, %v1547_v22  ;;  %v1614_v11 = vmul.f32 %v4718_v50, %v1548_v39  ;;  %s4967_s11 = sld [smem:[#allocation6]] }
 0x190   :  { %v4747_v59 = vadd.f32 %v1553_v29, %v1455_v62  ;;  %v4749_v60 = vadd.f32 %v1554_v51, %v1456_v43  ;;  %v1623_v41 = vmul.f32 %v4721_v37, %v1547_v22  ;;  %v1624_v34 = vmul.f32 %v4721_v37, %v1548_v39  ;;  %s4979_s12 = sld [smem:[#allocation6 + $0x1]] }
 0x191   :  { %v4753_v46 = vadd.f32 %v1563_v2, %v1465_v14  ;;  %v4755_v52 = vadd.f32 %v1564_v49, %v1466_v9  ;;  %v4757_v6 = vadd.f32 %v1573_v20, %v1475_v30  ;;  %v4759_v8 = vadd.f32 %v1574_v18, %v1476_v13  ;;  %v5843_v2 = vld [vmem:[#allocation56_spill] sm:$0xff]  ;;  %v5845_v20 = vld [vmem:[#allocation58_spill] sm:$0xff] }
 0x192   :  { %v4761_v16 = vadd.f32 %v1583_v19, %v1485_v61  ;;  %v4763_v32 = vadd.f32 %v1584_v4, %v1486_v57  ;;  %v4765_v62 = vadd.f32 %v1593_v17, %v1495_v35  ;;  %v4767_v43 = vadd.f32 %v1594_v28, %v1496_v21  ;;  %v5846_v19 = vld [vmem:[#allocation15_spill] sm:$0xff] }
 0x193   :  { %v4769_v29 = vadd.f32 %v1603_v0, %v1505_v33  ;;  %v4771_v22 = vadd.f32 %v1604_v31, %v1506_v48  ;;  %v4773_v14 = vadd.f32 %v1613_v36, %v1515_v40  ;;  %v4775_v9 = vadd.f32 %v1614_v11, %v1516_v42  ;;  %v1536_v40 = vpop.permute.xlu0 %1535  ;;  %v1534_v11 = vpop.permute.xlu2 %1533  ;;  %v5847_v28 = vld [vmem:[#allocation59_spill] sm:$0xff]  ;;  %v5848_v31 = vld [vmem:[#allocation60_spill] sm:$0xff] }
 0x194   :  { %v4779_v30 = vadd.f32 %v1623_v41, %v1525_v15  ;;  %v4781_v13 = vadd.f32 %v1624_v34, %v1526_v3  ;;  %v1473_v57 = vmul.f32 %v2337_v45, %v4641_v12  ;;  %v1474_v35 = vmul.f32 %v2338_v24, %v4641_v12 }
 0x195   :  { %v1483_v33 = vmul.f32 %v2337_v45, %v4655_v47  ;;  %v1484_v21 = vmul.f32 %v2338_v24, %v4655_v47  ;;  %v1493_v61 = vmul.f32 %v2337_v45, %v4662_v53  ;;  %v1494_v48 = vmul.f32 %v2338_v24, %v4662_v53 }
 0x196   :  { %v1503_v42 = vmul.f32 %v2337_v45, %v4665_v1  ;;  %v1504_v15 = vmul.f32 %v2338_v24, %v4665_v1  ;;  %v1513_v3 = vmul.f32 %v2337_v45, %v4672_v5  ;;  %v1514_v12 = vmul.f32 %v2338_v24, %v4672_v5 }
 0x197   :  { %v1523_v47 = vmul.f32 %v2337_v45, %v4675_v63  ;;  %v1524_v39 = vmul.f32 %v2338_v24, %v4675_v63  ;;  %v1457_v53 = vadd.f32 %v1453_v10, %v4552_v25  ;;  %v1458_v41 = vadd.f32 %v1454_v23, %v4555_v58  ;;  %v1652_v10 = vpop.permute.xlu1 %1651  ;;  %v5841_v24 = vld [vmem:[#allocation13_spill] sm:$0xff] }
 0x198   :  { %v1467_v34 = vadd.f32 %v1463_v27, %v4558_v26  ;;  %v1468_v1 = vadd.f32 %v1464_v54, %v4563_v56  ;;  %v1538_v51 = vsel %vm342_vm4, %v1534_v11, %v1536_v40  ;;  %v1546_v5 = vsel %vm342_vm4, %v1536_v40, %v1534_v11  ;;  %v5840_v26 = vld [vmem:[#allocation12_spill] sm:$0xff]  ;;  %v5842_v27 = vld [vmem:[#allocation55_spill] sm:$0xff] }
 0x199   :  { %v1477_v45 = vadd.f32 %v1473_v57, %v4566_v38  ;;  %v1478_v63 = vadd.f32 %v1474_v35, %v4569_v55  ;;  %v1549_v25 = vsel %vm2723_vm5, %v1538_v51, 0.0  ;;  %v1550_v58 = vsel %vm2733_vm6, %v1546_v5, 0.0  ;;  %v5844_v55 = vld [vmem:[#allocation57_spill] sm:$0xff]  ;;  %v5849_v57 = vld [vmem:[#allocation62_spill] sm:$0xff]  ;;  %v5852_v11 = vld [vmem:[#allocation63_spill] sm:$0xff] }
 0x19a   :  { %v1487_v56 = vadd.f32 %v1483_v33, %v5840_v26  ;;  %v1488_v23 = vadd.f32 %v1484_v21, %v5841_v24  ;;  %v1497_v54 = vadd.f32 %v1493_v61, %v5842_v27  ;;  %v1498_v38 = vadd.f32 %v1494_v48, %v5843_v2  ;;  %v5850_v21 = vld [vmem:[#allocation61_spill] sm:$0xff]  ;;  %v5851_v48 = vld [vmem:[#allocation18_spill] sm:$0xff] }
 0x19b   :  { %v1507_v49 = vadd.f32 %v1503_v42, %v5844_v55  ;;  %v1508_v18 = vadd.f32 %v1504_v15, %v5845_v20  ;;  %v1555_v4 = vmul.f32 %v5846_v19, %v1549_v25  ;;  %v1556_v17 = vmul.f32 %v5846_v19, %v1550_v58  ;;  %v5854_v20 = vld [vmem:[#allocation34_spill] sm:$0xff] }
 0x19c   :  { %v1517_v0 = vadd.f32 %v1513_v3, %v5847_v28  ;;  %v1518_v36 = vadd.f32 %v1514_v12, %v5848_v31  ;;  %v1565_v35 = vmul.f32 %v5849_v57, %v1549_v25  ;;  %v1566_v33 = vmul.f32 %v5849_v57, %v1550_v58  ;;  %v1660_v31 = vpop.permute.xlu0 %1659 }
 0x19d   :  { %v1527_v61 = vadd.f32 %v1523_v47, %v5850_v21  ;;  %v1528_v40 = vadd.f32 %v1524_v39, %v5851_v48  ;;  %v4840_v42 = vstv %s4777_s23  ;;  %v4843_v15 = vstv %s4785_s19  ;;  %v5853_v39 = vld [vmem:[#allocation33_spill] sm:$0xff]  ;;  %s5028_s23 = sld [smem:[#allocation6 + $0x6]] }
 0x19e   :  { %v1575_v3 = vmul.f32 %v5852_v11, %v1549_v25  ;;  %v1576_v12 = vmul.f32 %v5852_v11, %v1550_v58  ;;  %v4850_v51 = vstv %s4791_s20  ;;  %v4853_v5 = vstv %s4797_s21  ;;  %s5033_s19 = sld [smem:[#allocation6 + $0x7]] }
 0x19f   :  { %v4857_v26 = vadd.f32 %v1555_v4, %v1457_v53  ;;  %v4859_v47 = vadd.f32 %v1556_v17, %v1458_v41  ;;  %v1585_v24 = vmul.f32 %v5853_v39, %v1549_v25  ;;  %v1586_v27 = vmul.f32 %v5853_v39, %v1550_v58  ;;  %v5855_v53 = vld [vmem:[#allocation16_spill] sm:$0xff]  ;;  %v1662_v39 = vpop.permute.xlu1 %1661  ;;  %s5043_s20 = sld [smem:[#allocation7 + $0x1]] }
 0x1a0   :  { %v4865_v2 = vadd.f32 %v1565_v35, %v1467_v34  ;;  %v4867_v55 = vadd.f32 %v1566_v33, %v1468_v1  ;;  %v1595_v19 = vmul.f32 %v5854_v20, %v1549_v25  ;;  %v1596_v28 = vmul.f32 %v5854_v20, %v1550_v58  ;;  %s5055_s21 = sld [smem:[#allocation6 + $0x80]] }
 0x1a1   :  { %v1605_v41 = vmul.f32 %v5855_v53, %v1549_v25  ;;  %v1606_v4 = vmul.f32 %v5855_v53, %v1550_v58  ;;  %v1615_v17 = vmul.f32 %v4718_v50, %v1549_v25  ;;  %v1616_v57 = vmul.f32 %v4718_v50, %v1550_v58 }
 0x1a2   :  { %v4879_v34 = vadd.f32 %v1575_v3, %v1477_v45  ;;  %v4881_v1 = vadd.f32 %v1576_v12, %v1478_v63  ;;  %v1625_v35 = vmul.f32 %v4721_v37, %v1549_v25  ;;  %v1626_v33 = vmul.f32 %v4721_v37, %v1550_v58 }
 0x1a3   :  { %v4887_v21 = vadd.f32 %v1585_v24, %v1487_v56  ;;  %v4889_v48 = vadd.f32 %v1586_v27, %v1488_v23  ;;  %v1663_v11 = vsel %vm159_vm7, %v1660_v31, %v1652_v10  ;;  %v1669_v50 = vsel %vm159_vm7, %v1652_v10, %v1660_v31 }
 0x1a4   :  { %v4895_v45 = vadd.f32 %v1595_v19, %v1497_v54  ;;  %v4897_v63 = vadd.f32 %v1596_v28, %v1498_v38  ;;  %v1671_v37 = vsel %vm2834_vm8, %v1669_v50, 0.0  ;;  %v1672_v56 = vsel %vm2838_vm9, %v1663_v11, 0.0  ;;  %v1654_v38 = vpop.permute.xlu2 %1653 }
 0x1a5   :  { %v4905_v23 = vadd.f32 %v1605_v41, %v1507_v49  ;;  %v4907_v10 = vadd.f32 %v1606_v4, %v1508_v18  ;;  %v4909_v54 = vadd.f32 %v1615_v17, %v1517_v0  ;;  %v4911_v3 = vadd.f32 %v1616_v57, %v1518_v36 }
 0x1a6   :  { %v4915_v12 = vadd.f32 %v1625_v35, %v1527_v61  ;;  %v4917_v24 = vadd.f32 %v1626_v33, %v1528_v40  ;;  %v1677_v27 = vmul.f32 %v4840_v42, %v1671_v37  ;;  %v1670_v49 = vsel %vm159_vm7, %v1654_v38, %v1662_v39 }
 0x1a7   :  { %v1716_v18 = vstv %s4803_s22  ;;  %v1726_v20 = vstv %s4809_s24  ;;  %v1678_v0 = vmul.f32 %v4840_v42, %v1672_v56  ;;  %v1664_v36 = vsel %vm159_vm7, %v1662_v39, %v1654_v38  ;;  %s5069_s22 = sld [smem:[#allocation6 + $0x81]] }
 0x1a8   :  { %5858 = vst [vmem:[#allocation19_spill] sm:$0xff] %v4917_v24  ;;  %v4930_v19 = vstv %s4817_s25  ;;  %v4933_v61 = vstv %s4823_s0  ;;  %v1687_v40 = vmul.f32 %v4843_v15, %v1671_v37  ;;  %v1688_v28 = vmul.f32 %v4843_v15, %v1672_v56  ;;  %s5083_s24 = sld [smem:[#allocation6 + $0x82]] }
 0x1a9   :  { %v1697_v31 = vmul.f32 %v4850_v51, %v1671_v37  ;;  %v1698_v53 = vmul.f32 %v4850_v51, %v1672_v56  ;;  %v1707_v41 = vmul.f32 %v4853_v5, %v1671_v37  ;;  %v1673_v4 = vsel %vm2834_vm8, %v1670_v49, 0.0  ;;  %s5097_s25 = sld [smem:[#allocation6 + $0x83]] }
 0x1aa   :  { %v4947_v17 = vadd.f32 %v1677_v27, %v4747_v59  ;;  %v1708_v57 = vmul.f32 %v4853_v5, %v1672_v56  ;;  %v1717_v35 = vmul.f32 %v1716_v18, %v1671_v37  ;;  %v1674_v33 = vsel %vm2838_vm9, %v1664_v36, 0.0  ;;  %s5110_s0 = sld [smem:[#allocation6 + $0x84]] }
 0x1ab   :  { %v4955_v11 = vadd.f32 %v1678_v0, %v4749_v60  ;;  %v1718_v50 = vmul.f32 %v1716_v18, %v1672_v56  ;;  %v1727_v39 = vmul.f32 %v1726_v20, %v1671_v37  ;;  %v1728_v25 = vmul.f32 %v1726_v20, %v1672_v56 }
 0x1ac   :  { %v4960_v38 = vadd.f32 %v1687_v40, %v4753_v46  ;;  %v4963_v59 = vadd.f32 %v1688_v28, %v4755_v52  ;;  %v1737_v27 = vmul.f32 %v4930_v19, %v1671_v37  ;;  %v1738_v58 = vmul.f32 %v4930_v19, %v1672_v56 }
 0x1ad   :  { %v4970_v60 = vadd.f32 %v1697_v31, %v4757_v6  ;;  %v4973_v49 = vadd.f32 %v1698_v53, %v4759_v8  ;;  %v4976_v0 = vadd.f32 %v1707_v41, %v4761_v16  ;;  %v1747_v46 = vmul.f32 %v4933_v61, %v1671_v37 }
 0x1ae   :  { %v4982_v52 = vadd.f32 %v1708_v57, %v4763_v32  ;;  %v4985_v36 = vadd.f32 %v1717_v35, %v4765_v62  ;;  %v1748_v40 = vmul.f32 %v4933_v61, %v1672_v56  ;;  %v1679_v6 = vmul.f32 %v4840_v42, %v1673_v4 }
 0x1af   :  { %v4992_v8 = vadd.f32 %v1718_v50, %v4767_v43  ;;  %v4995_v16 = vadd.f32 %v1727_v39, %v4769_v29  ;;  %v4998_v37 = vadd.f32 %v1728_v25, %v4771_v22  ;;  %v1680_v32 = vmul.f32 %v4840_v42, %v1674_v33 }
 0x1b0   :  { %v5004_v62 = vadd.f32 %v1737_v27, %v4773_v14  ;;  %v5007_v56 = vadd.f32 %v1738_v58, %v4775_v9  ;;  %v1689_v28 = vmul.f32 %v4843_v15, %v1673_v4  ;;  %v1690_v43 = vmul.f32 %v4843_v15, %v1674_v33 }
 0x1b1   :  { %v5014_v29 = vadd.f32 %v1747_v46, %v4779_v30  ;;  %v1699_v22 = vmul.f32 %v4850_v51, %v1673_v4  ;;  %v1700_v42 = vmul.f32 %v4850_v51, %v1674_v33  ;;  %v1709_v31 = vmul.f32 %v4853_v5, %v1673_v4 }
 0x1b2   :  { %v5022_v14 = vadd.f32 %v1748_v40, %v4781_v13  ;;  %v5025_v9 = vadd.f32 %v1679_v6, %v4857_v26  ;;  %v1710_v15 = vmul.f32 %v4853_v5, %v1674_v33  ;;  %v1719_v53 = vmul.f32 %v1716_v18, %v1673_v4 }
 0x1b3   :  { %v5031_v30 = vadd.f32 %v1680_v32, %v4859_v47  ;;  %v1720_v41 = vmul.f32 %v1716_v18, %v1674_v33  ;;  %v1729_v51 = vmul.f32 %v1726_v20, %v1673_v4  ;;  %v1730_v57 = vmul.f32 %v1726_v20, %v1674_v33 }
 0x1b4   :  { %5859 = vst [vmem:[#allocation27_spill] sm:$0xff] %v5025_v9  ;;  %v5036_v13 = vadd.f32 %v1689_v28, %v4865_v2  ;;  %v5039_v26 = vadd.f32 %v1690_v43, %v4867_v55  ;;  %v1739_v5 = vmul.f32 %v4930_v19, %v1673_v4  ;;  %v1740_v35 = vmul.f32 %v4930_v19, %v1674_v33 }
 0x1b5   :  { %5860 = vst [vmem:[#allocation29_spill] sm:$0xff] %v5031_v30  ;;  %v5046_v47 = vadd.f32 %v1699_v22, %v4879_v34  ;;  %v5049_v18 = vadd.f32 %v1700_v42, %v4881_v1  ;;  %v5052_v2 = vadd.f32 %v1709_v31, %v4887_v21  ;;  %v1749_v55 = vmul.f32 %v4933_v61, %v1673_v4 }
 0x1b6   :  { %5861 = vst [vmem:[#allocation31_spill] sm:$0xff] %v5036_v13  ;;  %v5058_v20 = vadd.f32 %v1710_v15, %v4889_v48  ;;  %v5061_v19 = vadd.f32 %v1719_v53, %v4895_v45  ;;  %v5064_v34 = vmul.f32 %v4933_v61, %v1674_v33  ;;  %v5067_v1 = vstv %s4829_s5  ;;  %s5122_s5 = sld [smem:[#allocation6 + $0x85]] }
 0x1b7   :  { %5862 = vst [vmem:[#allocation40_spill] sm:$0xff] %v5039_v26  ;;  %v5072_v21 = vadd.f32 %v1720_v41, %v4897_v63  ;;  %v5075_v4 = vadd.f32 %v1729_v51, %v4905_v23  ;;  %v5078_v48 = vadd.f32 %v1730_v57, %v4907_v10  ;;  %v5081_v45 = vstv %s4835_s15  ;;  %v5878_v10 = vld [vmem:[#allocation23_spill] sm:$0xff]  ;;  %s5132_s15 = sld [smem:[#allocation6 + $0x86]] }
 0x1b8   :  { %5863 = vst [vmem:[#allocation44_spill] sm:$0xff] %v5046_v47  ;;  %v5086_v61 = vadd.f32 %v1739_v5, %v4909_v54  ;;  %v5089_v33 = vadd.f32 %v1740_v35, %v4911_v3  ;;  %v5092_v63 = vstv %s4845_s16  ;;  %v5095_v50 = vstv %s4855_s26  ;;  %v5881_v54 = vld [vmem:[#allocation22_spill] sm:$0xff]  ;;  %s5142_s16 = sld [smem:[#allocation6 + $0x87]] }
 0x1b9   :  { %5864 = vst [vmem:[#allocation64_spill] sm:$0xff] %v5049_v18  ;;  %v5100_v23 = vadd.f32 %v1749_v55, %v4915_v12  ;;  %v1757_v39 = vmul.f32 %v5067_v1, %v5878_v10  ;;  %v5105_v25 = vstv %s4863_s27  ;;  %v5108_v27 = vstv %s4871_s28  ;;  %v1838_v18 = vpop.permute.xlu0 %1837  ;;  %s5905_s28 = sld [smem:[#allocation72_spill]] }
 0x1ba   :  { %5865 = vst [vmem:[#allocation65_spill] sm:$0xff] %v5052_v2  ;;  %v1758_v3 = vmul.f32 %v5067_v1, %v5881_v54  ;;  %v1767_v58 = vmul.f32 %v5081_v45, %v5878_v10  ;;  %v5117_v46 = vstv %s4877_s29  ;;  %v5120_v40 = vstv %s4885_s30 }
 0x1bb   :  { %5866 = vst [vmem:[#allocation25_spill] sm:$0xff] %v5058_v20  ;;  %v1768_v12 = vmul.f32 %v5081_v45, %v5881_v54  ;;  %v1777_v6 = vmul.f32 %v5092_v63, %v5878_v10  ;;  %v1778_v32 = vmul.f32 %v5092_v63, %v5881_v54  ;;  %v1787_v28 = vmul.f32 %v5095_v50, %v5878_v10 }
 0x1bc   :  { %5867 = vst [vmem:[#allocation26_spill] sm:$0xff] %v5061_v19  ;;  %v1788_v43 = vmul.f32 %v5095_v50, %v5881_v54  ;;  %v1797_v22 = vmul.f32 %v5105_v25, %v5878_v10  ;;  %v1798_v42 = vmul.f32 %v5105_v25, %v5881_v54  ;;  %v1807_v31 = vmul.f32 %v5108_v27, %v5878_v10 }
 0x1bd   :  { %5868 = vst [vmem:[#allocation28_spill] sm:$0xff] %v5064_v34  ;;  %v1808_v15 = vmul.f32 %v5108_v27, %v5881_v54  ;;  %v1817_v53 = vmul.f32 %v5117_v46, %v5878_v10  ;;  %v1818_v41 = vmul.f32 %v5117_v46, %v5881_v54  ;;  %v1827_v51 = vmul.f32 %v5120_v40, %v5878_v10 }
 0x1be   :  { %5869 = vst [vmem:[#allocation30_spill] sm:$0xff] %v5072_v21  ;;  %v1828_v57 = vmul.f32 %v5120_v40, %v5881_v54  ;;  %v5155_v5 = vstv %s4893_s6  ;;  %v5158_v35 = vstv %s4903_s2  ;;  %v5161_v55 = vstv %s4913_s7 }
 0x1bf   :  { %5870 = vst [vmem:[#allocation32_spill] sm:$0xff] %v5075_v4  ;;  %v5170_v10 = vstv %s4937_s9  ;;  %v5173_v4 = vstv %s4944_s3  ;;  %v5176_v54 = vstv %s4952_s10  ;;  %v5179_v19 = vstv %s4957_s4 }
 0x1c0   :  { %5871 = vst [vmem:[#allocation42_spill] sm:$0xff] %v5078_v48  ;;  %v5182_v2 = vstv %s4967_s11  ;;  %v5185_v47 = vstv %s4979_s12  ;;  %v5188_v13 = vstv %s4989_s13  ;;  %v5191_v9 = vstv %s5001_s14 }
 0x1c1   :  { %5872 = vst [vmem:[#allocation46_spill] sm:$0xff] %v5081_v45  ;;  %v5197_v48 = vstv %s5019_s18  ;;  %v5200_v21 = vstv %s5028_s23  ;;  %v5209_v20 = vstv %s5055_s21  ;;  %v5218_v26 = vstv %s5097_s25 }
 0x1c2   :  { %5873 = vst [vmem:[#allocation48_spill] sm:$0xff] %v5086_v61  ;;  %v5167_v61 = vstv %s4927_s1  ;;  %v5221_v30 = vstv %s5110_s0  ;;  %v5227_v45 = vstv %s5132_s15  ;;  %v5230_v34 = vstv %s5142_s16 }
 0x1c3   :  { %5874 = vst [vmem:[#allocation50_spill] sm:$0xff] %v5089_v33  ;;  %v5194_v33 = vstv %s5011_s17  ;;  %v1761_v24 = vadd.f32 %v1757_v39, %v4947_v17  ;;  %v1782_v17 = vadd.f32 %v1778_v32, %v4973_v49 }
 0x1c4   :  { %5875 = vst [vmem:[#allocation52_spill] sm:$0xff] %v5092_v63  ;;  %v5224_v63 = vstv %s5122_s5 }
 0x1c5   :  { %5876 = vst [vmem:[#allocation54_spill] sm:$0xff] %v5095_v50  ;;  %v1836_v50 = vpop.permute.xlu2 %1835 }
 0x1c6   :  { %5877 = vst [vmem:[#allocation38_spill] sm:$0xff] %v5100_v23  ;;  %v5164_v23 = vstv %s4921_s8 }
 0x1c7   :  { %5879 = vst [vmem:[#allocation41_spill] sm:$0xff] %v5105_v25  ;;  %v5215_v25 = vstv %s5083_s24 }
 0x1c8   :  { %5880 = vst [vmem:[#allocation17_spill] sm:$0xff] %v5108_v27  ;;  %v5212_v27 = vstv %s5069_s22 }
 0x1c9   :  { %5882 = vst [vmem:[#allocation14_spill] sm:$0xff] %v5117_v46  ;;  %v5206_v46 = vstv %s5043_s20 }
 0x1ca   :  { %5883 = vst [vmem:[#allocation21_spill] sm:$0xff] %v5120_v40  ;;  %v5203_v40 = vstv %s5033_s19 }
 0x1cb   :  { %5884 = vst [vmem:[#allocation20_spill] sm:$0xff] %v5170_v10 }
 0x1cc   :  { %5885 = vst [vmem:[#allocation43_spill] sm:$0xff] %v5173_v4 }
 0x1cd   :  { %5886 = vst [vmem:[#allocation66_spill] sm:$0xff] %v5197_v48  ;;  %v1843_v48 = vsel %vm342_vm4, %v1836_v50, %v1838_v18 }
 0x1ce   :  { %5887 = vst [vmem:[#allocation45_spill] sm:$0xff] %v5200_v21  ;;  %v1771_v21 = vadd.f32 %v1767_v58, %v4960_v38  ;;  %v1831_v58 = vadd.f32 %v1827_v51, %v5014_v29 }
 0x1cf   :  { %5888 = vst [vmem:[#allocation67_spill] sm:$0xff] %v5203_v40  ;;  %v1762_v40 = vadd.f32 %v1758_v3, %v4955_v11  ;;  %v1791_v11 = vadd.f32 %v1787_v28, %v4976_v0  ;;  %v1822_v3 = vadd.f32 %v1818_v41, %v5007_v56 }
 0x1d0   :  { %5889 = vst [vmem:[#allocation47_spill] sm:$0xff] %v5215_v25  ;;  %v1851_v25 = vsel %vm342_vm4, %v1838_v18, %v1836_v50  ;;  %v1792_v18 = vadd.f32 %v1788_v43, %v4982_v52  ;;  %v1811_v50 = vadd.f32 %v1807_v31, %v4995_v16  ;;  %v1832_v52 = vadd.f32 %v1828_v57, %v5022_v14 }
 0x1d1   :  { %5890 = vst [vmem:[#allocation68_spill] sm:$0xff] %v5218_v26  ;;  %v1772_v26 = vadd.f32 %v1768_v12, %v4963_v59  ;;  %v1801_v59 = vadd.f32 %v1797_v22, %v4985_v36  ;;  %v5894_v12 = vld [vmem:[#allocation39_spill] sm:$0xff] }
 0x1d2   :  { %5891 = vst [vmem:[#allocation49_spill] sm:$0xff] %v5221_v30  ;;  %v1781_v30 = vadd.f32 %v1777_v6, %v4970_v60  ;;  %v1802_v60 = vadd.f32 %v1798_v42, %v4992_v8  ;;  %v5260_v36 = vmul.f32 %v5067_v1, %v5894_v12 }
 0x1d3   :  { %5892 = vst [vmem:[#allocation69_spill] sm:$0xff] %v5224_v63  ;;  %v1853_v63 = vsel %vm2723_vm5, %v1843_v48, 0.0  ;;  %v1812_v48 = vadd.f32 %v1808_v15, %v4998_v37 }
 0x1d4   :  { %5893 = vst [vmem:[#allocation51_spill] sm:$0xff] %v5230_v34  ;;  %v1854_v34 = vsel %vm2733_vm6, %v1851_v25, 0.0  ;;  %v1859_v38 = vmul.f32 %v5155_v5, %v1853_v63  ;;  %v1821_v25 = vadd.f32 %v1817_v53, %v5004_v62  ;;  %v1869_v49 = vmul.f32 %v5158_v35, %v1853_v63 }
 0x1d5   :  { %v1860_v39 = vmul.f32 %v5155_v5, %v1854_v34  ;;  %v1870_v0 = vmul.f32 %v5158_v35, %v1854_v34  ;;  %v1879_v37 = vmul.f32 %v5161_v55, %v1853_v63  ;;  %v1880_v62 = vmul.f32 %v5161_v55, %v1854_v34 }
 0x1d6   :  { %v1863_v8 = vadd.f32 %v1859_v38, %v1761_v24  ;;  %v1889_v6 = vmul.f32 %v5164_v23, %v1853_v63  ;;  %v1890_v32 = vmul.f32 %v5164_v23, %v1854_v34  ;;  %v1899_v56 = vmul.f32 %v5167_v61, %v1853_v63 }
 0x1d7   :  { %v1864_v16 = vadd.f32 %v1860_v39, %v1762_v40  ;;  %v1900_v29 = vmul.f32 %v5167_v61, %v1854_v34  ;;  %v1873_v28 = vadd.f32 %v1869_v49, %v1771_v21  ;;  %v1874_v14 = vadd.f32 %v1870_v0, %v1772_v26 }
 0x1d8   :  { %v1909_v43 = vmul.f32 %v5170_v10, %v1853_v63  ;;  %v1910_v22 = vmul.f32 %v5170_v10, %v1854_v34  ;;  %v1919_v24 = vmul.f32 %v5173_v4, %v1853_v63  ;;  %v1920_v40 = vmul.f32 %v5173_v4, %v1854_v34 }
 0x1d9   :  { %v1929_v42 = vmul.f32 %v5176_v54, %v1853_v63  ;;  %v1930_v31 = vmul.f32 %v5176_v54, %v1854_v34  ;;  %v1883_v15 = vadd.f32 %v1879_v37, %v1781_v30  ;;  %v1884_v53 = vadd.f32 %v1880_v62, %v1782_v17 }
 0x1da   :  { %v1937_v41 = vmax.f32 %v1863_v8, 0.0  ;;  %v1938_v51 = vmax.f32 %v1864_v16, 0.0  ;;  %v1893_v57 = vadd.f32 %v1889_v6, %v1791_v11  ;;  %v1894_v38 = vadd.f32 %v1890_v32, %v1792_v18 }
 0x1db   :  { %v5274_v21 = vadd.f32 %v1899_v56, %v1801_v59  ;;  %v5276_v26 = vadd.f32 %v1900_v29, %v1802_v60  ;;  %v5278_v39 = vadd.f32 %v1909_v43, %v1811_v50  ;;  %v5280_v49 = vadd.f32 %v1910_v22, %v1812_v48 }
 0x1dc   :  { %v1941_v0 = vmax.f32 %v1873_v28, 0.0  ;;  %v1942_v4 = vmax.f32 %v1874_v14, 0.0  ;;  %v5282_v10 = vadd.f32 %v1919_v24, %v1821_v25  ;;  %v5284_v63 = vadd.f32 %v1920_v40, %v1822_v3 }
 0x1dd   :  { %v5286_v30 = vadd.f32 %v1929_v42, %v1831_v58  ;;  %v5288_v34 = vadd.f32 %v1930_v31, %v1832_v52  ;;  %v1945_v17 = vmax.f32 %v1883_v15, 0.0  ;;  %v1946_v11 = vmax.f32 %v1884_v53, 0.0 }
 0x1de   :  { %v1973_v18 = vmul.f32 %v5182_v2, %v1937_v41  ;;  %v1974_v59 = vmul.f32 %v5182_v2, %v1938_v51  ;;  %v1949_v60 = vmax.f32 %v1893_v57, 0.0  ;;  %v1950_v50 = vmax.f32 %v1894_v38, 0.0 }
 0x1df   :  { %v1953_v48 = vmax.f32 %v5274_v21, 0.0  ;;  %v1954_v8 = vmax.f32 %v5276_v26, 0.0  ;;  %v1983_v58 = vmul.f32 %v5185_v47, %v1941_v0  ;;  %v1984_v52 = vmul.f32 %v5185_v47, %v1942_v4 }
 0x1e0   :  { %v1977_v25 = vadd.f32 %v1973_v18, %v5179_v19  ;;  %v1978_v3 = vadd.f32 %v1974_v59, %v5179_v19  ;;  %v1957_v16 = vmax.f32 %v5278_v39, 0.0  ;;  %v1958_v37 = vmax.f32 %v5280_v49, 0.0 }
 0x1e1   :  { %v1961_v62 = vmax.f32 %v5282_v10, 0.0  ;;  %v1962_v6 = vmax.f32 %v5284_v63, 0.0  ;;  %v1993_v29 = vmul.f32 %v5188_v13, %v1945_v17  ;;  %v1994_v28 = vmul.f32 %v5188_v13, %v1946_v11  ;;  %v5895_v63 = vld [vmem:[#allocation47_spill] sm:$0xff] }
 0x1e2   :  { %v1987_v32 = vadd.f32 %v1983_v58, %v1977_v25  ;;  %v1988_v56 = vadd.f32 %v1984_v52, %v1978_v3  ;;  %v1965_v14 = vmax.f32 %v5286_v30, 0.0  ;;  %v1966_v43 = vmax.f32 %v5288_v34, 0.0  ;;  %v5896_v25 = vld [vmem:[#allocation66_spill] sm:$0xff]  ;;  %v5897_v52 = vld [vmem:[#allocation68_spill] sm:$0xff] }
 0x1e3   :  { %v2059_v22 = vmul.f32 %v5209_v20, %v1937_v41  ;;  %v2060_v24 = vmul.f32 %v5209_v20, %v1938_v51  ;;  %v2003_v10 = vmul.f32 %v5191_v9, %v1949_v60  ;;  %v2004_v31 = vmul.f32 %v5191_v9, %v1950_v50 }
 0x1e4   :  { %v1997_v40 = vadd.f32 %v1993_v29, %v1987_v32  ;;  %v1998_v42 = vadd.f32 %v1994_v28, %v1988_v56  ;;  %v2069_v57 = vmul.f32 %v5212_v27, %v1941_v0  ;;  %v2070_v38 = vmul.f32 %v5212_v27, %v1942_v4 }
 0x1e5   :  { %v2063_v15 = vadd.f32 %v2059_v22, %v5206_v46  ;;  %v2064_v53 = vadd.f32 %v2060_v24, %v5206_v46  ;;  %v2013_v41 = vmul.f32 %v5194_v33, %v1953_v48  ;;  %v2014_v51 = vmul.f32 %v5194_v33, %v1954_v8  ;;  %v5898_v22 = vld [vmem:[#allocation45_spill] sm:$0xff] }
 0x1e6   :  { %v2007_v21 = vadd.f32 %v2003_v10, %v1997_v40  ;;  %v2008_v26 = vadd.f32 %v2004_v31, %v1998_v42  ;;  %v2079_v30 = vmul.f32 %v5895_v63, %v1945_v17  ;;  %v2080_v34 = vmul.f32 %v5895_v63, %v1946_v11  ;;  %v5899_v42 = vld [vmem:[#allocation49_spill] sm:$0xff] }
 0x1e7   :  { %v2073_v39 = vadd.f32 %v2069_v57, %v2063_v15  ;;  %v2074_v49 = vadd.f32 %v2070_v38, %v2064_v53  ;;  %v2023_v3 = vmul.f32 %v5896_v25, %v1957_v16  ;;  %v2024_v0 = vmul.f32 %v5896_v25, %v1958_v37  ;;  %v5900_v57 = vld [vmem:[#allocation67_spill] sm:$0xff] }
 0x1e8   :  { %v2017_v18 = vadd.f32 %v2013_v41, %v2007_v21  ;;  %v2018_v59 = vadd.f32 %v2014_v51, %v2008_v26  ;;  %v2089_v32 = vmul.f32 %v5897_v52, %v1949_v60  ;;  %v2090_v56 = vmul.f32 %v5897_v52, %v1950_v50  ;;  %v5901_v26 = vld [vmem:[#allocation69_spill] sm:$0xff] }
 0x1e9   :  { %v2083_v58 = vadd.f32 %v2079_v30, %v2073_v39  ;;  %v2084_v4 = vadd.f32 %v2080_v34, %v2074_v49  ;;  %v2033_v24 = vmul.f32 %v5898_v22, %v1961_v62  ;;  %v2034_v17 = vmul.f32 %v5898_v22, %v1962_v6  ;;  %v5902_v39 = vld [vmem:[#allocation19_spill] sm:$0xff]  ;;  %v5903_v49 = vld [vmem:[#allocation28_spill] sm:$0xff] }
 0x1ea   :  { %v2027_v29 = vadd.f32 %v2023_v3, %v2017_v18  ;;  %v2028_v28 = vadd.f32 %v2024_v0, %v2018_v59  ;;  %v2099_v10 = vmul.f32 %v5899_v42, %v1953_v48  ;;  %v2100_v31 = vmul.f32 %v5899_v42, %v1954_v8  ;;  %v5904_v48 = vld [vmem:[#allocation46_spill] sm:$0xff] }
 0x1eb   :  { %v2093_v40 = vadd.f32 %v2089_v32, %v2083_v58  ;;  %v2094_v11 = vadd.f32 %v2090_v56, %v2084_v4  ;;  %v2043_v38 = vmul.f32 %v5900_v57, %v1965_v14  ;;  %v2044_v60 = vmul.f32 %v5900_v57, %v1966_v43  ;;  %v5907_v4 = vld [vmem:[#allocation24_spill] sm:$0xff] }
 0x1ec   :  { %v2037_v15 = vadd.f32 %v2033_v24, %v2027_v29  ;;  %v2038_v53 = vadd.f32 %v2034_v17, %v2028_v28  ;;  %v2109_v41 = vmul.f32 %v5901_v26, %v1957_v16  ;;  %v2110_v51 = vmul.f32 %v5901_v26, %v1958_v37  ;;  %v5906_v16 = vld [vmem:[#allocation51_spill] sm:$0xff]  ;;  %v5908_v56 = vld [vmem:[#allocation52_spill] sm:$0xff]  ;;  %v5909_v28 = vld [vmem:[#allocation54_spill] sm:$0xff] }
 0x1ed   :  { %v2103_v21 = vadd.f32 %v2099_v10, %v2093_v40  ;;  %v2104_v50 = vadd.f32 %v2100_v31, %v2094_v11  ;;  %v1754_v30 = vadd.f32 %v5903_v49, %v5902_v39  ;;  %v1770_v8 = vmul.f32 %v5904_v48, %v5894_v12  ;;  %v5910_v40 = vld [vmem:[#allocation29_spill] sm:$0xff]  ;;  %v1842_v11 = vpop.permute.xlu2 %1841  ;;  %v5911_v10 = vld [vmem:[#allocation40_spill] sm:$0xff] }
 0x1ee   :  { %v2047_v34 = vadd.f32 %v2043_v38, %v2037_v15  ;;  %v2048_v18 = vadd.f32 %v2044_v60, %v2038_v53  ;;  %v2119_v0 = vmul.f32 %v5227_v45, %v1961_v62  ;;  %v2120_v58 = vmul.f32 %v5227_v45, %v1962_v6  ;;  %v1840_v38 = vpop.permute.xlu1 %1839  ;;  %v5915_v49 = vld [vmem:[#allocation25_spill] sm:$0xff] }
 0x1ef   :  { %v2113_v59 = vadd.f32 %v2109_v41, %v2103_v21  ;;  %v2114_v3 = vadd.f32 %v2110_v51, %v2104_v50  ;;  %v2129_v37 = vmul.f32 %v5906_v16, %v1965_v14  ;;  %v1759_v32 = vmul.f32 %v5067_v1, %v5907_v4  ;;  %v5914_v51 = vld [vmem:[#allocation64_spill] sm:$0xff] }
 0x1f0   :  { %2051 = vst [vmem:[%s5905_s28] sm:$0xff] %v2047_v34  ;;  %v1780_v29 = vmul.f32 %v5908_v56, %v5894_v12  ;;  %v1790_v24 = vmul.f32 %v5909_v28, %v5894_v12  ;;  %v2130_v17 = vmul.f32 %v5906_v16, %v1966_v43  ;;  %v1764_v14 = vadd.f32 %v5260_v36, %v5910_v40  ;;  %v5912_v43 = vld [vmem:[#allocation41_spill] sm:$0xff] }
 0x1f1   :  { %2052 = vst [vmem:[%s5905_s28 + $0x8] sm:$0xff] %v2048_v18  ;;  %v2123_v62 = vadd.f32 %v2119_v0, %v2113_v59  ;;  %v2124_v6 = vadd.f32 %v2120_v58, %v2114_v3  ;;  %v1769_v1 = vmul.f32 %v5904_v48, %v5907_v4  ;;  %v1774_v31 = vadd.f32 %v1770_v8, %v5911_v10  ;;  %v5913_v36 = vld [vmem:[#allocation17_spill] sm:$0xff]  ;;  %v5916_v48 = vld [vmem:[#allocation14_spill] sm:$0xff] }
 0x1f2   :  { %v1779_v15 = vmul.f32 %v5908_v56, %v5907_v4  ;;  %v1789_v53 = vmul.f32 %v5909_v28, %v5907_v4  ;;  %v1800_v50 = vmul.f32 %v5912_v43, %v5894_v12  ;;  %v1810_v41 = vmul.f32 %v5913_v36, %v5894_v12  ;;  %v5917_v3 = vld [vmem:[#allocation21_spill] sm:$0xff]  ;;  %v5920_v10 = vld [vmem:[#allocation50_spill] sm:$0xff] }
 0x1f3   :  { %v2133_v60 = vadd.f32 %v2129_v37, %v2123_v62  ;;  %v2134_v21 = vadd.f32 %v2130_v17, %v2124_v6  ;;  %v1784_v39 = vadd.f32 %v1780_v29, %v5914_v51  ;;  %v1794_v34 = vadd.f32 %v1790_v24, %v5915_v49  ;;  %v5918_v24 = vld [vmem:[#allocation30_spill] sm:$0xff]  ;;  %v5924_v49 = vld [vmem:[#allocation65_spill] sm:$0xff] }
 0x1f4   :  { %v1799_v18 = vmul.f32 %v5912_v43, %v5907_v4  ;;  %v1820_v8 = vmul.f32 %v5916_v48, %v5894_v12  ;;  %v1809_v59 = vmul.f32 %v5913_v36, %v5907_v4  ;;  %v1830_v0 = vmul.f32 %v5917_v3, %v5894_v12  ;;  %v5919_v6 = vld [vmem:[#allocation42_spill] sm:$0xff]  ;;  %v5922_v43 = vld [vmem:[#allocation31_spill] sm:$0xff]  ;;  %v5923_v36 = vld [vmem:[#allocation44_spill] sm:$0xff] }
 0x1f5   :  { %2319 = vst [vmem:[%s5905_s28 + $0x20] sm:$0xff] %v2133_v60  ;;  %v1844_v58 = vsel %vm342_vm4, %v1840_v38, %v1842_v11  ;;  %v1852_v37 = vsel %vm342_vm4, %v1842_v11, %v1840_v38  ;;  %v1819_v56 = vmul.f32 %v5916_v48, %v5907_v4  ;;  %v1829_v29 = vmul.f32 %v5917_v3, %v5907_v4  ;;  %v5921_v60 = vld [vmem:[#allocation27_spill] sm:$0xff] }
 0x1f6   :  { %2320 = vst [vmem:[%s5905_s28 + $0x28] sm:$0xff] %v2134_v21  ;;  %v1855_v28 = vsel %vm2723_vm5, %v1844_v58, 0.0  ;;  %v1856_v12 = vsel %vm2733_vm6, %v1852_v37, 0.0  ;;  %v1804_v62 = vadd.f32 %v1800_v50, %v5918_v24  ;;  %v1814_v17 = vadd.f32 %v1810_v41, %v5919_v6  ;;  %v5925_v41 = vld [vmem:[#allocation26_spill] sm:$0xff]  ;;  %v5926_v58 = vld [vmem:[#allocation32_spill] sm:$0xff] }
 0x1f7   :  { %v1861_v40 = vmul.f32 %v5155_v5, %v1855_v28  ;;  %v1862_v11 = vmul.f32 %v5155_v5, %v1856_v12  ;;  %v1824_v38 = vadd.f32 %v1820_v8, %v5920_v10  ;;  %v1763_v21 = vadd.f32 %v1759_v32, %v5921_v60  ;;  %v5927_v5 = vld [vmem:[#allocation48_spill] sm:$0xff]  ;;  %v5928_v8 = vld [vmem:[#allocation38_spill] sm:$0xff] }
 0x1f8   :  { %v1773_v4 = vadd.f32 %v1769_v1, %v5922_v43  ;;  %v1783_v44 = vadd.f32 %v1779_v15, %v5923_v36  ;;  %v1834_v51 = vadd.f32 %v1830_v0, %v1754_v30  ;;  %v1793_v7 = vadd.f32 %v1789_v53, %v5924_v49  ;;  %v5929_v60 = vld [vmem:[#allocation20_spill] sm:$0xff] }
 0x1f9   :  { %v1871_v48 = vmul.f32 %v5158_v35, %v1855_v28  ;;  %v1872_v50 = vmul.f32 %v5158_v35, %v1856_v12  ;;  %v1803_v3 = vadd.f32 %v1799_v18, %v5925_v41  ;;  %v1813_v37 = vadd.f32 %v1809_v59, %v5926_v58 }
 0x1fa   :  { %v1823_v24 = vadd.f32 %v1819_v56, %v5927_v5  ;;  %v1833_v6 = vadd.f32 %v1829_v29, %v5928_v8  ;;  %v1865_v32 = vadd.f32 %v1861_v40, %v1763_v21  ;;  %v1866_v10 = vadd.f32 %v1862_v11, %v1764_v14  ;;  %v5930_v40 = vld [vmem:[#allocation43_spill] sm:$0xff] }
 0x1fb   :  { %v1881_v1 = vmul.f32 %v5161_v55, %v1855_v28  ;;  %v1882_v30 = vmul.f32 %v5161_v55, %v1856_v12  ;;  %v1891_v15 = vmul.f32 %v5164_v23, %v1855_v28  ;;  %v1892_v53 = vmul.f32 %v5164_v23, %v1856_v12 }
 0x1fc   :  { %v1901_v35 = vmul.f32 %v5167_v61, %v1855_v28  ;;  %v1902_v18 = vmul.f32 %v5167_v61, %v1856_v12  ;;  %v1875_v0 = vadd.f32 %v1871_v48, %v1773_v4  ;;  %v1876_v59 = vadd.f32 %v1872_v50, %v1774_v31 }
 0x1fd   :  { %v1911_v56 = vmul.f32 %v5929_v60, %v1855_v28  ;;  %v1912_v29 = vmul.f32 %v5929_v60, %v1856_v12  ;;  %v1921_v14 = vmul.f32 %v5930_v40, %v1855_v28  ;;  %v1922_v11 = vmul.f32 %v5930_v40, %v1856_v12 }
 0x1fe   :  { %v1931_v55 = vmul.f32 %v5176_v54, %v1855_v28  ;;  %v1932_v21 = vmul.f32 %v5176_v54, %v1856_v12  ;;  %v1885_v43 = vadd.f32 %v1881_v1, %v1783_v44  ;;  %v1886_v23 = vadd.f32 %v1882_v30, %v1784_v39 }
 0x1ff   :  { %v1939_v36 = vmax.f32 %v1865_v32, 0.0  ;;  %v1940_v49 = vmax.f32 %v1866_v10, 0.0  ;;  %v1895_v41 = vadd.f32 %v1891_v15, %v1793_v7  ;;  %v1896_v61 = vadd.f32 %v1892_v53, %v1794_v34 }
 0x200   :  { %v5416_v4 = vadd.f32 %v1901_v35, %v1803_v3  ;;  %v5418_v31 = vadd.f32 %v1902_v18, %v1804_v62  ;;  %v5420_v48 = vadd.f32 %v1911_v56, %v1813_v37  ;;  %v5422_v50 = vadd.f32 %v1912_v29, %v1814_v17 }
 0x201   :  { %v1943_v58 = vmax.f32 %v1875_v0, 0.0  ;;  %v1944_v5 = vmax.f32 %v1876_v59, 0.0  ;;  %v5424_v8 = vadd.f32 %v1921_v14, %v1823_v24  ;;  %v5426_v28 = vadd.f32 %v1922_v11, %v1824_v38 }
 0x202   :  { %v5428_v54 = vadd.f32 %v1931_v55, %v1833_v6  ;;  %v5430_v39 = vadd.f32 %v1932_v21, %v1834_v51  ;;  %v1947_v12 = vmax.f32 %v1885_v43, 0.0  ;;  %v1948_v34 = vmax.f32 %v1886_v23, 0.0 }
 0x203   :  { %v1975_v44 = vmul.f32 %v5182_v2, %v1939_v36  ;;  %v1976_v62 = vmul.f32 %v5182_v2, %v1940_v49  ;;  %v1951_v7 = vmax.f32 %v1895_v41, 0.0  ;;  %v1952_v3 = vmax.f32 %v1896_v61, 0.0 }
 0x204   :  { %v1955_v17 = vmax.f32 %v5416_v4, 0.0  ;;  %v1956_v37 = vmax.f32 %v5418_v31, 0.0  ;;  %v1985_v6 = vmul.f32 %v5185_v47, %v1943_v58  ;;  %v1986_v51 = vmul.f32 %v5185_v47, %v1944_v5 }
 0x205   :  { %v1979_v24 = vadd.f32 %v1975_v44, %v5179_v19  ;;  %v1980_v38 = vadd.f32 %v1976_v62, %v5179_v19  ;;  %v1959_v32 = vmax.f32 %v5420_v48, 0.0  ;;  %v1960_v10 = vmax.f32 %v5422_v50, 0.0 }
 0x206   :  { %v1963_v2 = vmax.f32 %v5424_v8, 0.0  ;;  %v1964_v1 = vmax.f32 %v5426_v28, 0.0  ;;  %v1995_v53 = vmul.f32 %v5188_v13, %v1947_v12  ;;  %v1996_v35 = vmul.f32 %v5188_v13, %v1948_v34 }
 0x207   :  { %v1989_v30 = vadd.f32 %v1985_v6, %v1979_v24  ;;  %v1990_v15 = vadd.f32 %v1986_v51, %v1980_v38  ;;  %v1967_v19 = vmax.f32 %v5428_v54, 0.0  ;;  %v1968_v18 = vmax.f32 %v5430_v39, 0.0 }
 0x208   :  { %v2061_v47 = vmul.f32 %v5209_v20, %v1939_v36  ;;  %v2062_v0 = vmul.f32 %v5209_v20, %v1940_v49  ;;  %v2005_v56 = vmul.f32 %v5191_v9, %v1951_v7  ;;  %v2006_v29 = vmul.f32 %v5191_v9, %v1952_v3 }
 0x209   :  { %v1999_v59 = vadd.f32 %v1995_v53, %v1989_v30  ;;  %v2000_v60 = vadd.f32 %v1996_v35, %v1990_v15  ;;  %v2071_v13 = vmul.f32 %v5212_v27, %v1943_v58  ;;  %v2072_v11 = vmul.f32 %v5212_v27, %v1944_v5 }
 0x20a   :  { %v2065_v40 = vadd.f32 %v2061_v47, %v5206_v46  ;;  %v2066_v14 = vadd.f32 %v2062_v0, %v5206_v46  ;;  %v2015_v43 = vmul.f32 %v5194_v33, %v1955_v17  ;;  %v2016_v20 = vmul.f32 %v5194_v33, %v1956_v37 }
 0x20b   :  { %v2009_v55 = vadd.f32 %v2005_v56, %v1999_v59  ;;  %v2010_v21 = vadd.f32 %v2006_v29, %v2000_v60  ;;  %v2081_v49 = vmul.f32 %v5895_v63, %v1947_v12  ;;  %v2082_v9 = vmul.f32 %v5895_v63, %v1948_v34 }
 0x20c   :  { %v2075_v23 = vadd.f32 %v2071_v13, %v2065_v40  ;;  %v2076_v36 = vadd.f32 %v2072_v11, %v2066_v14  ;;  %v2025_v46 = vmul.f32 %v5896_v25, %v1959_v32  ;;  %v2026_v4 = vmul.f32 %v5896_v25, %v1960_v10 }
 0x20d   :  { %v2019_v41 = vadd.f32 %v2015_v43, %v2009_v55  ;;  %v2020_v61 = vadd.f32 %v2016_v20, %v2010_v21  ;;  %v2091_v48 = vmul.f32 %v5897_v52, %v1951_v7  ;;  %v2092_v50 = vmul.f32 %v5897_v52, %v1952_v3 }
 0x20e   :  { %v2085_v31 = vadd.f32 %v2081_v49, %v2075_v23  ;;  %v2086_v27 = vadd.f32 %v2082_v9, %v2076_v36  ;;  %v2035_v5 = vmul.f32 %v5898_v22, %v1963_v2  ;;  %v2036_v8 = vmul.f32 %v5898_v22, %v1964_v1 }
 0x20f   :  { %v2029_v58 = vadd.f32 %v2025_v46, %v2019_v41  ;;  %v2030_v33 = vadd.f32 %v2026_v4, %v2020_v61  ;;  %v2101_v54 = vmul.f32 %v5899_v42, %v1955_v17  ;;  %v2102_v39 = vmul.f32 %v5899_v42, %v1956_v37 }
 0x210   :  { %v2095_v28 = vadd.f32 %v2091_v48, %v2085_v31  ;;  %v2096_v63 = vadd.f32 %v2092_v50, %v2086_v27  ;;  %v2045_v34 = vmul.f32 %v5900_v57, %v1967_v19  ;;  %v2046_v44 = vmul.f32 %v5900_v57, %v1968_v18 }
 0x211   :  { %v2039_v12 = vadd.f32 %v2035_v5, %v2029_v58  ;;  %v2040_v25 = vadd.f32 %v2036_v8, %v2030_v33  ;;  %v2111_v7 = vmul.f32 %v5901_v26, %v1959_v32  ;;  %v2112_v3 = vmul.f32 %v5901_v26, %v1960_v10 }
 0x212   :  { %v2105_v62 = vadd.f32 %v2101_v54, %v2095_v28  ;;  %v2106_v52 = vadd.f32 %v2102_v39, %v2096_v63  ;;  %v2121_v17 = vmul.f32 %v5227_v45, %v1963_v2  ;;  %v2122_v42 = vmul.f32 %v5227_v45, %v1964_v1 }
 0x213   :  { %v2049_v24 = vadd.f32 %v2045_v34, %v2039_v12  ;;  %v2050_v22 = vadd.f32 %v2046_v44, %v2040_v25  ;;  %v2131_v26 = vmul.f32 %v5906_v16, %v1967_v19  ;;  %v2132_v51 = vmul.f32 %v5906_v16, %v1968_v18 }
 0x214   :  { %v2115_v38 = vadd.f32 %v2111_v7, %v2105_v62  ;;  %v2116_v6 = vadd.f32 %v2112_v3, %v2106_v52 }
 0x215   :  { %2053 = vst [vmem:[%s5905_s28 + $0x10] sm:$0xff] %v2049_v24 }
 0x216   :  { %2054 = vst [vmem:[%s5905_s28 + $0x18] sm:$0xff] %v2050_v22  ;;  %v2125_v57 = vadd.f32 %v2121_v17, %v2115_v38  ;;  %v2126_v37 = vadd.f32 %v2122_v42, %v2116_v6 }
 0x218   :  { %v2135_v32 = vadd.f32 %v2131_v26, %v2125_v57  ;;  %v2136_v10 = vadd.f32 %v2132_v51, %v2126_v37 }
 0x21a   :  { %2321 = vst [vmem:[%s5905_s28 + $0x30] sm:$0xff] %v2135_v32 }
 0x21b   :  { %2322 = vst [vmem:[%s5905_s28 + $0x38] sm:$0xff] %v2136_v10 }
 0x21c   :  { %2146 = vsyncpa [#allocation3], 1 }
 0x21d   :  { %2147 = vsyncpa [#allocation5], 1 }
 0x21e   :  { %2148 = vsyncpa [#allocation8], 1 }

// kernel: moco_recon_forward.10
= control target key start
LH: loop header
LB: loop body
LE: loop exit
PB: predicated region body
PF: predicated region fallthrough
CT: control target
= control target key end

     0   :  { %s2200_s30 = smov 0   ;;  %s2202_s10 = smov 0   ;;  %s2933_s0 = inlined_call_operand.vmem [shape: f32[4,16,256], index: 0, kind: input, shape index: {}]   ;;  %s2934_s1 = inlined_call_operand.vmem [shape: f32[4,16,256], index: 1, kind: input, shape index: {}]   ;;  %s2935_s2 = inlined_call_operand.vmem [shape: f32[16,256], index: 2, kind: input, shape index: {}]   ;;  %s2936_s3 = inlined_call_operand.vmem [shape: f32[4,16,16], index: 3, kind: input, shape index: {}]   ;;  %s2937_s4 = inlined_call_operand.vmem [shape: f32[4,16,16], index: 4, kind: input, shape index: {}]   ;;  %s2938_s5 = inlined_call_operand.vmem [shape: bf16[128,128], index: 5, kind: input, shape index: {}]   ;;  %s2939_s6 = inlined_call_operand.vmem [shape: bf16[128,128], index: 6, kind: input, shape index: {}]   ;;  %s2940_s7 = inlined_call_operand.vmem [shape: bf16[128,128], index: 7, kind: input, shape index: {}]   ;;  %s2941_s8 = inlined_call_operand.vmem [shape: f32[16,256], index: 8, kind: output, shape index: {0}]   ;;  %s2942_s9 = inlined_call_operand.vmem [shape: f32[16,256], index: 9, kind: output, shape index: {1}]  }
   0x1   :  { %s2204_s11 = smov 0  }
   0x2 LB: > { %s2216_s12 = sadd.s32 4294967295, %s2141_s11   ;;  %s2219_s13 = sadd.s32 1, %s2141_s11   ;;  %s2141_s11 = sphi %s2204_s11, %s2947_s11   ;;  %s2137_s10 = sphi %s2202_s10, %s2946_s10   ;;  %s2133_s30 = sphi %s2200_s30, %s2945_s30  }
   0x3   : > { %s24_s14 = ssub.s32 %s2141_s11, %s2219_s13  ;;  %s27_s15 = sadd.s32 1, %s2137_s10 }
   0x4   : > { %p25_p0 = scmp.eq.s32.totalorder %s24_s14, 0  ;;  %p34_p1 = scmp.ne.s32.totalorder %s2137_s10, %s2133_s30 }
   0x5   : > { %p35_p2 = scmp.eq.s32.totalorder %s2141_s11, 0  ;;  %p221_p3 = scmp.eq.s32.totalorder %s2216_s12, 1 }
   0x6   : > { %s2229_s16 = scalar_select %p25_p0, %s2137_s10, %s27_s15  }
   0x7   : > { %p2231_p4 = por %p35_p2, %p34_p1  ;;  %p2235_p5 = por %p221_p3, %p34_p1 }
   0x8   : > { %p1814_p6 = scmp.ge.s32.totalorder %s2141_s11, 2 }
   0xa   : > { %284 = sbr.rel (%p1814_p6) target bundleno = 45 (0x2d), region = 36 }
   0xf   : > { %287 = sbr.rel (!%p2231_p4) target bundleno = 27 (0x1b), region = 40  ;;  %s289_s19 = sand.u32 (%p2231_p4), 1, %s2137_s10  }
  0x10   : > { %s1816_s20 = sshll.u32 (%p2231_p4), %s2141_s11, 3  ;;  %s1815_s21 = sshll.u32 (%p2231_p4), %s289_s19, 6 }
  0x11   : > { %s293_s24 = scalar_lea.vmem (%p2231_p4), %s2933_s0, %s1816_s20  ;;  %s291_s25 = scalar_lea.vmem (%p2231_p4), [#allocation3], %s1815_s21 }
  0x12   : > { %v336_v0 = vld [vmem:[%s293_s24] sm:$0xff] (%p2231_p4)  ;;  %v338_v1 = vld [vmem:[%s293_s24 + $0x10] sm:$0xff] (%p2231_p4) }
  0x13   : > { %v340_v2 = vld [vmem:[%s293_s24 + $0x20] sm:$0xff] (%p2231_p4)  ;;  %337 = vst [vmem:[%s291_s25] sm:$0xff] (%p2231_p4), %v336_v0  ;;  %v342_v3 = vld [vmem:[%s293_s24 + $0x30] sm:$0xff] (%p2231_p4) }
  0x14   : > { %339 = vst [vmem:[%s291_s25 + $0x8] sm:$0xff] %v338_v1  ;;  %v344_v4 = vld [vmem:[%s293_s24 + $0x40] sm:$0xff]  ;;  %v346_v5 = vld [vmem:[%s293_s24 + $0x50] sm:$0xff] }
  0x15   : > { %341 = vst [vmem:[%s291_s25 + $0x10] sm:$0xff] %v340_v2  ;;  %v348_v6 = vld [vmem:[%s293_s24 + $0x60] sm:$0xff]  ;;  %v350_v7 = vld [vmem:[%s293_s24 + $0x70] sm:$0xff] }
  0x16   : > { %343 = vst [vmem:[%s291_s25 + $0x18] sm:$0xff] %v342_v3 }
  0x17   : > { %345 = vst [vmem:[%s291_s25 + $0x20] sm:$0xff] %v344_v4 }
  0x18   : > { %347 = vst [vmem:[%s291_s25 + $0x28] sm:$0xff] %v346_v5 }
  0x19   : > { %349 = vst [vmem:[%s291_s25 + $0x30] sm:$0xff] %v348_v6 }
  0x1a   : > { %351 = vst [vmem:[%s291_s25 + $0x38] sm:$0xff] %v350_v7 }
  0x1b PF: > { %357 = sbr.rel (!%p2231_p4) target bundleno = 39 (0x27), region = 78  ;;  %s359_s26 = sand.u32 (%p2231_p4), 1, %s2137_s10  }
  0x1c   : > { %s1818_s27 = sshll.u32 (%p2231_p4), %s2141_s11, 3  ;;  %s1817_s28 = sshll.u32 (%p2231_p4), %s359_s26, 6 }
  0x1d   : > { %s363_s15 = scalar_lea.vmem (%p2231_p4), %s2934_s1, %s1818_s27  ;;  %s361_s19 = scalar_lea.vmem (%p2231_p4), [#allocation4], %s1817_s28 }
  0x1e   : > { %v406_v8 = vld [vmem:[%s363_s15] sm:$0xff] (%p2231_p4)  ;;  %v408_v9 = vld [vmem:[%s363_s15 + $0x10] sm:$0xff] (%p2231_p4) }
  0x1f   : > { %v410_v10 = vld [vmem:[%s363_s15 + $0x20] sm:$0xff] (%p2231_p4)  ;;  %407 = vst [vmem:[%s361_s19] sm:$0xff] (%p2231_p4), %v406_v8  ;;  %v412_v11 = vld [vmem:[%s363_s15 + $0x30] sm:$0xff] (%p2231_p4) }
  0x20   : > { %409 = vst [vmem:[%s361_s19 + $0x8] sm:$0xff] %v408_v9  ;;  %v414_v12 = vld [vmem:[%s363_s15 + $0x40] sm:$0xff]  ;;  %v416_v13 = vld [vmem:[%s363_s15 + $0x50] sm:$0xff] }
  0x21   : > { %411 = vst [vmem:[%s361_s19 + $0x10] sm:$0xff] %v410_v10  ;;  %v418_v14 = vld [vmem:[%s363_s15 + $0x60] sm:$0xff]  ;;  %v420_v15 = vld [vmem:[%s363_s15 + $0x70] sm:$0xff] }
  0x22   : > { %413 = vst [vmem:[%s361_s19 + $0x18] sm:$0xff] %v412_v11 }
  0x23   : > { %415 = vst [vmem:[%s361_s19 + $0x20] sm:$0xff] %v414_v12 }
  0x24   : > { %417 = vst [vmem:[%s361_s19 + $0x28] sm:$0xff] %v416_v13 }
  0x25   : > { %419 = vst [vmem:[%s361_s19 + $0x30] sm:$0xff] %v418_v14 }
  0x26   : > { %421 = vst [vmem:[%s361_s19 + $0x38] sm:$0xff] %v420_v15 }
  0x27 PF: > { %427 = sbr.rel (!%p2231_p4) target bundleno = 45 (0x2d), region = 116  ;;  %s429_s20 = sand.u32 (%p2231_p4), 1, %s2137_s10  }
  0x28   : > { %s1820_s21 = sshll.u32 (%p2231_p4), %s2141_s11, 3  ;;  %s1819_s22 = sshll.u32 (%p2231_p4), %s429_s20, 4 }
  0x29   : > { %s433_s25 = scalar_lea.vmem (%p2231_p4), %s2935_s2, %s1820_s21  ;;  %s431_s26 = scalar_lea.vmem (%p2231_p4), [#allocation5], %s1819_s22 }
  0x2a   : > { %v464_v16 = vld [vmem:[%s433_s25] sm:$0xff] (%p2231_p4)  ;;  %v466_v17 = vld [vmem:[%s433_s25 + $0x10] sm:$0xff] (%p2231_p4) }
  0x2b   : > { %465 = vst [vmem:[%s431_s26] sm:$0xff] (%p2231_p4), %v464_v16 }
  0x2c   : > { %467 = vst [vmem:[%s431_s26 + $0x8] sm:$0xff] %v466_v17 }
  0x2d PF: > { %p1821_p7 = scmp.ge.s32.totalorder %s2141_s11, 1  ;;  %p472_p8 = scmp.lt.s32.totalorder %s2141_s11, 3 }
  0x2f   : > { %p473_p9 = pnand %p1821_p7, %p472_p8 }
  0x30   : > { %s2143_s28 = smov (!%p473_p9), 32   ;;  %s2144_s29 = smov (!%p473_p9), 16  }
  0x31   : > { %476 = sbr.rel (%p473_p9) target bundleno = 488 (0x1e8), region = 154  ;;  %s2145_s14 = smov (!%p473_p9), 48  }
  0x32   : > { %s479_s11 = sand.u32 (!%p473_p9), 1, %s2133_s30   ;;  %s2146_s24 = smov (!%p473_p9), 64  }
  0x33   : > { %s1822_s15 = sshll.u32 (!%p473_p9), %s479_s11, 6  ;;  %s2275_s19 = sshll.u32 (!%p473_p9), %s479_s11, 4 }
  0x34   : > { %s495_s22 = scalar_lea.vmem (!%p473_p9), [#allocation5], %s2275_s19  ;;  %s2283_s23 = scalar_lea.vmem (!%p473_p9), [#allocation4], %s1822_s15 }
  0x35   : > { %s2287_s30 = scalar_lea.vmem (!%p473_p9), [#allocation3], %s1822_s15  ;;  %s2147_s25 = smov (!%p473_p9), 80  }
  0x36   : > { %v2266_v18 = vld [vmem:[%s2936_s3] sm:$0xff]  ;;  %v2280_v19 = vld [vmem:[%s2936_s3 + $0x8] sm:$0xff]  ;;  %v1837_v22 = vld [vmem:[%s2283_s23 + $0x30] sm:$0xff]  ;;  %s2148_s26 = smov 96   ;;  %s2149_s11 = smov 112   ;;  %vm1072_vm0 = vcmask 130048  }
  0x37   : > { %1036 = vrot.lane.b32.xlu1 %v2266_v18, %s2143_s28  ;;  %1030 = vrot.lane.b32.xlu0 %v2266_v18, %s2144_s29  ;;  %v539_v20 = vld [vmem:[%s495_s22] sm:$0xff]  ;;  %v540_v21 = vld [vmem:[%s495_s22 + $0x8] sm:$0xff]  ;;  %vm1075_vm1 = vcmask 261120   ;;  %vm1078_vm2 = vcmask 392192   ;;  %vm1081_vm3 = vcmask 523264   ;;  %vm1084_vm4 = vcmask 654336  }
  0x38   : > { %1042 = vrot.lane.b32.xlu2 %v2266_v18, %s2145_s14  ;;  %v1838_v23 = vld [vmem:[%s2283_s23 + $0x38] sm:$0xff]  ;;  %v605_v24 = vmul.f32 %v1837_v22, %v539_v20  ;;  %v1835_v25 = vld [vmem:[%s2287_s30 + $0x30] sm:$0xff]  ;;  %v1833_v30 = vld [vmem:[%s2283_s23 + $0x20] sm:$0xff]  ;;  %vm1087_vm5 = vcmask 785408   ;;  %vm1090_vm6 = vcmask 916480  }
  0x39   : > { %v1836_v26 = vld [vmem:[%s2287_s30 + $0x38] sm:$0xff]  ;;  %v606_v27 = vmul.f32 %v1838_v23, %v540_v21  ;;  %v596_v28 = vmul.f32 %v1835_v25, %v539_v20  ;;  %v1834_v31 = vld [vmem:[%s2283_s23 + $0x28] sm:$0xff]  ;;  %v1831_v32 = vld [vmem:[%s2287_s30 + $0x20] sm:$0xff]  ;;  %v587_v33 = vmul.f32 %v1833_v30, %v539_v20 }
  0x3a   : > { %v597_v29 = vmul.f32 %v1836_v26, %v540_v21  ;;  %v588_v34 = vmul.f32 %v1834_v31, %v540_v21  ;;  %v1832_v35 = vld [vmem:[%s2287_s30 + $0x28] sm:$0xff]  ;;  %v578_v36 = vmul.f32 %v1831_v32, %v539_v20  ;;  %v1829_v37 = vld [vmem:[%s2283_s23 + $0x10] sm:$0xff]  ;;  %v1830_v38 = vld [vmem:[%s2283_s23 + $0x18] sm:$0xff] }
  0x3b   : > { %v2055_v39 = vpack.c.bf16 %v606_v27, %v605_v24  ;;  %v579_v41 = vmul.f32 %v1832_v35, %v540_v21  ;;  %v1827_v42 = vld [vmem:[%s2287_s30 + $0x10] sm:$0xff]  ;;  %v1828_v43 = vld [vmem:[%s2287_s30 + $0x18] sm:$0xff]  ;;  %v569_v45 = vmul.f32 %v1829_v37, %v539_v20  ;;  %v570_v46 = vmul.f32 %v1830_v38, %v540_v21  ;;  %v549_v48 = vld [vmem:[%s2283_s23] sm:$0xff] }
  0x3c   : > { %v2050_v40 = vpack.c.bf16 %v597_v29, %v596_v28  ;;  %v2045_v44 = vpack.c.bf16 %v588_v34, %v587_v33  ;;  %v560_v47 = vmul.f32 %v1827_v42, %v539_v20  ;;  %v550_v49 = vld [vmem:[%s2283_s23 + $0x8] sm:$0xff]  ;;  %v561_v51 = vmul.f32 %v1828_v43, %v540_v21  ;;  %v541_v54 = vld [vmem:[%s2287_s30] sm:$0xff]  ;;  %v1991_v9 = vld [vmem:[%s2938_s5 + $0x30] sm:$0xff] }
  0x3d   : > { %2063 = vst [vmem:[#allocation2 + $0x38] sm:$0xff] %v2055_v39   ;;  %v2040_v50 = vpack.c.bf16 %v579_v41, %v578_v36  ;;  %v551_v52 = vmul.f32 %v549_v48, %v539_v20  ;;  %v552_v53 = vmul.f32 %v550_v49, %v540_v21  ;;  %v542_v55 = vld [vmem:[%s2287_s30 + $0x8] sm:$0xff]  ;;  %v2035_v56 = vpack.c.bf16 %v570_v46, %v569_v45  ;;  %v2324_v2 = vld [vmem:[%s2937_s4] sm:$0xff]  ;;  %v1992_v11 = vld [vmem:[%s2938_s5 + $0x38] sm:$0xff] }
  0x3e   : > { %2062 = vst [vmem:[#allocation2 + $0x28] sm:$0xff] %v2050_v40   ;;  %v543_v57 = vmul.f32 %v541_v54, %v539_v20  ;;  %v544_v58 = vmul.f32 %v542_v55, %v540_v21  ;;  %v2030_v59 = vpack.c.bf16 %v561_v51, %v560_v47  ;;  %v2335_v5 = vld [vmem:[%s2937_s4 + $0x8] sm:$0xff]  ;;  %v1985_v8 = vld [vmem:[%s2938_s5] sm:$0xff]  ;;  %v2376_v12 = vld [vmem:[%s2936_s3 + $0x10] sm:$0xff] }
  0x3f   : > { %1038 = vrot.lane.b32.xlu1 %v2280_v19, %s2143_s28  ;;  %1032 = vrot.lane.b32.xlu0 %v2280_v19, %s2144_s29  ;;  %2061 = vst [vmem:[#allocation2 + $0x20] sm:$0xff] %v2045_v44   ;;  %v2025_v60 = vpack.c.bf16 %v552_v53, %v551_v52  ;;  %v1986_v10 = vld [vmem:[%s2938_s5 + $0x8] sm:$0xff]  ;;  %v2381_v13 = vld [vmem:[%s2936_s3 + $0x18] sm:$0xff] }
  0x40   : > { %1044 = vrot.lane.b32.xlu2 %v2280_v19, %s2145_s14  ;;  %2060 = vst [vmem:[#allocation2 + $0x8] sm:$0xff] %v2040_v50   ;;  %v2020_v61 = vpack.c.bf16 %v544_v58, %v543_v57  ;;  %v1987_v14 = vld [vmem:[%s2938_s5 + $0x10] sm:$0xff]  ;;  %v1988_v16 = vld [vmem:[%s2938_s5 + $0x18] sm:$0xff]  ;;  %v1989_v23 = vld [vmem:[%s2938_s5 + $0x20] sm:$0xff] }
  0x41   : > { %2059 = vst [vmem:[#allocation2 + $0x10] sm:$0xff] %v2035_v56   ;;  %v2422_v21 = vld [vmem:[%s2937_s4 + $0x18] sm:$0xff]  ;;  %v2427_v22 = vld [vmem:[%s2937_s4 + $0x10] sm:$0xff]  ;;  %v2006_v39 = vld [vmem:[%s2939_s6 + $0x28] sm:$0xff] }
  0x42   : > { %2058 = vst [vmem:[#allocation2 + $0x18] sm:$0xff] %v2030_v59   ;;  %v2008_v30 = vld [vmem:[%s2939_s6 + $0x38] sm:$0xff]  ;;  %v2007_v35 = vld [vmem:[%s2939_s6 + $0x30] sm:$0xff]  ;;  %v2487_v40 = vld [vmem:[%s2940_s7 + $0x28] sm:$0xff] }
  0x43   : > { %2057 = vst [vmem:[#allocation2] sm:$0xff] %v2025_v60   ;;  %860 = vmatpush.bf16.msra.mxu1 %v2008_v30  ;;  %v2467_v36 = vld [vmem:[%s2940_s7 + $0x30] sm:$0xff]  ;;  %v2005_v47 = vld [vmem:[%s2939_s6 + $0x20] sm:$0xff]  ;;  %v2004_v49 = vld [vmem:[%s2939_s6 + $0x18] sm:$0xff] }
  0x44   : > { %v2000_v62 = vld [vmem:[#allocation2 + $0x38] sm:$0xff]  ;;  %2021 = vst [vmem:[#allocation2 + $0x30] sm:$0xff] %v2020_v61   ;;  %v2499_v48 = vld [vmem:[%s2940_s7 + $0x20] sm:$0xff]  ;;  %v2003_v57 = vld [vmem:[%s2939_s6 + $0x10] sm:$0xff] }
  0x45   : > { %739 = vmatpush.bf16.msra.mxu0 %v2000_v62  ;;  %2064 = vmatpush.bf16.msra.mxu3 %v2000_v62  ;;  %v1999_v63 = vld [vmem:[#allocation2 + $0x28] sm:$0xff]  ;;  %v2514_v50 = vld [vmem:[%s2940_s7 + $0x18] sm:$0xff]  ;;  %v2011_v58 = vld [vmem:[%s2940_s7 + $0x10] sm:$0xff] }
  0x46   : > { %v1998_v0 = vld [vmem:[#allocation2 + $0x20] sm:$0xff]  ;;  %v2002_v60 = vld [vmem:[%s2939_s6 + $0x8] sm:$0xff] }
  0x47   : > { %1050 = vrot.lane.b32.xlu1 %v2280_v19, %s2146_s24  ;;  %1048 = vrot.lane.b32.xlu0 %v2266_v18, %s2146_s24  ;;  %v1997_v1 = vld [vmem:[#allocation2 + $0x8] sm:$0xff]  ;;  %v2529_v59 = vld [vmem:[%s2936_s3 + $0x20] sm:$0xff] }
  0x48   : > { %1054 = vrot.lane.b32.xlu2 %v2266_v18, %s2147_s25  ;;  %v1996_v3 = vld [vmem:[#allocation2 + $0x10] sm:$0xff]  ;;  %861 = vmatpush.bf16.msra.mxu1 %v2007_v35  ;;  %v2010_v61 = vld [vmem:[%s2940_s7 + $0x8] sm:$0xff] }
  0x49   : > { %740 = vmatpush.bf16.msra.mxu0 %v1999_v63  ;;  %2065 = vmatpush.bf16.msra.mxu3 %v1999_v63  ;;  %v1995_v4 = vld [vmem:[#allocation2 + $0x18] sm:$0xff] }
  0x4a   : > { %v1994_v6 = vld [vmem:[#allocation2] sm:$0xff] }
  0x4b   : > { %v1993_v7 = vld [vmem:[#allocation2 + $0x30] sm:$0xff] }
  0x4c   : > { %862 = vmatpush.bf16.msra.mxu1 %v2006_v39 }
  0x4d   : > { %741 = vmatpush.bf16.msra.mxu0 %v1998_v0  ;;  %2066 = vmatpush.bf16.msra.mxu3 %v1998_v0 }
  0x4f   : > { %1060 = vrot.lane.b32.xlu1 %v2266_v18, %s2148_s26  ;;  %1056 = vrot.lane.b32.xlu0 %v2280_v19, %s2147_s25 }
  0x50   : > { %1062 = vrot.lane.b32.xlu2 %v2280_v19, %s2148_s26  ;;  %863 = vmatpush.bf16.msra.mxu1 %v2005_v47 }
  0x51   : > { %742 = vmatpush.bf16.msra.mxu0 %v1997_v1  ;;  %2067 = vmatpush.bf16.msra.mxu3 %v1997_v1 }
  0x54   : > { %864 = vmatpush.bf16.msra.mxu1 %v2004_v49 }
  0x55   : > { %743 = vmatpush.bf16.msra.mxu0 %v1996_v3  ;;  %2068 = vmatpush.bf16.msra.mxu3 %v1996_v3 }
  0x57   : > { %1068 = vrot.lane.b32.xlu1 %v2280_v19, %s2149_s11  ;;  %1066 = vrot.lane.b32.xlu0 %v2266_v18, %s2149_s11 }
  0x58   : > { %1097 = vrot.lane.b32.xlu2 %v2324_v2, %s2144_s29  ;;  %865 = vmatpush.bf16.msra.mxu1 %v2003_v57 }
  0x59   : > { %744 = vmatpush.bf16.msra.mxu0 %v1995_v4  ;;  %2069 = vmatpush.bf16.msra.mxu3 %v1995_v4  ;;  %v2552_v4 = vld [vmem:[%s2936_s3 + $0x28] sm:$0xff] }
  0x5c   : > { %866 = vmatpush.bf16.msra.mxu1 %v2002_v60 }
  0x5d   : > { %745 = vmatpush.bf16.msra.mxu0 %v1994_v6  ;;  %2070 = vmatpush.bf16.msra.mxu3 %v1994_v6  ;;  %v2001_v6 = vld [vmem:[%s2939_s6] sm:$0xff] }
  0x5f   : > { %1103 = vrot.lane.b32.xlu1 %v2324_v2, %s2143_s28  ;;  %1099 = vrot.lane.b32.xlu0 %v2335_v5, %s2144_s29 }
  0x60   : > { %1105 = vrot.lane.b32.xlu2 %v2335_v5, %s2143_s28  ;;  %867 = vmatpush.bf16.msra.mxu1 %v2001_v6 }
  0x61   : > { %746 = vmatpush.bf16.msra.mxu0 %v1993_v7  ;;  %2071 = vmatpush.bf16.msra.mxu3 %v1993_v7  ;;  %v2009_v7 = vld [vmem:[%s2940_s7] sm:$0xff] }
  0x64   : > { %747 = vmatmul.bf16.vlgmr.msra.gmra.mxu0 %v1985_v8  ;;  %777 = vmatmul.bf16.vlgmr.msra.gmra.mxu3 %v1991_v9 }
  0x65   : > { %2072 = vmatpush.bf16.msrb.mxu3 %v2008_v30 }
  0x67   : > { %1111 = vrot.lane.b32.xlu1 %v2335_v5, %s2145_s14  ;;  %1109 = vrot.lane.b32.xlu0 %v2324_v2, %s2145_s14 }
  0x68   : > { %1115 = vrot.lane.b32.xlu2 %v2324_v2, %s2146_s24 }
  0x69   : > { %2073 = vmatpush.bf16.msrb.mxu3 %v2007_v35 }
  0x6d   : > { %2074 = vmatpush.bf16.msrb.mxu3 %v2006_v39 }
  0x6f   : > { %1121 = vrot.lane.b32.xlu1 %v2324_v2, %s2147_s25  ;;  %1117 = vrot.lane.b32.xlu0 %v2335_v5, %s2146_s24 }
  0x70   : > { %1123 = vrot.lane.b32.xlu2 %v2335_v5, %s2147_s25 }
  0x71   : > { %2075 = vmatpush.bf16.msrb.mxu3 %v2005_v47 }
  0x74   : > { %752 = vmatmul.bf16.gmra.mxu0 %v1986_v10  ;;  %782 = vmatmul.bf16.gmra.mxu3 %v1992_v11 }
  0x75   : > { %2076 = vmatpush.bf16.msrb.mxu3 %v2004_v49 }
  0x77   : > { %1129 = vrot.lane.b32.xlu1 %v2335_v5, %s2148_s26  ;;  %1127 = vrot.lane.b32.xlu0 %v2324_v2, %s2148_s26 }
  0x78   : > { %1133 = vrot.lane.b32.xlu2 %v2324_v2, %s2149_s11 }
  0x79   : > { %2077 = vmatpush.bf16.msrb.mxu3 %v2003_v57 }
  0x7d   : > { %2078 = vmatpush.bf16.msrb.mxu3 %v2002_v60 }
  0x7f   : > { %1178 = vrot.lane.b32.xlu1 %v2376_v12, %s2144_s29  ;;  %1135 = vrot.lane.b32.xlu0 %v2335_v5, %s2149_s11 }
  0x80   : > { %1180 = vrot.lane.b32.xlu2 %v2381_v13, %s2144_s29 }
  0x81   : > { %2079 = vmatpush.bf16.msrb.mxu3 %v2001_v6 }
  0x84   : > { %757 = vmatmul.bf16.gmra.mxu0 %v1987_v14 }
  0x87   : > { %1186 = vrot.lane.b32.xlu1 %v2381_v13, %s2143_s28  ;;  %1184 = vrot.lane.b32.xlu0 %v2376_v12, %s2143_s28 }
  0x88   : > { %1190 = vrot.lane.b32.xlu2 %v2376_v12, %s2145_s14 }
  0x8f   : > { %1196 = vrot.lane.b32.xlu1 %v2376_v12, %s2146_s24  ;;  %1192 = vrot.lane.b32.xlu0 %v2381_v13, %s2145_s14 }
  0x90   : > { %1198 = vrot.lane.b32.xlu2 %v2381_v13, %s2146_s24 }
  0x92   : > { %v1043_v15 = vpop.permute.xlu2 %1042 }
  0x94   : > { %762 = vmatmul.bf16.gmra.mxu0 %v1988_v16 }
  0x97   : > { %1204 = vrot.lane.b32.xlu1 %v2381_v13, %s2147_s25  ;;  %1202 = vrot.lane.b32.xlu0 %v2376_v12, %s2147_s25 }
  0x98   : > { %1208 = vrot.lane.b32.xlu2 %v2376_v12, %s2148_s26 }
  0x9a   : > { %v1045_v17 = vpop.permute.xlu2 %1044 }
  0x9f   : > { %1214 = vrot.lane.b32.xlu1 %v2376_v12, %s2149_s11  ;;  %1210 = vrot.lane.b32.xlu0 %v2381_v13, %s2148_s26 }
  0xa0   : > { %1216 = vrot.lane.b32.xlu2 %v2381_v13, %s2149_s11 }
  0xa2   : > { %v1055_v20 = vpop.permute.xlu2 %1054 }
  0xa4   : > { %767 = vmatmul.bf16.gmra.mxu0 %v1989_v23 }
  0xa7   : > { %1241 = vrot.lane.b32.xlu1 %v2422_v21, %s2144_s29  ;;  %1239 = vrot.lane.b32.xlu0 %v2427_v22, %s2144_s29 }
  0xa8   : > { %1245 = vrot.lane.b32.xlu2 %v2427_v22, %s2143_s28 }
  0xa9   : > { %v1037_v24 = vpop.permute.xlu1 %1036  ;;  %v1031_v25 = vpop.permute.xlu0 %1030 }
  0xaa   : > { %v1073_v26 = vsel %vm1072_vm0, %v2266_v18, %v1031_v25  ;;  %v1063_v27 = vpop.permute.xlu2 %1062  ;;  %v2454_v18 = vld [vmem:[%s2940_s7 + $0x38] sm:$0xff] }
  0xab   : > { %v1076_v28 = vsel %vm1075_vm1, %v1073_v26, %v1037_v24  ;;  %973 = vmatpush.bf16.msra.mxu2 %v2454_v18  ;;  %2080 = vmatpush.bf16.msra.mxu3 %v2454_v18 }
  0xac   : > { %v1079_v29 = vsel %vm1078_vm2, %v1076_v28, %v1043_v15 }
  0xaf   : > { %1251 = vrot.lane.b32.xlu1 %v2427_v22, %s2145_s14  ;;  %1247 = vrot.lane.b32.xlu0 %v2422_v21, %s2143_s28 }
  0xb0   : > { %1253 = vrot.lane.b32.xlu2 %v2422_v21, %s2145_s14  ;;  %974 = vmatpush.bf16.msra.mxu2 %v2467_v36 }
  0xb1   : > { %v1039_v31 = vpop.permute.xlu1 %1038  ;;  %v1033_v32 = vpop.permute.xlu0 %1032  ;;  %2081 = vmatpush.bf16.msra.mxu3 %v2467_v36 }
  0xb2   : > { %v1074_v33 = vsel %vm1072_vm0, %v2280_v19, %v1033_v32  ;;  %v2458_v34 = vpop.permute.xlu2 %1097  ;;  %v1990_v19 = vld [vmem:[%s2938_s5 + $0x28] sm:$0xff] }
  0xb3   : > { %v1077_v37 = vsel %vm1075_vm1, %v1074_v33, %v1039_v31  ;;  %v1139_v8 = vsel %vm1072_vm0, %v2324_v2, %v2458_v34 }
  0xb4   : > { %v1080_v38 = vsel %vm1078_vm2, %v1077_v37, %v1045_v17  ;;  %772 = vmatmul.bf16.gmra.mxu0 %v1990_v19  ;;  %975 = vmatpush.bf16.msra.mxu2 %v2487_v40  ;;  %v2615_v19 = vld [vmem:[%s2937_s4 + $0x28] sm:$0xff] }
  0xb5   : > { %2082 = vmatpush.bf16.msra.mxu3 %v2487_v40 }
  0xb7   : > { %1259 = vrot.lane.b32.xlu1 %v2422_v21, %s2146_s24  ;;  %1257 = vrot.lane.b32.xlu0 %v2427_v22, %s2146_s24 }
  0xb8   : > { %1263 = vrot.lane.b32.xlu2 %v2427_v22, %s2147_s25  ;;  %976 = vmatpush.bf16.msra.mxu2 %v2499_v48 }
  0xb9   : > { %v1051_v41 = vpop.permute.xlu1 %1050  ;;  %v1049_v42 = vpop.permute.xlu0 %1048  ;;  %2083 = vmatpush.bf16.msra.mxu3 %v2499_v48 }
  0xba   : > { %v1083_v43 = vsel %vm1081_vm3, %v1080_v38, %v1051_v41  ;;  %v1082_v44 = vsel %vm1081_vm3, %v1079_v29, %v1049_v42  ;;  %v1106_v45 = vpop.permute.xlu2 %1105  ;;  %v2610_v38 = vld [vmem:[%s2937_s4 + $0x20] sm:$0xff] }
  0xbb   : > { %v1085_v46 = vsel %vm1084_vm4, %v1082_v44, %v1055_v20 }
  0xbc   : > { %977 = vmatpush.bf16.msra.mxu2 %v2514_v50 }
  0xbd   : > { %2084 = vmatpush.bf16.msra.mxu3 %v2514_v50 }
  0xbf   : > { %1269 = vrot.lane.b32.xlu1 %v2427_v22, %s2148_s26  ;;  %1265 = vrot.lane.b32.xlu0 %v2422_v21, %s2147_s25 }
  0xc0   : > { %1271 = vrot.lane.b32.xlu2 %v2422_v21, %s2148_s26  ;;  %978 = vmatpush.bf16.msra.mxu2 %v2011_v58 }
  0xc1   : > { %v1061_v51 = vpop.permute.xlu1 %1060  ;;  %v1057_v52 = vpop.permute.xlu0 %1056  ;;  %2085 = vmatpush.bf16.msra.mxu3 %v2011_v58 }
  0xc2   : > { %v1088_v53 = vsel %vm1087_vm5, %v1085_v46, %v1061_v51  ;;  %v1086_v54 = vsel %vm1084_vm4, %v1083_v43, %v1057_v52  ;;  %v1116_v55 = vpop.permute.xlu2 %1115 }
  0xc3   : > { %v1089_v56 = vsel %vm1087_vm5, %v1086_v54, %v1063_v27 }
  0xc4   : > { %979 = vmatpush.bf16.msra.mxu2 %v2010_v61 }
  0xc5   : > { %2086 = vmatpush.bf16.msra.mxu3 %v2010_v61 }
  0xc7   : > { %1277 = vrot.lane.b32.xlu1 %v2422_v21, %s2149_s11  ;;  %1275 = vrot.lane.b32.xlu0 %v2427_v22, %s2149_s11 }
  0xc8   : > { %1320 = vrot.lane.b32.xlu2 %v2529_v59, %s2144_s29  ;;  %980 = vmatpush.bf16.msra.mxu2 %v2009_v7 }
  0xc9   : > { %v1069_v62 = vpop.permute.xlu1 %1068  ;;  %v1067_v63 = vpop.permute.xlu0 %1066  ;;  %2087 = vmatpush.bf16.msra.mxu3 %v2009_v7 }
  0xca   : > { %v2544_v0 = vsel %vm1090_vm6, %v1089_v56, %v1069_v62  ;;  %v2547_v1 = vsel %vm1090_vm6, %v1088_v53, %v1067_v63  ;;  %v1124_v3 = vpop.permute.xlu2 %1123 }
  0xcf   : > { %1326 = vrot.lane.b32.xlu1 %v2529_v59, %s2143_s28  ;;  %1322 = vrot.lane.b32.xlu0 %v2552_v4, %s2144_s29 }
  0xd0   : > { %1328 = vrot.lane.b32.xlu2 %v2552_v4, %s2143_s28 }
  0xd1   : > { %v1104_v9 = vpop.permute.xlu1 %1103  ;;  %v1100_v10 = vpop.permute.xlu0 %1099 }
  0xd2   : > { %v1141_v11 = vsel %vm1075_vm1, %v1139_v8, %v1104_v9  ;;  %v1140_v14 = vsel %vm1072_vm0, %v2335_v5, %v1100_v10  ;;  %v1134_v2 = vpop.permute.xlu2 %1133 }
  0xd3   : > { %v1142_v15 = vsel %vm1075_vm1, %v1140_v14, %v1106_v45 }
  0xd7   : > { %1334 = vrot.lane.b32.xlu1 %v2552_v4, %s2145_s14  ;;  %1332 = vrot.lane.b32.xlu0 %v2529_v59, %s2145_s14 }
  0xd8   : > { %1338 = vrot.lane.b32.xlu2 %v2529_v59, %s2146_s24 }
  0xd9   : > { %v1112_v16 = vpop.permute.xlu1 %1111  ;;  %v1110_v17 = vpop.permute.xlu0 %1109 }
  0xda   : > { %v1144_v5 = vsel %vm1078_vm2, %v1142_v15, %v1112_v16  ;;  %v1143_v20 = vsel %vm1078_vm2, %v1141_v11, %v1110_v17  ;;  %v1181_v23 = vpop.permute.xlu2 %1180 }
  0xdb   : > { %v1145_v24 = vsel %vm1081_vm3, %v1143_v20, %v1116_v55  ;;  %v1221_v48 = vsel %vm1072_vm0, %v2381_v13, %v1181_v23 }
  0xdf   : > { %1344 = vrot.lane.b32.xlu1 %v2529_v59, %s2147_s25  ;;  %1340 = vrot.lane.b32.xlu0 %v2552_v4, %s2146_s24 }
  0xe0   : > { %1346 = vrot.lane.b32.xlu2 %v2552_v4, %s2147_s25 }
  0xe1   : > { %v1122_v25 = vpop.permute.xlu1 %1121  ;;  %v1118_v26 = vpop.permute.xlu0 %1117 }
  0xe2   : > { %v1147_v27 = vsel %vm1084_vm4, %v1145_v24, %v1122_v25  ;;  %v1146_v28 = vsel %vm1081_vm3, %v1144_v5, %v1118_v26  ;;  %v1191_v29 = vpop.permute.xlu2 %1190  ;;  %v748_v18 = vpop.f32.mrf.mxu0  ;;  %v2673_v26 = vld [vmem:[%s2936_s3 + $0x38] sm:$0xff] }
  0xe3   : > { %v1148_v30 = vsel %vm1084_vm4, %v1146_v28, %v1124_v3 }
  0xe7   : > { %1352 = vrot.lane.b32.xlu1 %v2552_v4, %s2148_s26  ;;  %1350 = vrot.lane.b32.xlu0 %v2529_v59, %s2148_s26  ;;  %v778_v37 = vpop.f32.mrf.mxu3 }
  0xe8   : > { %1356 = vrot.lane.b32.xlu2 %v2529_v59, %s2149_s11 }
  0xe9   : > { %v1130_v31 = vpop.permute.xlu1 %1129  ;;  %v1128_v32 = vpop.permute.xlu0 %1127 }
  0xea   : > { %v1150_v33 = vsel %vm1087_vm5, %v1148_v30, %v1130_v31  ;;  %v1149_v34 = vsel %vm1087_vm5, %v1147_v27, %v1128_v32  ;;  %v1199_v35 = vpop.permute.xlu2 %1198  ;;  %v750_v39 = vpop.f32.mrf.mxu0  ;;  %v2678_v27 = vld [vmem:[%s2936_s3 + $0x30] sm:$0xff] }
  0xeb   : > { %v2605_v36 = vsel %vm1090_vm6, %v1149_v34, %v1134_v2  ;;  %v788_v40 = vpack.c.bf16 %v750_v39, %v748_v18 }
  0xed   : > { %868 = vmatmul.bf16.vlgmr.msra.gmra.mxu1 %v788_v40  ;;  %981 = vmatmul.bf16.vlgmr.msra.gmra.mxu2 %v788_v40 }
  0xef   : > { %1381 = vrot.lane.b32.xlu1 %v2610_v38, %s2144_s29  ;;  %1358 = vrot.lane.b32.xlu0 %v2552_v4, %s2149_s11  ;;  %v780_v45 = vpop.f32.mrf.mxu3 }
  0xf0   : > { %1383 = vrot.lane.b32.xlu2 %v2615_v19, %s2144_s29  ;;  %v794_v46 = vpack.c.bf16 %v780_v45, %v778_v37 }
  0xf1   : > { %v1179_v41 = vpop.permute.xlu1 %1178  ;;  %v1136_v42 = vpop.permute.xlu0 %1135 }
  0xf2   : > { %v2624_v43 = vsel %vm1090_vm6, %v1150_v33, %v1136_v42  ;;  %v1209_v44 = vpop.permute.xlu2 %1208  ;;  %v753_v47 = vpop.f32.mrf.mxu0  ;;  %v1220_v49 = vsel %vm1072_vm0, %v2376_v12, %v1179_v41  ;;  %898 = vmatmul.bf16.vlgmr.msrb.gmra.mxu3 %v794_v46 }
  0xf7   : > { %1389 = vrot.lane.b32.xlu1 %v2615_v19, %s2143_s28  ;;  %1387 = vrot.lane.b32.xlu0 %v2610_v38, %s2143_s28  ;;  %v783_v12 = vpop.f32.mrf.mxu3 }
  0xf8   : > { %1393 = vrot.lane.b32.xlu2 %v2610_v38, %s2145_s14 }
  0xf9   : > { %v1187_v50 = vpop.permute.xlu1 %1186  ;;  %v1185_v51 = vpop.permute.xlu0 %1184 }
  0xfa   : > { %v1223_v52 = vsel %vm1075_vm1, %v1221_v48, %v1187_v50  ;;  %v1222_v53 = vsel %vm1075_vm1, %v1220_v49, %v1185_v51  ;;  %v1217_v13 = vpop.permute.xlu2 %1216  ;;  %v755_v55 = vpop.f32.mrf.mxu0 }
  0xfb   : > { %v1224_v54 = vsel %vm1078_vm2, %v1222_v53, %v1191_v29  ;;  %v789_v56 = vpack.c.bf16 %v755_v55, %v753_v47 }
  0xfd   : > { %873 = vmatmul.bf16.gmra.mxu1 %v789_v56  ;;  %986 = vmatmul.bf16.gmra.mxu2 %v789_v56  ;;  %v2721_v56 = vld [vmem:[%s2937_s4 + $0x38] sm:$0xff] }
  0xff   : > { %1399 = vrot.lane.b32.xlu1 %v2610_v38, %s2146_s24  ;;  %1395 = vrot.lane.b32.xlu0 %v2615_v19, %s2145_s14  ;;  %v785_v3 = vpop.f32.mrf.mxu3 }
 0x100   : > { %1401 = vrot.lane.b32.xlu2 %v2615_v19, %s2146_s24  ;;  %v795_v6 = vpack.c.bf16 %v785_v3, %v783_v12 }
 0x101   : > { %v1197_v57 = vpop.permute.xlu1 %1196  ;;  %v1193_v58 = vpop.permute.xlu0 %1192 }
 0x102   : > { %v1226_v60 = vsel %vm1081_vm3, %v1224_v54, %v1197_v57  ;;  %v1225_v61 = vsel %vm1078_vm2, %v1223_v52, %v1193_v58  ;;  %v1246_v62 = vpop.permute.xlu2 %1245  ;;  %v758_v7 = vpop.f32.mrf.mxu0  ;;  %903 = vmatmul.bf16.gmra.mxu3 %v795_v6  ;;  %v2726_v57 = vld [vmem:[%s2937_s4 + $0x30] sm:$0xff] }
 0x103   : > { %v1227_v63 = vsel %vm1081_vm3, %v1225_v61, %v1199_v35 }
 0x107   : > { %1407 = vrot.lane.b32.xlu1 %v2615_v19, %s2147_s25  ;;  %1405 = vrot.lane.b32.xlu0 %v2610_v38, %s2147_s25 }
 0x108   : > { %1411 = vrot.lane.b32.xlu2 %v2610_v38, %s2148_s26 }
 0x109   : > { %v1205_v8 = vpop.permute.xlu1 %1204  ;;  %v1203_v9 = vpop.permute.xlu0 %1202 }
 0x10a   : > { %v1229_v10 = vsel %vm1084_vm4, %v1227_v63, %v1205_v8  ;;  %v1228_v11 = vsel %vm1084_vm4, %v1226_v60, %v1203_v9  ;;  %v1254_v14 = vpop.permute.xlu2 %1253  ;;  %v760_v15 = vpop.f32.mrf.mxu0 }
 0x10b   : > { %v1230_v2 = vsel %vm1087_vm5, %v1228_v11, %v1209_v44  ;;  %v790_v16 = vpack.c.bf16 %v760_v15, %v758_v7 }
 0x10d   : > { %878 = vmatmul.bf16.gmra.mxu1 %v790_v16  ;;  %991 = vmatmul.bf16.gmra.mxu2 %v790_v16 }
 0x10f   : > { %1417 = vrot.lane.b32.xlu1 %v2610_v38, %s2149_s11  ;;  %1413 = vrot.lane.b32.xlu0 %v2615_v19, %s2148_s26 }
 0x110   : > { %1419 = vrot.lane.b32.xlu2 %v2615_v19, %s2149_s11 }
 0x111   : > { %v1215_v17 = vpop.permute.xlu1 %1214  ;;  %v1211_v5 = vpop.permute.xlu0 %1210 }
 0x112   : > { %v2664_v20 = vsel %vm1090_vm6, %v1230_v2, %v1215_v17  ;;  %v1231_v23 = vsel %vm1087_vm5, %v1229_v10, %v1211_v5  ;;  %v1264_v24 = vpop.permute.xlu2 %1263  ;;  %v763_v28 = vpop.f32.mrf.mxu0  ;;  %1011 = vmatmul.bf16.vlgmr.msra.gmra.mxu3 %v794_v46 }
 0x113   : > { %v2668_v25 = vsel %vm1090_vm6, %v1231_v23, %v1217_v13 }
 0x117   : > { %1464 = vrot.lane.b32.xlu1 %v2673_v26, %s2144_s29  ;;  %1462 = vrot.lane.b32.xlu0 %v2678_v27, %s2144_s29 }
 0x118   : > { %1468 = vrot.lane.b32.xlu2 %v2678_v27, %s2143_s28 }
 0x119   : > { %v1242_v29 = vpop.permute.xlu1 %1241  ;;  %v1240_v30 = vpop.permute.xlu0 %1239 }
 0x11a   : > { %v1281_v18 = vsel %vm1072_vm0, %v2427_v22, %v1240_v30  ;;  %v1272_v31 = vpop.permute.xlu2 %1271  ;;  %v765_v33 = vpop.f32.mrf.mxu0  ;;  %v1282_v34 = vsel %vm1072_vm0, %v2422_v21, %v1242_v29 }
 0x11b   : > { %v1283_v32 = vsel %vm1075_vm1, %v1281_v18, %v1246_v62  ;;  %v791_v35 = vpack.c.bf16 %v765_v33, %v763_v28 }
 0x11d   : > { %883 = vmatmul.bf16.gmra.mxu1 %v791_v35  ;;  %996 = vmatmul.bf16.gmra.mxu2 %v791_v35 }
 0x11f   : > { %1474 = vrot.lane.b32.xlu1 %v2678_v27, %s2145_s14  ;;  %1470 = vrot.lane.b32.xlu0 %v2673_v26, %s2143_s28 }
 0x120   : > { %1476 = vrot.lane.b32.xlu2 %v2673_v26, %s2145_s14 }
 0x121   : > { %v1252_v22 = vpop.permute.xlu1 %1251  ;;  %v1248_v37 = vpop.permute.xlu0 %1247 }
 0x122   : > { %v1285_v39 = vsel %vm1078_vm2, %v1283_v32, %v1252_v22  ;;  %v1284_v40 = vsel %vm1075_vm1, %v1282_v34, %v1248_v37  ;;  %v1321_v41 = vpop.permute.xlu2 %1320  ;;  %v768_v42 = vpop.f32.mrf.mxu0  ;;  %1016 = vmatmul.bf16.gmra.mxu3 %v795_v6 }
 0x123   : > { %v1286_v21 = vsel %vm1078_vm2, %v1284_v40, %v1254_v14  ;;  %v1362_v7 = vsel %vm1072_vm0, %v2529_v59, %v1321_v41 }
 0x127   : > { %1482 = vrot.lane.b32.xlu1 %v2673_v26, %s2146_s24  ;;  %1480 = vrot.lane.b32.xlu0 %v2678_v27, %s2146_s24 }
 0x128   : > { %1486 = vrot.lane.b32.xlu2 %v2678_v27, %s2147_s25 }
 0x129   : > { %v1260_v44 = vpop.permute.xlu1 %1259  ;;  %v1258_v45 = vpop.permute.xlu0 %1257 }
 0x12a   : > { %v1288_v46 = vsel %vm1081_vm3, %v1286_v21, %v1260_v44  ;;  %v1287_v47 = vsel %vm1081_vm3, %v1285_v39, %v1258_v45  ;;  %v1329_v48 = vpop.permute.xlu2 %1328  ;;  %v770_v50 = vpop.f32.mrf.mxu0 }
 0x12b   : > { %v1289_v49 = vsel %vm1084_vm4, %v1287_v47, %v1264_v24  ;;  %v792_v51 = vpack.c.bf16 %v770_v50, %v768_v42 }
 0x12d   : > { %888 = vmatmul.bf16.gmra.mxu1 %v792_v51  ;;  %1001 = vmatmul.bf16.gmra.mxu2 %v792_v51 }
 0x12f   : > { %1492 = vrot.lane.b32.xlu1 %v2678_v27, %s2148_s26  ;;  %1488 = vrot.lane.b32.xlu0 %v2673_v26, %s2147_s25 }
 0x130   : > { %1494 = vrot.lane.b32.xlu2 %v2673_v26, %s2148_s26 }
 0x131   : > { %v1270_v52 = vpop.permute.xlu1 %1269  ;;  %v1266_v53 = vpop.permute.xlu0 %1265 }
 0x132   : > { %v1291_v13 = vsel %vm1087_vm5, %v1289_v49, %v1270_v52  ;;  %v1290_v54 = vsel %vm1084_vm4, %v1288_v46, %v1266_v53  ;;  %v1339_v12 = vpop.permute.xlu2 %1338  ;;  %v773_v58 = vpop.f32.mrf.mxu0 }
 0x133   : > { %v1292_v55 = vsel %vm1087_vm5, %v1290_v54, %v1272_v31 }
 0x137   : > { %1525 = vrot.lane.b32.xlu1 %v2721_v56, %s2144_s29  ;;  %1523 = vrot.lane.b32.xlu0 %v2726_v57, %s2144_s29  ;;  %s538_s29 = scalar_lea.vmem [#allocation7], %s2275_s19 }
 0x138   : > { %1529 = vrot.lane.b32.xlu2 %v2726_v57, %s2143_s28 }
 0x139   : > { %v1278_v60 = vpop.permute.xlu1 %1277  ;;  %v1276_v61 = vpop.permute.xlu0 %1275 }
 0x13a   : > { %v2735_v62 = vsel %vm1090_vm6, %v1292_v55, %v1278_v60  ;;  %v2738_v63 = vsel %vm1090_vm6, %v1291_v13, %v1276_v61  ;;  %v1347_v3 = vpop.permute.xlu2 %1346  ;;  %v775_v6 = vpop.f32.mrf.mxu0 }
 0x13b   : > { %v793_v8 = vpack.c.bf16 %v775_v6, %v773_v58 }
 0x13d   : > { %893 = vmatmul.bf16.gmra.mxu1 %v793_v8  ;;  %1006 = vmatmul.bf16.gmra.mxu2 %v793_v8 }
 0x13f   : > { %1535 = vrot.lane.b32.xlu1 %v2726_v57, %s2145_s14  ;;  %1531 = vrot.lane.b32.xlu0 %v2721_v56, %s2143_s28  ;;  %s532_s28 = scalar_lea.vmem [#allocation6], %s2275_s19 }
 0x140   : > { %1537 = vrot.lane.b32.xlu2 %v2721_v56, %s2145_s14  ;;  %s1981_s14 = sshll.u32 (%p2235_p5), %s2216_s12, 3 }
 0x141   : > { %v1327_v9 = vpop.permute.xlu1 %1326  ;;  %v1323_v10 = vpop.permute.xlu0 %1322 }
 0x142   : > { %v1364_v11 = vsel %vm1075_vm1, %v1362_v7, %v1327_v9  ;;  %v1363_v14 = vsel %vm1072_vm0, %v2552_v4, %v1323_v10  ;;  %v1357_v59 = vpop.permute.xlu2 %1356 }
 0x143   : > { %v1365_v2 = vsel %vm1075_vm1, %v1363_v14, %v1329_v48 }
 0x147   : > { %1543 = vrot.lane.b32.xlu1 %v2721_v56, %s2146_s24  ;;  %1541 = vrot.lane.b32.xlu0 %v2726_v57, %s2146_s24 }
 0x148   : > { %1498 = vrot.lane.b32.xlu2 %v2678_v27, %s2149_s11 }
 0x149   : > { %v1335_v15 = vpop.permute.xlu1 %1334  ;;  %v1333_v16 = vpop.permute.xlu0 %1332 }
 0x14a   : > { %v1367_v17 = vsel %vm1078_vm2, %v1365_v2, %v1335_v15  ;;  %v1366_v5 = vsel %vm1078_vm2, %v1364_v11, %v1333_v16  ;;  %v1384_v23 = vpop.permute.xlu2 %1383 }
 0x14b   : > { %v1368_v4 = vsel %vm1081_vm3, %v1366_v5, %v1339_v12  ;;  %v1424_v21 = vsel %vm1072_vm0, %v2615_v19, %v1384_v23 }
 0x14f   : > { %1547 = vrot.lane.b32.xlu1 %v2726_v57, %s2147_s25  ;;  %1500 = vrot.lane.b32.xlu0 %v2673_v26, %s2149_s11 }
 0x150   : > { %1549 = vrot.lane.b32.xlu2 %v2721_v56, %s2147_s25  ;;  %s1611_s25 = scalar_lea.vmem (%p2235_p5), %s2941_s8, %s1981_s14 }
 0x151   : > { %v1345_v24 = vpop.permute.xlu1 %1344  ;;  %v1341_v28 = vpop.permute.xlu0 %1340 }
 0x152   : > { %v1370_v29 = vsel %vm1084_vm4, %v1368_v4, %v1345_v24  ;;  %v1369_v30 = vsel %vm1081_vm3, %v1367_v17, %v1341_v28  ;;  %v1394_v31 = vpop.permute.xlu2 %1393 }
 0x153   : > { %v1371_v18 = vsel %vm1084_vm4, %v1369_v30, %v1347_v3 }
 0x157   : > { %1555 = vrot.lane.b32.xlu1 %v2721_v56, %s2148_s26  ;;  %1553 = vrot.lane.b32.xlu0 %v2726_v57, %s2148_s26 }
 0x158   : > { %1559 = vrot.lane.b32.xlu2 %v2726_v57, %s2149_s11 }
 0x159   : > { %v1353_v32 = vpop.permute.xlu1 %1352  ;;  %v1351_v33 = vpop.permute.xlu0 %1350 }
 0x15a   : > { %v1373_v34 = vsel %vm1087_vm5, %v1371_v18, %v1353_v32  ;;  %v1372_v35 = vsel %vm1087_vm5, %v1370_v29, %v1351_v33  ;;  %v1402_v37 = vpop.permute.xlu2 %1401 }
 0x15b   : > { %v2779_v22 = vsel %vm1090_vm6, %v1372_v35, %v1357_v59 }
 0x15f   : > { %1561 = vrot.lane.b32.xlu0 %v2721_v56, %s2149_s11 }
 0x161   : > { %v1382_v39 = vpop.permute.xlu1 %1381  ;;  %v1359_v40 = vpop.permute.xlu0 %1358 }
 0x162   : > { %v2784_v41 = vsel %vm1090_vm6, %v1373_v34, %v1359_v40  ;;  %v1423_v42 = vsel %vm1072_vm0, %v2610_v38, %v1382_v39  ;;  %v1412_v44 = vpop.permute.xlu2 %1411 }
 0x169   : > { %v1390_v45 = vpop.permute.xlu1 %1389  ;;  %v1388_v47 = vpop.permute.xlu0 %1387 }
 0x16a   : > { %v1426_v46 = vsel %vm1075_vm1, %v1424_v21, %v1390_v45  ;;  %v1425_v48 = vsel %vm1075_vm1, %v1423_v42, %v1388_v47  ;;  %v869_v50 = vpop.f32.mrf.mxu1  ;;  %v1420_v13 = vpop.permute.xlu2 %1419 }
 0x16b   : > { %v1427_v49 = vsel %vm1078_vm2, %v1425_v48, %v1394_v31 }
 0x170   : > { %v982_v54 = vpop.f32.mrf.mxu2 }
 0x171   : > { %v1400_v51 = vpop.permute.xlu1 %1399  ;;  %v1396_v53 = vpop.permute.xlu0 %1395 }
 0x172   : > { %v1429_v52 = vsel %vm1081_vm3, %v1427_v49, %v1400_v51  ;;  %v1428_v19 = vsel %vm1078_vm2, %v1426_v46, %v1396_v53  ;;  %v871_v12 = vpop.f32.mrf.mxu1  ;;  %v2801_v7 = vpop.permute.xlu2 %1468 }
 0x173   : > { %v1430_v38 = vsel %vm1081_vm3, %v1428_v19, %v1402_v37 }
 0x175   : > { %v2811_v5 = vpop.f32.mrf.mxu3 }
 0x178   : > { %v984_v3 = vpop.f32.mrf.mxu2 }
 0x179   : > { %v1408_v55 = vpop.permute.xlu1 %1407  ;;  %v1406_v60 = vpop.permute.xlu0 %1405 }
 0x17a   : > { %v1432_v58 = vsel %vm1084_vm4, %v1430_v38, %v1408_v55  ;;  %v1431_v61 = vsel %vm1084_vm4, %v1429_v52, %v1406_v60  ;;  %v874_v8 = vpop.f32.mrf.mxu1  ;;  %v2813_v4 = vpop.permute.xlu2 %1476 }
 0x17b   : > { %v2799_v6 = vsel %vm1087_vm5, %v1431_v61, %v1412_v44  ;;  %v1024_v9 = vsub.f32 %v874_v8, %v982_v54 }
 0x17d   : > { %v1157_v10 = vmul.f32 %v2605_v36, %v1024_v9  ;;  %v1161_v11 = vmul.f32 %v2547_v1, %v1024_v9 }
 0x180   : > { %v987_v15 = vpop.f32.mrf.mxu2 }
 0x181   : > { %v2805_v14 = vpop.permute.xlu1 %1417  ;;  %v1414_v59 = vpop.permute.xlu0 %1413  ;;  %v1022_v17 = vadd.f32 %v987_v15, %v869_v50 }
 0x182   : > { %v1434_v2 = vsel %vm1087_vm5, %v1432_v58, %v1414_v59  ;;  %v876_v23 = vpop.f32.mrf.mxu1 }
 0x183   : > { %v2809_v16 = vsel %vm1090_vm6, %v1434_v2, %v1420_v13  ;;  %v1153_v24 = vmul.f32 %v2547_v1, %v1022_v17  ;;  %v1165_v28 = vmul.f32 %v2605_v36, %v1022_v17  ;;  %v1025_v29 = vsub.f32 %v876_v23, %v984_v3  ;;  %v2823_v1 = vpop.f32.mrf.mxu3  ;;  %v2825_v36 = vpop.permute.xlu2 %1486 }
 0x185   : > { %v1159_v30 = vadd.f32 %v1157_v10, %v1153_v24  ;;  %v1167_v18 = vsub.f32 %v1161_v11, %v1165_v28  ;;  %v1158_v31 = vmul.f32 %v2624_v43, %v1025_v29  ;;  %v1162_v32 = vmul.f32 %v2544_v0, %v1025_v29 }
 0x188   : > { %v989_v35 = vpop.f32.mrf.mxu2 }
 0x189   : > { %v2819_v33 = vpop.permute.xlu1 %1464  ;;  %v1463_v34 = vpop.permute.xlu0 %1462  ;;  %v1023_v37 = vadd.f32 %v989_v35, %v871_v12 }
 0x18a   : > { %v879_v39 = vpop.f32.mrf.mxu1 }
 0x18b   : > { %v1154_v40 = vmul.f32 %v2544_v0, %v1023_v37  ;;  %v1166_v21 = vmul.f32 %v2624_v43, %v1023_v37  ;;  %v2829_v51 = vpop.f32.mrf.mxu3  ;;  %v2831_v52 = vpop.permute.xlu2 %1494 }
 0x18d   : > { %v1160_v42 = vadd.f32 %v1158_v31, %v1154_v40  ;;  %v1168_v44 = vsub.f32 %v1162_v32, %v1166_v21 }
 0x190   : > { %v992_v47 = vpop.f32.mrf.mxu2 }
 0x191   : > { %v1475_v45 = vpop.permute.xlu1 %1474  ;;  %v1471_v46 = vpop.permute.xlu0 %1470 }
 0x192   : > { %v881_v48 = vpop.f32.mrf.mxu1 }
 0x193   : > { %v2836_v55 = vpop.f32.mrf.mxu3  ;;  %v1530_v58 = vpop.permute.xlu2 %1529 }
 0x198   : > { %v994_v0 = vpop.f32.mrf.mxu2 }
 0x199   : > { %v2827_v49 = vpop.permute.xlu1 %1482  ;;  %v1481_v50 = vpop.permute.xlu0 %1480 }
 0x19a   : > { %v884_v53 = vpop.f32.mrf.mxu1 }
 0x19b   : > { %v1171_v43 = vsub.f32 %v884_v53, %v992_v47  ;;  %v1012_v31 = vpop.f32.mrf.mxu3  ;;  %v2844_v32 = vpop.permute.xlu2 %1537  ;;  %v1504_v53 = vsel %vm1072_vm0, %v2678_v27, %v1463_v34 }
 0x19d   : > { %v1303_v13 = vmul.f32 %v2664_v20, %v1171_v43  ;;  %v1299_v10 = vmul.f32 %v2738_v63, %v1171_v43 }
 0x19f   : > { %v1305_v38 = vadd.f32 %v1303_v13, %v1167_v18 }
 0x1a0   : > { %v997_v12 = vpop.f32.mrf.mxu2 }
 0x1a1   : > { %v1493_v19 = vpop.permute.xlu1 %1492  ;;  %v2834_v54 = vpop.permute.xlu0 %1488  ;;  %v1169_v60 = vadd.f32 %v997_v12, %v879_v39  ;;  %v1505_v12 = vsel %vm1072_vm0, %v2673_v26, %v2819_v33  ;;  %v1435_v33 = vsel %vm1090_vm6, %v2799_v6, %v2805_v14 }
 0x1a2   : > { %v886_v61 = vpop.f32.mrf.mxu1  ;;  %v1507_v27 = vsel %vm1075_vm1, %v1505_v12, %v1471_v46 }
 0x1a3   : > { %v1295_v3 = vmul.f32 %v2664_v20, %v1169_v60  ;;  %v1307_v8 = vmul.f32 %v2738_v63, %v1169_v60  ;;  %v1172_v9 = vsub.f32 %v886_v61, %v994_v0  ;;  %v1499_v0 = vpop.permute.xlu2 %1498 }
 0x1a5   : > { %v1297_v11 = vadd.f32 %v1295_v3, %v1159_v30  ;;  %v1309_v59 = vsub.f32 %v1305_v38, %v1307_v8  ;;  %v1304_v2 = vmul.f32 %v2668_v25, %v1172_v9  ;;  %v1300_v63 = vmul.f32 %v2735_v62, %v1172_v9 }
 0x1a7   : > { %v2842_v23 = vadd.f32 %v1304_v2, %v1168_v44  ;;  %v1301_v24 = vadd.f32 %v1299_v10, %v1297_v11 }
 0x1a8   : > { %v999_v28 = vpop.f32.mrf.mxu2 }
 0x1a9   : > { %v1526_v15 = vpop.permute.xlu1 %1525  ;;  %v1524_v17 = vpop.permute.xlu0 %1523  ;;  %v1170_v29 = vadd.f32 %v999_v28, %v881_v48 }
 0x1aa   : > { %v889_v18 = vpop.f32.mrf.mxu1  ;;  %v2852_v48 = vpop.f32.mrf.mxu3  ;;  %v1565_v10 = vsel %vm1072_vm0, %v2726_v57, %v1524_v17  ;;  %v1566_v46 = vsel %vm1072_vm0, %v2721_v56, %v1526_v15  ;;  %v1455_v56 = vsub.f32 %v2829_v51, %v1012_v31 }
 0x1ab   : > { %v1296_v20 = vmul.f32 %v2668_v25, %v1170_v29  ;;  %v1308_v35 = vmul.f32 %v2735_v62, %v1170_v29  ;;  %v1506_v62 = vsel %vm1075_vm1, %v1504_v53, %v2801_v7  ;;  %v1550_v3 = vpop.permute.xlu2 %1549 }
 0x1ad   : > { %v1298_v30 = vadd.f32 %v1296_v20, %v1160_v42  ;;  %v1310_v37 = vsub.f32 %v2842_v23, %v1308_v35  ;;  %v1508_v42 = vsel %vm1078_vm2, %v1506_v62, %v1475_v45 }
 0x1ae   : > { %v1510_v60 = vsel %vm1081_vm3, %v1508_v42, %v1481_v50  ;;  %v1509_v50 = vsel %vm1078_vm2, %v1507_v27, %v2813_v4  ;;  %v1456_v27 = vsub.f32 %v2836_v55, %v2852_v48 }
 0x1af   : > { %v2850_v21 = vadd.f32 %v1300_v63, %v1298_v30  ;;  %v1512_v34 = vsel %vm1084_vm4, %v1510_v60, %v2825_v36 }
 0x1b0   : > { %v1002_v44 = vpop.f32.mrf.mxu2  ;;  %v1514_v7 = vsel %vm1087_vm5, %v1512_v34, %v1493_v19  ;;  %v1511_v19 = vsel %vm1081_vm3, %v1509_v50, %v2827_v49 }
 0x1b1   : > { %v1536_v39 = vpop.permute.xlu1 %1535  ;;  %v1532_v40 = vpop.permute.xlu0 %1531  ;;  %v1516_v23 = vsel %vm1090_vm6, %v1514_v7, %v1499_v0  ;;  %v1513_v15 = vsel %vm1084_vm4, %v1511_v19, %v2834_v54 }
 0x1b2   : > { %v891_v47 = vpop.f32.mrf.mxu1  ;;  %v1017_v45 = vpop.f32.mrf.mxu3  ;;  %v1568_v49 = vsel %vm1075_vm1, %v1566_v46, %v1532_v40  ;;  %v1587_v63 = vmul.f32 %v1516_v23, %v1455_v56  ;;  %v1515_v40 = vsel %vm1087_vm5, %v1513_v15, %v2831_v52 }
 0x1b3   : > { %v1453_v57 = vadd.f32 %v1017_v45, %v2811_v5  ;;  %v1560_v35 = vpop.permute.xlu2 %1559  ;;  %v1570_v54 = vsel %vm1078_vm2, %v1568_v49, %v2844_v32 }
 0x1b8   : > { %v1004_v13 = vpop.f32.mrf.mxu2 }
 0x1b9   : > { %v1542_v25 = vpop.permute.xlu0 %1541  ;;  %v1544_v43 = vpop.permute.xlu1 %1543 }
 0x1ba   : > { %v894_v38 = vpop.f32.mrf.mxu1 }
 0x1bb   : > { %v1313_v61 = vsub.f32 %v894_v38, %v1002_v44 }
 0x1bd   : > { %v1445_v8 = vmul.f32 %v2779_v22, %v1313_v61 }
 0x1bf   : > { %v1447_v11 = vadd.f32 %v1445_v8, %v1309_v59  ;;  %v1567_v59 = vsel %vm1075_vm1, %v1565_v10, %v1530_v58 }
 0x1c0   : > { %v1007_v26 = vpop.f32.mrf.mxu2  ;;  %v1569_v6 = vsel %vm1078_vm2, %v1567_v59, %v1536_v39  ;;  %v1579_v39 = vmul.f32 %v1516_v23, %v1453_v57 }
 0x1c1   : > { %v1501_v9 = vpop.permute.xlu0 %1500  ;;  %v1548_v36 = vpop.permute.xlu1 %1547  ;;  %v1311_v2 = vadd.f32 %v1007_v26, %v889_v18  ;;  %v1571_v29 = vsel %vm1081_vm3, %v1569_v6, %v1542_v25  ;;  %v1441_v18 = vmul.f32 %v1435_v33, %v1313_v61 }
 0x1c2   : > { %v896_v17 = vpop.f32.mrf.mxu1  ;;  %v1019_v25 = vpop.f32.mrf.mxu3  ;;  %v1517_v12 = vsel %vm1090_vm6, %v1515_v40, %v1501_v9 }
 0x1c3   : > { %v1437_v14 = vmul.f32 %v2779_v22, %v1311_v2  ;;  %v1449_v4 = vmul.f32 %v1435_v33, %v1311_v2  ;;  %v1314_v28 = vsub.f32 %v896_v17, %v1004_v13  ;;  %v1573_v22 = vsel %vm1084_vm4, %v1571_v29, %v1548_v36 }
 0x1c4   : > { %v1454_v34 = vadd.f32 %v1019_v25, %v2823_v1  ;;  %v1588_v45 = vmul.f32 %v1517_v12, %v1456_v27 }
 0x1c5   : > { %v1439_v5 = vadd.f32 %v1437_v14, %v1301_v24  ;;  %v1451_v20 = vsub.f32 %v1447_v11, %v1449_v4  ;;  %v1446_v58 = vmul.f32 %v2784_v41, %v1314_v28 }
 0x1c6   : > { %v1580_v11 = vmul.f32 %v1517_v12, %v1454_v34 }
 0x1c7   : > { %v1443_v44 = vadd.f32 %v1441_v18, %v1439_v5  ;;  %v1448_v51 = vadd.f32 %v1446_v58, %v1310_v37  ;;  %v1589_v24 = vadd.f32 %v1587_v63, %v1451_v20  ;;  %v1572_v37 = vsel %vm1081_vm3, %v1570_v54, %v1544_v43 }
 0x1c8   : > { %v1009_v53 = vpop.f32.mrf.mxu2  ;;  %v1574_v7 = vsel %vm1084_vm4, %v1572_v37, %v1550_v3 }
 0x1c9   : > { %v1554_v30 = vpop.permute.xlu0 %1553  ;;  %v1581_v13 = vadd.f32 %v1579_v39, %v1443_v44  ;;  %v1312_v38 = vadd.f32 %v1009_v53, %v891_v47  ;;  %v1556_v60 = vpop.permute.xlu1 %1555  ;;  %v1442_v47 = vmul.f32 %v2809_v16, %v1314_v28 }
 0x1ca   : > { %v1575_v31 = vsel %vm1087_vm5, %v1573_v22, %v1554_v30  ;;  %v1576_v10 = vsel %vm1087_vm5, %v1574_v7, %v1556_v60 }
 0x1cb   : > { %v1577_v0 = vsel %vm1090_vm6, %v1575_v31, %v1560_v35  ;;  %v1438_v52 = vmul.f32 %v2784_v41, %v1312_v38  ;;  %v1450_v8 = vmul.f32 %v2809_v16, %v1312_v38 }
 0x1cc   : > { %v1583_v62 = vmul.f32 %v1577_v0, %v1455_v56  ;;  %v1591_v42 = vmul.f32 %v1577_v0, %v1453_v57 }
 0x1cd   : > { %v1440_v43 = vadd.f32 %v1438_v52, %v2850_v21  ;;  %v1452_v9 = vsub.f32 %v1448_v51, %v1450_v8 }
 0x1ce   : > { %v1585_v32 = vadd.f32 %v1583_v62, %v1581_v13  ;;  %v1593_v61 = vsub.f32 %v1589_v24, %v1591_v42 }
 0x1cf   : > { %v1444_v26 = vadd.f32 %v1442_v47, %v1440_v43  ;;  %v1590_v1 = vadd.f32 %v1588_v45, %v1452_v9 }
 0x1d0   : > { %1595 = vst [vmem:[%s532_s28] sm:$0xff] %v1585_v32 }
 0x1d1   : > { %1597 = vst [vmem:[%s538_s29] sm:$0xff] %v1593_v61  ;;  %v1562_v41 = vpop.permute.xlu0 %1561  ;;  %v1582_v33 = vadd.f32 %v1580_v11, %v1444_v26 }
 0x1d2   : > { %v1578_v55 = vsel %vm1090_vm6, %v1576_v10, %v1562_v41 }
 0x1d3   : > { %v1584_v48 = vmul.f32 %v1578_v55, %v1456_v27  ;;  %v1592_v3 = vmul.f32 %v1578_v55, %v1454_v34 }
 0x1d4   : > { %1609 = sbr.rel (!%p2235_p5) target bundleno = 481 (0x1e1), region = 170 }
 0x1d5   : > { %v1594_v16 = vsub.f32 %v1590_v1, %v1592_v3  ;;  %v1586_v50 = vadd.f32 %v1584_v48, %v1582_v33 }
 0x1d7   : > { %1598 = vst [vmem:[%s538_s29 + $0x8] sm:$0xff] %v1594_v16  ;;  %v1642_v21 = vld [vmem:[%s532_s28] sm:$0xff] (%p2235_p5) }
 0x1d8   : > { %1596 = vst [vmem:[%s532_s28 + $0x8] sm:$0xff] %v1586_v50 }
 0x1d9   : > { %1643 = vst [vmem:[%s1611_s25] sm:$0xff] %v1642_v21 }
 0x1df   : > { %v1644_v46 = vld [vmem:[%s532_s28 + $0x8] sm:$0xff] }
 0x1e0   : > { %1645 = vst [vmem:[%s1611_s25 + $0x10] sm:$0xff] %v1644_v46 }
 0x1e1 PF: > { %1651 = sbr.rel (!%p2235_p5) target bundleno = 488 (0x1e8), region = 208  ;;  %s1982_s26 = sshll.u32 (%p2235_p5), %s2216_s12, 3  ;;  %v1684_v36 = vld [vmem:[%s538_s29] sm:$0xff] (%p2235_p5) }
 0x1e2   : > { %s1653_s22 = scalar_lea.vmem (%p2235_p5), %s2942_s9, %s1982_s26 }
 0x1e3   : > { %1685 = vst [vmem:[%s1653_s22] sm:$0xff] (%p2235_p5), %v1684_v36 }
 0x1e6   : > { %v1686_v2 = vld [vmem:[%s538_s29 + $0x8] sm:$0xff] }
 0x1e7   : > { %1687 = vst [vmem:[%s1653_s22 + $0x10] sm:$0xff] %v1686_v2 }
 0x1e8 PF: > { %p17_p10 = scmp.ge.s32.totalorder %s2219_s13, 4   ;;  %s2945_s30 = smov %s2137_s10 }
 0x1e9   : > { %s2946_s10 = smov %s2229_s16  ;;  %s2947_s11 = smov %s2219_s13 }
 0x1ea   :  { %19 = sbr.rel (!%p17_p10) target bundleno = 2 (0x2), region = 317 }

// kernel: moco_recon_forward.11
= control target key start
LH: loop header
LB: loop body
LE: loop exit
PB: predicated region body
PF: predicated region fallthrough
CT: control target
= control target key end

     0   :  { %s2862_s13 = smov 0   ;;  %s2864_s14 = smov 0   ;;  %s3732_s0 = inlined_call_operand.vmem [shape: f32[16,256], index: 0, kind: input, shape index: {}]   ;;  %s3733_s1 = inlined_call_operand.vmem [shape: f32[16,256], index: 1, kind: input, shape index: {}]   ;;  %s3734_s2 = inlined_call_operand.vmem [shape: f32[4,16,16], index: 2, kind: input, shape index: {}]   ;;  %s3735_s3 = inlined_call_operand.vmem [shape: f32[4,16,16], index: 3, kind: input, shape index: {}]   ;;  %s3736_s4 = inlined_call_operand.vmem [shape: f32[16,256], index: 4, kind: input, shape index: {}]   ;;  %s3737_s5 = inlined_call_operand.vmem [shape: bf16[128,128], index: 5, kind: input, shape index: {}]   ;;  %s3738_s6 = inlined_call_operand.vmem [shape: bf16[128,128], index: 6, kind: input, shape index: {}]   ;;  %s3739_s7 = inlined_call_operand.vmem [shape: bf16[128,128], index: 7, kind: input, shape index: {}]   ;;  %s3740_s8 = inlined_call_operand.vmem [shape: bf16[128,128], index: 8, kind: input, shape index: {}]   ;;  %s3741_s9 = inlined_call_operand.vmem [shape: f32[16,256], index: 9, kind: output, shape index: {0}]   ;;  %s3742_s10 = inlined_call_operand.vmem [shape: f32[16,256], index: 10, kind: output, shape index: {1}]  }
   0x1   :  { %s2866_s15 = smov 0  }
   0x2 LB: > { %s2878_s16 = sadd.s32 4294967295, %s2798_s15   ;;  %s2881_s17 = sadd.s32 1, %s2798_s15   ;;  %s2798_s15 = sphi %s2866_s15, %s3747_s15   ;;  %s2794_s14 = sphi %s2864_s14, %s3746_s14   ;;  %s2790_s13 = sphi %s2862_s13, %s3745_s13  }
   0x3   : > { %s25_s18 = ssub.s32 %s2798_s15, %s2881_s17  ;;  %s28_s19 = sadd.s32 1, %s2794_s14 }
   0x4   : > { %p26_p0 = scmp.eq.s32.totalorder %s25_s18, 0  ;;  %p35_p1 = scmp.ne.s32.totalorder %s2794_s14, %s2790_s13 }
   0x5   : > { %p36_p2 = scmp.eq.s32.totalorder %s2798_s15, 0  ;;  %p243_p3 = scmp.eq.s32.totalorder %s2878_s16, 1 }
   0x6   : > { %s2891_s20 = scalar_select %p26_p0, %s2794_s14, %s28_s19  }
   0x7   : > { %p2893_p4 = por %p36_p2, %p35_p1  ;;  %p2897_p5 = por %p243_p3, %p35_p1 }
   0x8   : > { %p2284_p6 = scmp.ge.s32.totalorder %s2798_s15, 2 }
   0xa   : > { %309 = sbr.rel (%p2284_p6) target bundleno = 33 (0x21), region = 40 }
   0xf   : > { %312 = sbr.rel (!%p2893_p4) target bundleno = 21 (0x15), region = 44  ;;  %s314_s23 = sand.u32 (%p2893_p4), 1, %s2794_s14  }
  0x10   : > { %s2286_s24 = sshll.u32 (%p2893_p4), %s2798_s15, 3  ;;  %s2285_s25 = sshll.u32 (%p2893_p4), %s314_s23, 4 }
  0x11   : > { %s318_s28 = scalar_lea.vmem (%p2893_p4), %s3732_s0, %s2286_s24  ;;  %s316_s29 = scalar_lea.vmem (%p2893_p4), [#allocation3], %s2285_s25 }
  0x12   : > { %v349_v0 = vld [vmem:[%s318_s28] sm:$0xff] (%p2893_p4)  ;;  %v351_v1 = vld [vmem:[%s318_s28 + $0x10] sm:$0xff] (%p2893_p4) }
  0x13   : > { %350 = vst [vmem:[%s316_s29] sm:$0xff] (%p2893_p4), %v349_v0 }
  0x14   : > { %352 = vst [vmem:[%s316_s29 + $0x8] sm:$0xff] %v351_v1 }
  0x15 PF: > { %358 = sbr.rel (!%p2893_p4) target bundleno = 27 (0x1b), region = 82  ;;  %s360_s30 = sand.u32 (%p2893_p4), 1, %s2794_s14  }
  0x16   : > { %s2288_s11 = sshll.u32 (%p2893_p4), %s2798_s15, 3  ;;  %s2287_s12 = sshll.u32 (%p2893_p4), %s360_s30, 4 }
  0x17   : > { %s364_s23 = scalar_lea.vmem (%p2893_p4), %s3733_s1, %s2288_s11  ;;  %s362_s24 = scalar_lea.vmem (%p2893_p4), [#allocation4], %s2287_s12 }
  0x18   : > { %v395_v2 = vld [vmem:[%s364_s23] sm:$0xff] (%p2893_p4)  ;;  %v397_v3 = vld [vmem:[%s364_s23 + $0x10] sm:$0xff] (%p2893_p4) }
  0x19   : > { %396 = vst [vmem:[%s362_s24] sm:$0xff] (%p2893_p4), %v395_v2 }
  0x1a   : > { %398 = vst [vmem:[%s362_s24 + $0x8] sm:$0xff] %v397_v3 }
  0x1b PF: > { %404 = sbr.rel (!%p2893_p4) target bundleno = 33 (0x21), region = 120  ;;  %s406_s25 = sand.u32 (%p2893_p4), 1, %s2794_s14  }
  0x1c   : > { %s2290_s26 = sshll.u32 (%p2893_p4), %s2798_s15, 3  ;;  %s2289_s27 = sshll.u32 (%p2893_p4), %s406_s25, 4 }
  0x1d   : > { %s410_s30 = scalar_lea.vmem (%p2893_p4), %s3736_s4, %s2290_s26  ;;  %s408_s11 = scalar_lea.vmem (%p2893_p4), [#allocation5], %s2289_s27 }
  0x1e   : > { %v441_v4 = vld [vmem:[%s410_s30] sm:$0xff] (%p2893_p4)  ;;  %v443_v5 = vld [vmem:[%s410_s30 + $0x10] sm:$0xff] (%p2893_p4) }
  0x1f   : > { %442 = vst [vmem:[%s408_s11] sm:$0xff] (%p2893_p4), %v441_v4 }
  0x20   : > { %444 = vst [vmem:[%s408_s11 + $0x8] sm:$0xff] %v443_v5 }
  0x21 PF: > { %p2291_p7 = scmp.ge.s32.totalorder %s2798_s15, 1  ;;  %p449_p8 = scmp.lt.s32.totalorder %s2798_s15, 3 }
  0x23   : > { %p450_p9 = pnand %p2291_p7, %p449_p8 }
  0x24   : > { %s2800_s23 = smov (!%p450_p9), 16   ;;  %s2801_s15 = smov (!%p450_p9), 32  }
  0x25   : > { %453 = sbr.rel (%p450_p9) target bundleno = 1320 (0x528), region = 158  ;;  %s2802_s28 = smov (!%p450_p9), 48  }
  0x26   : > { %s2803_s29 = smov (!%p450_p9), 64   ;;  %s2804_s30 = smov (!%p450_p9), 80  }
  0x27   : > { %s2805_s11 = smov (!%p450_p9), 96   ;;  %s2806_s21 = smov (!%p450_p9), 112  }
  0x28   : > { %s456_s19 = sand.u32 (!%p450_p9), 1, %s2790_s13  }
  0x29   : > { %s3155_s13 = sshll.u32 (!%p450_p9), %s456_s19, 4 }
  0x2a   : > { %v2928_v6 = vld [vmem:[%s3735_s3 + $0x30] sm:$0xff]  ;;  %v2944_v8 = vld [vmem:[%s3735_s3 + $0x38] sm:$0xff]  ;;  %v3002_v10 = vld [vmem:[%s3734_s2 + $0x20] sm:$0xff]  ;;  %vm568_vm0 = vcmask 130048   ;;  %vm571_vm1 = vcmask 261120   ;;  %vm574_vm2 = vcmask 392192  }
  0x2b   : > { %v2933_v7 = vld [vmem:[%s3734_s2 + $0x30] sm:$0xff]  ;;  %959 = vrot.lane.b32.xlu1 %v2928_v6, %s2800_s23  ;;  %v2949_v9 = vld [vmem:[%s3734_s2 + $0x38] sm:$0xff]  ;;  %v3007_v11 = vld [vmem:[%s3734_s2 + $0x28] sm:$0xff]  ;;  %vm577_vm3 = vcmask 523264   ;;  %vm580_vm4 = vcmask 654336   ;;  %vm583_vm5 = vcmask 785408  }
  0x2c   : > { %716 = vrot.lane.b32.xlu0 %v2933_v7, %s2800_s23  ;;  %722 = vrot.lane.b32.xlu2 %v2933_v7, %s2801_s15  ;;  %v3018_v12 = vld [vmem:[%s3735_s3 + $0x28] sm:$0xff]  ;;  %v3023_v13 = vld [vmem:[%s3735_s3 + $0x20] sm:$0xff]  ;;  %vm586_vm6 = vcmask 916480   ;;  %s458_s24 = scalar_lea.vmem [#allocation3], %s3155_s13  ;;  %s465_s25 = scalar_lea.vmem [#allocation4], %s3155_s13 }
  0x2d   : > { %v3087_v31 = vld [vmem:[%s3734_s2 + $0x10] sm:$0xff]  ;;  %v3105_v36 = vld [vmem:[%s3734_s2 + $0x18] sm:$0xff]  ;;  %s511_s26 = scalar_lea.vmem [#allocation6], %s3155_s13 }
  0x2e   : > { %v3100_v35 = vld [vmem:[%s3735_s3 + $0x10] sm:$0xff]  ;;  %v3110_v37 = vld [vmem:[%s3735_s3 + $0x18] sm:$0xff] }
  0x33   : > { %961 = vrot.lane.b32.xlu1 %v2944_v8, %s2800_s23 }
  0x34   : > { %718 = vrot.lane.b32.xlu0 %v2949_v9, %s2800_s23  ;;  %724 = vrot.lane.b32.xlu2 %v2949_v9, %s2801_s15 }
  0x3b   : > { %967 = vrot.lane.b32.xlu1 %v2944_v8, %s2801_s15 }
  0x3c   : > { %965 = vrot.lane.b32.xlu0 %v2928_v6, %s2801_s15  ;;  %728 = vrot.lane.b32.xlu2 %v2933_v7, %s2802_s28 }
  0x43   : > { %971 = vrot.lane.b32.xlu1 %v2928_v6, %s2802_s28 }
  0x44   : > { %730 = vrot.lane.b32.xlu0 %v2949_v9, %s2802_s28  ;;  %973 = vrot.lane.b32.xlu2 %v2944_v8, %s2802_s28 }
  0x4b   : > { %736 = vrot.lane.b32.xlu1 %v2949_v9, %s2803_s29 }
  0x4c   : > { %734 = vrot.lane.b32.xlu0 %v2933_v7, %s2803_s29  ;;  %977 = vrot.lane.b32.xlu2 %v2928_v6, %s2803_s29 }
  0x53   : > { %740 = vrot.lane.b32.xlu1 %v2933_v7, %s2804_s30 }
  0x54   : > { %979 = vrot.lane.b32.xlu0 %v2944_v8, %s2803_s29  ;;  %742 = vrot.lane.b32.xlu2 %v2949_v9, %s2804_s30 }
  0x5b   : > { %985 = vrot.lane.b32.xlu1 %v2944_v8, %s2804_s30 }
  0x5c   : > { %983 = vrot.lane.b32.xlu0 %v2928_v6, %s2804_s30  ;;  %746 = vrot.lane.b32.xlu2 %v2933_v7, %s2805_s11 }
  0x63   : > { %989 = vrot.lane.b32.xlu1 %v2928_v6, %s2805_s11 }
  0x64   : > { %748 = vrot.lane.b32.xlu0 %v2949_v9, %s2805_s11  ;;  %991 = vrot.lane.b32.xlu2 %v2944_v8, %s2805_s11 }
  0x6b   : > { %754 = vrot.lane.b32.xlu1 %v2949_v9, %s2806_s21 }
  0x6c   : > { %752 = vrot.lane.b32.xlu0 %v2933_v7, %s2806_s21  ;;  %995 = vrot.lane.b32.xlu2 %v2928_v6, %s2806_s21 }
  0x73   : > { %655 = vrot.lane.b32.xlu1 %v3002_v10, %s2800_s23 }
  0x74   : > { %997 = vrot.lane.b32.xlu0 %v2944_v8, %s2806_s21  ;;  %657 = vrot.lane.b32.xlu2 %v3007_v11, %s2800_s23 }
  0x7b   : > { %900 = vrot.lane.b32.xlu1 %v3018_v12, %s2800_s23 }
  0x7c   : > { %898 = vrot.lane.b32.xlu0 %v3023_v13, %s2800_s23  ;;  %661 = vrot.lane.b32.xlu2 %v3002_v10, %s2801_s15 }
  0x83   : > { %904 = vrot.lane.b32.xlu1 %v3023_v13, %s2801_s15 }
  0x84   : > { %663 = vrot.lane.b32.xlu0 %v3007_v11, %s2801_s15  ;;  %906 = vrot.lane.b32.xlu2 %v3018_v12, %s2801_s15 }
  0x86   : > { %v723_v14 = vpop.permute.xlu2 %722 }
  0x8b   : > { %669 = vrot.lane.b32.xlu1 %v3007_v11, %s2802_s28 }
  0x8c   : > { %667 = vrot.lane.b32.xlu0 %v3002_v10, %s2802_s28  ;;  %910 = vrot.lane.b32.xlu2 %v3023_v13, %s2802_s28 }
  0x8e   : > { %v3043_v15 = vpop.permute.xlu2 %724 }
  0x93   : > { %673 = vrot.lane.b32.xlu1 %v3002_v10, %s2803_s29 }
  0x94   : > { %912 = vrot.lane.b32.xlu0 %v3018_v12, %s2802_s28  ;;  %675 = vrot.lane.b32.xlu2 %v3007_v11, %s2803_s29 }
  0x96   : > { %v3051_v16 = vpop.permute.xlu2 %728 }
  0x9b   : > { %918 = vrot.lane.b32.xlu1 %v3018_v12, %s2803_s29 }
  0x9c   : > { %916 = vrot.lane.b32.xlu0 %v3023_v13, %s2803_s29  ;;  %679 = vrot.lane.b32.xlu2 %v3002_v10, %s2804_s30 }
  0x9d   : > { %v960_v17 = vpop.permute.xlu1 %959 }
  0x9e   : > { %v717_v18 = vpop.permute.xlu0 %716  ;;  %v3061_v20 = vpop.permute.xlu2 %973  ;;  %v1001_v47 = vsel %vm568_vm0, %v2928_v6, %v960_v17 }
  0x9f   : > { %v758_v19 = vsel %vm568_vm0, %v2933_v7, %v717_v18 }
  0xa0   : > { %v760_v21 = vsel %vm571_vm1, %v758_v19, %v723_v14 }
  0xa1   : > { %v762_v52 = vsel %vm574_vm2, %v760_v21, %v3051_v16  ;;  %v3191_v16 = vld [vmem:[%s465_s25 + $0x8] sm:$0xff] }
  0xa3   : > { %922 = vrot.lane.b32.xlu1 %v3023_v13, %s2804_s30 }
  0xa4   : > { %681 = vrot.lane.b32.xlu0 %v3007_v11, %s2804_s30  ;;  %924 = vrot.lane.b32.xlu2 %v3018_v12, %s2804_s30 }
  0xa5   : > { %v962_v22 = vpop.permute.xlu1 %961 }
  0xa6   : > { %v719_v23 = vpop.permute.xlu0 %718  ;;  %v978_v24 = vpop.permute.xlu2 %977  ;;  %v1002_v48 = vsel %vm568_vm0, %v2944_v8, %v962_v22  ;;  %v3177_v8 = vld [vmem:[%s458_s24] sm:$0xff] }
  0xa7   : > { %v759_v49 = vsel %vm568_vm0, %v2949_v9, %v719_v23  ;;  %v3180_v9 = vld [vmem:[%s465_s25] sm:$0xff] }
  0xa8   : > { %v761_v54 = vsel %vm571_vm1, %v759_v49, %v3043_v15  ;;  %v3189_v15 = vld [vmem:[%s458_s24 + $0x8] sm:$0xff] }
  0xab   : > { %687 = vrot.lane.b32.xlu1 %v3007_v11, %s2805_s11 }
  0xac   : > { %685 = vrot.lane.b32.xlu0 %v3002_v10, %s2805_s11  ;;  %928 = vrot.lane.b32.xlu2 %v3023_v13, %s2805_s11 }
  0xad   : > { %v968_v25 = vpop.permute.xlu1 %967 }
  0xae   : > { %v966_v26 = vpop.permute.xlu0 %965  ;;  %v3076_v27 = vpop.permute.xlu2 %742  ;;  %v1004_v53 = vsel %vm571_vm1, %v1002_v48, %v968_v25 }
  0xaf   : > { %v1003_v50 = vsel %vm571_vm1, %v1001_v47, %v966_v26  ;;  %v1006_v0 = vsel %vm574_vm2, %v1004_v53, %v3061_v20 }
  0xb3   : > { %691 = vrot.lane.b32.xlu1 %v3002_v10, %s2806_s21 }
  0xb4   : > { %930 = vrot.lane.b32.xlu0 %v3018_v12, %s2805_s11  ;;  %693 = vrot.lane.b32.xlu2 %v3007_v11, %s2806_s21 }
  0xb5   : > { %v972_v28 = vpop.permute.xlu1 %971 }
  0xb6   : > { %v731_v29 = vpop.permute.xlu0 %730  ;;  %v747_v30 = vpop.permute.xlu2 %746  ;;  %v1005_v51 = vsel %vm574_vm2, %v1003_v50, %v972_v28 }
  0xb7   : > { %v763_v58 = vsel %vm574_vm2, %v761_v54, %v731_v29  ;;  %v1007_v59 = vsel %vm577_vm3, %v1005_v51, %v978_v24 }
  0xbb   : > { %936 = vrot.lane.b32.xlu1 %v3018_v12, %s2806_s21 }
  0xbc   : > { %934 = vrot.lane.b32.xlu0 %v3023_v13, %s2806_s21  ;;  %594 = vrot.lane.b32.xlu2 %v3087_v31, %s2800_s23 }
  0xbd   : > { %v737_v32 = vpop.permute.xlu1 %736 }
  0xbe   : > { %v735_v33 = vpop.permute.xlu0 %734  ;;  %v3095_v34 = vpop.permute.xlu2 %991  ;;  %v765_v62 = vsel %vm577_vm3, %v763_v58, %v737_v32  ;;  %v3257_v58 = vld [vmem:[%s3734_s2] sm:$0xff] }
  0xbf   : > { %v764_v55 = vsel %vm577_vm3, %v762_v52, %v735_v33  ;;  %v767_v4 = vsel %vm580_vm4, %v765_v62, %v3076_v27 }
  0xc3   : > { %837 = vrot.lane.b32.xlu1 %v3100_v35, %s2800_s23 }
  0xc4   : > { %596 = vrot.lane.b32.xlu0 %v3105_v36, %s2800_s23  ;;  %839 = vrot.lane.b32.xlu2 %v3110_v37, %s2800_s23 }
  0xc5   : > { %v741_v38 = vpop.permute.xlu1 %740 }
  0xc6   : > { %v980_v39 = vpop.permute.xlu0 %979  ;;  %v996_v40 = vpop.permute.xlu2 %995  ;;  %v766_v60 = vsel %vm580_vm4, %v764_v55, %v741_v38 }
  0xc7   : > { %v1008_v2 = vsel %vm577_vm3, %v1006_v0, %v980_v39  ;;  %v768_v3 = vsel %vm583_vm5, %v766_v60, %v747_v30  ;;  %v3273_v0 = vld [vmem:[%s3735_s3 + $0x8] sm:$0xff] }
  0xcb   : > { %602 = vrot.lane.b32.xlu1 %v3105_v36, %s2801_s15 }
  0xcc   : > { %600 = vrot.lane.b32.xlu0 %v3087_v31, %s2801_s15  ;;  %843 = vrot.lane.b32.xlu2 %v3100_v35, %s2801_s15 }
  0xcd   : > { %v986_v41 = vpop.permute.xlu1 %985 }
  0xce   : > { %v984_v42 = vpop.permute.xlu0 %983  ;;  %v3124_v43 = vpop.permute.xlu2 %657  ;;  %v1010_v5 = vsel %vm580_vm4, %v1008_v2, %v986_v41 }
  0xcf   : > { %v1009_v63 = vsel %vm580_vm4, %v1007_v59, %v984_v42  ;;  %v1012_v18 = vsel %vm583_vm5, %v1010_v5, %v3095_v34  ;;  %v3262_v59 = vld [vmem:[%s3735_s3] sm:$0xff] }
  0xd3   : > { %606 = vrot.lane.b32.xlu1 %v3087_v31, %s2802_s28 }
  0xd4   : > { %845 = vrot.lane.b32.xlu0 %v3110_v37, %s2801_s15  ;;  %608 = vrot.lane.b32.xlu2 %v3105_v36, %s2802_s28 }
  0xd5   : > { %v990_v44 = vpop.permute.xlu1 %989 }
  0xd6   : > { %v749_v45 = vpop.permute.xlu0 %748  ;;  %v3132_v46 = vpop.permute.xlu2 %661  ;;  %v1011_v1 = vsel %vm583_vm5, %v1009_v63, %v990_v44 }
  0xd7   : > { %v769_v7 = vsel %vm583_vm5, %v767_v4, %v749_v45  ;;  %v3183_v14 = vsel %vm586_vm6, %v1011_v1, %v996_v40 }
  0xd8   : > { %v1077_v23 = vmul.f32 %v3183_v14, %v3180_v9  ;;  %v1087_v24 = vmul.f32 %v3183_v14, %v3177_v8 }
  0xdb   : > { %851 = vrot.lane.b32.xlu1 %v3110_v37, %s2802_s28 }
  0xdc   : > { %849 = vrot.lane.b32.xlu0 %v3100_v35, %s2802_s28  ;;  %612 = vrot.lane.b32.xlu2 %v3087_v31, %s2803_s29 }
  0xdd   : > { %v755_v56 = vpop.permute.xlu1 %754 }
  0xde   : > { %v753_v57 = vpop.permute.xlu0 %752  ;;  %v3160_v61 = vpop.permute.xlu2 %906  ;;  %v3194_v17 = vsel %vm586_vm6, %v769_v7, %v755_v56 }
  0xdf   : > { %v3173_v6 = vsel %vm586_vm6, %v768_v3, %v753_v57  ;;  %v1076_v27 = vmul.f32 %v3194_v17, %v3189_v15  ;;  %v1086_v28 = vmul.f32 %v3194_v17, %v3191_v16  ;;  %v3252_v57 = vld [vmem:[%s3734_s2 + $0x8] sm:$0xff] }
  0xe0   : > { %v1075_v19 = vmul.f32 %v3173_v6, %v3177_v8  ;;  %v1085_v20 = vmul.f32 %v3173_v6, %v3180_v9 }
  0xe2   : > { %v1079_v32 = vsub.f32 %v1075_v19, %v1077_v23  ;;  %v1089_v33 = vadd.f32 %v1087_v24, %v1085_v20 }
  0xe3   : > { %855 = vrot.lane.b32.xlu1 %v3100_v35, %s2803_s29 }
  0xe4   : > { %614 = vrot.lane.b32.xlu0 %v3105_v36, %s2803_s29  ;;  %857 = vrot.lane.b32.xlu2 %v3110_v37, %s2803_s29 }
  0xe5   : > { %v3204_v21 = vpop.permute.xlu1 %655 }
  0xe6   : > { %v998_v22 = vpop.permute.xlu0 %997  ;;  %v3213_v26 = vpop.permute.xlu2 %910  ;;  %v697_v19 = vsel %vm568_vm0, %v3002_v10, %v3204_v21 }
  0xe7   : > { %v3211_v25 = vsel %vm586_vm6, %v1012_v18, %v998_v22  ;;  %v698_v18 = vsel %vm568_vm0, %v3007_v11, %v3124_v43  ;;  %v699_v23 = vsel %vm571_vm1, %v697_v19, %v3132_v46 }
  0xe8   : > { %v1078_v29 = vmul.f32 %v3211_v25, %v3191_v16  ;;  %v1088_v30 = vmul.f32 %v3211_v25, %v3189_v15 }
  0xea   : > { %v1080_v34 = vsub.f32 %v1076_v27, %v1078_v29  ;;  %v1090_v38 = vadd.f32 %v1088_v30, %v1086_v28 }
  0xeb   : > { %620 = vrot.lane.b32.xlu1 %v3105_v36, %s2804_s30 }
  0xec   : > { %v2668_v39 = vpack.c.bf16 %v1080_v34, %v1079_v32  ;;  %v2673_v40 = vpack.c.bf16 %v1090_v38, %v1089_v33  ;;  %618 = vrot.lane.b32.xlu0 %v3087_v31, %s2804_s30  ;;  %861 = vrot.lane.b32.xlu2 %v3100_v35, %s2804_s30 }
  0xed   : > { %v901_v41 = vpop.permute.xlu1 %900 }
  0xee   : > { %2720 = vst [vmem:[#allocation2 + $0x28] sm:$0xff] %v2668_v39   ;;  %v899_v42 = vpop.permute.xlu0 %898  ;;  %v676_v44 = vpop.permute.xlu2 %675  ;;  %v941_v11 = vsel %vm568_vm0, %v3018_v12, %v901_v41 }
  0xef   : > { %2721 = vst [vmem:[#allocation2 + $0x38] sm:$0xff] %v2673_v40   ;;  %v940_v43 = vsel %vm568_vm0, %v3023_v13, %v899_v42  ;;  %v943_v12 = vsel %vm571_vm1, %v941_v11, %v3160_v61 }
  0xf3   : > { %624 = vrot.lane.b32.xlu1 %v3087_v31, %s2805_s11 }
  0xf4   : > { %863 = vrot.lane.b32.xlu0 %v3110_v37, %s2804_s30  ;;  %626 = vrot.lane.b32.xlu2 %v3105_v36, %s2805_s11 }
  0xf5   : > { %v905_v45 = vpop.permute.xlu1 %904  ;;  %v2585_v50 = vld [vmem:[#allocation2 + $0x28] sm:$0xff] }
  0xf6   : > { %v664_v47 = vpop.permute.xlu0 %663  ;;  %v2586_v48 = vld [vmem:[#allocation2 + $0x38] sm:$0xff]  ;;  %v3235_v49 = vpop.permute.xlu2 %679  ;;  %v942_v10 = vsel %vm571_vm1, %v940_v43, %v905_v45 }
  0xf7   : > { %1223 = vmatpush.bf16.msra.mxu0 %v2586_v48  ;;  %2729 = vmatpush.bf16.msra.mxu2 %v2586_v48  ;;  %v700_v20 = vsel %vm571_vm1, %v698_v18, %v664_v47  ;;  %v944_v32 = vsel %vm574_vm2, %v942_v10, %v3213_v26 }
  0xfb   : > { %869 = vrot.lane.b32.xlu1 %v3110_v37, %s2805_s11  ;;  %1224 = vmatpush.bf16.msra.mxu0 %v2585_v50 }
  0xfc   : > { %867 = vrot.lane.b32.xlu0 %v3100_v35, %s2805_s11  ;;  %2730 = vmatpush.bf16.msra.mxu2 %v2585_v50 }
  0xfd   : > { %v670_v51 = vpop.permute.xlu1 %669  ;;  %630 = vrot.lane.b32.xlu2 %v3087_v31, %s2806_s21 }
  0xfe   : > { %v668_v52 = vpop.permute.xlu0 %667  ;;  %v925_v53 = vpop.permute.xlu2 %924  ;;  %v702_v22 = vsel %vm574_vm2, %v700_v20, %v670_v51 }
  0xff   : > { %v701_v21 = vsel %vm574_vm2, %v699_v23, %v668_v52  ;;  %v704_v24 = vsel %vm577_vm3, %v702_v22, %v676_v44 }
 0x103   : > { %873 = vrot.lane.b32.xlu1 %v3100_v35, %s2806_s21 }
 0x104   : > { %632 = vrot.lane.b32.xlu0 %v3105_v36, %s2806_s21 }
 0x105   : > { %v674_v54 = vpop.permute.xlu1 %673  ;;  %875 = vrot.lane.b32.xlu2 %v3110_v37, %s2806_s21 }
 0x106   : > { %v913_v55 = vpop.permute.xlu0 %912  ;;  %v929_v56 = vpop.permute.xlu2 %928  ;;  %v703_v29 = vsel %vm577_vm3, %v701_v21, %v674_v54 }
 0x107   : > { %v945_v33 = vsel %vm574_vm2, %v943_v12, %v913_v55  ;;  %v705_v34 = vsel %vm580_vm4, %v703_v29, %v3235_v49 }
 0x10b   : > { %528 = vrot.lane.b32.xlu1 %v3252_v57, %s2800_s23 }
 0x10c   : > { %526 = vrot.lane.b32.xlu0 %v3257_v58, %s2800_s23 }
 0x10d   : > { %v919_v60 = vpop.permute.xlu1 %918  ;;  %776 = vrot.lane.b32.xlu2 %v3262_v59, %s2800_s23 }
 0x10e   : > { %v917_v62 = vpop.permute.xlu0 %916  ;;  %v694_v63 = vpop.permute.xlu2 %693  ;;  %v947_v38 = vsel %vm577_vm3, %v945_v33, %v919_v60 }
 0x10f   : > { %v946_v39 = vsel %vm577_vm3, %v944_v32, %v917_v62  ;;  %v949_v26 = vsel %vm580_vm4, %v947_v38, %v925_v53 }
 0x113   : > { %532 = vrot.lane.b32.xlu1 %v3257_v58, %s2801_s15 }
 0x114   : > { %778 = vrot.lane.b32.xlu0 %v3273_v0, %s2800_s23  ;;  %s517_s23 = scalar_lea.vmem [#allocation7], %s3155_s13 }
 0x115   : > { %v923_v1 = vpop.permute.xlu1 %922  ;;  %534 = vrot.lane.b32.xlu2 %v3252_v57, %s2801_s15 }
 0x116   : > { %v682_v2 = vpop.permute.xlu0 %681  ;;  %v3281_v3 = vpop.permute.xlu2 %594  ;;  %v948_v40 = vsel %vm580_vm4, %v946_v39, %v923_v1 }
 0x117   : > { %v706_v46 = vsel %vm580_vm4, %v704_v24, %v682_v2  ;;  %v950_v44 = vsel %vm583_vm5, %v948_v40, %v929_v56 }
 0x11b   : > { %784 = vrot.lane.b32.xlu1 %v3273_v0, %s2801_s15 }
 0x11c   : > { %782 = vrot.lane.b32.xlu0 %v3262_v59, %s2801_s15 }
 0x11d   : > { %v688_v4 = vpop.permute.xlu1 %687  ;;  %538 = vrot.lane.b32.xlu2 %v3257_v58, %s2802_s28 }
 0x11e   : > { %v686_v5 = vpop.permute.xlu0 %685  ;;  %v3289_v7 = vpop.permute.xlu2 %839  ;;  %v708_v13 = vsel %vm583_vm5, %v706_v46, %v688_v4 }
 0x11f   : > { %v707_v41 = vsel %vm583_vm5, %v705_v34, %v686_v5  ;;  %v3331_v61 = vsel %vm586_vm6, %v708_v13, %v694_v63 }
 0x120   : > { %v1056_v45 = vmul.f32 %v3331_v61, %v3189_v15  ;;  %v1066_v47 = vmul.f32 %v3331_v61, %v3191_v16 }
 0x123   : > { %788 = vrot.lane.b32.xlu1 %v3262_v59, %s2802_s28 }
 0x124   : > { %540 = vrot.lane.b32.xlu0 %v3252_v57, %s2802_s28 }
 0x125   : > { %v692_v27 = vpop.permute.xlu1 %691  ;;  %790 = vrot.lane.b32.xlu2 %v3273_v0, %s2802_s28 }
 0x126   : > { %v931_v28 = vpop.permute.xlu0 %930  ;;  %v3316_v30 = vpop.permute.xlu2 %843  ;;  %v3334_v42 = vsel %vm586_vm6, %v707_v41, %v692_v27 }
 0x127   : > { %v951_v48 = vsel %vm583_vm5, %v949_v26, %v931_v28  ;;  %v1055_v51 = vmul.f32 %v3334_v42, %v3177_v8  ;;  %v1065_v52 = vmul.f32 %v3334_v42, %v3180_v9 }
 0x12b   : > { %546 = vrot.lane.b32.xlu1 %v3252_v57, %s2803_s29 }
 0x12c   : > { %544 = vrot.lane.b32.xlu0 %v3257_v58, %s2803_s29 }
 0x12d   : > { %v937_v49 = vpop.permute.xlu1 %936  ;;  %794 = vrot.lane.b32.xlu2 %v3262_v59, %s2803_s29 }
 0x12e   : > { %v935_v50 = vpop.permute.xlu0 %934  ;;  %v3354_v53 = vsel %vm586_vm6, %v951_v48, %v937_v49  ;;  %v3359_v55 = vpop.permute.xlu2 %608 }
 0x12f   : > { %v3357_v54 = vsel %vm586_vm6, %v950_v44, %v935_v50  ;;  %v1058_v56 = vmul.f32 %v3354_v53, %v3191_v16  ;;  %v1068_v60 = vmul.f32 %v3354_v53, %v3189_v15  ;;  %v636_v44 = vsel %vm568_vm0, %v3087_v31, %v3281_v3 }
 0x130   : > { %v1057_v62 = vmul.f32 %v3357_v54, %v3180_v9  ;;  %v1067_v63 = vmul.f32 %v3357_v54, %v3177_v8 }
 0x131   : > { %v1060_v1 = vsub.f32 %v1056_v45, %v1058_v56  ;;  %v1070_v2 = vadd.f32 %v1068_v60, %v1066_v47  ;;  %v880_v45 = vsel %vm568_vm0, %v3110_v37, %v3289_v7 }
 0x132   : > { %v1059_v4 = vsub.f32 %v1055_v51, %v1057_v62  ;;  %v1069_v5 = vadd.f32 %v1067_v63, %v1065_v52 }
 0x133   : > { %550 = vrot.lane.b32.xlu1 %v3257_v58, %s2804_s30 }
 0x134   : > { %v2658_v18 = vpack.c.bf16 %v1060_v1, %v1059_v4  ;;  %v2663_v19 = vpack.c.bf16 %v1070_v2, %v1069_v5  ;;  %796 = vrot.lane.b32.xlu0 %v3273_v0, %s2803_s29 }
 0x135   : > { %v838_v20 = vpop.permute.xlu1 %837  ;;  %552 = vrot.lane.b32.xlu2 %v3252_v57, %s2804_s30 }
 0x136   : > { %2718 = vst [vmem:[#allocation2 + $0x8] sm:$0xff] %v2658_v18   ;;  %v597_v22 = vpop.permute.xlu0 %596  ;;  %v613_v23 = vpop.permute.xlu2 %612  ;;  %v879_v51 = vsel %vm568_vm0, %v3100_v35, %v838_v20 }
 0x137   : > { %2719 = vst [vmem:[#allocation2 + $0x20] sm:$0xff] %v2663_v19   ;;  %v637_v52 = vsel %vm568_vm0, %v3105_v36, %v597_v22  ;;  %v881_v62 = vsel %vm571_vm1, %v879_v51, %v3316_v30 }
 0x13b   : > { %802 = vrot.lane.b32.xlu1 %v3273_v0, %s2804_s30 }
 0x13c   : > { %800 = vrot.lane.b32.xlu0 %v3262_v59, %s2804_s30 }
 0x13d   : > { %v603_v11 = vpop.permute.xlu1 %602  ;;  %556 = vrot.lane.b32.xlu2 %v3257_v58, %s2805_s11  ;;  %v2583_v24 = vld [vmem:[#allocation2 + $0x8] sm:$0xff] }
 0x13e   : > { %v601_v43 = vpop.permute.xlu0 %600  ;;  %v2584_v10 = vld [vmem:[#allocation2 + $0x20] sm:$0xff]  ;;  %v858_v21 = vpop.permute.xlu2 %857  ;;  %v639_v31 = vsel %vm571_vm1, %v637_v52, %v603_v11 }
 0x13f   : > { %1225 = vmatpush.bf16.msra.mxu0 %v2584_v10  ;;  %2731 = vmatpush.bf16.msra.mxu2 %v2584_v10  ;;  %v638_v47 = vsel %vm571_vm1, %v636_v44, %v601_v43  ;;  %v641_v36 = vsel %vm574_vm2, %v639_v31, %v3359_v55 }
 0x143   : > { %806 = vrot.lane.b32.xlu1 %v3262_v59, %s2805_s11  ;;  %1226 = vmatpush.bf16.msra.mxu0 %v2583_v24 }
 0x144   : > { %558 = vrot.lane.b32.xlu0 %v3252_v57, %s2805_s11  ;;  %2732 = vmatpush.bf16.msra.mxu2 %v2583_v24 }
 0x145   : > { %v607_v27 = vpop.permute.xlu1 %606  ;;  %808 = vrot.lane.b32.xlu2 %v3273_v0, %s2805_s11 }
 0x146   : > { %v846_v28 = vpop.permute.xlu0 %845  ;;  %v862_v29 = vpop.permute.xlu2 %861  ;;  %v640_v48 = vsel %vm574_vm2, %v638_v47, %v607_v27 }
 0x147   : > { %v882_v49 = vsel %vm571_vm1, %v880_v45, %v846_v28  ;;  %v642_v3 = vsel %vm577_vm3, %v640_v48, %v613_v23 }
 0x14b   : > { %564 = vrot.lane.b32.xlu1 %v3252_v57, %s2806_s21 }
 0x14c   : > { %562 = vrot.lane.b32.xlu0 %v3257_v58, %s2806_s21 }
 0x14d   : > { %v852_v46 = vpop.permute.xlu1 %851  ;;  %812 = vrot.lane.b32.xlu2 %v3262_v59, %s2806_s21 }
 0x14e   : > { %v850_v12 = vpop.permute.xlu0 %849  ;;  %v627_v13 = vpop.permute.xlu2 %626  ;;  %v884_v50 = vsel %vm574_vm2, %v882_v49, %v852_v46 }
 0x14f   : > { %v886_v7 = vsel %vm577_vm3, %v884_v50, %v858_v21  ;;  %v883_v1 = vsel %vm574_vm2, %v881_v62, %v850_v12 }
 0x154   : > { %814 = vrot.lane.b32.xlu0 %v3273_v0, %s2806_s21  ;;  %s472_s21 = scalar_lea.vmem [#allocation5], %s3155_s13  ;;  %s2567_s13 = sshll.u32 (%p2897_p5), %s2878_s16, 3 }
 0x155   : > { %v856_v32 = vpop.permute.xlu1 %855  ;;  %s2081_s29 = scalar_lea.vmem (%p2897_p5), %s3741_s9, %s2567_s13 }
 0x156   : > { %v615_v33 = vpop.permute.xlu0 %614  ;;  %v885_v5 = vsel %vm577_vm3, %v883_v1, %v856_v32 }
 0x157   : > { %v631_v34 = vpop.permute.xlu2 %630  ;;  %v643_v18 = vsel %vm577_vm3, %v641_v36, %v615_v33  ;;  %v887_v22 = vsel %vm580_vm4, %v885_v5, %v862_v29 }
 0x15d   : > { %v621_v38 = vpop.permute.xlu1 %620 }
 0x15e   : > { %v619_v39 = vpop.permute.xlu0 %618  ;;  %v645_v19 = vsel %vm580_vm4, %v643_v18, %v621_v38 }
 0x15f   : > { %v876_v26 = vpop.permute.xlu2 %875  ;;  %v644_v60 = vsel %vm580_vm4, %v642_v3, %v619_v39  ;;  %v647_v55 = vsel %vm583_vm5, %v645_v19, %v627_v13 }
 0x165   : > { %v625_v40 = vpop.permute.xlu1 %624 }
 0x166   : > { %v864_v41 = vpop.permute.xlu0 %863  ;;  %v646_v63 = vsel %vm583_vm5, %v644_v60, %v625_v40 }
 0x167   : > { %v888_v35 = vsel %vm580_vm4, %v886_v7, %v864_v41  ;;  %v777_v4 = vpop.permute.xlu2 %776  ;;  %v3425_v30 = vsel %vm586_vm6, %v646_v63, %v631_v34 }
 0x168   : > { %v1035_v23 = vmul.f32 %v3425_v30, %v3177_v8  ;;  %v1045_v11 = vmul.f32 %v3425_v30, %v3180_v9 }
 0x16d   : > { %v870_v56 = vpop.permute.xlu1 %869 }
 0x16e   : > { %v868_v37 = vpop.permute.xlu0 %867  ;;  %v890_v2 = vsel %vm583_vm5, %v888_v35, %v870_v56 }
 0x16f   : > { %v3428_v20 = vsel %vm586_vm6, %v890_v2, %v876_v26  ;;  %v889_v43 = vsel %vm583_vm5, %v887_v22, %v868_v37  ;;  %v535_v40 = vpop.permute.xlu2 %534 }
 0x170   : > { %v1038_v24 = vmul.f32 %v3428_v20, %v3191_v16  ;;  %v1048_v27 = vmul.f32 %v3428_v20, %v3189_v15 }
 0x175   : > { %v874_v10 = vpop.permute.xlu1 %873 }
 0x176   : > { %v633_v21 = vpop.permute.xlu0 %632  ;;  %v3442_v28 = vsel %vm586_vm6, %v889_v43, %v874_v10 }
 0x177   : > { %v3445_v29 = vsel %vm586_vm6, %v647_v55, %v633_v21  ;;  %v1037_v46 = vmul.f32 %v3442_v28, %v3180_v9  ;;  %v1047_v12 = vmul.f32 %v3442_v28, %v3177_v8  ;;  %v539_v47 = vpop.permute.xlu2 %538 }
 0x178   : > { %v1036_v13 = vmul.f32 %v3445_v29, %v3189_v15  ;;  %v1046_v32 = vmul.f32 %v3445_v29, %v3191_v16 }
 0x179   : > { %v1039_v33 = vsub.f32 %v1035_v23, %v1037_v46  ;;  %v1049_v34 = vadd.f32 %v1047_v12, %v1045_v11  ;;  %v818_v23 = vsel %vm568_vm0, %v3262_v59, %v777_v4 }
 0x17a   : > { %v1040_v38 = vsub.f32 %v1036_v13, %v1038_v24  ;;  %v1050_v39 = vadd.f32 %v1048_v27, %v1046_v32 }
 0x17c   : > { %v2648_v41 = vpack.c.bf16 %v1040_v38, %v1039_v33  ;;  %v2653_v26 = vpack.c.bf16 %v1050_v39, %v1049_v34 }
 0x17d   : > { %v529_v44 = vpop.permute.xlu1 %528 }
 0x17e   : > { %2716 = vst [vmem:[#allocation2 + $0x18] sm:$0xff] %v2648_v41   ;;  %v527_v45 = vpop.permute.xlu0 %526  ;;  %v570_v43 = vsel %vm568_vm0, %v3252_v57, %v529_v44 }
 0x17f   : > { %2717 = vst [vmem:[#allocation2 + $0x10] sm:$0xff] %v2653_v26   ;;  %v791_v3 = vpop.permute.xlu2 %790  ;;  %v569_v55 = vsel %vm568_vm0, %v3257_v58, %v527_v45  ;;  %v573_v46 = vsel %vm571_vm1, %v570_v43, %v535_v40  ;;  %v2601_v43 = vld [vmem:[%s3740_s8 + $0x30] sm:$0xff] }
 0x185   : > { %v533_v48 = vpop.permute.xlu1 %532  ;;  %v2581_v51 = vld [vmem:[#allocation2 + $0x18] sm:$0xff] }
 0x186   : > { %v779_v49 = vpop.permute.xlu0 %778  ;;  %v2582_v50 = vld [vmem:[#allocation2 + $0x10] sm:$0xff]  ;;  %v572_v11 = vsel %vm571_vm1, %v569_v55, %v533_v48  ;;  %v2602_v55 = vld [vmem:[%s3740_s8 + $0x38] sm:$0xff] }
 0x187   : > { %1227 = vmatpush.bf16.msra.mxu0 %v2582_v50  ;;  %2733 = vmatpush.bf16.msra.mxu2 %v2582_v50  ;;  %v795_v7 = vpop.permute.xlu2 %794  ;;  %v819_v24 = vsel %vm568_vm0, %v3273_v0, %v779_v49  ;;  %v575_v27 = vsel %vm574_vm2, %v572_v11, %v539_v47  ;;  %v2593_v11 = vld [vmem:[%s3739_s7 + $0x30] sm:$0xff] }
 0x18b   : > { %1228 = vmatpush.bf16.msra.mxu0 %v2581_v51  ;;  %2734 = vmatpush.bf16.msra.mxu2 %v2581_v51 }
 0x18d   : > { %v785_v52 = vpop.permute.xlu1 %784 }
 0x18e   : > { %v783_v31 = vpop.permute.xlu0 %782  ;;  %v821_v58 = vsel %vm571_vm1, %v819_v24, %v785_v52  ;;  %v2573_v24 = vld [vmem:[%s3737_s5 + $0x10] sm:$0xff] }
 0x18f   : > { %v553_v63 = vpop.permute.xlu2 %552  ;;  %v820_v10 = vsel %vm571_vm1, %v818_v23, %v783_v31  ;;  %v823_v0 = vsel %vm574_vm2, %v821_v58, %v791_v3  ;;  %v2594_v23 = vld [vmem:[%s3739_s7 + $0x38] sm:$0xff]  ;;  %v2577_v58 = vld [vmem:[%s3737_s5 + $0x30] sm:$0xff] }
 0x190   : > { %1344 = vmatpush.bf16.msra.mxu1 %v2594_v23  ;;  %2737 = vmatpush.bf16.msra.mxu3 %v2594_v23  ;;  %v1506_v23 = vld [vmem:[%s472_s21] sm:$0xff] }
 0x194   : > { %1345 = vmatpush.bf16.msra.mxu1 %v2593_v11  ;;  %2738 = vmatpush.bf16.msra.mxu3 %v2593_v11  ;;  %v1507_v11 = vld [vmem:[%s472_s21 + $0x8] sm:$0xff] }
 0x195   : > { %v789_v56 = vpop.permute.xlu1 %788 }
 0x196   : > { %v541_v37 = vpop.permute.xlu0 %540  ;;  %v822_v21 = vsel %vm574_vm2, %v820_v10, %v789_v56  ;;  %v2592_v10 = vld [vmem:[%s3739_s7 + $0x28] sm:$0xff] }
 0x197   : > { %v557_v1 = vpop.permute.xlu2 %556  ;;  %v576_v12 = vsel %vm574_vm2, %v573_v46, %v541_v37  ;;  %v824_v57 = vsel %vm577_vm3, %v822_v21, %v795_v7  ;;  %v2600_v21 = vld [vmem:[%s3740_s8 + $0x28] sm:$0xff]  ;;  %v2599_v46 = vld [vmem:[%s3740_s8 + $0x20] sm:$0xff] }
 0x198   : > { %1346 = vmatpush.bf16.msra.mxu1 %v2592_v10  ;;  %2739 = vmatpush.bf16.msra.mxu3 %v2592_v10  ;;  %v3584_v10 = vmul.f32 %v1506_v23, %v1506_v23 }
 0x19d   : > { %v547_v60 = vpop.permute.xlu1 %546 }
 0x19e   : > { %v545_v62 = vpop.permute.xlu0 %544  ;;  %v579_v32 = vsel %vm577_vm3, %v576_v12, %v547_v60  ;;  %v2574_v12 = vld [vmem:[%s3737_s5 + $0x18] sm:$0xff] }
 0x19f   : > { %v809_v19 = vpop.permute.xlu2 %808  ;;  %v578_v59 = vsel %vm577_vm3, %v575_v27, %v545_v62  ;;  %v582_v26 = vsel %vm580_vm4, %v579_v32, %v553_v63  ;;  %v2591_v27 = vld [vmem:[%s3739_s7 + $0x20] sm:$0xff]  ;;  %v2597_v32 = vld [vmem:[%s3740_s8 + $0x10] sm:$0xff] }
 0x1a0   : > { %1347 = vmatpush.bf16.msra.mxu1 %v2591_v27  ;;  %2740 = vmatpush.bf16.msra.mxu3 %v2591_v27 }
 0x1a5   : > { %v551_v35 = vpop.permute.xlu1 %550 }
 0x1a6   : > { %v797_v36 = vpop.permute.xlu0 %796  ;;  %v581_v13 = vsel %vm580_vm4, %v578_v59, %v551_v35  ;;  %v2590_v59 = vld [vmem:[%s3739_s7 + $0x18] sm:$0xff] }
 0x1a7   : > { %v813_v38 = vpop.permute.xlu2 %812  ;;  %v825_v39 = vsel %vm577_vm3, %v823_v0, %v797_v36  ;;  %v584_v40 = vsel %vm583_vm5, %v581_v13, %v557_v1  ;;  %1348 = vmatpush.bf16.msra.mxu1 %v2590_v59  ;;  %2741 = vmatpush.bf16.msra.mxu3 %v2590_v59  ;;  %v2589_v13 = vld [vmem:[%s3739_s7 + $0x10] sm:$0xff]  ;;  %v2596_v0 = vld [vmem:[%s3740_s8 + $0x8] sm:$0xff] }
 0x1ab   : > { %1349 = vmatpush.bf16.msra.mxu1 %v2589_v13  ;;  %2742 = vmatpush.bf16.msra.mxu3 %v2589_v13 }
 0x1ad   : > { %v803_v2 = vpop.permute.xlu1 %802 }
 0x1ae   : > { %v801_v5 = vpop.permute.xlu0 %800  ;;  %v827_v44 = vsel %vm580_vm4, %v825_v39, %v803_v2 }
 0x1af   : > { %v826_v33 = vsel %vm580_vm4, %v824_v57, %v801_v5  ;;  %v829_v50 = vsel %vm583_vm5, %v827_v44, %v809_v19  ;;  %v2571_v19 = vld [vmem:[%s3737_s5] sm:$0xff]  ;;  %v2578_v57 = vld [vmem:[%s3737_s5 + $0x38] sm:$0xff] }
 0x1b5   : > { %v807_v22 = vpop.permute.xlu1 %806 }
 0x1b6   : > { %v559_v18 = vpop.permute.xlu0 %558  ;;  %v828_v34 = vsel %vm583_vm5, %v826_v33, %v807_v22  ;;  %v2576_v22 = vld [vmem:[%s3737_s5 + $0x28] sm:$0xff] }
 0x1b7   : > { %v585_v47 = vsel %vm583_vm5, %v582_v26, %v559_v18  ;;  %v3486_v48 = vsel %vm586_vm6, %v828_v34, %v813_v38  ;;  %v2588_v33 = vld [vmem:[%s3739_s7 + $0x8] sm:$0xff]  ;;  %v2587_v34 = vld [vmem:[%s3739_s7] sm:$0xff] }
 0x1b8   : > { %v1017_v3 = vmul.f32 %v3486_v48, %v3180_v9  ;;  %v1027_v56 = vmul.f32 %v3486_v48, %v3177_v8  ;;  %1350 = vmatpush.bf16.msra.mxu1 %v2588_v33  ;;  %2743 = vmatpush.bf16.msra.mxu3 %v2588_v33  ;;  %v2595_v38 = vld [vmem:[%s3740_s8] sm:$0xff] }
 0x1bc   : > { %1351 = vmatpush.bf16.msra.mxu1 %v2587_v34  ;;  %2744 = vmatpush.bf16.msra.mxu3 %v2587_v34 }
 0x1bd   : > { %v565_v41 = vpop.permute.xlu1 %564 }
 0x1be   : > { %v563_v4 = vpop.permute.xlu0 %562  ;;  %v3489_v49 = vsel %vm586_vm6, %v585_v47, %v565_v41 }
 0x1bf   : > { %v3482_v45 = vsel %vm586_vm6, %v584_v40, %v563_v4  ;;  %v1016_v7 = vmul.f32 %v3489_v49, %v3189_v15  ;;  %v1026_v60 = vmul.f32 %v3489_v49, %v3191_v16  ;;  %v2598_v4 = vld [vmem:[%s3740_s8 + $0x18] sm:$0xff] }
 0x1c0   : > { %v1015_v51 = vmul.f32 %v3482_v45, %v3177_v8  ;;  %v1025_v52 = vmul.f32 %v3482_v45, %v3180_v9 }
 0x1c2   : > { %v1019_v35 = vsub.f32 %v1015_v51, %v1017_v3  ;;  %v1029_v9 = vadd.f32 %v1027_v56, %v1025_v52 }
 0x1c6   : > { %v815_v31 = vpop.permute.xlu0 %814 }
 0x1c7   : > { %v3501_v37 = vsel %vm586_vm6, %v829_v50, %v815_v31 }
 0x1c8   : > { %v1018_v62 = vmul.f32 %v3501_v37, %v3191_v16  ;;  %v1028_v63 = vmul.f32 %v3501_v37, %v3189_v15  ;;  %v2575_v15 = vld [vmem:[%s3737_s5 + $0x20] sm:$0xff]  ;;  %v2572_v16 = vld [vmem:[%s3737_s5 + $0x8] sm:$0xff] }
 0x1ca   : > { %v1020_v36 = vsub.f32 %v1016_v7, %v1018_v62  ;;  %v1030_v1 = vadd.f32 %v1028_v63, %v1026_v60 }
 0x1cc   : > { %v2638_v8 = vpack.c.bf16 %v1020_v36, %v1019_v35  ;;  %v2643_v2 = vpack.c.bf16 %v1030_v1, %v1029_v9 }
 0x1ce   : > { %2639 = vst [vmem:[#allocation2 + $0x30] sm:$0xff] %v2638_v8  }
 0x1cf   : > { %2715 = vst [vmem:[#allocation2] sm:$0xff] %v2643_v2  }
 0x1d5   : > { %v2579_v18 = vld [vmem:[#allocation2 + $0x30] sm:$0xff] }
 0x1d6   : > { %v2580_v5 = vld [vmem:[#allocation2] sm:$0xff] }
 0x1d7   : > { %1229 = vmatpush.bf16.msra.mxu0 %v2580_v5  ;;  %2735 = vmatpush.bf16.msra.mxu2 %v2580_v5 }
 0x1db   : > { %1230 = vmatpush.bf16.msra.mxu0 %v2579_v18  ;;  %2736 = vmatpush.bf16.msra.mxu2 %v2579_v18 }
 0x1de   : > { %1231 = vmatmul.bf16.vlgmr.msra.gmra.mxu0 %v2571_v19  ;;  %1251 = vmatmul.bf16.vlgmr.msra.gmra.mxu2 %v2575_v15 }
 0x1df   : > { %1457 = vmatpush.bf16.msrb.mxu2 %v2602_v55 }
 0x1e3   : > { %1458 = vmatpush.bf16.msrb.mxu2 %v2601_v43 }
 0x1e7   : > { %1459 = vmatpush.bf16.msrb.mxu2 %v2600_v21 }
 0x1eb   : > { %1460 = vmatpush.bf16.msrb.mxu2 %v2599_v46 }
 0x1ee   : > { %1236 = vmatmul.bf16.gmra.mxu0 %v2572_v16  ;;  %1256 = vmatmul.bf16.gmra.mxu2 %v2576_v22 }
 0x1ef   : > { %1461 = vmatpush.bf16.msrb.mxu2 %v2598_v4 }
 0x1f3   : > { %1462 = vmatpush.bf16.msrb.mxu2 %v2597_v32 }
 0x1f7   : > { %1463 = vmatpush.bf16.msrb.mxu2 %v2596_v0 }
 0x1fb   : > { %1464 = vmatpush.bf16.msrb.mxu2 %v2595_v38 }
 0x1fe   : > { %1241 = vmatmul.bf16.gmra.mxu0 %v2573_v24  ;;  %1261 = vmatmul.bf16.gmra.mxu2 %v2577_v58  ;;  %v3586_v24 = vmul.f32 %v1507_v11, %v1507_v11 }
 0x20e   : > { %1246 = vmatmul.bf16.gmra.mxu0 %v2574_v12  ;;  %1266 = vmatmul.bf16.gmra.mxu2 %v2578_v57 }
 0x25b   : > { %v1232_v39 = vpop.f32.mrf.mxu0 }
 0x261   : > { %v1252_v26 = vpop.f32.mrf.mxu2 }
 0x263   : > { %v1234_v40 = vpop.f32.mrf.mxu0 }
 0x264   : > { %v1272_v41 = vpack.c.bf16 %v1234_v40, %v1232_v39 }
 0x266   : > { %1352 = vmatmul.bf16.vlgmr.msra.gmra.mxu1 %v1272_v41  ;;  %1465 = vmatmul.bf16.vlgmr.msrb.gmra.mxu2 %v1272_v41 }
 0x269   : > { %v1254_v47 = vpop.f32.mrf.mxu2 }
 0x26a   : > { %v1276_v50 = vpack.c.bf16 %v1254_v47, %v1252_v26 }
 0x26b   : > { %v1237_v44 = vpop.f32.mrf.mxu0 }
 0x26c   : > { %1372 = vmatmul.bf16.vlgmr.msra.gmra.mxu3 %v1276_v50 }
 0x271   : > { %v1257_v31 = vpop.f32.mrf.mxu2 }
 0x273   : > { %v1239_v51 = vpop.f32.mrf.mxu0 }
 0x274   : > { %v1273_v52 = vpack.c.bf16 %v1239_v51, %v1237_v44 }
 0x276   : > { %1357 = vmatmul.bf16.gmra.mxu1 %v1273_v52  ;;  %1470 = vmatmul.bf16.gmra.mxu2 %v1273_v52 }
 0x279   : > { %v1259_v56 = vpop.f32.mrf.mxu2 }
 0x27a   : > { %v1277_v7 = vpack.c.bf16 %v1259_v56, %v1257_v31 }
 0x27b   : > { %v1242_v3 = vpop.f32.mrf.mxu0 }
 0x27c   : > { %1377 = vmatmul.bf16.gmra.mxu3 %v1277_v7 }
 0x281   : > { %v1262_v63 = vpop.f32.mrf.mxu2 }
 0x283   : > { %v1244_v60 = vpop.f32.mrf.mxu0 }
 0x284   : > { %v1274_v62 = vpack.c.bf16 %v1244_v60, %v1242_v3 }
 0x286   : > { %1362 = vmatmul.bf16.gmra.mxu1 %v1274_v62  ;;  %1475 = vmatmul.bf16.gmra.mxu2 %v1274_v62 }
 0x289   : > { %v1264_v9 = vpop.f32.mrf.mxu2 }
 0x28a   : > { %v1278_v36 = vpack.c.bf16 %v1264_v9, %v1262_v63 }
 0x28b   : > { %v1247_v35 = vpop.f32.mrf.mxu0 }
 0x28c   : > { %1382 = vmatmul.bf16.gmra.mxu3 %v1278_v36 }
 0x291   : > { %v1267_v2 = vpop.f32.mrf.mxu2 }
 0x293   : > { %v1249_v1 = vpop.f32.mrf.mxu0 }
 0x294   : > { %v1275_v8 = vpack.c.bf16 %v1249_v1, %v1247_v35 }
 0x296   : > { %1367 = vmatmul.bf16.gmra.mxu1 %v1275_v8  ;;  %1480 = vmatmul.bf16.gmra.mxu2 %v1275_v8 }
 0x299   : > { %v1269_v5 = vpop.f32.mrf.mxu2 }
 0x29a   : > { %v1279_v18 = vpack.c.bf16 %v1269_v5, %v1267_v2 }
 0x29c   : > { %1387 = vmatmul.bf16.gmra.mxu3 %v1279_v18 }
 0x2a6   : > { %1485 = vmatmul.bf16.gmra.mxu2 %v1276_v50 }
 0x2b6   : > { %1490 = vmatmul.bf16.gmra.mxu2 %v1277_v7 }
 0x2c6   : > { %1495 = vmatmul.bf16.gmra.mxu2 %v1278_v36 }
 0x2d6   : > { %1500 = vmatmul.bf16.gmra.mxu2 %v1279_v18 }
 0x2e3   : > { %v1353_v19 = vpop.f32.mrf.mxu1 }
 0x2e9   : > { %v1466_v15 = vpop.f32.mrf.mxu2 }
 0x2eb   : > { %v1355_v16 = vpop.f32.mrf.mxu1 }
 0x2ef   : > { %v1373_v40 = vpop.f32.mrf.mxu3 }
 0x2f1   : > { %v1468_v22 = vpop.f32.mrf.mxu2 }
 0x2f3   : > { %v1358_v55 = vpop.f32.mrf.mxu1 }
 0x2f4   : > { %v1518_v21 = vadd.f32 %v1466_v15, %v1358_v55 }
 0x2f6   : > { %v1520_v58 = vmul.f32 %v1518_v21, %v3584_v10 }
 0x2f7   : > { %v1375_v44 = vpop.f32.mrf.mxu3 }
 0x2f9   : > { %v1471_v43 = vpop.f32.mrf.mxu2 }
 0x2fa   : > { %v1510_v4 = vsub.f32 %v1353_v19, %v1471_v43 }
 0x2fb   : > { %v1360_v27 = vpop.f32.mrf.mxu1 }
 0x2fc   : > { %v1519_v46 = vadd.f32 %v1468_v22, %v1360_v27  ;;  %v1512_v33 = vmul.f32 %v1510_v4, %v3584_v10 }
 0x2fe   : > { %v1521_v59 = vmul.f32 %v1519_v46, %v3586_v24 }
 0x2ff   : > { %v1378_v56 = vpop.f32.mrf.mxu3 }
 0x300   : > { %v2683_v12 = vpack.c.bf16 %v1521_v59, %v1520_v58 }
 0x301   : > { %v1473_v57 = vpop.f32.mrf.mxu2 }
 0x302   : > { %2722 = vst [vmem:[#allocation2] sm:$0xff] %v2683_v12   ;;  %v1511_v13 = vsub.f32 %v1355_v16, %v1473_v57 }
 0x303   : > { %v1363_v32 = vpop.f32.mrf.mxu1 }
 0x304   : > { %v1513_v0 = vmul.f32 %v1511_v13, %v3586_v24 }
 0x306   : > { %v2678_v34 = vpack.c.bf16 %v1513_v0, %v1512_v33 }
 0x307   : > { %v1380_v1 = vpop.f32.mrf.mxu3 }
 0x308   : > { %2679 = vst [vmem:[#allocation2 + $0x30] sm:$0xff] %v2678_v34  }
 0x309   : > { %v1476_v38 = vpop.f32.mrf.mxu2 }
 0x30b   : > { %v1365_v39 = vpop.f32.mrf.mxu1 }
 0x30f   : > { %v1383_v19 = vpop.f32.mrf.mxu3 }
 0x311   : > { %v1478_v41 = vpop.f32.mrf.mxu2 }
 0x313   : > { %v1368_v26 = vpop.f32.mrf.mxu1 }
 0x314   : > { %v1534_v50 = vadd.f32 %v1476_v38, %v1368_v26 }
 0x316   : > { %v1536_v31 = vmul.f32 %v1534_v50, %v3584_v10 }
 0x317   : > { %v1385_v23 = vpop.f32.mrf.mxu3 }
 0x319   : > { %v1481_v47 = vpop.f32.mrf.mxu2 }
 0x31a   : > { %v1526_v7 = vsub.f32 %v1363_v32, %v1481_v47 }
 0x31b   : > { %v1370_v51 = vpop.f32.mrf.mxu1 }
 0x31c   : > { %v1535_v52 = vadd.f32 %v1478_v41, %v1370_v51  ;;  %v1528_v35 = vmul.f32 %v1526_v7, %v3584_v10  ;;  %v2612_v7 = vld [vmem:[#allocation2] sm:$0xff] }
 0x31e   : > { %v1537_v3 = vmul.f32 %v1535_v52, %v3586_v24 }
 0x31f   : > { %v1388_v59 = vpop.f32.mrf.mxu3 }
 0x320   : > { %v2693_v60 = vpack.c.bf16 %v1537_v3, %v1536_v31 }
 0x321   : > { %v1483_v62 = vpop.f32.mrf.mxu2 }
 0x322   : > { %2724 = vst [vmem:[#allocation2 + $0x10] sm:$0xff] %v2693_v60   ;;  %v1527_v63 = vsub.f32 %v1365_v39, %v1483_v62  ;;  %v2611_v60 = vld [vmem:[#allocation2 + $0x30] sm:$0xff] }
 0x323   : > { %v2605_v62 = vld [vmem:[%s3738_s6 + $0x10] sm:$0xff] }
 0x324   : > { %v1529_v9 = vmul.f32 %v1527_v63, %v3586_v24  ;;  %v2606_v63 = vld [vmem:[%s3738_s6 + $0x18] sm:$0xff] }
 0x326   : > { %v2688_v36 = vpack.c.bf16 %v1529_v9, %v1528_v35  ;;  %v2607_v35 = vld [vmem:[%s3738_s6 + $0x20] sm:$0xff]  ;;  %v2626_v9 = vld [vmem:[%s3739_s7 + $0x38] sm:$0xff] }
 0x327   : > { %v1390_v57 = vpop.f32.mrf.mxu3  ;;  %1823 = vmatpush.bf16.msrb.mxu0 %v2626_v9 }
 0x328   : > { %2723 = vst [vmem:[#allocation2 + $0x18] sm:$0xff] %v2688_v36   ;;  %v2634_v36 = vld [vmem:[%s3740_s8 + $0x38] sm:$0xff] }
 0x329   : > { %v1486_v8 = vpop.f32.mrf.mxu2  ;;  %v2614_v3 = vld [vmem:[#allocation2 + $0x10] sm:$0xff]  ;;  %1936 = vmatpush.bf16.msrb.mxu1 %v2634_v36 }
 0x32a   : > { %v1550_v2 = vadd.f32 %v1486_v8, %v1378_v56  ;;  %v2625_v8 = vld [vmem:[%s3739_s7 + $0x30] sm:$0xff] }
 0x32b   : > { %1824 = vmatpush.bf16.msrb.mxu0 %v2625_v8 }
 0x32c   : > { %v1552_v15 = vmul.f32 %v1550_v2, %v3584_v10  ;;  %v2633_v2 = vld [vmem:[%s3740_s8 + $0x30] sm:$0xff] }
 0x32d   : > { %1937 = vmatpush.bf16.msrb.mxu1 %v2633_v2 }
 0x32f   : > { %v2613_v56 = vld [vmem:[#allocation2 + $0x18] sm:$0xff] }
 0x331   : > { %v1488_v5 = vpop.f32.mrf.mxu2 }
 0x332   : > { %v1551_v18 = vadd.f32 %v1488_v5, %v1380_v1  ;;  %v2608_v1 = vld [vmem:[%s3738_s6 + $0x28] sm:$0xff] }
 0x333   : > { %v2624_v5 = vld [vmem:[%s3739_s7 + $0x28] sm:$0xff] }
 0x334   : > { %v1553_v16 = vmul.f32 %v1551_v18, %v3586_v24  ;;  %v2632_v18 = vld [vmem:[%s3740_s8 + $0x28] sm:$0xff]  ;;  %1825 = vmatpush.bf16.msrb.mxu0 %v2624_v5 }
 0x335   : > { %1938 = vmatpush.bf16.msrb.mxu1 %v2632_v18 }
 0x336   : > { %v2703_v22 = vpack.c.bf16 %v1553_v16, %v1552_v15  ;;  %v2631_v15 = vld [vmem:[%s3740_s8 + $0x20] sm:$0xff]  ;;  %v2622_v16 = vld [vmem:[%s3739_s7 + $0x18] sm:$0xff] }
 0x338   : > { %2726 = vst [vmem:[#allocation2 + $0x20] sm:$0xff] %v2703_v22   ;;  %v2630_v22 = vld [vmem:[%s3740_s8 + $0x18] sm:$0xff] }
 0x339   : > { %v1491_v55 = vpop.f32.mrf.mxu2  ;;  %1939 = vmatpush.bf16.msrb.mxu1 %v2631_v15 }
 0x33a   : > { %v1542_v11 = vsub.f32 %v1373_v40, %v1491_v55  ;;  %v2609_v55 = vld [vmem:[%s3738_s6 + $0x30] sm:$0xff] }
 0x33c   : > { %v1544_v27 = vmul.f32 %v1542_v11, %v3584_v10  ;;  %v2629_v11 = vld [vmem:[%s3740_s8 + $0x10] sm:$0xff] }
 0x33d   : > { %1940 = vmatpush.bf16.msrb.mxu1 %v2630_v22 }
 0x33f   : > { %v2616_v52 = vld [vmem:[#allocation2 + $0x20] sm:$0xff] }
 0x341   : > { %v1493_v43 = vpop.f32.mrf.mxu2  ;;  %1941 = vmatpush.bf16.msrb.mxu1 %v2629_v11 }
 0x342   : > { %v1543_v21 = vsub.f32 %v1375_v44, %v1493_v43  ;;  %v2620_v43 = vld [vmem:[%s3739_s7 + $0x8] sm:$0xff] }
 0x344   : > { %v1545_v46 = vmul.f32 %v1543_v21, %v3586_v24  ;;  %v2628_v21 = vld [vmem:[%s3740_s8 + $0x8] sm:$0xff] }
 0x345   : > { %1942 = vmatpush.bf16.msrb.mxu1 %v2628_v21 }
 0x346   : > { %v2698_v58 = vpack.c.bf16 %v1545_v46, %v1544_v27  ;;  %v2619_v27 = vld [vmem:[%s3739_s7] sm:$0xff] }
 0x347   : > { %v2627_v46 = vld [vmem:[%s3740_s8] sm:$0xff] }
 0x348   : > { %2725 = vst [vmem:[#allocation2 + $0x8] sm:$0xff] %v2698_v58   ;;  %v2610_v58 = vld [vmem:[%s3738_s6 + $0x38] sm:$0xff] }
 0x349   : > { %v1496_v4 = vpop.f32.mrf.mxu2  ;;  %1943 = vmatpush.bf16.msrb.mxu1 %v2627_v46 }
 0x34a   : > { %v1566_v12 = vadd.f32 %v1496_v4, %v1388_v59 }
 0x34c   : > { %v1568_v33 = vmul.f32 %v1566_v12, %v3584_v10 }
 0x34f   : > { %v2615_v31 = vld [vmem:[#allocation2 + $0x8] sm:$0xff] }
 0x351   : > { %v1498_v13 = vpop.f32.mrf.mxu2 }
 0x352   : > { %v1567_v32 = vadd.f32 %v1498_v13, %v1390_v57 }
 0x354   : > { %v1569_v0 = vmul.f32 %v1567_v32, %v3586_v24 }
 0x356   : > { %v2713_v34 = vpack.c.bf16 %v1569_v0, %v1568_v33 }
 0x358   : > { %2728 = vst [vmem:[#allocation2 + $0x38] sm:$0xff] %v2713_v34  }
 0x359   : > { %v1501_v38 = vpop.f32.mrf.mxu2 }
 0x35a   : > { %v1558_v40 = vsub.f32 %v1383_v19, %v1501_v38  ;;  %v2623_v19 = vld [vmem:[%s3739_s7 + $0x20] sm:$0xff] }
 0x35b   : > { %1826 = vmatpush.bf16.msrb.mxu0 %v2623_v19 }
 0x35c   : > { %v1560_v44 = vmul.f32 %v1558_v40, %v3584_v10  ;;  %v2603_v10 = vld [vmem:[%s3738_s6] sm:$0xff] }
 0x35f   : > { %v2618_v39 = vld [vmem:[#allocation2 + $0x38] sm:$0xff]  ;;  %1827 = vmatpush.bf16.msrb.mxu0 %v2622_v16 }
 0x360   : > { %1702 = vmatpush.bf16.msrb.mxu3 %v2618_v39 }
 0x361   : > { %v1503_v41 = vpop.f32.mrf.mxu2 }
 0x362   : > { %v1559_v26 = vsub.f32 %v1385_v23, %v1503_v41  ;;  %v2621_v23 = vld [vmem:[%s3739_s7 + $0x10] sm:$0xff] }
 0x363   : > { %1828 = vmatpush.bf16.msrb.mxu0 %v2621_v23 }
 0x364   : > { %v1561_v47 = vmul.f32 %v1559_v26, %v3586_v24  ;;  %v2604_v24 = vld [vmem:[%s3738_s6 + $0x8] sm:$0xff] }
 0x366   : > { %v2708_v50 = vpack.c.bf16 %v1561_v47, %v1560_v44 }
 0x367   : > { %1829 = vmatpush.bf16.msrb.mxu0 %v2620_v43 }
 0x368   : > { %2727 = vst [vmem:[#allocation2 + $0x28] sm:$0xff] %v2708_v50  }
 0x36b   : > { %1830 = vmatpush.bf16.msrb.mxu0 %v2619_v27 }
 0x36f   : > { %v2617_v51 = vld [vmem:[#allocation2 + $0x28] sm:$0xff] }
 0x370   : > { %1703 = vmatpush.bf16.msrb.mxu3 %v2617_v51 }
 0x374   : > { %1704 = vmatpush.bf16.msrb.mxu3 %v2616_v52 }
 0x378   : > { %1705 = vmatpush.bf16.msrb.mxu3 %v2615_v31 }
 0x37c   : > { %1706 = vmatpush.bf16.msrb.mxu3 %v2614_v3 }
 0x380   : > { %1707 = vmatpush.bf16.msrb.mxu3 %v2613_v56 }
 0x384   : > { %1708 = vmatpush.bf16.msrb.mxu3 %v2612_v7 }
 0x388   : > { %1709 = vmatpush.bf16.msrb.mxu3 %v2611_v60 }
 0x38b   : > { %1710 = vmatmul.bf16.vlgmr.msrb.gmra.mxu3 %v2603_v10 }
 0x39b   : > { %1715 = vmatmul.bf16.gmra.mxu3 %v2604_v24 }
 0x3ab   : > { %1720 = vmatmul.bf16.gmra.mxu3 %v2605_v62 }
 0x3bb   : > { %1725 = vmatmul.bf16.gmra.mxu3 %v2606_v63 }
 0x3cb   : > { %1730 = vmatmul.bf16.gmra.mxu3 %v2607_v35 }
 0x3db   : > { %1735 = vmatmul.bf16.gmra.mxu3 %v2608_v1 }
 0x3eb   : > { %1740 = vmatmul.bf16.gmra.mxu3 %v2609_v55 }
 0x3fb   : > { %1745 = vmatmul.bf16.gmra.mxu3 %v2610_v58 }
 0x40e   : > { %v1711_v59 = vpop.f32.mrf.mxu3 }
 0x416   : > { %v1713_v4 = vpop.f32.mrf.mxu3 }
 0x417   : > { %v1751_v12 = vpack.c.bf16 %v1713_v4, %v1711_v59 }
 0x419   : > { %1831 = vmatmul.bf16.vlgmr.msrb.gmra.mxu0 %v1751_v12  ;;  %1944 = vmatmul.bf16.vlgmr.msrb.gmra.mxu1 %v1751_v12 }
 0x41e   : > { %v1716_v57 = vpop.f32.mrf.mxu3 }
 0x426   : > { %v1718_v13 = vpop.f32.mrf.mxu3 }
 0x427   : > { %v1752_v32 = vpack.c.bf16 %v1718_v13, %v1716_v57 }
 0x429   : > { %1836 = vmatmul.bf16.gmra.mxu0 %v1752_v32  ;;  %1949 = vmatmul.bf16.gmra.mxu1 %v1752_v32 }
 0x42e   : > { %v1721_v33 = vpop.f32.mrf.mxu3 }
 0x436   : > { %v1723_v0 = vpop.f32.mrf.mxu3 }
 0x437   : > { %v1753_v34 = vpack.c.bf16 %v1723_v0, %v1721_v33 }
 0x439   : > { %1841 = vmatmul.bf16.gmra.mxu0 %v1753_v34  ;;  %1954 = vmatmul.bf16.gmra.mxu1 %v1753_v34 }
 0x43e   : > { %v1726_v38 = vpop.f32.mrf.mxu3 }
 0x446   : > { %v1728_v39 = vpop.f32.mrf.mxu3 }
 0x447   : > { %v1754_v40 = vpack.c.bf16 %v1728_v39, %v1726_v38 }
 0x449   : > { %1846 = vmatmul.bf16.gmra.mxu0 %v1754_v40  ;;  %1959 = vmatmul.bf16.gmra.mxu1 %v1754_v40 }
 0x44e   : > { %v1731_v41 = vpop.f32.mrf.mxu3 }
 0x456   : > { %v1733_v26 = vpop.f32.mrf.mxu3 }
 0x457   : > { %v1755_v44 = vpack.c.bf16 %v1733_v26, %v1731_v41 }
 0x459   : > { %1851 = vmatmul.bf16.gmra.mxu0 %v1755_v44  ;;  %1964 = vmatmul.bf16.gmra.mxu1 %v1755_v44 }
 0x45e   : > { %v1736_v47 = vpop.f32.mrf.mxu3 }
 0x466   : > { %v1738_v50 = vpop.f32.mrf.mxu3 }
 0x467   : > { %v1756_v51 = vpack.c.bf16 %v1738_v50, %v1736_v47 }
 0x469   : > { %1856 = vmatmul.bf16.gmra.mxu0 %v1756_v51  ;;  %1969 = vmatmul.bf16.gmra.mxu1 %v1756_v51 }
 0x46e   : > { %v1741_v52 = vpop.f32.mrf.mxu3 }
 0x476   : > { %v1743_v31 = vpop.f32.mrf.mxu3 }
 0x477   : > { %v1757_v3 = vpack.c.bf16 %v1743_v31, %v1741_v52 }
 0x479   : > { %1861 = vmatmul.bf16.gmra.mxu0 %v1757_v3  ;;  %1974 = vmatmul.bf16.gmra.mxu1 %v1757_v3 }
 0x47e   : > { %v1746_v56 = vpop.f32.mrf.mxu3 }
 0x486   : > { %v1748_v7 = vpop.f32.mrf.mxu3 }
 0x487   : > { %v1758_v60 = vpack.c.bf16 %v1748_v7, %v1746_v56 }
 0x489   : > { %1866 = vmatmul.bf16.gmra.mxu0 %v1758_v60  ;;  %1979 = vmatmul.bf16.gmra.mxu1 %v1758_v60 }
 0x496   : > { %v1832_v10 = vpop.f32.mrf.mxu0  ;;  %v1945_v24 = vpop.f32.mrf.mxu1 }
 0x49e   : > { %v1834_v62 = vpop.f32.mrf.mxu0  ;;  %v1947_v63 = vpop.f32.mrf.mxu1 }
 0x4a6   : > { %v1837_v35 = vpop.f32.mrf.mxu0  ;;  %v1950_v9 = vpop.f32.mrf.mxu1 }
 0x4a7   : > { %v1987_v36 = vsub.f32 %v1837_v35, %v1945_v24  ;;  %v1985_v1 = vadd.f32 %v1950_v9, %v1832_v10 }
 0x4a9   : > { %v1993_v8 = vmul.f32 %v1987_v36, %v3486_v48  ;;  %v1997_v2 = vmul.f32 %v1987_v36, %v3482_v45  ;;  %v1989_v5 = vmul.f32 %v1985_v1, %v3482_v45  ;;  %v2001_v18 = vmul.f32 %v1985_v1, %v3486_v48 }
 0x4ab   : > { %v1995_v19 = vadd.f32 %v1993_v8, %v1989_v5  ;;  %v2003_v15 = vsub.f32 %v1997_v2, %v2001_v18 }
 0x4ae   : > { %v1839_v16 = vpop.f32.mrf.mxu0  ;;  %v1952_v22 = vpop.f32.mrf.mxu1 }
 0x4af   : > { %v1988_v55 = vsub.f32 %v1839_v16, %v1947_v63  ;;  %v1986_v23 = vadd.f32 %v1952_v22, %v1834_v62 }
 0x4b1   : > { %v1994_v11 = vmul.f32 %v1988_v55, %v3501_v37  ;;  %v1998_v43 = vmul.f32 %v1988_v55, %v3489_v49  ;;  %v1990_v21 = vmul.f32 %v1986_v23, %v3489_v49  ;;  %v2002_v27 = vmul.f32 %v1986_v23, %v3501_v37 }
 0x4b3   : > { %v1996_v46 = vadd.f32 %v1994_v11, %v1990_v21  ;;  %v2004_v58 = vsub.f32 %v1998_v43, %v2002_v27 }
 0x4b6   : > { %v1842_v59 = vpop.f32.mrf.mxu0  ;;  %v1955_v45 = vpop.f32.mrf.mxu1 }
 0x4be   : > { %v1844_v4 = vpop.f32.mrf.mxu0  ;;  %v1957_v48 = vpop.f32.mrf.mxu1 }
 0x4c6   : > { %v1847_v12 = vpop.f32.mrf.mxu0  ;;  %v1960_v57 = vpop.f32.mrf.mxu1 }
 0x4c7   : > { %v2007_v13 = vsub.f32 %v1847_v12, %v1955_v45  ;;  %v2005_v32 = vadd.f32 %v1960_v57, %v1842_v59 }
 0x4c9   : > { %v2017_v33 = vmul.f32 %v2007_v13, %v3425_v30  ;;  %v2009_v0 = vmul.f32 %v2005_v32, %v3425_v30  ;;  %v2013_v34 = vmul.f32 %v2007_v13, %v3442_v28  ;;  %v2021_v37 = vmul.f32 %v2005_v32, %v3442_v28 }
 0x4cb   : > { %v2019_v38 = vadd.f32 %v2017_v33, %v2003_v15  ;;  %v2011_v49 = vadd.f32 %v2009_v0, %v1995_v19 }
 0x4cd   : > { %v2023_v39 = vsub.f32 %v2019_v38, %v2021_v37  ;;  %v2015_v40 = vadd.f32 %v2013_v34, %v2011_v49 }
 0x4ce   : > { %v1849_v41 = vpop.f32.mrf.mxu0  ;;  %v1962_v26 = vpop.f32.mrf.mxu1 }
 0x4cf   : > { %v2008_v44 = vsub.f32 %v1849_v41, %v1957_v48  ;;  %v2006_v47 = vadd.f32 %v1962_v26, %v1844_v4 }
 0x4d1   : > { %v2018_v50 = vmul.f32 %v2008_v44, %v3445_v29  ;;  %v2010_v51 = vmul.f32 %v2006_v47, %v3445_v29  ;;  %v2014_v52 = vmul.f32 %v2008_v44, %v3428_v20  ;;  %v2022_v3 = vmul.f32 %v2006_v47, %v3428_v20 }
 0x4d3   : > { %v2020_v31 = vadd.f32 %v2018_v50, %v2004_v58  ;;  %v2012_v30 = vadd.f32 %v2010_v51, %v1996_v46 }
 0x4d5   : > { %v2024_v56 = vsub.f32 %v2020_v31, %v2022_v3  ;;  %v2016_v7 = vadd.f32 %v2014_v52, %v2012_v30 }
 0x4d6   : > { %v1852_v60 = vpop.f32.mrf.mxu0  ;;  %v1965_v28 = vpop.f32.mrf.mxu1 }
 0x4de   : > { %v1854_v10 = vpop.f32.mrf.mxu0  ;;  %v1967_v24 = vpop.f32.mrf.mxu1 }
 0x4e6   : > { %v1857_v62 = vpop.f32.mrf.mxu0  ;;  %v1970_v63 = vpop.f32.mrf.mxu1 }
 0x4e7   : > { %v2027_v8 = vsub.f32 %v1857_v62, %v1965_v28  ;;  %v2025_v29 = vadd.f32 %v1970_v63, %v1852_v60 }
 0x4e9   : > { %v2037_v18 = vmul.f32 %v2027_v8, %v3334_v42  ;;  %v2029_v20 = vmul.f32 %v2025_v29, %v3334_v42  ;;  %v2033_v55 = vmul.f32 %v2027_v8, %v3357_v54  ;;  %v2041_v23 = vmul.f32 %v2025_v29, %v3357_v54 }
 0x4eb   : > { %v2039_v19 = vadd.f32 %v2037_v18, %v2023_v39  ;;  %v2031_v15 = vadd.f32 %v2029_v20, %v2015_v40 }
 0x4ed   : > { %v2043_v46 = vsub.f32 %v2039_v19, %v2041_v23  ;;  %v2035_v58 = vadd.f32 %v2033_v55, %v2031_v15 }
 0x4ee   : > { %v1859_v35 = vpop.f32.mrf.mxu0  ;;  %v1972_v9 = vpop.f32.mrf.mxu1 }
 0x4ef   : > { %v2028_v16 = vsub.f32 %v1859_v35, %v1967_v24  ;;  %v2026_v22 = vadd.f32 %v1972_v9, %v1854_v10 }
 0x4f1   : > { %v2038_v59 = vmul.f32 %v2028_v16, %v3331_v61  ;;  %v2030_v45 = vmul.f32 %v2026_v22, %v3331_v61  ;;  %v2034_v49 = vmul.f32 %v2028_v16, %v3354_v53  ;;  %v2042_v61 = vmul.f32 %v2026_v22, %v3354_v53 }
 0x4f3   : > { %v2040_v13 = vadd.f32 %v2038_v59, %v2024_v56  ;;  %v2032_v32 = vadd.f32 %v2030_v45, %v2016_v7 }
 0x4f5   : > { %v2044_v39 = vsub.f32 %v2040_v13, %v2042_v61 }
 0x4f6   : > { %v1862_v36 = vpop.f32.mrf.mxu0  ;;  %v1975_v1 = vpop.f32.mrf.mxu1 }
 0x4fe   : > { %v1864_v2 = vpop.f32.mrf.mxu0  ;;  %v1977_v5 = vpop.f32.mrf.mxu1 }
 0x506   : > { %v1867_v11 = vpop.f32.mrf.mxu0  ;;  %v1980_v43 = vpop.f32.mrf.mxu1 }
 0x507   : > { %v2047_v21 = vsub.f32 %v1867_v11, %v1975_v1  ;;  %v2045_v27 = vadd.f32 %v1980_v43, %v1862_v36 }
 0x509   : > { %v2057_v42 = vmul.f32 %v2047_v21, %v3173_v6  ;;  %v2049_v4 = vmul.f32 %v2045_v27, %v3173_v6  ;;  %v2053_v48 = vmul.f32 %v2047_v21, %v3183_v14  ;;  %v2061_v57 = vmul.f32 %v2045_v27, %v3183_v14 }
 0x50a   : > { %v2036_v14 = vadd.f32 %v2034_v49, %v2032_v32 }
 0x50b   : > { %v2059_v12 = vadd.f32 %v2057_v42, %v2043_v46  ;;  %v2051_v54 = vadd.f32 %v2049_v4, %v2035_v58 }
 0x50d   : > { %v2055_v33 = vadd.f32 %v2053_v48, %v2051_v54  ;;  %v2063_v0 = vsub.f32 %v2059_v12, %v2061_v57 }
 0x50e   : > { %v1869_v34 = vpop.f32.mrf.mxu0  ;;  %v1982_v38 = vpop.f32.mrf.mxu1 }
 0x50f   : > { %2065 = vst [vmem:[%s511_s26] sm:$0xff] %v2055_v33  ;;  %v2048_v6 = vsub.f32 %v1869_v34, %v1977_v5  ;;  %v2046_v37 = vadd.f32 %v1982_v38, %v1864_v2 }
 0x510   : > { %2067 = vst [vmem:[%s517_s23] sm:$0xff] %v2063_v0 }
 0x511   : > { %v2058_v40 = vmul.f32 %v2048_v6, %v3194_v17  ;;  %v2050_v41 = vmul.f32 %v2046_v37, %v3194_v17  ;;  %v2054_v26 = vmul.f32 %v2048_v6, %v3211_v25  ;;  %v2062_v50 = vmul.f32 %v2046_v37, %v3211_v25 }
 0x513   : > { %v2060_v44 = vadd.f32 %v2058_v40, %v2044_v39  ;;  %v2052_v47 = vadd.f32 %v2050_v41, %v2036_v14 }
 0x514   : > { %2079 = sbr.rel (!%p2897_p5) target bundleno = 1312 (0x520), region = 174 }
 0x515   : > { %v2056_v51 = vadd.f32 %v2054_v26, %v2052_v47  ;;  %v2064_v53 = vsub.f32 %v2060_v44, %v2062_v50 }
 0x516   : > { %v2112_v52 = vld [vmem:[%s511_s26] sm:$0xff] (%p2897_p5) }
 0x517   : > { %2066 = vst [vmem:[%s511_s26 + $0x8] sm:$0xff] %v2056_v51 }
 0x518   : > { %2068 = vst [vmem:[%s517_s23 + $0x8] sm:$0xff] %v2064_v53 }
 0x519   : > { %2113 = vst [vmem:[%s2081_s29] sm:$0xff] %v2112_v52 }
 0x51e   : > { %v2114_v31 = vld [vmem:[%s511_s26 + $0x8] sm:$0xff] }
 0x51f   : > { %2115 = vst [vmem:[%s2081_s29 + $0x10] sm:$0xff] %v2114_v31 }
 0x520 PF: > { %2121 = sbr.rel (!%p2897_p5) target bundleno = 1320 (0x528), region = 212  ;;  %s2568_s30 = sshll.u32 (%p2897_p5), %s2878_s16, 3  ;;  %v2154_v17 = vld [vmem:[%s517_s23] sm:$0xff] (%p2897_p5) }
 0x521   : > { %s2123_s27 = scalar_lea.vmem (%p2897_p5), %s3742_s10, %s2568_s30 }
 0x522   : > { %2155 = vst [vmem:[%s2123_s27] sm:$0xff] (%p2897_p5), %v2154_v17 }
 0x526   : > { %v2156_v25 = vld [vmem:[%s517_s23 + $0x8] sm:$0xff] }
 0x527   : > { %2157 = vst [vmem:[%s2123_s27 + $0x10] sm:$0xff] %v2156_v25 }
 0x528 PF: > { %p18_p10 = scmp.ge.s32.totalorder %s2881_s17, 4   ;;  %s3745_s13 = smov %s2794_s14 }
 0x529   : > { %s3746_s14 = smov %s2891_s20  ;;  %s3747_s15 = smov %s2881_s17 }
 0x52a   :  { %20 = sbr.rel (!%p18_p10) target bundleno = 2 (0x2), region = 315 }

// kernel: custom-call.6
= control target key start
LH: loop header
LB: loop body
LE: loop exit
PB: predicated region body
PF: predicated region fallthrough
CT: control target
= control target key end

     0   :  { %s105_s0 = inlined_call_operand.vmem [shape: f32[1,2,16,16], index: 0, kind: input, shape index: {}]   ;;  %s106_s1 = inlined_call_operand.vmem [shape: f32[1,2,16,16], index: 1, kind: input, shape index: {}]   ;;  %s107_s2 = inlined_call_operand.hbm [shape: c64[1,2,16,16], index: 2, kind: output, shape index: {}]  }
   0x1   :  { %s3_s11 = scalar_lea.hbm %s107_s2, 32 }
   0x2   :  { %4 = vsyncpa [#allocation0], 0  ;;  %s6_s14 = sshll.u32 %s105_s0, 4  ;;  %s8_s17 = sshll.u32 %s107_s2, 4  ;;  %s7_s14 = int_to_ptr.vmem [resolvable:$true] %s6_s14  ;;  %s9_s17 = int_to_ptr.hbm [resolvable:$true] %s8_s17 }
   0x3   :  { %11 = dma.vmem_to_hbm [thread:$0]  %s7_s14, 512, %s9_s17, [#allocation0] }
   0x4   :  { %74 = dma.done.wait [#allocation0], 512  }
   0x5   :  { %75 = vsyncadd [#allocation0], 4294966784 }
   0x6   :  { %14 = vsyncpa [#allocation0], 1 }
   0x7   :  { %15 = vsyncpa [#allocation1], 0  ;;  %s17_s20 = sshll.u32 %s106_s1, 4  ;;  %s19_s21 = sshll.u32 %s3_s11, 4  ;;  %s18_s20 = int_to_ptr.vmem [resolvable:$true] %s17_s20  ;;  %s20_s21 = int_to_ptr.hbm [resolvable:$true] %s19_s21 }
   0x8   :  { %22 = dma.vmem_to_hbm [thread:$0]  %s18_s20, 512, %s20_s21, [#allocation1] }
   0x9   :  { %76 = dma.done.wait [#allocation1], 512  }
   0xa   :  { %77 = vsyncadd [#allocation1], 4294966784 }
   0xb   :  { %25 = vsyncpa [#allocation1], 1 }

</bundles_post_ra>
